<compile_context>
chip_gen: v5e
topology: v5e:2x2
jax: 0.10.0
libtpu: 0.0.40
codegen_flags: <defaults>
</compile_context>

<pallas_src>
from functools import partial

import jax
import jax.numpy as jnp
import numpy as np
from jax.experimental import pallas as pl
from jax.experimental.pallas import tpu as pltpu

_LANE = 128
_SUB = 8


def _round_up(x, m):
    return (x + m - 1) // m * m


def _pick_tm(m, cap=512):
    """Largest row tile that divides m (multiple of 8, <= cap); full-m fallback.

    Always returns a divisor of m, so grid = m // tm never drops a tail row.
    """
    if m <= cap:
        return m
    for cand in range(cap - cap % _SUB, _SUB - 1, -_SUB):
        if m % cand == 0:
            return cand
    return m          # no nice divisor: single full-m tile (always correct)


def _pick_tn(n):
    """Split N into two lane-aligned tiles when possible so the N grid axis has
    >= 2 'parallel' steps (feeds v7x's 2nd TensorCore); whole-N otherwise."""
    if n >= 256 and (n // 2) % _LANE == 0:
        return n // 2
    return n


# ----------------------------------------------------------------------------
# Pallas kernel: out = act(x @ w + b), single K step per output tile
# ----------------------------------------------------------------------------
def _matmul_bias_kernel(x_ref, w_ref, b_ref, o_ref, *, relu):
    # Full-K contraction in one shot: no accumulator scratch, no init/finalize.
    y = jnp.dot(x_ref[...], w_ref[...], preferred_element_type=jnp.float32)
    y = y + b_ref[...]                      # bias-add (and ReLU) in f32
    if relu:
        y = jnp.maximum(y, 0.0)
    o_ref[...] = y.astype(o_ref.dtype)


def matmul_bias(x, w, b, *, relu, out_dtype=jnp.float32):
    """out = act(x @ w + b).  x:(M,K), w:(K,N) bf16, b:(1,N) f32.

    K must be a multiple of 128 (padded once at init / patch-build time).
    Grid is (M tiles, N tiles) only; the whole K is contracted per tile.
    """
    m, k = x.shape
    k2, n = w.shape
    assert k == k2 and k % _LANE == 0, (k, k2)
    assert b.shape == (1, n), b.shape
    if x.dtype != jnp.bfloat16:
        x = x.astype(jnp.bfloat16)

    tm = _pick_tm(m)
    tn = _pick_tn(n)
    assert m % tm == 0 and n % tn == 0, (m, tm, n, tn)
    grid = (m // tm, n // tn)

    return pl.pallas_call(
        partial(_matmul_bias_kernel, relu=relu),
        out_shape=jax.ShapeDtypeStruct((m, n), out_dtype),
        grid_spec=pltpu.PrefetchScalarGridSpec(
            num_scalar_prefetch=0,
            grid=grid,
            in_specs=[
                pl.BlockSpec((tm, k), lambda i, j: (i, 0)),
                pl.BlockSpec((k, tn), lambda i, j: (0, j)),
                pl.BlockSpec((1, tn), lambda i, j: (0, j)),
            ],
            out_specs=pl.BlockSpec((tm, tn), lambda i, j: (i, j)),
        ),
        compiler_params=pltpu.CompilerParams(
            dimension_semantics=("parallel", "parallel")),
    )(x, w, b)


# ----------------------------------------------------------------------------
# NHWC conv = one fused patch-extraction op + one Pallas matmul
# ----------------------------------------------------------------------------
def conv2d_nhwc(x, wm, b, k, stride, *, out_dtype=jnp.bfloat16):
    """VALID NHWC conv.  Patch features are ordered (c, kh, kw); `wm` rows match.

    TODO(synk): fold this patch extraction into the kernel as a shifted-matmul
    accumulation over (kh, kw) and fuse the whole tower into one pallas_call.
    """
    bsz = x.shape[0]
    patches = jax.lax.conv_general_dilated_patches(
        x, filter_shape=(k, k), window_strides=(stride, stride),
        padding="VALID", dimension_numbers=("NHWC", "HWIO", "NHWC"))
    _, ho, wo, f = patches.shape
    p2 = patches.reshape(bsz * ho * wo, f)
    kp = wm.shape[0]
    if kp != f:                            # im2col K padded to a multiple of 128
        p2 = jnp.pad(p2, ((0, 0), (0, kp - f)))
    y = matmul_bias(p2, wm, b, relu=True, out_dtype=out_dtype)
    return y.reshape(bsz, ho, wo, -1)


# ----------------------------------------------------------------------------
# Parameter init (PyTorch-default-style bounds) + one-time kernel-layout prep
# ----------------------------------------------------------------------------
def init_raw_params(key, action_dim, in_channels=4):
    def uni(k, shape, fan_in):
        bound = 1.0 / np.sqrt(fan_in)
        return jax.random.uniform(k, shape, jnp.float32, -bound, bound)

    ks = jax.random.split(key, 10)
    return {
        "w1": uni(ks[0], (32, in_channels, 8, 8), in_channels * 8 * 8),
        "b1": uni(ks[1], (32,), in_channels * 8 * 8),
        "w2": uni(ks[2], (64, 32, 4, 4), 32 * 4 * 4),
        "b2": uni(ks[3], (64,), 32 * 4 * 4),
        "w3": uni(ks[4], (64, 64, 3, 3), 64 * 3 * 3),
        "b3": uni(ks[5], (64,), 64 * 3 * 3),
        "w4": uni(ks[6], (512, 7 * 7 * 64), 7 * 7 * 64),   # nn.Linear: (out, in)
        "b4": uni(ks[7], (512,), 7 * 7 * 64),
        "w5": uni(ks[8], (action_dim, 512), 512),
        "b5": uni(ks[9], (action_dim,), 512),
    }


def _prep_conv(w, b, *, scale=None):
    """(Cout,Cin,k,k) -> ((round_up_128(Cin*k*k), Cout) bf16, (1,Cout) f32).

    Rows ordered (c, kh, kw) to match conv_general_dilated_patches; zero rows
    pad K up to a multiple of 128.  `scale` folds a constant input scale in.
    """
    cout, cin, k, _ = w.shape
    if scale is not None:
        w = w * scale
    wm = jnp.transpose(w, (1, 2, 3, 0)).reshape(cin * k * k, cout)
    kp = _round_up(cin * k * k, _LANE)
    if kp != wm.shape[0]:
        wm = jnp.pad(wm, ((0, kp - wm.shape[0]), (0, 0)))
    return wm.astype(jnp.bfloat16), b.reshape(1, cout).astype(jnp.float32)


def prepare_params(raw, action_dim):
    p = {}
    # x/255 is folded into conv1's weight (bias unscaled, as in PyTorch).
    p["w1"], p["b1"] = _prep_conv(raw["w1"], raw["b1"], scale=1.0 / 255.0)  # K=256
    p["w2"], p["b2"] = _prep_conv(raw["w2"], raw["b2"])                     # K=512
    p["w3"], p["b3"] = _prep_conv(raw["w3"], raw["b3"])                     # K=576->640

    # fc4: PyTorch flattens (C,H,W); our activation flattens (H,W,C).
    w4 = raw["w4"].reshape(512, 64, 7, 7)            # (out, c, h, w)
    w4 = jnp.transpose(w4, (2, 3, 1, 0)).reshape(7 * 7 * 64, 512)
    kp = _round_up(7 * 7 * 64, _LANE)                # 3136 -> 3200
    p["w4"] = jnp.pad(w4, ((0, kp - 7 * 7 * 64), (0, 0))).astype(jnp.bfloat16)
    p["b4"] = raw["b4"].reshape(1, 512).astype(jnp.float32)

    # head: N padded to 128 for a lane-dense store; cropped in forward().
    npad = _round_up(max(action_dim, _LANE), _LANE)
    w5 = jnp.zeros((512, npad), jnp.float32).at[:, :action_dim].set(raw["w5"].T)
    p["w5"] = w5.astype(jnp.bfloat16)
    p["b5"] = jnp.zeros((1, npad), jnp.float32).at[:, :action_dim].set(raw["b5"])
    return p


# ----------------------------------------------------------------------------
# Forward pass (matches ConvolutionalQnet.forward)
# ----------------------------------------------------------------------------
def make_forward(action_dim):
    def forward(params, x):
        bsz = x.shape[0]
        # NCHW -> NHWC once; cast to bf16 once, before any patch extraction.
        x = jnp.transpose(x, (0, 2, 3, 1)).astype(jnp.bfloat16)
        x = conv2d_nhwc(x, params["w1"], params["b1"], k=8, stride=4)  # (B,20,20,32)
        x = conv2d_nhwc(x, params["w2"], params["b2"], k=4, stride=2)  # (B, 9, 9,64)
        x = conv2d_nhwc(x, params["w3"], params["b3"], k=3, stride=1)  # (B, 7, 7,64)
        # Flatten (H,W,C); the PyTorch (C,H,W) ordering is absorbed into w4.
        x = x.reshape(bsz, -1)                                         # (B, 3136)
        kp = params["w4"].shape[0]
        if kp != x.shape[1]:
            x = jnp.pad(x, ((0, 0), (0, kp - x.shape[1])))             # (B, 3200)
        x = matmul_bias(x, params["w4"], params["b4"], relu=True,
                        out_dtype=jnp.bfloat16)                        # (B, 512)
        q = matmul_bias(x, params["w5"], params["b5"], relu=False,
                        out_dtype=jnp.float32)                         # (B, 128)
        return q[:, :action_dim]
    return forward


# ----------------------------------------------------------------------------
# Pure-JAX f32 reference (PyTorch semantics) for a correctness check
# ----------------------------------------------------------------------------
def reference_forward(raw, x):
    x = x / 255.0

    def conv(x, w, b, stride):
        y = jax.lax.conv_general_dilated(
            x, w, window_strides=(stride, stride), padding="VALID",
            dimension_numbers=("NCHW", "OIHW", "NCHW"))
        return jax.nn.relu(y + b[None, :, None, None])

    x = conv(x, raw["w1"], raw["b1"], 4)
    x = conv(x, raw["w2"], raw["b2"], 2)
    x = conv(x, raw["w3"], raw["b3"], 1)
    x = x.reshape(x.shape[0], -1)                 # (B, C*H*W), PyTorch order
    x = jax.nn.relu(x @ raw["w4"].T + raw["b4"])
    return x @ raw["w5"].T + raw["b5"]


if __name__ == "__main__":
    action_dim = 6
    in_channels = 4
    batch = 2
    # Spatial size 84 is forced by fc4's 7*7*64 input (standard Atari DQN).
    key = jax.random.PRNGKey(0)
    k_x, k_p = jax.random.split(key)
    x = jax.random.uniform(k_x, (batch, in_channels, 84, 84), jnp.float32, 0.0, 255.0)

    raw = init_raw_params(k_p, action_dim, in_channels)
    params = prepare_params(raw, action_dim)      # one-time layout prep

    fwd = jax.jit(make_forward(action_dim))
    q_values = fwd(params, x)
    jax.block_until_ready(q_values)

    assert q_values.shape == (batch, action_dim), q_values.shape
    assert q_values.dtype == jnp.float32
    assert bool(jnp.all(jnp.isfinite(q_values)))

    q_ref = jax.jit(reference_forward)(raw, x)
    np.testing.assert_allclose(np.asarray(q_values), np.asarray(q_ref),
                               rtol=8e-2, atol=8e-2)   # bf16 MXU tolerance
    print("KERNEL_OK")
</pallas_src>

<mosaic_0001>
module attributes {stable_mosaic.version = 11 : i64} {
  func.func @_matmul_bias_kernel(%arg0: i32, %arg1: i32, %arg2: memref<400x256xbf16, #tpu.memory_space<vmem>>, %arg3: memref<256x32xbf16, #tpu.memory_space<vmem>>, %arg4: memref<1x32xf32, #tpu.memory_space<vmem>>, %arg5: memref<400x32xbf16, #tpu.memory_space<vmem>>) attributes {dimension_semantics = [#tpu.dimension_semantics<parallel>, #tpu.dimension_semantics<parallel>], iteration_bounds = array<i64: 2, 1>, scalar_prefetch = 0 : i64, scratch_operands = 0 : i64, tpu.core_type = #tpu.core_type<tc>, window_params = [{transform_indices = @transform_0, window_bounds = array<i64: 400, 256>}, {transform_indices = @transform_1, window_bounds = array<i64: 256, 32>}, {transform_indices = @transform_2, window_bounds = array<i64: 1, 32>}, {transform_indices = @transform_3, window_bounds = array<i64: 400, 32>}]} {
    %c0 = arith.constant 0 : index
    %c0_0 = arith.constant 0 : index
    %0 = vector.load %arg2[%c0, %c0_0] : memref<400x256xbf16, #tpu.memory_space<vmem>>, vector<400x256xbf16>
    %c0_1 = arith.constant 0 : index
    %c0_2 = arith.constant 0 : index
    %1 = vector.load %arg3[%c0_1, %c0_2] : memref<256x32xbf16, #tpu.memory_space<vmem>>, vector<256x32xbf16>
    %cst = arith.constant dense<0.000000e+00> : vector<400x32xf32>
    %2 = tpu.matmul %0, %1, %cst {dimension_numbers = #tpu.dot_dimension_numbers<[1], [0], [0], [1], [0, 0, 1, 1], [], []>} : vector<400x256xbf16>, vector<256x32xbf16>, vector<400x32xf32> -> vector<400x32xf32>
    %c0_3 = arith.constant 0 : index
    %c0_4 = arith.constant 0 : index
    %3 = vector.load %arg4[%c0_3, %c0_4] : memref<1x32xf32, #tpu.memory_space<vmem>>, vector<1x32xf32>
    %4 = vector.broadcast %3 : vector<1x32xf32> to vector<400x32xf32>
    %5 = arith.addf %2, %4 : vector<400x32xf32>
    %cst_5 = arith.constant 0.000000e+00 : f32
    %6 = vector.broadcast %cst_5 : f32 to vector<400x32xf32>
    %7 = arith.maximumf %5, %6 : vector<400x32xf32>
    %8 = arith.truncf %7 : vector<400x32xf32> to vector<400x32xbf16>
    %c0_6 = arith.constant 0 : index
    %c0_7 = arith.constant 0 : index
    %9 = vector.load %arg5[%c0_6, %c0_7] : memref<400x32xbf16, #tpu.memory_space<vmem>>, vector<400x32xbf16>
    tpu.vector_store %arg5[%c0_6, %c0_7], %8 {strides = array<i32>} : memref<400x32xbf16, #tpu.memory_space<vmem>>, vector<400x32xbf16>,
    return
  }
  func.func @transform_0(%arg0: i32, %arg1: i32) -> (i32, i32) {
    %c0_i32 = arith.constant 0 : i32
    %c0_i32_0 = arith.constant 0 : i32
    return %arg0, %c0_i32 : i32, i32
  }
  func.func @transform_1(%arg0: i32, %arg1: i32) -> (i32, i32) {
    %c0_i32 = arith.constant 0 : i32
    %c0_i32_0 = arith.constant 0 : i32
    return %c0_i32, %arg1 : i32, i32
  }
  func.func @transform_2(%arg0: i32, %arg1: i32) -> (i32, i32) {
    %c0_i32 = arith.constant 0 : i32
    %c0_i32_0 = arith.constant 0 : i32
    return %c0_i32, %arg1 : i32, i32
  }
  func.func @transform_3(%arg0: i32, %arg1: i32) -> (i32, i32) {
    %c0_i32 = arith.constant 0 : i32
    return %arg0, %arg1 : i32, i32
  }
}

module attributes {stable_mosaic.version = 11 : i64} {
  func.func @_matmul_bias_kernel(%arg0: i32, %arg1: i32, %arg2: memref<162x512xbf16, #tpu.memory_space<vmem>>, %arg3: memref<512x64xbf16, #tpu.memory_space<vmem>>, %arg4: memref<1x64xf32, #tpu.memory_space<vmem>>, %arg5: memref<162x64xbf16, #tpu.memory_space<vmem>>) attributes {dimension_semantics = [#tpu.dimension_semantics<parallel>, #tpu.dimension_semantics<parallel>], iteration_bounds = array<i64: 1, 1>, scalar_prefetch = 0 : i64, scratch_operands = 0 : i64, tpu.core_type = #tpu.core_type<tc>, window_params = [{transform_indices = @transform_0, window_bounds = array<i64: 162, 512>}, {transform_indices = @transform_1, window_bounds = array<i64: 512, 64>}, {transform_indices = @transform_2, window_bounds = array<i64: 1, 64>}, {transform_indices = @transform_3, window_bounds = array<i64: 162, 64>}]} {
    %c0 = arith.constant 0 : index
    %c0_0 = arith.constant 0 : index
    %0 = vector.load %arg2[%c0, %c0_0] : memref<162x512xbf16, #tpu.memory_space<vmem>>, vector<162x512xbf16>
    %c0_1 = arith.constant 0 : index
    %c0_2 = arith.constant 0 : index
    %1 = vector.load %arg3[%c0_1, %c0_2] : memref<512x64xbf16, #tpu.memory_space<vmem>>, vector<512x64xbf16>
    %cst = arith.constant dense<0.000000e+00> : vector<162x64xf32>
    %2 = tpu.matmul %0, %1, %cst {dimension_numbers = #tpu.dot_dimension_numbers<[1], [0], [0], [1], [0, 0, 1, 1], [], []>} : vector<162x512xbf16>, vector<512x64xbf16>, vector<162x64xf32> -> vector<162x64xf32>
    %c0_3 = arith.constant 0 : index
    %c0_4 = arith.constant 0 : index
    %3 = vector.load %arg4[%c0_3, %c0_4] : memref<1x64xf32, #tpu.memory_space<vmem>>, vector<1x64xf32>
    %4 = vector.broadcast %3 : vector<1x64xf32> to vector<162x64xf32>
    %5 = arith.addf %2, %4 : vector<162x64xf32>
    %cst_5 = arith.constant 0.000000e+00 : f32
    %6 = vector.broadcast %cst_5 : f32 to vector<162x64xf32>
    %7 = arith.maximumf %5, %6 : vector<162x64xf32>
    %8 = arith.truncf %7 : vector<162x64xf32> to vector<162x64xbf16>
    %c0_6 = arith.constant 0 : index
    %c0_7 = arith.constant 0 : index
    %9 = vector.load %arg5[%c0_6, %c0_7] : memref<162x64xbf16, #tpu.memory_space<vmem>>, vector<162x64xbf16>
    tpu.vector_store %arg5[%c0_6, %c0_7], %8 {strides = array<i32>} : memref<162x64xbf16, #tpu.memory_space<vmem>>, vector<162x64xbf16>,
    return
  }
  func.func @transform_0(%arg0: i32, %arg1: i32) -> (i32, i32) {
    %c0_i32 = arith.constant 0 : i32
    %c0_i32_0 = arith.constant 0 : i32
    return %arg0, %c0_i32 : i32, i32
  }
  func.func @transform_1(%arg0: i32, %arg1: i32) -> (i32, i32) {
    %c0_i32 = arith.constant 0 : i32
    %c0_i32_0 = arith.constant 0 : i32
    return %c0_i32, %arg1 : i32, i32
  }
  func.func @transform_2(%arg0: i32, %arg1: i32) -> (i32, i32) {
    %c0_i32 = arith.constant 0 : i32
    %c0_i32_0 = arith.constant 0 : i32
    return %c0_i32, %arg1 : i32, i32
  }
  func.func @transform_3(%arg0: i32, %arg1: i32) -> (i32, i32) {
    %c0_i32 = arith.constant 0 : i32
    return %arg0, %arg1 : i32, i32
  }
}

module attributes {stable_mosaic.version = 11 : i64} {
  func.func @_matmul_bias_kernel(%arg0: i32, %arg1: i32, %arg2: memref<98x640xbf16, #tpu.memory_space<vmem>>, %arg3: memref<640x64xbf16, #tpu.memory_space<vmem>>, %arg4: memref<1x64xf32, #tpu.memory_space<vmem>>, %arg5: memref<98x64xbf16, #tpu.memory_space<vmem>>) attributes {dimension_semantics = [#tpu.dimension_semantics<parallel>, #tpu.dimension_semantics<parallel>], iteration_bounds = array<i64: 1, 1>, scalar_prefetch = 0 : i64, scratch_operands = 0 : i64, tpu.core_type = #tpu.core_type<tc>, window_params = [{transform_indices = @transform_0, window_bounds = array<i64: 98, 640>}, {transform_indices = @transform_1, window_bounds = array<i64: 640, 64>}, {transform_indices = @transform_2, window_bounds = array<i64: 1, 64>}, {transform_indices = @transform_3, window_bounds = array<i64: 98, 64>}]} {
    %c0 = arith.constant 0 : index
    %c0_0 = arith.constant 0 : index
    %0 = vector.load %arg2[%c0, %c0_0] : memref<98x640xbf16, #tpu.memory_space<vmem>>, vector<98x640xbf16>
    %c0_1 = arith.constant 0 : index
    %c0_2 = arith.constant 0 : index
    %1 = vector.load %arg3[%c0_1, %c0_2] : memref<640x64xbf16, #tpu.memory_space<vmem>>, vector<640x64xbf16>
    %cst = arith.constant dense<0.000000e+00> : vector<98x64xf32>
    %2 = tpu.matmul %0, %1, %cst {dimension_numbers = #tpu.dot_dimension_numbers<[1], [0], [0], [1], [0, 0, 1, 1], [], []>} : vector<98x640xbf16>, vector<640x64xbf16>, vector<98x64xf32> -> vector<98x64xf32>
    %c0_3 = arith.constant 0 : index
    %c0_4 = arith.constant 0 : index
    %3 = vector.load %arg4[%c0_3, %c0_4] : memref<1x64xf32, #tpu.memory_space<vmem>>, vector<1x64xf32>
    %4 = vector.broadcast %3 : vector<1x64xf32> to vector<98x64xf32>
    %5 = arith.addf %2, %4 : vector<98x64xf32>
    %cst_5 = arith.constant 0.000000e+00 : f32
    %6 = vector.broadcast %cst_5 : f32 to vector<98x64xf32>
    %7 = arith.maximumf %5, %6 : vector<98x64xf32>
    %8 = arith.truncf %7 : vector<98x64xf32> to vector<98x64xbf16>
    %c0_6 = arith.constant 0 : index
    %c0_7 = arith.constant 0 : index
    %9 = vector.load %arg5[%c0_6, %c0_7] : memref<98x64xbf16, #tpu.memory_space<vmem>>, vector<98x64xbf16>
    tpu.vector_store %arg5[%c0_6, %c0_7], %8 {strides = array<i32>} : memref<98x64xbf16, #tpu.memory_space<vmem>>, vector<98x64xbf16>,
    return
  }
  func.func @transform_0(%arg0: i32, %arg1: i32) -> (i32, i32) {
    %c0_i32 = arith.constant 0 : i32
    %c0_i32_0 = arith.constant 0 : i32
    return %arg0, %c0_i32 : i32, i32
  }
  func.func @transform_1(%arg0: i32, %arg1: i32) -> (i32, i32) {
    %c0_i32 = arith.constant 0 : i32
    %c0_i32_0 = arith.constant 0 : i32
    return %c0_i32, %arg1 : i32, i32
  }
  func.func @transform_2(%arg0: i32, %arg1: i32) -> (i32, i32) {
    %c0_i32 = arith.constant 0 : i32
    %c0_i32_0 = arith.constant 0 : i32
    return %c0_i32, %arg1 : i32, i32
  }
  func.func @transform_3(%arg0: i32, %arg1: i32) -> (i32, i32) {
    %c0_i32 = arith.constant 0 : i32
    return %arg0, %arg1 : i32, i32
  }
}

module attributes {stable_mosaic.version = 11 : i64} {
  func.func @_matmul_bias_kernel(%arg0: i32, %arg1: i32, %arg2: memref<2x3200xbf16, #tpu.memory_space<vmem>>, %arg3: memref<3200x256xbf16, #tpu.memory_space<vmem>>, %arg4: memref<1x256xf32, #tpu.memory_space<vmem>>, %arg5: memref<2x256xbf16, #tpu.memory_space<vmem>>) attributes {dimension_semantics = [#tpu.dimension_semantics<parallel>, #tpu.dimension_semantics<parallel>], iteration_bounds = array<i64: 1, 2>, scalar_prefetch = 0 : i64, scratch_operands = 0 : i64, tpu.core_type = #tpu.core_type<tc>, window_params = [{transform_indices = @transform_0, window_bounds = array<i64: 2, 3200>}, {transform_indices = @transform_1, window_bounds = array<i64: 3200, 256>}, {transform_indices = @transform_2, window_bounds = array<i64: 1, 256>}, {transform_indices = @transform_3, window_bounds = array<i64: 2, 256>}]} {
    %c0 = arith.constant 0 : index
    %c0_0 = arith.constant 0 : index
    %0 = vector.load %arg2[%c0, %c0_0] : memref<2x3200xbf16, #tpu.memory_space<vmem>>, vector<2x3200xbf16>
    %c0_1 = arith.constant 0 : index
    %c0_2 = arith.constant 0 : index
    %1 = vector.load %arg3[%c0_1, %c0_2] : memref<3200x256xbf16, #tpu.memory_space<vmem>>, vector<3200x256xbf16>
    %cst = arith.constant dense<0.000000e+00> : vector<2x256xf32>
    %2 = tpu.matmul %0, %1, %cst {dimension_numbers = #tpu.dot_dimension_numbers<[1], [0], [0], [1], [0, 0, 1, 1], [], []>} : vector<2x3200xbf16>, vector<3200x256xbf16>, vector<2x256xf32> -> vector<2x256xf32>
    %c0_3 = arith.constant 0 : index
    %c0_4 = arith.constant 0 : index
    %3 = vector.load %arg4[%c0_3, %c0_4] : memref<1x256xf32, #tpu.memory_space<vmem>>, vector<1x256xf32>
    %4 = vector.broadcast %3 : vector<1x256xf32> to vector<2x256xf32>
    %5 = arith.addf %2, %4 : vector<2x256xf32>
    %cst_5 = arith.constant 0.000000e+00 : f32
    %6 = vector.broadcast %cst_5 : f32 to vector<2x256xf32>
    %7 = arith.maximumf %5, %6 : vector<2x256xf32>
    %8 = arith.truncf %7 : vector<2x256xf32> to vector<2x256xbf16>
    %c0_6 = arith.constant 0 : index
    %c0_7 = arith.constant 0 : index
    %9 = vector.load %arg5[%c0_6, %c0_7] : memref<2x256xbf16, #tpu.memory_space<vmem>>, vector<2x256xbf16>
    tpu.vector_store %arg5[%c0_6, %c0_7], %8 {strides = array<i32>} : memref<2x256xbf16, #tpu.memory_space<vmem>>, vector<2x256xbf16>,
    return
  }
  func.func @transform_0(%arg0: i32, %arg1: i32) -> (i32, i32) {
    %c0_i32 = arith.constant 0 : i32
    %c0_i32_0 = arith.constant 0 : i32
    return %arg0, %c0_i32 : i32, i32
  }
  func.func @transform_1(%arg0: i32, %arg1: i32) -> (i32, i32) {
    %c0_i32 = arith.constant 0 : i32
    %c0_i32_0 = arith.constant 0 : i32
    return %c0_i32, %arg1 : i32, i32
  }
  func.func @transform_2(%arg0: i32, %arg1: i32) -> (i32, i32) {
    %c0_i32 = arith.constant 0 : i32
    %c0_i32_0 = arith.constant 0 : i32
    return %c0_i32, %arg1 : i32, i32
  }
  func.func @transform_3(%arg0: i32, %arg1: i32) -> (i32, i32) {
    %c0_i32 = arith.constant 0 : i32
    return %arg0, %arg1 : i32, i32
  }
}

module attributes {stable_mosaic.version = 11 : i64} {
  func.func @_matmul_bias_kernel(%arg0: i32, %arg1: i32, %arg2: memref<2x512xbf16, #tpu.memory_space<vmem>>, %arg3: memref<512x128xbf16, #tpu.memory_space<vmem>>, %arg4: memref<1x128xf32, #tpu.memory_space<vmem>>, %arg5: memref<2x128xf32, #tpu.memory_space<vmem>>) attributes {dimension_semantics = [#tpu.dimension_semantics<parallel>, #tpu.dimension_semantics<parallel>], iteration_bounds = array<i64: 1, 1>, scalar_prefetch = 0 : i64, scratch_operands = 0 : i64, tpu.core_type = #tpu.core_type<tc>, window_params = [{transform_indices = @transform_0, window_bounds = array<i64: 2, 512>}, {transform_indices = @transform_1, window_bounds = array<i64: 512, 128>}, {transform_indices = @transform_2, window_bounds = array<i64: 1, 128>}, {transform_indices = @transform_3, window_bounds = array<i64: 2, 128>}]} {
    %c0 = arith.constant 0 : index
    %c0_0 = arith.constant 0 : index
    %0 = vector.load %arg2[%c0, %c0_0] : memref<2x512xbf16, #tpu.memory_space<vmem>>, vector<2x512xbf16>
    %c0_1 = arith.constant 0 : index
    %c0_2 = arith.constant 0 : index
    %1 = vector.load %arg3[%c0_1, %c0_2] : memref<512x128xbf16, #tpu.memory_space<vmem>>, vector<512x128xbf16>
    %cst = arith.constant dense<0.000000e+00> : vector<2x128xf32>
    %2 = tpu.matmul %0, %1, %cst {dimension_numbers = #tpu.dot_dimension_numbers<[1], [0], [0], [1], [0, 0, 1, 1], [], []>} : vector<2x512xbf16>, vector<512x128xbf16>, vector<2x128xf32> -> vector<2x128xf32>
    %c0_3 = arith.constant 0 : index
    %c0_4 = arith.constant 0 : index
    %3 = vector.load %arg4[%c0_3, %c0_4] : memref<1x128xf32, #tpu.memory_space<vmem>>, vector<1x128xf32>
    %4 = vector.broadcast %3 : vector<1x128xf32> to vector<2x128xf32>
    %5 = arith.addf %2, %4 : vector<2x128xf32>
    %c0_5 = arith.constant 0 : index
    %c0_6 = arith.constant 0 : index
    %6 = vector.load %arg5[%c0_5, %c0_6] : memref<2x128xf32, #tpu.memory_space<vmem>>, vector<2x128xf32>
    tpu.vector_store %arg5[%c0_5, %c0_6], %5 {strides = array<i32>} : memref<2x128xf32, #tpu.memory_space<vmem>>, vector<2x128xf32>,
    return
  }
  func.func @transform_0(%arg0: i32, %arg1: i32) -> (i32, i32) {
    %c0_i32 = arith.constant 0 : i32
    %c0_i32_0 = arith.constant 0 : i32
    return %arg0, %c0_i32 : i32, i32
  }
  func.func @transform_1(%arg0: i32, %arg1: i32) -> (i32, i32) {
    %c0_i32 = arith.constant 0 : i32
    %c0_i32_0 = arith.constant 0 : i32
    return %c0_i32, %arg1 : i32, i32
  }
  func.func @transform_2(%arg0: i32, %arg1: i32) -> (i32, i32) {
    %c0_i32 = arith.constant 0 : i32
    %c0_i32_0 = arith.constant 0 : i32
    return %c0_i32, %arg1 : i32, i32
  }
  func.func @transform_3(%arg0: i32, %arg1: i32) -> (i32, i32) {
    %c0_i32 = arith.constant 0 : i32
    return %arg0, %arg1 : i32, i32
  }
}

</mosaic_0001>

<bundles_post_ra>
// kernel: forward.5
= control target key start
LH: loop header
LB: loop body
LE: loop exit
PB: predicated region body
PF: predicated region fallthrough
CT: control target
= control target key end

     0   :  { %s1609_s12 = smov 0   ;;  %s1611_s13 = smov 0   ;;  %s1962_s0 = inlined_call_operand.vmem [shape: bf16[800,256], index: 0, kind: input, shape index: {}]   ;;  %s1963_s1 = inlined_call_operand.vmem [shape: bf16[256,32], index: 1, kind: input, shape index: {}]   ;;  %s1964_s2 = inlined_call_operand.vmem [shape: f32[1,32], index: 2, kind: input, shape index: {}]   ;;  %s1965_s3 = inlined_call_operand.vmem [shape: bf16[800,32], index: 3, kind: output, shape index: {}]  }
   0x1   :  { %s1613_s14 = smov 0  }
   0x2 LB: > { %s25_s15 = sadd.s32 1, %s1583_s13  ;;  %p1187_p0 = scmp.ge.s32.totalorder %s1587_s14, 1  ;;  %s1587_s14 = sphi %s1613_s14, %s13_s14   ;;  %s1583_s13 = sphi %s1611_s13, %s1967_s13   ;;  %s1579_s12 = sphi %s1609_s12, %s1966_s12  }
   0x3   : > { %p27_p1 = scmp.ge.s32.totalorder %s25_s15, 2  ;;  %p170_p2 = scmp.lt.s32.totalorder %s1587_s14, 3 }
   0x5   : > { %s1969_s15 = smov (%p27_p1, %s25_s15), 0  ;;  %p171_p3 = pnand %p1187_p0, %p170_p2 }
   0x6   : > { %s205_s28 = smul.u32 (!%p171_p3), 50, %s1579_s12 }
   0x7   : > { %174 = sbr.rel (%p171_p3) target bundleno = 385 (0x181), region = 32 }
   0x8   : > { %p206_p4 = scmp.lt.s32.totalorder (!%p171_p3), %s205_s28, 99 }
   0xc   : > { %v1515_v0 = vld [vmem:[%s1963_s1 + $0x38] sm:$0xff]  ;;  %v1514_v2 = vld [vmem:[%s1963_s1 + $0x30] sm:$0xff]  ;;  %v1513_v4 = vld [vmem:[%s1963_s1 + $0x28] sm:$0xff]  ;;  %s1971_s28 = smov (!%p206_p4, %s205_s28), 99  ;;  %vm1028_vm0 = vcmask 257024  }
   0xd   : > { %v1523_v1 = vld [vmem:[%s1963_s1 + $0x78] sm:$0xff]  ;;  %660 = vmatpush.bf16.msra.mxu0 %v1515_v0  ;;  %1524 = vmatpush.bf16.msra.mxu2 %v1515_v0  ;;  %v1522_v3 = vld [vmem:[%s1963_s1 + $0x70] sm:$0xff]  ;;  %v1521_v5 = vld [vmem:[%s1963_s1 + $0x68] sm:$0xff]  ;;  %s1457_s17 = sshll.u32 %s1971_s28, 3  ;;  %s1190_s5 = sshll.u32 %s1971_s28, 2 }
   0xe   : > { %794 = vmatpush.bf16.msra.mxu1 %v1523_v1  ;;  %1532 = vmatpush.bf16.msra.mxu3 %v1523_v1  ;;  %v1512_v6 = vld [vmem:[%s1963_s1 + $0x20] sm:$0xff]  ;;  %v1511_v8 = vld [vmem:[%s1963_s1 + $0x18] sm:$0xff]  ;;  %v1510_v10 = vld [vmem:[%s1963_s1 + $0x10] sm:$0xff]  ;;  %s1675_s22 = scalar_lea.vmem %s1962_s0, %s1457_s17  ;;  %s1768_s8 = scalar_lea.vmem %s1965_s3, %s1190_s5 }
   0xf   : > { %v1520_v7 = vld [vmem:[%s1963_s1 + $0x60] sm:$0xff]  ;;  %v1519_v9 = vld [vmem:[%s1963_s1 + $0x58] sm:$0xff]  ;;  %v1518_v11 = vld [vmem:[%s1963_s1 + $0x50] sm:$0xff] }
  0x10   : > { %v1509_v12 = vld [vmem:[%s1963_s1 + $0x8] sm:$0xff]  ;;  %v1508_v14 = vld [vmem:[%s1963_s1] sm:$0xff]  ;;  %v1484_v22 = vld [vmem:[%s1675_s22 + $0xd4] sm:$0xf] }
  0x11   : > { %661 = vmatpush.bf16.msra.mxu0 %v1514_v2  ;;  %1525 = vmatpush.bf16.msra.mxu2 %v1514_v2  ;;  %v1517_v13 = vld [vmem:[%s1963_s1 + $0x48] sm:$0xff]  ;;  %v1516_v15 = vld [vmem:[%s1963_s1 + $0x40] sm:$0xff]  ;;  %v1299_v23 = vld [vmem:[%s1675_s22 + $0xd8] sm:$0xf0] }
  0x12   : > { %795 = vmatpush.bf16.msra.mxu1 %v1522_v3  ;;  %1533 = vmatpush.bf16.msra.mxu3 %v1522_v3  ;;  %v1193_v16 = vld [vmem:[%s1675_s22] sm:$0xf]  ;;  %v1459_v17 = vld [vmem:[%s1675_s22 + $0x4] sm:$0xf0]  ;;  %v1458_v20 = vld [vmem:[%s1675_s22 + $0x4] sm:$0xf]  ;;  %v1302_v27 = vor.u32 %v1484_v22, %v1299_v23 }
  0x13   : > { %v1289_v18 = vld [vmem:[%s1675_s22 + $0xc0] sm:$0xf]  ;;  %v1483_v19 = vld [vmem:[%s1675_s22 + $0xc4] sm:$0xf0]  ;;  %v1195_v21 = vld [vmem:[%s1675_s22 + $0x8] sm:$0xf0]  ;;  %v1194_v24 = vor.u32 %v1459_v17, %v1193_v16 }
  0x14   : > { %v1290_v25 = vor.u32 %v1483_v19, %v1289_v18  ;;  %v1198_v26 = vor.u32 %v1458_v20, %v1195_v21  ;;  %v1201_v28 = vld [vmem:[%s1675_s22 + $0x10] sm:$0xf]  ;;  %v1461_v29 = vld [vmem:[%s1675_s22 + $0x14] sm:$0xf0]  ;;  %v1460_v32 = vld [vmem:[%s1675_s22 + $0x14] sm:$0xf] }
  0x15   : > { %662 = vmatpush.bf16.msra.mxu0 %v1513_v4  ;;  %1526 = vmatpush.bf16.msra.mxu2 %v1513_v4  ;;  %v1297_v30 = vld [vmem:[%s1675_s22 + $0xd0] sm:$0xf]  ;;  %v1485_v31 = vld [vmem:[%s1675_s22 + $0xd4] sm:$0xf0]  ;;  %v1203_v33 = vld [vmem:[%s1675_s22 + $0x18] sm:$0xf0]  ;;  %v1202_v36 = vor.u32 %v1461_v29, %v1201_v28 }
  0x16   : > { %796 = vmatpush.bf16.msra.mxu1 %v1521_v5  ;;  %1534 = vmatpush.bf16.msra.mxu3 %v1521_v5  ;;  %v1486_v34 = vld [vmem:[%s1675_s22 + $0xe4] sm:$0xf]  ;;  %v1307_v35 = vld [vmem:[%s1675_s22 + $0xe8] sm:$0xf0]  ;;  %v1298_v37 = vor.u32 %v1485_v31, %v1297_v30  ;;  %v1206_v38 = vor.u32 %v1460_v32, %v1203_v33  ;;  %v1209_v40 = vld [vmem:[%s1675_s22 + $0x20] sm:$0xf] }
  0x17   : > { %v1310_v39 = vor.u32 %v1486_v34, %v1307_v35  ;;  %v1463_v41 = vld [vmem:[%s1675_s22 + $0x24] sm:$0xf0]  ;;  %v1305_v42 = vld [vmem:[%s1675_s22 + $0xe0] sm:$0xf]  ;;  %v1462_v44 = vld [vmem:[%s1675_s22 + $0x24] sm:$0xf] }
  0x18   : > { %v1487_v43 = vld [vmem:[%s1675_s22 + $0xe4] sm:$0xf0]  ;;  %v1211_v45 = vld [vmem:[%s1675_s22 + $0x28] sm:$0xf0]  ;;  %v1488_v46 = vld [vmem:[%s1675_s22 + $0xf4] sm:$0xf]  ;;  %v1210_v48 = vor.u32 %v1463_v41, %v1209_v40 }
  0x19   : > { %663 = vmatpush.bf16.msra.mxu0 %v1512_v6  ;;  %1527 = vmatpush.bf16.msra.mxu2 %v1512_v6  ;;  %v1315_v47 = vld [vmem:[%s1675_s22 + $0xf8] sm:$0xf0]  ;;  %v1306_v49 = vor.u32 %v1487_v43, %v1305_v42  ;;  %v1214_v50 = vor.u32 %v1462_v44, %v1211_v45  ;;  %v1217_v52 = vld [vmem:[%s1675_s22 + $0x30] sm:$0xf]  ;;  %v1465_v53 = vld [vmem:[%s1675_s22 + $0x34] sm:$0xf0] }
  0x1a   : > { %797 = vmatpush.bf16.msra.mxu1 %v1520_v7  ;;  %1535 = vmatpush.bf16.msra.mxu3 %v1520_v7  ;;  %v1318_v51 = vor.u32 %v1488_v46, %v1315_v47  ;;  %v1313_v54 = vld [vmem:[%s1675_s22 + $0xf0] sm:$0xf]  ;;  %v1489_v55 = vld [vmem:[%s1675_s22 + $0xf4] sm:$0xf0]  ;;  %v1464_v56 = vld [vmem:[%s1675_s22 + $0x34] sm:$0xf]  ;;  %v1218_v60 = vor.u32 %v1465_v53, %v1217_v52 }
  0x1b   : > { %v1219_v57 = vld [vmem:[%s1675_s22 + $0x38] sm:$0xf0]  ;;  %v1490_v58 = vld [vmem:[%s1675_s22 + $0x104] sm:$0xf]  ;;  %v1323_v59 = vld [vmem:[%s1675_s22 + $0x108] sm:$0xf0]  ;;  %v1314_v61 = vor.u32 %v1489_v55, %v1313_v54 }
  0x1c   : > { %v1222_v62 = vor.u32 %v1464_v56, %v1219_v57  ;;  %v1326_v63 = vor.u32 %v1490_v58, %v1323_v59  ;;  %v1225_v0 = vld [vmem:[%s1675_s22 + $0x40] sm:$0xf]  ;;  %v1467_v1 = vld [vmem:[%s1675_s22 + $0x44] sm:$0xf0]  ;;  %v1466_v4 = vld [vmem:[%s1675_s22 + $0x44] sm:$0xf] }
  0x1d   : > { %664 = vmatpush.bf16.msra.mxu0 %v1511_v8  ;;  %1528 = vmatpush.bf16.msra.mxu2 %v1511_v8  ;;  %v1321_v2 = vld [vmem:[%s1675_s22 + $0x100] sm:$0xf]  ;;  %v1491_v3 = vld [vmem:[%s1675_s22 + $0x104] sm:$0xf0]  ;;  %v1227_v5 = vld [vmem:[%s1675_s22 + $0x48] sm:$0xf0]  ;;  %v1226_v8 = vor.u32 %v1467_v1, %v1225_v0 }
  0x1e   : > { %798 = vmatpush.bf16.msra.mxu1 %v1519_v9  ;;  %1536 = vmatpush.bf16.msra.mxu3 %v1519_v9  ;;  %v1492_v6 = vld [vmem:[%s1675_s22 + $0x114] sm:$0xf]  ;;  %v1331_v7 = vld [vmem:[%s1675_s22 + $0x118] sm:$0xf0]  ;;  %v1322_v9 = vor.u32 %v1491_v3, %v1321_v2  ;;  %v1494_v18 = vld [vmem:[%s1675_s22 + $0x124] sm:$0xf] }
  0x1f   : > { %v1468_v16 = vld [vmem:[%s1675_s22 + $0x54] sm:$0xf]  ;;  %v1235_v17 = vld [vmem:[%s1675_s22 + $0x58] sm:$0xf0]  ;;  %v1339_v19 = vld [vmem:[%s1675_s22 + $0x128] sm:$0xf0] }
  0x20   : > { %v1238_v22 = vor.u32 %v1468_v16, %v1235_v17  ;;  %v1342_v23 = vor.u32 %v1494_v18, %v1339_v19  ;;  %v1470_v28 = vld [vmem:[%s1675_s22 + $0x64] sm:$0xf]  ;;  %v1243_v29 = vld [vmem:[%s1675_s22 + $0x68] sm:$0xf0]  ;;  %v1496_v30 = vld [vmem:[%s1675_s22 + $0x134] sm:$0xf] }
  0x21   : > { %665 = vmatpush.bf16.msra.mxu0 %v1510_v10  ;;  %1529 = vmatpush.bf16.msra.mxu2 %v1510_v10  ;;  %v1230_v10 = vor.u32 %v1466_v4, %v1227_v5  ;;  %v1347_v31 = vld [vmem:[%s1675_s22 + $0x138] sm:$0xf0]  ;;  %v1246_v34 = vor.u32 %v1470_v28, %v1243_v29  ;;  %v1472_v40 = vld [vmem:[%s1675_s22 + $0x74] sm:$0xf]  ;;  %v1498_v42 = vld [vmem:[%s1675_s22 + $0x144] sm:$0xf] }
  0x22   : > { %799 = vmatpush.bf16.msra.mxu1 %v1518_v11  ;;  %1537 = vmatpush.bf16.msra.mxu3 %v1518_v11  ;;  %v1334_v11 = vor.u32 %v1492_v6, %v1331_v7  ;;  %v1350_v35 = vor.u32 %v1496_v30, %v1347_v31  ;;  %v1251_v41 = vld [vmem:[%s1675_s22 + $0x78] sm:$0xf0]  ;;  %v1355_v43 = vld [vmem:[%s1675_s22 + $0x148] sm:$0xf0]  ;;  %v1499_v52 = vld [vmem:[%s1675_s22 + $0x144] sm:$0xf0] }
  0x23   : > { %v1254_v46 = vor.u32 %v1472_v40, %v1251_v41  ;;  %v1358_v47 = vor.u32 %v1498_v42, %v1355_v43  ;;  %v1474_v53 = vld [vmem:[%s1675_s22 + $0x84] sm:$0xf]  ;;  %v1259_v54 = vld [vmem:[%s1675_s22 + $0x88] sm:$0xf0]  ;;  %v1500_v55 = vld [vmem:[%s1675_s22 + $0x154] sm:$0xf] }
  0x24   : > { %v1363_v56 = vld [vmem:[%s1675_s22 + $0x158] sm:$0xf0]  ;;  %v1502_v16 = vld [vmem:[%s1675_s22 + $0x164] sm:$0xf]  ;;  %v1371_v17 = vld [vmem:[%s1675_s22 + $0x168] sm:$0xf0] }
  0x25   : > { %666 = vmatpush.bf16.msra.mxu0 %v1509_v12  ;;  %1530 = vmatpush.bf16.msra.mxu2 %v1509_v12  ;;  %v1233_v12 = vld [vmem:[%s1675_s22 + $0x50] sm:$0xf]  ;;  %v1479_v41 = vld [vmem:[%s1675_s22 + $0xa4] sm:$0xf0]  ;;  %v1369_v42 = vld [vmem:[%s1675_s22 + $0x160] sm:$0xf] }
  0x26   : > { %800 = vmatpush.bf16.msra.mxu1 %v1517_v13  ;;  %1538 = vmatpush.bf16.msra.mxu3 %v1517_v13  ;;  %v1469_v13 = vld [vmem:[%s1675_s22 + $0x54] sm:$0xf0]  ;;  %v1503_v43 = vld [vmem:[%s1675_s22 + $0x164] sm:$0xf0] }
  0x27   : > { %v1234_v20 = vor.u32 %v1469_v13, %v1233_v12  ;;  %v1501_v12 = vld [vmem:[%s1675_s22 + $0x154] sm:$0xf0]  ;;  %v1476_v13 = vld [vmem:[%s1675_s22 + $0x94] sm:$0xf] }
  0x29   : > { %667 = vmatpush.bf16.msra.mxu0 %v1508_v14  ;;  %1531 = vmatpush.bf16.msra.mxu2 %v1508_v14  ;;  %v1329_v14 = vld [vmem:[%s1675_s22 + $0x110] sm:$0xf] }
  0x2a   : > { %801 = vmatpush.bf16.msra.mxu1 %v1516_v15  ;;  %1539 = vmatpush.bf16.msra.mxu3 %v1516_v15  ;;  %v1493_v15 = vld [vmem:[%s1675_s22 + $0x114] sm:$0xf0] }
  0x2b   : > { %v1330_v21 = vor.u32 %v1493_v15, %v1329_v14  ;;  %v1267_v14 = vld [vmem:[%s1675_s22 + $0x98] sm:$0xf0] }
  0x2c   : > { %668 = vmatmul.bf16.vlgmr.msra.gmra.mxu0 %v1194_v24  ;;  %728 = vmatmul.bf16.vlgmr.msra.gmra.mxu2 %v1290_v25  ;;  %v1241_v24 = vld [vmem:[%s1675_s22 + $0x60] sm:$0xf]  ;;  %v1471_v25 = vld [vmem:[%s1675_s22 + $0x64] sm:$0xf0] }
  0x2d   : > { %802 = vmatmul.bf16.vlgmr.msra.gmra.mxu1 %v1198_v26  ;;  %867 = vmatmul.bf16.vlgmr.msra.gmra.mxu3 %v1302_v27  ;;  %v1337_v26 = vld [vmem:[%s1675_s22 + $0x120] sm:$0xf]  ;;  %v1495_v27 = vld [vmem:[%s1675_s22 + $0x124] sm:$0xf0]  ;;  %v1242_v32 = vor.u32 %v1471_v25, %v1241_v24  ;;  %v1270_v24 = vor.u32 %v1476_v13, %v1267_v14  ;;  %v1374_v25 = vor.u32 %v1502_v16, %v1371_v17  ;;  %v1377_v16 = vld [vmem:[%s1675_s22 + $0x170] sm:$0xf] }
  0x2e   : > { %v1338_v33 = vor.u32 %v1495_v27, %v1337_v26  ;;  %v1505_v17 = vld [vmem:[%s1675_s22 + $0x174] sm:$0xf0] }
  0x3c   : > { %673 = vmatmul.bf16.gmra.mxu0 %v1202_v36  ;;  %733 = vmatmul.bf16.gmra.mxu2 %v1298_v37  ;;  %v1249_v36 = vld [vmem:[%s1675_s22 + $0x70] sm:$0xf]  ;;  %v1473_v37 = vld [vmem:[%s1675_s22 + $0x74] sm:$0xf0] }
  0x3d   : > { %807 = vmatmul.bf16.gmra.mxu1 %v1206_v38  ;;  %872 = vmatmul.bf16.gmra.mxu3 %v1310_v39  ;;  %v1345_v38 = vld [vmem:[%s1675_s22 + $0x130] sm:$0xf]  ;;  %v1497_v39 = vld [vmem:[%s1675_s22 + $0x134] sm:$0xf0]  ;;  %v1250_v44 = vor.u32 %v1473_v37, %v1249_v36 }
  0x3e   : > { %v1346_v45 = vor.u32 %v1497_v39, %v1345_v38  ;;  %v1273_v38 = vld [vmem:[%s1675_s22 + $0xa0] sm:$0xf] }
  0x4c   : > { %678 = vmatmul.bf16.gmra.mxu0 %v1210_v48  ;;  %738 = vmatmul.bf16.gmra.mxu2 %v1306_v49  ;;  %v1753_v48 = vld [vmem:[%s1964_s2] ss:$0 sm:$0xff] }
  0x4d   : > { %812 = vmatmul.bf16.gmra.mxu1 %v1214_v50  ;;  %877 = vmatmul.bf16.gmra.mxu3 %v1318_v51  ;;  %v1257_v49 = vld [vmem:[%s1675_s22 + $0x80] sm:$0xf]  ;;  %v1475_v50 = vld [vmem:[%s1675_s22 + $0x84] sm:$0xf0] }
  0x4e   : > { %v1353_v51 = vld [vmem:[%s1675_s22 + $0x140] sm:$0xf]  ;;  %v1258_v57 = vor.u32 %v1475_v50, %v1257_v49  ;;  %v1504_v49 = vld [vmem:[%s1675_s22 + $0x174] sm:$0xf]  ;;  %v1379_v50 = vld [vmem:[%s1675_s22 + $0x178] sm:$0xf0] }
  0x4f   : > { %v1354_v58 = vor.u32 %v1499_v52, %v1353_v51 }
  0x5c   : > { %683 = vmatmul.bf16.gmra.mxu0 %v1218_v60  ;;  %743 = vmatmul.bf16.gmra.mxu2 %v1314_v61  ;;  %v1262_v60 = vor.u32 %v1474_v53, %v1259_v54  ;;  %v1366_v61 = vor.u32 %v1500_v55, %v1363_v56  ;;  %v1274_v54 = vor.u32 %v1479_v41, %v1273_v38 }
  0x5d   : > { %817 = vmatmul.bf16.gmra.mxu1 %v1222_v62  ;;  %882 = vmatmul.bf16.gmra.mxu3 %v1326_v63  ;;  %v1370_v55 = vor.u32 %v1503_v43, %v1369_v42 }
  0x6c   : > { %688 = vmatmul.bf16.gmra.mxu0 %v1226_v8  ;;  %748 = vmatmul.bf16.gmra.mxu2 %v1322_v9  ;;  %v1265_v9 = vld [vmem:[%s1675_s22 + $0x90] sm:$0xf] }
  0x6d   : > { %822 = vmatmul.bf16.gmra.mxu1 %v1230_v10  ;;  %887 = vmatmul.bf16.gmra.mxu3 %v1334_v11  ;;  %v1477_v10 = vld [vmem:[%s1675_s22 + $0x94] sm:$0xf0]  ;;  %v1361_v11 = vld [vmem:[%s1675_s22 + $0x150] sm:$0xf] }
  0x7c   : > { %693 = vmatmul.bf16.gmra.mxu0 %v1234_v20  ;;  %753 = vmatmul.bf16.gmra.mxu2 %v1330_v21  ;;  %v1266_v20 = vor.u32 %v1477_v10, %v1265_v9  ;;  %v1362_v21 = vor.u32 %v1501_v12, %v1361_v11  ;;  %v1281_v12 = vld [vmem:[%s1675_s22 + $0xb0] sm:$0xf] }
  0x7d   : > { %827 = vmatmul.bf16.gmra.mxu1 %v1238_v22  ;;  %892 = vmatmul.bf16.gmra.mxu3 %v1342_v23 }
  0x8c   : > { %698 = vmatmul.bf16.gmra.mxu0 %v1242_v32  ;;  %758 = vmatmul.bf16.gmra.mxu2 %v1338_v33 }
  0x8d   : > { %832 = vmatmul.bf16.gmra.mxu1 %v1246_v34  ;;  %897 = vmatmul.bf16.gmra.mxu3 %v1350_v35 }
  0x9c   : > { %703 = vmatmul.bf16.gmra.mxu0 %v1250_v44  ;;  %763 = vmatmul.bf16.gmra.mxu2 %v1346_v45  ;;  %v1478_v44 = vld [vmem:[%s1675_s22 + $0xa4] sm:$0xf]  ;;  %v1275_v45 = vld [vmem:[%s1675_s22 + $0xa8] sm:$0xf0] }
  0x9d   : > { %837 = vmatmul.bf16.gmra.mxu1 %v1254_v46  ;;  %902 = vmatmul.bf16.gmra.mxu3 %v1358_v47 }
  0xa9   : > { %v669_v59 = vpop.f32.mrf.mxu0 }
  0xaa   : > { %v670_v62 = vadd.f32 %v1753_v48, %v669_v59  ;;  %v803_v63 = vpop.f32.mrf.mxu1  ;;  %v1382_v59 = vor.u32 %v1504_v49, %v1379_v50 }
  0xac   : > { %v804_v0 = vadd.f32 %v803_v63, %v670_v62  ;;  %708 = vmatmul.bf16.gmra.mxu0 %v1258_v57  ;;  %768 = vmatmul.bf16.gmra.mxu2 %v1354_v58  ;;  %v1278_v58 = vor.u32 %v1478_v44, %v1275_v45 }
  0xad   : > { %842 = vmatmul.bf16.gmra.mxu1 %v1262_v60  ;;  %907 = vmatmul.bf16.gmra.mxu3 %v1366_v61 }
  0xae   : > { %v928_v1 = vmax.f32 %v804_v0, 0.0 }
  0xaf   : > { %v1770_v2 = vpop.f32.mrf.mxu2 }
  0xb0   : > { %v978_v3 = vpack.c.bf16 %v928_v1, %v928_v1  ;;  %v868_v4 = vpop.f32.mrf.mxu3 }
  0xb1   : > { %v671_v5 = vpop.f32.mrf.mxu0 }
  0xb2   : > { %1029 = vst.msk [vmem:[%s1768_s8] sm:$0xf] %vm1028_vm0, %v978_v3  ;;  %v672_v6 = vadd.f32 %v1753_v48, %v671_v5  ;;  %v805_v7 = vpop.f32.mrf.mxu1 }
  0xb4   : > { %v806_v8 = vadd.f32 %v805_v7, %v672_v6 }
  0xb6   : > { %v929_v15 = vmax.f32 %v806_v8, 0.0 }
  0xb7   : > { %v1783_v18 = vpop.f32.mrf.mxu2 }
  0xb8   : > { %v979_v19 = vpack.c.bf16 %v929_v15, %v929_v15  ;;  %v870_v22 = vpop.f32.mrf.mxu3  ;;  %v1481_v15 = vld [vmem:[%s1675_s22 + $0xb4] sm:$0xf0] }
  0xb9   : > { %v674_v23 = vpop.f32.mrf.mxu0 }
  0xba   : > { %1030 = vst.msk [vmem:[%s1768_s8 + $0x4] sm:$0xf] %vm1028_vm0, %v979_v19  ;;  %v675_v26 = vadd.f32 %v1753_v48, %v674_v23  ;;  %v808_v27 = vpop.f32.mrf.mxu1  ;;  %v1480_v19 = vld [vmem:[%s1675_s22 + $0xb4] sm:$0xf]  ;;  %v1506_v23 = vld [vmem:[%s1675_s22 + $0x184] sm:$0xf] }
  0xbc   : > { %v809_v28 = vadd.f32 %v808_v27, %v675_v26  ;;  %713 = vmatmul.bf16.gmra.mxu0 %v1266_v20  ;;  %773 = vmatmul.bf16.gmra.mxu2 %v1362_v21  ;;  %v1283_v20 = vld [vmem:[%s1675_s22 + $0xb8] sm:$0xf0] }
  0xbd   : > { %847 = vmatmul.bf16.gmra.mxu1 %v1270_v24  ;;  %912 = vmatmul.bf16.gmra.mxu3 %v1374_v25  ;;  %v1387_v24 = vld [vmem:[%s1675_s22 + $0x188] sm:$0xf0] }
  0xbe   : > { %v930_v29 = vmax.f32 %v809_v28, 0.0  ;;  %v1282_v28 = vor.u32 %v1481_v15, %v1281_v12 }
  0xbf   : > { %v734_v30 = vpop.f32.mrf.mxu2 }
  0xc0   : > { %v980_v31 = vpack.c.bf16 %v930_v29, %v930_v29  ;;  %v735_v32 = vadd.f32 %v1753_v48, %v734_v30  ;;  %v873_v33 = vpop.f32.mrf.mxu3  ;;  %v1378_v29 = vor.u32 %v1505_v17, %v1377_v16 }
  0xc1   : > { %v676_v34 = vpop.f32.mrf.mxu0 }
  0xc2   : > { %1031 = vst.msk [vmem:[%s1768_s8 + $0x8] sm:$0xf] %vm1028_vm0, %v980_v31  ;;  %v869_v35 = vadd.f32 %v868_v4, %v735_v32  ;;  %v677_v36 = vadd.f32 %v1753_v48, %v676_v34  ;;  %v810_v37 = vpop.f32.mrf.mxu1  ;;  %v1286_v32 = vor.u32 %v1480_v19, %v1283_v20 }
  0xc4   : > { %v954_v39 = vmax.f32 %v869_v35, 0.0  ;;  %v811_v40 = vadd.f32 %v810_v37, %v677_v36 }
  0xc6   : > { %v1004_v46 = vpack.c.bf16 %v954_v39, %v954_v39  ;;  %v931_v47 = vmax.f32 %v811_v40, 0.0 }
  0xc7   : > { %v736_v51 = vpop.f32.mrf.mxu2 }
  0xc8   : > { %1055 = vst.msk [vmem:[%s1768_s8 + $0x68] sm:$0xf] %vm1028_vm0, %v1004_v46  ;;  %v981_v52 = vpack.c.bf16 %v931_v47, %v931_v47  ;;  %v737_v53 = vadd.f32 %v1753_v48, %v736_v51  ;;  %v875_v56 = vpop.f32.mrf.mxu3 }
  0xc9   : > { %v679_v57 = vpop.f32.mrf.mxu0 }
  0xca   : > { %1032 = vst.msk [vmem:[%s1768_s8 + $0xc] sm:$0xf] %vm1028_vm0, %v981_v52  ;;  %v871_v60 = vadd.f32 %v870_v22, %v737_v53  ;;  %v680_v61 = vadd.f32 %v1753_v48, %v679_v57  ;;  %v813_v62 = vpop.f32.mrf.mxu1  ;;  %v1385_v52 = vld [vmem:[%s1675_s22 + $0x180] sm:$0xf]  ;;  %v1507_v53 = vld [vmem:[%s1675_s22 + $0x184] sm:$0xf0] }
  0xcb   : > { %v1291_v57 = vld [vmem:[%s1675_s22 + $0xc8] sm:$0xf0] }
  0xcc   : > { %v955_v63 = vmax.f32 %v871_v60, 0.0  ;;  %v814_v0 = vadd.f32 %v813_v62, %v680_v61  ;;  %718 = vmatmul.bf16.gmra.mxu0 %v1274_v54  ;;  %778 = vmatmul.bf16.gmra.mxu2 %v1370_v55  ;;  %v1386_v61 = vor.u32 %v1507_v53, %v1385_v52 }
  0xcd   : > { %852 = vmatmul.bf16.gmra.mxu1 %v1278_v58  ;;  %917 = vmatmul.bf16.gmra.mxu3 %v1382_v59 }
  0xce   : > { %v1005_v1 = vpack.c.bf16 %v955_v63, %v955_v63  ;;  %v932_v3 = vmax.f32 %v814_v0, 0.0 }
  0xcf   : > { %v739_v4 = vpop.f32.mrf.mxu2 }
  0xd0   : > { %1056 = vst.msk [vmem:[%s1768_s8 + $0x6c] sm:$0xf] %vm1028_vm0, %v1005_v1  ;;  %v982_v5 = vpack.c.bf16 %v932_v3, %v932_v3  ;;  %v740_v6 = vadd.f32 %v1753_v48, %v739_v4  ;;  %v878_v7 = vpop.f32.mrf.mxu3 }
  0xd1   : > { %v681_v8 = vpop.f32.mrf.mxu0 }
  0xd2   : > { %1033 = vst.msk [vmem:[%s1768_s8 + $0x10] sm:$0xf] %vm1028_vm0, %v982_v5  ;;  %v874_v9 = vadd.f32 %v873_v33, %v740_v6  ;;  %v682_v10 = vadd.f32 %v1753_v48, %v681_v8  ;;  %v815_v11 = vpop.f32.mrf.mxu1  ;;  %v1390_v33 = vor.u32 %v1506_v23, %v1387_v24 }
  0xd4   : > { %v956_v13 = vmax.f32 %v874_v9, 0.0  ;;  %v816_v14 = vadd.f32 %v815_v11, %v682_v10 }
  0xd6   : > { %v1006_v21 = vpack.c.bf16 %v956_v13, %v956_v13  ;;  %v933_v22 = vmax.f32 %v816_v14, 0.0 }
  0xd7   : > { %v741_v25 = vpop.f32.mrf.mxu2 }
  0xd8   : > { %1057 = vst.msk [vmem:[%s1768_s8 + $0x70] sm:$0xf] %vm1028_vm0, %v1006_v21  ;;  %v983_v26 = vpack.c.bf16 %v933_v22, %v933_v22  ;;  %v742_v27 = vadd.f32 %v1753_v48, %v741_v25  ;;  %v880_v30 = vpop.f32.mrf.mxu3 }
  0xd9   : > { %v684_v31 = vpop.f32.mrf.mxu0 }
  0xda   : > { %1034 = vst.msk [vmem:[%s1768_s8 + $0x14] sm:$0xf] %vm1028_vm0, %v983_v26  ;;  %v876_v34 = vadd.f32 %v875_v56, %v742_v27  ;;  %v685_v35 = vadd.f32 %v1753_v48, %v684_v31  ;;  %v818_v36 = vpop.f32.mrf.mxu1  ;;  %v1482_v56 = vld [vmem:[%s1675_s22 + $0xc4] sm:$0xf] }
  0xdb   : > { %v1294_v0 = vor.u32 %v1482_v56, %v1291_v57 }
  0xdc   : > { %v957_v37 = vmax.f32 %v876_v34, 0.0  ;;  %v819_v38 = vadd.f32 %v818_v36, %v685_v35  ;;  %723 = vmatmul.bf16.gmra.mxu0 %v1282_v28  ;;  %783 = vmatmul.bf16.gmra.mxu2 %v1378_v29 }
  0xdd   : > { %857 = vmatmul.bf16.gmra.mxu1 %v1286_v32  ;;  %922 = vmatmul.bf16.gmra.mxu3 %v1390_v33 }
  0xde   : > { %v1007_v39 = vpack.c.bf16 %v957_v37, %v957_v37  ;;  %v934_v40 = vmax.f32 %v819_v38, 0.0 }
  0xdf   : > { %v744_v41 = vpop.f32.mrf.mxu2 }
  0xe0   : > { %1058 = vst.msk [vmem:[%s1768_s8 + $0x74] sm:$0xf] %vm1028_vm0, %v1007_v39  ;;  %v984_v42 = vpack.c.bf16 %v934_v40, %v934_v40  ;;  %v745_v43 = vadd.f32 %v1753_v48, %v744_v41  ;;  %v883_v44 = vpop.f32.mrf.mxu3 }
  0xe1   : > { %v686_v45 = vpop.f32.mrf.mxu0 }
  0xe2   : > { %1035 = vst.msk [vmem:[%s1768_s8 + $0x18] sm:$0xf] %vm1028_vm0, %v984_v42  ;;  %v879_v46 = vadd.f32 %v878_v7, %v745_v43  ;;  %v687_v47 = vadd.f32 %v1753_v48, %v686_v45  ;;  %v820_v49 = vpop.f32.mrf.mxu1 }
  0xe4   : > { %v958_v50 = vmax.f32 %v879_v46, 0.0  ;;  %v821_v51 = vadd.f32 %v820_v49, %v687_v47 }
  0xe6   : > { %v1008_v54 = vpack.c.bf16 %v958_v50, %v958_v50  ;;  %v935_v55 = vmax.f32 %v821_v51, 0.0 }
  0xe7   : > { %v746_v58 = vpop.f32.mrf.mxu2 }
  0xe8   : > { %1059 = vst.msk [vmem:[%s1768_s8 + $0x78] sm:$0xf] %vm1028_vm0, %v1008_v54  ;;  %v985_v59 = vpack.c.bf16 %v935_v55, %v935_v55  ;;  %v747_v60 = vadd.f32 %v1753_v48, %v746_v58  ;;  %v885_v62 = vpop.f32.mrf.mxu3 }
  0xe9   : > { %v689_v63 = vpop.f32.mrf.mxu0 }
  0xea   : > { %1036 = vst.msk [vmem:[%s1768_s8 + $0x1c] sm:$0xf] %vm1028_vm0, %v985_v59  ;;  %v881_v1 = vadd.f32 %v880_v30, %v747_v60  ;;  %v690_v3 = vadd.f32 %v1753_v48, %v689_v63  ;;  %v823_v4 = vpop.f32.mrf.mxu1 }
  0xec   : > { %v959_v5 = vmax.f32 %v881_v1, 0.0  ;;  %v824_v6 = vadd.f32 %v823_v4, %v690_v3  ;;  %788 = vmatmul.bf16.gmra.mxu2 %v1386_v61 }
  0xed   : > { %862 = vmatmul.bf16.gmra.mxu1 %v1294_v0 }
  0xee   : > { %v1009_v7 = vpack.c.bf16 %v959_v5, %v959_v5  ;;  %v936_v8 = vmax.f32 %v824_v6, 0.0 }
  0xef   : > { %v749_v9 = vpop.f32.mrf.mxu2 }
  0xf0   : > { %1060 = vst.msk [vmem:[%s1768_s8 + $0x7c] sm:$0xf] %vm1028_vm0, %v1009_v7  ;;  %v986_v10 = vpack.c.bf16 %v936_v8, %v936_v8  ;;  %v750_v11 = vadd.f32 %v1753_v48, %v749_v9  ;;  %v888_v12 = vpop.f32.mrf.mxu3 }
  0xf1   : > { %v691_v13 = vpop.f32.mrf.mxu0 }
  0xf2   : > { %1037 = vst.msk [vmem:[%s1768_s8 + $0x20] sm:$0xf] %vm1028_vm0, %v986_v10  ;;  %v884_v14 = vadd.f32 %v883_v44, %v750_v11  ;;  %v692_v15 = vadd.f32 %v1753_v48, %v691_v13  ;;  %v825_v16 = vpop.f32.mrf.mxu1 }
  0xf4   : > { %v960_v17 = vmax.f32 %v884_v14, 0.0  ;;  %v826_v19 = vadd.f32 %v825_v16, %v692_v15 }
  0xf6   : > { %v1010_v20 = vpack.c.bf16 %v960_v17, %v960_v17  ;;  %v937_v21 = vmax.f32 %v826_v19, 0.0 }
  0xf7   : > { %v751_v22 = vpop.f32.mrf.mxu2 }
  0xf8   : > { %1061 = vst.msk [vmem:[%s1768_s8 + $0x80] sm:$0xf] %vm1028_vm0, %v1010_v20  ;;  %v987_v23 = vpack.c.bf16 %v937_v21, %v937_v21  ;;  %v752_v24 = vadd.f32 %v1753_v48, %v751_v22  ;;  %v890_v25 = vpop.f32.mrf.mxu3 }
  0xf9   : > { %v694_v26 = vpop.f32.mrf.mxu0 }
  0xfa   : > { %1038 = vst.msk [vmem:[%s1768_s8 + $0x24] sm:$0xf] %vm1028_vm0, %v987_v23  ;;  %v886_v27 = vadd.f32 %v885_v62, %v752_v24  ;;  %v695_v28 = vadd.f32 %v1753_v48, %v694_v26  ;;  %v828_v29 = vpop.f32.mrf.mxu1 }
  0xfc   : > { %v961_v30 = vmax.f32 %v886_v27, 0.0  ;;  %v829_v31 = vadd.f32 %v828_v29, %v695_v28 }
  0xfe   : > { %v1011_v32 = vpack.c.bf16 %v961_v30, %v961_v30  ;;  %v938_v33 = vmax.f32 %v829_v31, 0.0 }
  0xff   : > { %v754_v34 = vpop.f32.mrf.mxu2 }
 0x100   : > { %1062 = vst.msk [vmem:[%s1768_s8 + $0x84] sm:$0xf] %vm1028_vm0, %v1011_v32  ;;  %v988_v35 = vpack.c.bf16 %v938_v33, %v938_v33  ;;  %v755_v36 = vadd.f32 %v1753_v48, %v754_v34  ;;  %v893_v37 = vpop.f32.mrf.mxu3 }
 0x101   : > { %v696_v38 = vpop.f32.mrf.mxu0 }
 0x102   : > { %1039 = vst.msk [vmem:[%s1768_s8 + $0x28] sm:$0xf] %vm1028_vm0, %v988_v35  ;;  %v889_v39 = vadd.f32 %v888_v12, %v755_v36  ;;  %v697_v40 = vadd.f32 %v1753_v48, %v696_v38  ;;  %v830_v41 = vpop.f32.mrf.mxu1 }
 0x104   : > { %v962_v42 = vmax.f32 %v889_v39, 0.0  ;;  %v831_v43 = vadd.f32 %v830_v41, %v697_v40 }
 0x106   : > { %v1012_v44 = vpack.c.bf16 %v962_v42, %v962_v42  ;;  %v939_v45 = vmax.f32 %v831_v43, 0.0 }
 0x107   : > { %v756_v46 = vpop.f32.mrf.mxu2 }
 0x108   : > { %1063 = vst.msk [vmem:[%s1768_s8 + $0x88] sm:$0xf] %vm1028_vm0, %v1012_v44  ;;  %v989_v47 = vpack.c.bf16 %v939_v45, %v939_v45  ;;  %v757_v49 = vadd.f32 %v1753_v48, %v756_v46  ;;  %v895_v50 = vpop.f32.mrf.mxu3 }
 0x109   : > { %v699_v51 = vpop.f32.mrf.mxu0 }
 0x10a   : > { %1040 = vst.msk [vmem:[%s1768_s8 + $0x2c] sm:$0xf] %vm1028_vm0, %v989_v47  ;;  %v891_v52 = vadd.f32 %v890_v25, %v757_v49  ;;  %v700_v53 = vadd.f32 %v1753_v48, %v699_v51  ;;  %v833_v54 = vpop.f32.mrf.mxu1 }
 0x10c   : > { %v963_v55 = vmax.f32 %v891_v52, 0.0  ;;  %v834_v56 = vadd.f32 %v833_v54, %v700_v53 }
 0x10e   : > { %v1013_v57 = vpack.c.bf16 %v963_v55, %v963_v55  ;;  %v940_v58 = vmax.f32 %v834_v56, 0.0 }
 0x10f   : > { %v759_v59 = vpop.f32.mrf.mxu2 }
 0x110   : > { %1064 = vst.msk [vmem:[%s1768_s8 + $0x8c] sm:$0xf] %vm1028_vm0, %v1013_v57  ;;  %v990_v60 = vpack.c.bf16 %v940_v58, %v940_v58  ;;  %v760_v61 = vadd.f32 %v1753_v48, %v759_v59  ;;  %v898_v62 = vpop.f32.mrf.mxu3 }
 0x111   : > { %v701_v63 = vpop.f32.mrf.mxu0 }
 0x112   : > { %1041 = vst.msk [vmem:[%s1768_s8 + $0x30] sm:$0xf] %vm1028_vm0, %v990_v60  ;;  %v894_v0 = vadd.f32 %v893_v37, %v760_v61  ;;  %v702_v1 = vadd.f32 %v1753_v48, %v701_v63  ;;  %v835_v3 = vpop.f32.mrf.mxu1 }
 0x114   : > { %v964_v4 = vmax.f32 %v894_v0, 0.0  ;;  %v836_v5 = vadd.f32 %v835_v3, %v702_v1 }
 0x116   : > { %v1014_v6 = vpack.c.bf16 %v964_v4, %v964_v4  ;;  %v941_v7 = vmax.f32 %v836_v5, 0.0 }
 0x117   : > { %v761_v8 = vpop.f32.mrf.mxu2 }
 0x118   : > { %1065 = vst.msk [vmem:[%s1768_s8 + $0x90] sm:$0xf] %vm1028_vm0, %v1014_v6  ;;  %v991_v9 = vpack.c.bf16 %v941_v7, %v941_v7  ;;  %v762_v10 = vadd.f32 %v1753_v48, %v761_v8  ;;  %v900_v11 = vpop.f32.mrf.mxu3 }
 0x119   : > { %v704_v12 = vpop.f32.mrf.mxu0 }
 0x11a   : > { %1042 = vst.msk [vmem:[%s1768_s8 + $0x34] sm:$0xf] %vm1028_vm0, %v991_v9  ;;  %v896_v13 = vadd.f32 %v895_v50, %v762_v10  ;;  %v705_v14 = vadd.f32 %v1753_v48, %v704_v12  ;;  %v838_v15 = vpop.f32.mrf.mxu1 }
 0x11c   : > { %v965_v16 = vmax.f32 %v896_v13, 0.0  ;;  %v839_v17 = vadd.f32 %v838_v15, %v705_v14 }
 0x11e   : > { %v1015_v19 = vpack.c.bf16 %v965_v16, %v965_v16  ;;  %v942_v20 = vmax.f32 %v839_v17, 0.0 }
 0x11f   : > { %v764_v21 = vpop.f32.mrf.mxu2 }
 0x120   : > { %1066 = vst.msk [vmem:[%s1768_s8 + $0x94] sm:$0xf] %vm1028_vm0, %v1015_v19  ;;  %v992_v22 = vpack.c.bf16 %v942_v20, %v942_v20  ;;  %v765_v23 = vadd.f32 %v1753_v48, %v764_v21  ;;  %v903_v24 = vpop.f32.mrf.mxu3 }
 0x121   : > { %v706_v25 = vpop.f32.mrf.mxu0 }
 0x122   : > { %1043 = vst.msk [vmem:[%s1768_s8 + $0x38] sm:$0xf] %vm1028_vm0, %v992_v22  ;;  %v899_v26 = vadd.f32 %v898_v62, %v765_v23  ;;  %v707_v27 = vadd.f32 %v1753_v48, %v706_v25  ;;  %v840_v28 = vpop.f32.mrf.mxu1 }
 0x124   : > { %v966_v29 = vmax.f32 %v899_v26, 0.0  ;;  %v841_v30 = vadd.f32 %v840_v28, %v707_v27 }
 0x126   : > { %v1016_v31 = vpack.c.bf16 %v966_v29, %v966_v29  ;;  %v943_v32 = vmax.f32 %v841_v30, 0.0 }
 0x127   : > { %v766_v33 = vpop.f32.mrf.mxu2 }
 0x128   : > { %1067 = vst.msk [vmem:[%s1768_s8 + $0x98] sm:$0xf] %vm1028_vm0, %v1016_v31  ;;  %v993_v34 = vpack.c.bf16 %v943_v32, %v943_v32  ;;  %v767_v35 = vadd.f32 %v1753_v48, %v766_v33  ;;  %v905_v37 = vpop.f32.mrf.mxu3 }
 0x129   : > { %v709_v36 = vpop.f32.mrf.mxu0 }
 0x12a   : > { %1044 = vst.msk [vmem:[%s1768_s8 + $0x3c] sm:$0xf] %vm1028_vm0, %v993_v34  ;;  %v901_v38 = vadd.f32 %v900_v11, %v767_v35  ;;  %v710_v39 = vadd.f32 %v1753_v48, %v709_v36  ;;  %v843_v40 = vpop.f32.mrf.mxu1 }
 0x12c   : > { %v967_v41 = vmax.f32 %v901_v38, 0.0  ;;  %v844_v42 = vadd.f32 %v843_v40, %v710_v39 }
 0x12e   : > { %v1017_v43 = vpack.c.bf16 %v967_v41, %v967_v41  ;;  %v944_v44 = vmax.f32 %v844_v42, 0.0 }
 0x12f   : > { %v769_v45 = vpop.f32.mrf.mxu2 }
 0x130   : > { %1068 = vst.msk [vmem:[%s1768_s8 + $0x9c] sm:$0xf] %vm1028_vm0, %v1017_v43  ;;  %v994_v46 = vpack.c.bf16 %v944_v44, %v944_v44  ;;  %v770_v47 = vadd.f32 %v1753_v48, %v769_v45  ;;  %v908_v53 = vpop.f32.mrf.mxu3 }
 0x131   : > { %v711_v49 = vpop.f32.mrf.mxu0 }
 0x132   : > { %1045 = vst.msk [vmem:[%s1768_s8 + $0x40] sm:$0xf] %vm1028_vm0, %v994_v46  ;;  %v904_v50 = vadd.f32 %v903_v24, %v770_v47  ;;  %v712_v51 = vadd.f32 %v1753_v48, %v711_v49  ;;  %v845_v52 = vpop.f32.mrf.mxu1 }
 0x134   : > { %v968_v54 = vmax.f32 %v904_v50, 0.0  ;;  %v846_v55 = vadd.f32 %v845_v52, %v712_v51 }
 0x136   : > { %v1018_v56 = vpack.c.bf16 %v968_v54, %v968_v54  ;;  %v945_v57 = vmax.f32 %v846_v55, 0.0 }
 0x137   : > { %v771_v58 = vpop.f32.mrf.mxu2 }
 0x138   : > { %1069 = vst.msk [vmem:[%s1768_s8 + $0xa0] sm:$0xf] %vm1028_vm0, %v1018_v56  ;;  %v995_v59 = vpack.c.bf16 %v945_v57, %v945_v57  ;;  %v772_v60 = vadd.f32 %v1753_v48, %v771_v58  ;;  %v910_v4 = vpop.f32.mrf.mxu3 }
 0x139   : > { %v714_v61 = vpop.f32.mrf.mxu0 }
 0x13a   : > { %1046 = vst.msk [vmem:[%s1768_s8 + $0x44] sm:$0xf] %vm1028_vm0, %v995_v59  ;;  %v906_v62 = vadd.f32 %v905_v37, %v772_v60  ;;  %v715_v63 = vadd.f32 %v1753_v48, %v714_v61  ;;  %v848_v0 = vpop.f32.mrf.mxu1 }
 0x13c   : > { %v969_v1 = vmax.f32 %v906_v62, 0.0  ;;  %v849_v3 = vadd.f32 %v848_v0, %v715_v63 }
 0x13e   : > { %v1019_v5 = vpack.c.bf16 %v969_v1, %v969_v1  ;;  %v946_v6 = vmax.f32 %v849_v3, 0.0 }
 0x13f   : > { %v774_v7 = vpop.f32.mrf.mxu2 }
 0x140   : > { %1070 = vst.msk [vmem:[%s1768_s8 + $0xa4] sm:$0xf] %vm1028_vm0, %v1019_v5  ;;  %v996_v8 = vpack.c.bf16 %v946_v6, %v946_v6  ;;  %v775_v9 = vadd.f32 %v1753_v48, %v774_v7  ;;  %v913_v20 = vpop.f32.mrf.mxu3 }
 0x141   : > { %v716_v10 = vpop.f32.mrf.mxu0 }
 0x142   : > { %1047 = vst.msk [vmem:[%s1768_s8 + $0x48] sm:$0xf] %vm1028_vm0, %v996_v8  ;;  %v909_v11 = vadd.f32 %v908_v53, %v775_v9  ;;  %v717_v12 = vadd.f32 %v1753_v48, %v716_v10  ;;  %v850_v13 = vpop.f32.mrf.mxu1  ;;  %v730_v8 = vadd.f32 %v1753_v48, %v1770_v2  ;;  %v732_v2 = vadd.f32 %v1753_v48, %v1783_v18 }
 0x144   : > { %v970_v14 = vmax.f32 %v909_v11, 0.0  ;;  %v851_v15 = vadd.f32 %v850_v13, %v717_v12 }
 0x146   : > { %v1020_v16 = vpack.c.bf16 %v970_v14, %v970_v14  ;;  %v947_v17 = vmax.f32 %v851_v15, 0.0 }
 0x147   : > { %v776_v19 = vpop.f32.mrf.mxu2 }
 0x148   : > { %1071 = vst.msk [vmem:[%s1768_s8 + $0xa8] sm:$0xf] %vm1028_vm0, %v1020_v16  ;;  %v997_v21 = vpack.c.bf16 %v947_v17, %v947_v17  ;;  %v777_v22 = vadd.f32 %v1753_v48, %v776_v19  ;;  %v915_v35 = vpop.f32.mrf.mxu3 }
 0x149   : > { %v719_v23 = vpop.f32.mrf.mxu0 }
 0x14a   : > { %1048 = vst.msk [vmem:[%s1768_s8 + $0x4c] sm:$0xf] %vm1028_vm0, %v997_v21  ;;  %v911_v24 = vadd.f32 %v910_v4, %v777_v22  ;;  %v720_v25 = vadd.f32 %v1753_v48, %v719_v23  ;;  %v853_v26 = vpop.f32.mrf.mxu1 }
 0x14c   : > { %v971_v27 = vmax.f32 %v911_v24, 0.0  ;;  %v854_v28 = vadd.f32 %v853_v26, %v720_v25 }
 0x14e   : > { %v1021_v29 = vpack.c.bf16 %v971_v27, %v971_v27  ;;  %v948_v30 = vmax.f32 %v854_v28, 0.0 }
 0x14f   : > { %v779_v31 = vpop.f32.mrf.mxu2 }
 0x150   : > { %1072 = vst.msk [vmem:[%s1768_s8 + $0xac] sm:$0xf] %vm1028_vm0, %v1021_v29  ;;  %v998_v32 = vpack.c.bf16 %v948_v30, %v948_v30  ;;  %v780_v33 = vadd.f32 %v1753_v48, %v779_v31  ;;  %v918_v51 = vpop.f32.mrf.mxu3 }
 0x151   : > { %v721_v34 = vpop.f32.mrf.mxu0 }
 0x152   : > { %1049 = vst.msk [vmem:[%s1768_s8 + $0x50] sm:$0xf] %vm1028_vm0, %v998_v32  ;;  %v914_v36 = vadd.f32 %v913_v20, %v780_v33  ;;  %v722_v37 = vadd.f32 %v1753_v48, %v721_v34  ;;  %v855_v38 = vpop.f32.mrf.mxu1 }
 0x154   : > { %v972_v39 = vmax.f32 %v914_v36, 0.0  ;;  %v856_v40 = vadd.f32 %v855_v38, %v722_v37 }
 0x156   : > { %v1022_v41 = vpack.c.bf16 %v972_v39, %v972_v39  ;;  %v949_v42 = vmax.f32 %v856_v40, 0.0 }
 0x157   : > { %v781_v43 = vpop.f32.mrf.mxu2 }
 0x158   : > { %1073 = vst.msk [vmem:[%s1768_s8 + $0xb0] sm:$0xf] %vm1028_vm0, %v1022_v41  ;;  %v999_v44 = vpack.c.bf16 %v949_v42, %v949_v42  ;;  %v782_v45 = vadd.f32 %v1753_v48, %v781_v43  ;;  %v920_v1 = vpop.f32.mrf.mxu3 }
 0x159   : > { %v724_v46 = vpop.f32.mrf.mxu0 }
 0x15a   : > { %1050 = vst.msk [vmem:[%s1768_s8 + $0x54] sm:$0xf] %vm1028_vm0, %v999_v44  ;;  %v916_v47 = vadd.f32 %v915_v35, %v782_v45  ;;  %v725_v49 = vadd.f32 %v1753_v48, %v724_v46  ;;  %v858_v50 = vpop.f32.mrf.mxu1 }
 0x15c   : > { %v973_v52 = vmax.f32 %v916_v47, 0.0  ;;  %v859_v53 = vadd.f32 %v858_v50, %v725_v49 }
 0x15e   : > { %v1023_v54 = vpack.c.bf16 %v973_v52, %v973_v52  ;;  %v950_v55 = vmax.f32 %v859_v53, 0.0 }
 0x15f   : > { %v784_v56 = vpop.f32.mrf.mxu2 }
 0x160   : > { %1074 = vst.msk [vmem:[%s1768_s8 + $0xb4] sm:$0xf] %vm1028_vm0, %v1023_v54  ;;  %v1000_v57 = vpack.c.bf16 %v950_v55, %v950_v55  ;;  %v785_v58 = vadd.f32 %v1753_v48, %v784_v56  ;;  %v923_v16 = vpop.f32.mrf.mxu3 }
 0x161   : > { %v726_v59 = vpop.f32.mrf.mxu0 }
 0x162   : > { %1051 = vst.msk [vmem:[%s1768_s8 + $0x58] sm:$0xf] %vm1028_vm0, %v1000_v57  ;;  %v919_v60 = vadd.f32 %v918_v51, %v785_v58  ;;  %v727_v61 = vadd.f32 %v1753_v48, %v726_v59  ;;  %v860_v62 = vpop.f32.mrf.mxu1 }
 0x164   : > { %v974_v63 = vmax.f32 %v919_v60, 0.0  ;;  %v861_v0 = vadd.f32 %v860_v62, %v727_v61 }
 0x166   : > { %v1024_v3 = vpack.c.bf16 %v974_v63, %v974_v63  ;;  %v951_v4 = vmax.f32 %v861_v0, 0.0 }
 0x167   : > { %v786_v5 = vpop.f32.mrf.mxu2 }
 0x168   : > { %1075 = vst.msk [vmem:[%s1768_s8 + $0xb8] sm:$0xf] %vm1028_vm0, %v1024_v3  ;;  %v1001_v6 = vpack.c.bf16 %v951_v4, %v951_v4  ;;  %v787_v7 = vadd.f32 %v1753_v48, %v786_v5  ;;  %v925_v29 = vpop.f32.mrf.mxu3 }
 0x16a   : > { %1052 = vst.msk [vmem:[%s1768_s8 + $0x5c] sm:$0xf] %vm1028_vm0, %v1001_v6  ;;  %v921_v9 = vadd.f32 %v920_v1, %v787_v7  ;;  %v863_v10 = vpop.f32.mrf.mxu1 }
 0x16b   : > { %v864_v11 = vadd.f32 %v863_v10, %v730_v8 }
 0x16c   : > { %v975_v12 = vmax.f32 %v921_v9, 0.0 }
 0x16d   : > { %v952_v13 = vmax.f32 %v864_v11, 0.0 }
 0x16e   : > { %v1025_v14 = vpack.c.bf16 %v975_v12, %v975_v12 }
 0x16f   : > { %v1002_v15 = vpack.c.bf16 %v952_v13, %v952_v13  ;;  %v789_v17 = vpop.f32.mrf.mxu2 }
 0x170   : > { %1076 = vst.msk [vmem:[%s1768_s8 + $0xbc] sm:$0xf] %vm1028_vm0, %v1025_v14  ;;  %v790_v19 = vadd.f32 %v1753_v48, %v789_v17 }
 0x171   : > { %1053 = vst.msk [vmem:[%s1768_s8 + $0x60] sm:$0xf] %vm1028_vm0, %v1002_v15 }
 0x172   : > { %v924_v20 = vadd.f32 %v923_v16, %v790_v19  ;;  %v865_v21 = vpop.f32.mrf.mxu1 }
 0x173   : > { %v866_v22 = vadd.f32 %v865_v21, %v732_v2 }
 0x174   : > { %v976_v23 = vmax.f32 %v924_v20, 0.0 }
 0x175   : > { %v953_v24 = vmax.f32 %v866_v22, 0.0 }
 0x176   : > { %v1026_v25 = vpack.c.bf16 %v976_v23, %v976_v23 }
 0x177   : > { %v1003_v26 = vpack.c.bf16 %v953_v24, %v953_v24  ;;  %v791_v27 = vpop.f32.mrf.mxu2 }
 0x178   : > { %1077 = vst.msk [vmem:[%s1768_s8 + $0xc0] sm:$0xf] %vm1028_vm0, %v1026_v25  ;;  %v792_v28 = vadd.f32 %v1753_v48, %v791_v27 }
 0x179   : > { %1054 = vst.msk [vmem:[%s1768_s8 + $0x64] sm:$0xf] %vm1028_vm0, %v1003_v26 }
 0x17a   : > { %v926_v30 = vadd.f32 %v925_v29, %v792_v28 }
 0x17c   : > { %v977_v18 = vmax.f32 %v926_v30, 0.0 }
 0x17e   : > { %v1027_v31 = vpack.c.bf16 %v977_v18, %v977_v18 }
 0x180   : > { %1078 = vst.msk [vmem:[%s1768_s8 + $0xc4] sm:$0xf] %vm1028_vm0, %v1027_v31 }
 0x181 PF: > { %s13_s14 = sadd.s32 1, %s1587_s14   ;;  %s1966_s12 = smov %s1583_s13 }
 0x182   : > { %p10_p5 = scmp.ge.s32.totalorder %s13_s14, 4   ;;  %s1967_s13 = smov %s1969_s15 }
 0x184   :  { %12 = sbr.rel (!%p10_p5) target bundleno = 2 (0x2), region = 68 }

// kernel: forward.6
= control target key start
LH: loop header
LB: loop body
LE: loop exit
PB: predicated region body
PF: predicated region fallthrough
CT: control target
= control target key end

     0   :  { %vm824_vm0 = vcmask 519168   ;;  %vm845_vm1 = vcmask 516096   ;;  %s1683_s1 = inlined_call_operand.vmem [shape: bf16[512,64], index: 1, kind: input, shape index: {}]   ;;  %s1684_s2 = inlined_call_operand.vmem [shape: f32[1,64], index: 2, kind: input, shape index: {}]   ;;  %s1685_s0 = inlined_call_operand.vmem [shape: bf16[162,512], index: 0, kind: input, shape index: {}]   ;;  %s1686_s3 = inlined_call_operand.vmem [shape: bf16[162,64], index: 3, kind: output, shape index: {}]  }
   0x1   :  { %v1186_v0 = vld [vmem:[%s1683_s1 + $0x38] sm:$0xff]  ;;  %v1185_v4 = vld [vmem:[%s1683_s1 + $0x30] sm:$0xff]  ;;  %v1184_v8 = vld [vmem:[%s1683_s1 + $0x28] sm:$0xff] }
   0x2   :  { %v1194_v1 = vld [vmem:[%s1683_s1 + $0x78] sm:$0xff]  ;;  %530 = vmatpush.bf16.msra.mxu0 %v1186_v0  ;;  %v1193_v5 = vld [vmem:[%s1683_s1 + $0x70] sm:$0xff]  ;;  %v1192_v9 = vld [vmem:[%s1683_s1 + $0x68] sm:$0xff] }
   0x3   :  { %v1202_v2 = vld [vmem:[%s1683_s1 + $0xb8] sm:$0xff]  ;;  %593 = vmatpush.bf16.msra.mxu1 %v1194_v1  ;;  %v1201_v6 = vld [vmem:[%s1683_s1 + $0xb0] sm:$0xff]  ;;  %v1200_v10 = vld [vmem:[%s1683_s1 + $0xa8] sm:$0xff] }
   0x4   :  { %v1210_v3 = vld [vmem:[%s1683_s1 + $0xf8] sm:$0xff]  ;;  %656 = vmatpush.bf16.msra.mxu2 %v1202_v2  ;;  %v1209_v7 = vld [vmem:[%s1683_s1 + $0xf0] sm:$0xff]  ;;  %v1208_v11 = vld [vmem:[%s1683_s1 + $0xe8] sm:$0xff] }
   0x5   :  { %719 = vmatpush.bf16.msra.mxu3 %v1210_v3  ;;  %v1183_v12 = vld [vmem:[%s1683_s1 + $0x20] sm:$0xff]  ;;  %v1182_v16 = vld [vmem:[%s1683_s1 + $0x18] sm:$0xff]  ;;  %v1181_v20 = vld [vmem:[%s1683_s1 + $0x10] sm:$0xff] }
   0x6   :  { %531 = vmatpush.bf16.msra.mxu0 %v1185_v4  ;;  %v1191_v13 = vld [vmem:[%s1683_s1 + $0x60] sm:$0xff]  ;;  %v1190_v17 = vld [vmem:[%s1683_s1 + $0x58] sm:$0xff]  ;;  %v1189_v21 = vld [vmem:[%s1683_s1 + $0x50] sm:$0xff] }
   0x7   :  { %594 = vmatpush.bf16.msra.mxu1 %v1193_v5  ;;  %v1199_v14 = vld [vmem:[%s1683_s1 + $0xa0] sm:$0xff]  ;;  %v1198_v18 = vld [vmem:[%s1683_s1 + $0x98] sm:$0xff]  ;;  %v1197_v22 = vld [vmem:[%s1683_s1 + $0x90] sm:$0xff] }
   0x8   :  { %657 = vmatpush.bf16.msra.mxu2 %v1201_v6  ;;  %v1207_v15 = vld [vmem:[%s1683_s1 + $0xe0] sm:$0xff]  ;;  %v1206_v19 = vld [vmem:[%s1683_s1 + $0xd8] sm:$0xff]  ;;  %v1205_v23 = vld [vmem:[%s1683_s1 + $0xd0] sm:$0xff] }
   0x9   :  { %720 = vmatpush.bf16.msra.mxu3 %v1209_v7  ;;  %v1180_v24 = vld [vmem:[%s1683_s1 + $0x8] sm:$0xff]  ;;  %v1179_v28 = vld [vmem:[%s1683_s1] sm:$0xff]  ;;  %v1141_v33 = vld [vmem:[%s1685_s0 + $0xc] sm:$0xf0] }
   0xa   :  { %532 = vmatpush.bf16.msra.mxu0 %v1184_v8  ;;  %v1188_v25 = vld [vmem:[%s1683_s1 + $0x48] sm:$0xff]  ;;  %v1187_v29 = vld [vmem:[%s1683_s1 + $0x40] sm:$0xff]  ;;  %v855_v35 = vld [vmem:[%s1685_s0 + $0x10] sm:$0xf0] }
   0xb   :  { %595 = vmatpush.bf16.msra.mxu1 %v1192_v9  ;;  %v1196_v26 = vld [vmem:[%s1683_s1 + $0x88] sm:$0xff]  ;;  %v1195_v30 = vld [vmem:[%s1683_s1 + $0x80] sm:$0xff]  ;;  %v1142_v37 = vld [vmem:[%s1685_s0 + $0x14] sm:$0xf0] }
   0xc   :  { %658 = vmatpush.bf16.msra.mxu2 %v1200_v10  ;;  %v1204_v27 = vld [vmem:[%s1683_s1 + $0xc8] sm:$0xff]  ;;  %v1203_v31 = vld [vmem:[%s1683_s1 + $0xc0] sm:$0xff]  ;;  %v863_v39 = vld [vmem:[%s1685_s0 + $0x18] sm:$0xf0] }
   0xd   :  { %721 = vmatpush.bf16.msra.mxu3 %v1208_v11  ;;  %v853_v32 = vld [vmem:[%s1685_s0] sm:$0xf]  ;;  %v1139_v34 = vld [vmem:[%s1685_s0 + $0x4] sm:$0xf]  ;;  %v861_v36 = vld [vmem:[%s1685_s0 + $0x8] sm:$0xf] }
   0xe   :  { %533 = vmatpush.bf16.msra.mxu0 %v1183_v12  ;;  %v1140_v38 = vld [vmem:[%s1685_s0 + $0xc] sm:$0xf]  ;;  %v854_v40 = vor.u32 %v1141_v33, %v853_v32  ;;  %v858_v41 = vor.u32 %v1139_v34, %v855_v35  ;;  %v862_v42 = vor.u32 %v1142_v37, %v861_v36  ;;  %v869_v44 = vld [vmem:[%s1685_s0 + $0x20] sm:$0xf]  ;;  %v1145_v45 = vld [vmem:[%s1685_s0 + $0x2c] sm:$0xf0] }
   0xf   :  { %596 = vmatpush.bf16.msra.mxu1 %v1191_v13  ;;  %v866_v43 = vor.u32 %v1140_v38, %v863_v39  ;;  %v1143_v46 = vld [vmem:[%s1685_s0 + $0x24] sm:$0xf]  ;;  %v871_v47 = vld [vmem:[%s1685_s0 + $0x30] sm:$0xf0]  ;;  %v877_v48 = vld [vmem:[%s1685_s0 + $0x28] sm:$0xf]  ;;  %v870_v52 = vor.u32 %v1145_v45, %v869_v44 }
  0x10   :  { %659 = vmatpush.bf16.msra.mxu2 %v1199_v14  ;;  %v1146_v49 = vld [vmem:[%s1685_s0 + $0x34] sm:$0xf0]  ;;  %v1144_v50 = vld [vmem:[%s1685_s0 + $0x2c] sm:$0xf]  ;;  %v879_v51 = vld [vmem:[%s1685_s0 + $0x38] sm:$0xf0]  ;;  %v874_v53 = vor.u32 %v1143_v46, %v871_v47 }
  0x11   :  { %722 = vmatpush.bf16.msra.mxu3 %v1207_v15  ;;  %v878_v54 = vor.u32 %v1146_v49, %v877_v48  ;;  %v882_v55 = vor.u32 %v1144_v50, %v879_v51  ;;  %v885_v56 = vld [vmem:[%s1685_s0 + $0x40] sm:$0xf]  ;;  %v1149_v57 = vld [vmem:[%s1685_s0 + $0x4c] sm:$0xf0]  ;;  %v1147_v58 = vld [vmem:[%s1685_s0 + $0x44] sm:$0xf] }
  0x12   :  { %534 = vmatpush.bf16.msra.mxu0 %v1182_v16  ;;  %v887_v59 = vld [vmem:[%s1685_s0 + $0x50] sm:$0xf0]  ;;  %v893_v60 = vld [vmem:[%s1685_s0 + $0x48] sm:$0xf]  ;;  %v1150_v61 = vld [vmem:[%s1685_s0 + $0x54] sm:$0xf0]  ;;  %v886_v0 = vor.u32 %v1149_v57, %v885_v56 }
  0x13   :  { %597 = vmatpush.bf16.msra.mxu1 %v1190_v17  ;;  %v1148_v62 = vld [vmem:[%s1685_s0 + $0x4c] sm:$0xf]  ;;  %v895_v63 = vld [vmem:[%s1685_s0 + $0x58] sm:$0xf0]  ;;  %v890_v1 = vor.u32 %v1147_v58, %v887_v59  ;;  %v894_v2 = vor.u32 %v1150_v61, %v893_v60  ;;  %v901_v4 = vld [vmem:[%s1685_s0 + $0x60] sm:$0xf] }
  0x14   :  { %660 = vmatpush.bf16.msra.mxu2 %v1198_v18  ;;  %v898_v3 = vor.u32 %v1148_v62, %v895_v63  ;;  %v1153_v5 = vld [vmem:[%s1685_s0 + $0x6c] sm:$0xf0]  ;;  %v1151_v6 = vld [vmem:[%s1685_s0 + $0x64] sm:$0xf]  ;;  %v903_v7 = vld [vmem:[%s1685_s0 + $0x70] sm:$0xf0] }
  0x15   :  { %723 = vmatpush.bf16.msra.mxu3 %v1206_v19  ;;  %v909_v8 = vld [vmem:[%s1685_s0 + $0x68] sm:$0xf]  ;;  %v1154_v9 = vld [vmem:[%s1685_s0 + $0x74] sm:$0xf0]  ;;  %v1152_v10 = vld [vmem:[%s1685_s0 + $0x6c] sm:$0xf]  ;;  %v902_v12 = vor.u32 %v1153_v5, %v901_v4  ;;  %v906_v13 = vor.u32 %v1151_v6, %v903_v7 }
  0x16   :  { %535 = vmatpush.bf16.msra.mxu0 %v1181_v20  ;;  %v911_v11 = vld [vmem:[%s1685_s0 + $0x78] sm:$0xf0]  ;;  %v910_v14 = vor.u32 %v1154_v9, %v909_v8  ;;  %v917_v16 = vld [vmem:[%s1685_s0 + $0x80] sm:$0xf]  ;;  %v1157_v17 = vld [vmem:[%s1685_s0 + $0x8c] sm:$0xf0] }
  0x17   :  { %598 = vmatpush.bf16.msra.mxu1 %v1189_v21  ;;  %v914_v15 = vor.u32 %v1152_v10, %v911_v11  ;;  %v1155_v18 = vld [vmem:[%s1685_s0 + $0x84] sm:$0xf]  ;;  %v919_v19 = vld [vmem:[%s1685_s0 + $0x90] sm:$0xf0]  ;;  %v925_v20 = vld [vmem:[%s1685_s0 + $0x88] sm:$0xf] }
  0x18   :  { %661 = vmatpush.bf16.msra.mxu2 %v1197_v22  ;;  %v1158_v21 = vld [vmem:[%s1685_s0 + $0x94] sm:$0xf0]  ;;  %v1156_v22 = vld [vmem:[%s1685_s0 + $0x8c] sm:$0xf]  ;;  %v941_v32 = vld [vmem:[%s1685_s0 + $0xa8] sm:$0xf] }
  0x19   :  { %724 = vmatpush.bf16.msra.mxu3 %v1205_v23  ;;  %v927_v23 = vld [vmem:[%s1685_s0 + $0x98] sm:$0xf0]  ;;  %v1162_v33 = vld [vmem:[%s1685_s0 + $0xb4] sm:$0xf0]  ;;  %v1160_v34 = vld [vmem:[%s1685_s0 + $0xac] sm:$0xf] }
  0x1a   :  { %536 = vmatpush.bf16.msra.mxu0 %v1180_v24  ;;  %v918_v24 = vor.u32 %v1157_v17, %v917_v16  ;;  %v943_v35 = vld [vmem:[%s1685_s0 + $0xb8] sm:$0xf0]  ;;  %v942_v38 = vor.u32 %v1162_v33, %v941_v32  ;;  %v957_v44 = vld [vmem:[%s1685_s0 + $0xc8] sm:$0xf]  ;;  %v1166_v45 = vld [vmem:[%s1685_s0 + $0xd4] sm:$0xf0] }
  0x1b   :  { %599 = vmatpush.bf16.msra.mxu1 %v1188_v25  ;;  %v922_v25 = vor.u32 %v1155_v18, %v919_v19  ;;  %v946_v39 = vor.u32 %v1160_v34, %v943_v35  ;;  %v1164_v46 = vld [vmem:[%s1685_s0 + $0xcc] sm:$0xf]  ;;  %v959_v47 = vld [vmem:[%s1685_s0 + $0xd8] sm:$0xf0]  ;;  %v958_v50 = vor.u32 %v1166_v45, %v957_v44  ;;  %v973_v56 = vld [vmem:[%s1685_s0 + $0xe8] sm:$0xf] }
  0x1c   :  { %662 = vmatpush.bf16.msra.mxu2 %v1196_v26  ;;  %v926_v26 = vor.u32 %v1158_v21, %v925_v20  ;;  %v962_v51 = vor.u32 %v1164_v46, %v959_v47  ;;  %v1170_v57 = vld [vmem:[%s1685_s0 + $0xf4] sm:$0xf0]  ;;  %v1168_v58 = vld [vmem:[%s1685_s0 + $0xec] sm:$0xf]  ;;  %v975_v59 = vld [vmem:[%s1685_s0 + $0xf8] sm:$0xf0] }
  0x1d   :  { %725 = vmatpush.bf16.msra.mxu3 %v1204_v27  ;;  %v930_v27 = vor.u32 %v1156_v22, %v927_v23  ;;  %v974_v62 = vor.u32 %v1170_v57, %v973_v56  ;;  %v978_v63 = vor.u32 %v1168_v58, %v975_v59  ;;  %v983_v4 = vld [vmem:[%s1685_s0 + $0x110] sm:$0xf0]  ;;  %v989_v5 = vld [vmem:[%s1685_s0 + $0x108] sm:$0xf]  ;;  %v1174_v6 = vld [vmem:[%s1685_s0 + $0x114] sm:$0xf0] }
  0x1e   :  { %537 = vmatpush.bf16.msra.mxu0 %v1179_v28  ;;  %v933_v28 = vld [vmem:[%s1685_s0 + $0xa0] sm:$0xf]  ;;  %v1172_v7 = vld [vmem:[%s1685_s0 + $0x10c] sm:$0xf]  ;;  %v991_v8 = vld [vmem:[%s1685_s0 + $0x118] sm:$0xf0] }
  0x1f   :  { %600 = vmatpush.bf16.msra.mxu1 %v1187_v29  ;;  %v1161_v29 = vld [vmem:[%s1685_s0 + $0xac] sm:$0xf0]  ;;  %v1007_v32 = vld [vmem:[%s1685_s0 + $0x138] sm:$0xf0] }
  0x20   :  { %663 = vmatpush.bf16.msra.mxu2 %v1195_v30  ;;  %v1159_v30 = vld [vmem:[%s1685_s0 + $0xa4] sm:$0xf]  ;;  %v934_v36 = vor.u32 %v1161_v29, %v933_v28  ;;  %v999_v28 = vld [vmem:[%s1685_s0 + $0x130] sm:$0xf0]  ;;  %v1005_v29 = vld [vmem:[%s1685_s0 + $0x128] sm:$0xf] }
  0x21   :  { %726 = vmatpush.bf16.msra.mxu3 %v1203_v31  ;;  %538 = vmatmul.bf16.vlgmr.msra.gmra.mxu0 %v854_v40  ;;  %v935_v31 = vld [vmem:[%s1685_s0 + $0xb0] sm:$0xf0]  ;;  %v949_v40 = vld [vmem:[%s1685_s0 + $0xc0] sm:$0xf] }
  0x22   :  { %601 = vmatmul.bf16.vlgmr.msra.gmra.mxu1 %v858_v41  ;;  %v938_v37 = vor.u32 %v1159_v30, %v935_v31  ;;  %v1165_v41 = vld [vmem:[%s1685_s0 + $0xcc] sm:$0xf0]  ;;  %v1178_v30 = vld [vmem:[%s1685_s0 + $0x134] sm:$0xf0]  ;;  %v1176_v31 = vld [vmem:[%s1685_s0 + $0x12c] sm:$0xf] }
  0x23   :  { %664 = vmatmul.bf16.vlgmr.msra.gmra.mxu2 %v862_v42  ;;  %v1163_v42 = vld [vmem:[%s1685_s0 + $0xc4] sm:$0xf]  ;;  %v950_v48 = vor.u32 %v1165_v41, %v949_v40 }
  0x24   :  { %727 = vmatmul.bf16.vlgmr.msra.gmra.mxu3 %v866_v43  ;;  %v951_v43 = vld [vmem:[%s1685_s0 + $0xd0] sm:$0xf0] }
  0x25   :  { %v954_v49 = vor.u32 %v1163_v42, %v951_v43  ;;  %v1006_v42 = vor.u32 %v1178_v30, %v1005_v29  ;;  %v1010_v43 = vor.u32 %v1176_v31, %v1007_v32 }
  0x31   :  { %543 = vmatmul.bf16.gmra.mxu0 %v870_v52  ;;  %v965_v52 = vld [vmem:[%s1685_s0 + $0xe0] sm:$0xf] }
  0x32   :  { %606 = vmatmul.bf16.gmra.mxu1 %v874_v53  ;;  %v1169_v53 = vld [vmem:[%s1685_s0 + $0xec] sm:$0xf0] }
  0x33   :  { %669 = vmatmul.bf16.gmra.mxu2 %v878_v54  ;;  %v1167_v54 = vld [vmem:[%s1685_s0 + $0xe4] sm:$0xf]  ;;  %v966_v60 = vor.u32 %v1169_v53, %v965_v52 }
  0x34   :  { %732 = vmatmul.bf16.gmra.mxu3 %v882_v55  ;;  %v967_v55 = vld [vmem:[%s1685_s0 + $0xf0] sm:$0xf0] }
  0x35   :  { %v970_v61 = vor.u32 %v1167_v54, %v967_v55  ;;  %v54_v54 = vld [vmem:[%s1685_s0 + $0x140] sm:$0x11]  ;;  %v55_v55 = vld [vmem:[%s1685_s0 + $0x148] sm:$0x11] }
  0x36   :  { %v246_v58 = vunpack.c.l.b16 %v54_v54  ;;  %v247_v59 = vunpack.c.h.b16 %v54_v54 }
  0x41   :  { %548 = vmatmul.bf16.gmra.mxu0 %v886_v0  ;;  %v1523_v0 = vld [vmem:[%s1684_s2] ss:$0 sm:$0xff] }
  0x42   :  { %611 = vmatmul.bf16.gmra.mxu1 %v890_v1  ;;  %v981_v1 = vld [vmem:[%s1685_s0 + $0x100] sm:$0xf] }
  0x43   :  { %674 = vmatmul.bf16.gmra.mxu2 %v894_v2  ;;  %v1173_v2 = vld [vmem:[%s1685_s0 + $0x10c] sm:$0xf0] }
  0x44   :  { %737 = vmatmul.bf16.gmra.mxu3 %v898_v3  ;;  %v1171_v3 = vld [vmem:[%s1685_s0 + $0x104] sm:$0xf]  ;;  %v982_v9 = vor.u32 %v1173_v2, %v981_v1 }
  0x45   :  { %v986_v10 = vor.u32 %v1171_v3, %v983_v4  ;;  %v290_v4 = vpack.c.b16 %v246_v58, %v246_v58 }
  0x51   :  { %553 = vmatmul.bf16.gmra.mxu0 %v902_v12 }
  0x52   :  { %616 = vmatmul.bf16.gmra.mxu1 %v906_v13  ;;  %v990_v13 = vor.u32 %v1174_v6, %v989_v5  ;;  %v291_v5 = vpack.c.b16 %v247_v59, %v247_v59 }
  0x53   :  { %679 = vmatmul.bf16.gmra.mxu2 %v910_v14  ;;  %v994_v14 = vor.u32 %v1172_v7, %v991_v8 }
  0x54   :  { %742 = vmatmul.bf16.gmra.mxu3 %v914_v15 }
  0x61   :  { %558 = vmatmul.bf16.gmra.mxu0 %v918_v24  ;;  %v997_v24 = vld [vmem:[%s1685_s0 + $0x120] sm:$0xf] }
  0x62   :  { %621 = vmatmul.bf16.gmra.mxu1 %v922_v25  ;;  %v1177_v25 = vld [vmem:[%s1685_s0 + $0x12c] sm:$0xf0] }
  0x63   :  { %684 = vmatmul.bf16.gmra.mxu2 %v926_v26  ;;  %v1175_v26 = vld [vmem:[%s1685_s0 + $0x124] sm:$0xf] }
  0x64   :  { %747 = vmatmul.bf16.gmra.mxu3 %v930_v27 }
  0x71   :  { %563 = vmatmul.bf16.gmra.mxu0 %v934_v36 }
  0x72   :  { %626 = vmatmul.bf16.gmra.mxu1 %v938_v37  ;;  %v998_v37 = vor.u32 %v1177_v25, %v997_v24 }
  0x73   :  { %689 = vmatmul.bf16.gmra.mxu2 %v942_v38  ;;  %v1002_v38 = vor.u32 %v1175_v26, %v999_v28 }
  0x74   :  { %752 = vmatmul.bf16.gmra.mxu3 %v946_v39 }
  0x81   :  { %568 = vmatmul.bf16.gmra.mxu0 %v950_v48 }
  0x82   :  { %631 = vmatmul.bf16.gmra.mxu1 %v954_v49 }
  0x83   :  { %694 = vmatmul.bf16.gmra.mxu2 %v958_v50 }
  0x84   :  { %757 = vmatmul.bf16.gmra.mxu3 %v962_v51 }
  0x91   :  { %573 = vmatmul.bf16.gmra.mxu0 %v966_v60 }
  0x92   :  { %636 = vmatmul.bf16.gmra.mxu1 %v970_v61  ;;  %v248_v61 = vunpack.c.l.b16 %v55_v55 }
  0x93   :  { %699 = vmatmul.bf16.gmra.mxu2 %v974_v62  ;;  %v249_v62 = vunpack.c.h.b16 %v55_v55 }
  0x94   :  { %762 = vmatmul.bf16.gmra.mxu3 %v978_v63 }
  0x9e   :  { %v539_v11 = vpop.f32.mrf.mxu0 }
  0x9f   :  { %v602_v12 = vpop.f32.mrf.mxu1  ;;  %v540_v15 = vadd.f32 %v1523_v0, %v539_v11 }
  0xa1   :  { %578 = vmatmul.bf16.gmra.mxu0 %v982_v9  ;;  %v603_v16 = vadd.f32 %v602_v12, %v540_v15  ;;  %v292_v9 = vpack.c.b16 %v248_v61, %v248_v61 }
  0xa2   :  { %641 = vmatmul.bf16.gmra.mxu1 %v986_v10  ;;  %v293_v10 = vpack.c.b16 %v249_v62, %v249_v62 }
  0xa3   :  { %704 = vmatmul.bf16.gmra.mxu2 %v990_v13 }
  0xa4   :  { %767 = vmatmul.bf16.gmra.mxu3 %v994_v14 }
  0xa6   :  { %v665_v17 = vpop.f32.mrf.mxu2  ;;  %v541_v20 = vpop.f32.mrf.mxu0 }
  0xa7   :  { %v728_v18 = vpop.f32.mrf.mxu3  ;;  %v666_v19 = vadd.f32 %v665_v17, %v603_v16  ;;  %v604_v21 = vpop.f32.mrf.mxu1  ;;  %v542_v23 = vadd.f32 %v1523_v0, %v541_v20 }
  0xa9   :  { %v729_v22 = vadd.f32 %v728_v18, %v666_v19  ;;  %v605_v34 = vadd.f32 %v604_v21, %v542_v23 }
  0xab   :  { %v782_v27 = vmax.f32 %v729_v22, 0.0 }
  0xad   :  { %v803_v33 = vpack.c.bf16 %v782_v27, %v782_v27 }
  0xae   :  { %v667_v35 = vpop.f32.mrf.mxu2  ;;  %v544_v40 = vpop.f32.mrf.mxu0 }
  0xaf   :  { %v730_v36 = vpop.f32.mrf.mxu3  ;;  %825 = vst.msk [vmem:[%s1686_s3] sm:$0xf] %vm824_vm0, %v803_v33  ;;  %v668_v39 = vadd.f32 %v667_v35, %v605_v34  ;;  %v607_v41 = vpop.f32.mrf.mxu1  ;;  %v545_v44 = vadd.f32 %v1523_v0, %v544_v40 }
  0xb1   :  { %v731_v45 = vadd.f32 %v730_v36, %v668_v39  ;;  %583 = vmatmul.bf16.gmra.mxu0 %v998_v37  ;;  %v608_v47 = vadd.f32 %v607_v41, %v545_v44 }
  0xb2   :  { %646 = vmatmul.bf16.gmra.mxu1 %v1002_v38 }
  0xb3   :  { %v783_v46 = vmax.f32 %v731_v45, 0.0  ;;  %709 = vmatmul.bf16.gmra.mxu2 %v1006_v42 }
  0xb4   :  { %772 = vmatmul.bf16.gmra.mxu3 %v1010_v43 }
  0xb5   :  { %v804_v48 = vpack.c.bf16 %v783_v46, %v783_v46 }
  0xb6   :  { %v670_v49 = vpop.f32.mrf.mxu2  ;;  %v546_v52 = vpop.f32.mrf.mxu0 }
  0xb7   :  { %v733_v50 = vpop.f32.mrf.mxu3  ;;  %826 = vst.msk [vmem:[%s1686_s3 + $0x4] sm:$0xf] %vm824_vm0, %v804_v48  ;;  %v671_v51 = vadd.f32 %v670_v49, %v608_v47  ;;  %v609_v53 = vpop.f32.mrf.mxu1  ;;  %v547_v57 = vadd.f32 %v1523_v0, %v546_v52 }
  0xb9   :  { %v734_v56 = vadd.f32 %v733_v50, %v671_v51  ;;  %v610_v1 = vadd.f32 %v609_v53, %v547_v57 }
  0xbb   :  { %v784_v60 = vmax.f32 %v734_v56, 0.0 }
  0xbd   :  { %v805_v63 = vpack.c.bf16 %v784_v60, %v784_v60 }
  0xbe   :  { %v672_v2 = vpop.f32.mrf.mxu2  ;;  %v549_v7 = vpop.f32.mrf.mxu0 }
  0xbf   :  { %v735_v3 = vpop.f32.mrf.mxu3  ;;  %827 = vst.msk [vmem:[%s1686_s3 + $0x8] sm:$0xf] %vm824_vm0, %v805_v63  ;;  %v673_v6 = vadd.f32 %v672_v2, %v610_v1  ;;  %v612_v8 = vpop.f32.mrf.mxu1  ;;  %v550_v11 = vadd.f32 %v1523_v0, %v549_v7 }
  0xc1   :  { %v736_v12 = vadd.f32 %v735_v3, %v673_v6  ;;  %588 = vmatmul.bf16.gmra.mxu0 %v290_v4  ;;  %v613_v14 = vadd.f32 %v612_v8, %v550_v11 }
  0xc2   :  { %651 = vmatmul.bf16.gmra.mxu1 %v291_v5 }
  0xc3   :  { %v785_v13 = vmax.f32 %v736_v12, 0.0  ;;  %714 = vmatmul.bf16.gmra.mxu2 %v292_v9 }
  0xc4   :  { %777 = vmatmul.bf16.gmra.mxu3 %v293_v10 }
  0xc5   :  { %v806_v15 = vpack.c.bf16 %v785_v13, %v785_v13 }
  0xc6   :  { %v675_v16 = vpop.f32.mrf.mxu2  ;;  %v551_v19 = vpop.f32.mrf.mxu0 }
  0xc7   :  { %v738_v17 = vpop.f32.mrf.mxu3  ;;  %828 = vst.msk [vmem:[%s1686_s3 + $0xc] sm:$0xf] %vm824_vm0, %v806_v15  ;;  %v676_v18 = vadd.f32 %v675_v16, %v613_v14  ;;  %v614_v20 = vpop.f32.mrf.mxu1  ;;  %v552_v22 = vadd.f32 %v1523_v0, %v551_v19 }
  0xc9   :  { %v739_v21 = vadd.f32 %v738_v17, %v676_v18  ;;  %v615_v25 = vadd.f32 %v614_v20, %v552_v22 }
  0xcb   :  { %v786_v23 = vmax.f32 %v739_v21, 0.0 }
  0xcd   :  { %v807_v24 = vpack.c.bf16 %v786_v23, %v786_v23 }
  0xce   :  { %v677_v26 = vpop.f32.mrf.mxu2  ;;  %v554_v29 = vpop.f32.mrf.mxu0 }
  0xcf   :  { %v740_v27 = vpop.f32.mrf.mxu3  ;;  %829 = vst.msk [vmem:[%s1686_s3 + $0x10] sm:$0xf] %vm824_vm0, %v807_v24  ;;  %v678_v28 = vadd.f32 %v677_v26, %v615_v25  ;;  %v617_v30 = vpop.f32.mrf.mxu1  ;;  %v555_v31 = vadd.f32 %v1523_v0, %v554_v29 }
  0xd1   :  { %v741_v32 = vadd.f32 %v740_v27, %v678_v28  ;;  %v618_v34 = vadd.f32 %v617_v30, %v555_v31 }
  0xd3   :  { %v787_v33 = vmax.f32 %v741_v32, 0.0 }
  0xd5   :  { %v808_v35 = vpack.c.bf16 %v787_v33, %v787_v33 }
  0xd6   :  { %v680_v36 = vpop.f32.mrf.mxu2  ;;  %v556_v39 = vpop.f32.mrf.mxu0 }
  0xd7   :  { %v743_v37 = vpop.f32.mrf.mxu3  ;;  %830 = vst.msk [vmem:[%s1686_s3 + $0x14] sm:$0xf] %vm824_vm0, %v808_v35  ;;  %v681_v38 = vadd.f32 %v680_v36, %v618_v34  ;;  %v619_v40 = vpop.f32.mrf.mxu1  ;;  %v557_v42 = vadd.f32 %v1523_v0, %v556_v39 }
  0xd9   :  { %v744_v41 = vadd.f32 %v743_v37, %v681_v38  ;;  %v620_v45 = vadd.f32 %v619_v40, %v557_v42 }
  0xdb   :  { %v788_v43 = vmax.f32 %v744_v41, 0.0 }
  0xdd   :  { %v809_v44 = vpack.c.bf16 %v788_v43, %v788_v43 }
  0xde   :  { %v682_v46 = vpop.f32.mrf.mxu2  ;;  %v559_v49 = vpop.f32.mrf.mxu0 }
  0xdf   :  { %v745_v47 = vpop.f32.mrf.mxu3  ;;  %831 = vst.msk [vmem:[%s1686_s3 + $0x18] sm:$0xf] %vm824_vm0, %v809_v44  ;;  %v683_v48 = vadd.f32 %v682_v46, %v620_v45  ;;  %v622_v50 = vpop.f32.mrf.mxu1  ;;  %v560_v51 = vadd.f32 %v1523_v0, %v559_v49 }
  0xe1   :  { %v746_v52 = vadd.f32 %v745_v47, %v683_v48  ;;  %v623_v54 = vadd.f32 %v622_v50, %v560_v51 }
  0xe3   :  { %v789_v53 = vmax.f32 %v746_v52, 0.0 }
  0xe5   :  { %v810_v55 = vpack.c.bf16 %v789_v53, %v789_v53 }
  0xe6   :  { %v685_v56 = vpop.f32.mrf.mxu2  ;;  %v561_v59 = vpop.f32.mrf.mxu0 }
  0xe7   :  { %v748_v57 = vpop.f32.mrf.mxu3  ;;  %832 = vst.msk [vmem:[%s1686_s3 + $0x1c] sm:$0xf] %vm824_vm0, %v810_v55  ;;  %v686_v58 = vadd.f32 %v685_v56, %v623_v54  ;;  %v624_v60 = vpop.f32.mrf.mxu1  ;;  %v562_v62 = vadd.f32 %v1523_v0, %v561_v59 }
  0xe9   :  { %v749_v61 = vadd.f32 %v748_v57, %v686_v58  ;;  %v625_v2 = vadd.f32 %v624_v60, %v562_v62 }
  0xeb   :  { %v790_v63 = vmax.f32 %v749_v61, 0.0 }
  0xed   :  { %v811_v1 = vpack.c.bf16 %v790_v63, %v790_v63 }
  0xee   :  { %v687_v3 = vpop.f32.mrf.mxu2  ;;  %v564_v6 = vpop.f32.mrf.mxu0 }
  0xef   :  { %v750_v4 = vpop.f32.mrf.mxu3  ;;  %833 = vst.msk [vmem:[%s1686_s3 + $0x20] sm:$0xf] %vm824_vm0, %v811_v1  ;;  %v688_v5 = vadd.f32 %v687_v3, %v625_v2  ;;  %v627_v7 = vpop.f32.mrf.mxu1  ;;  %v565_v8 = vadd.f32 %v1523_v0, %v564_v6 }
  0xf1   :  { %v751_v9 = vadd.f32 %v750_v4, %v688_v5  ;;  %v628_v11 = vadd.f32 %v627_v7, %v565_v8 }
  0xf3   :  { %v791_v10 = vmax.f32 %v751_v9, 0.0 }
  0xf5   :  { %v812_v12 = vpack.c.bf16 %v791_v10, %v791_v10 }
  0xf6   :  { %v690_v13 = vpop.f32.mrf.mxu2  ;;  %v566_v16 = vpop.f32.mrf.mxu0 }
  0xf7   :  { %v753_v14 = vpop.f32.mrf.mxu3  ;;  %834 = vst.msk [vmem:[%s1686_s3 + $0x24] sm:$0xf] %vm824_vm0, %v812_v12  ;;  %v691_v15 = vadd.f32 %v690_v13, %v628_v11  ;;  %v629_v17 = vpop.f32.mrf.mxu1  ;;  %v567_v19 = vadd.f32 %v1523_v0, %v566_v16 }
  0xf9   :  { %v754_v18 = vadd.f32 %v753_v14, %v691_v15  ;;  %v630_v22 = vadd.f32 %v629_v17, %v567_v19 }
  0xfb   :  { %v792_v20 = vmax.f32 %v754_v18, 0.0 }
  0xfd   :  { %v813_v21 = vpack.c.bf16 %v792_v20, %v792_v20 }
  0xfe   :  { %v692_v23 = vpop.f32.mrf.mxu2  ;;  %v569_v26 = vpop.f32.mrf.mxu0 }
  0xff   :  { %v755_v24 = vpop.f32.mrf.mxu3  ;;  %835 = vst.msk [vmem:[%s1686_s3 + $0x28] sm:$0xf] %vm824_vm0, %v813_v21  ;;  %v693_v25 = vadd.f32 %v692_v23, %v630_v22  ;;  %v632_v27 = vpop.f32.mrf.mxu1  ;;  %v570_v28 = vadd.f32 %v1523_v0, %v569_v26 }
 0x101   :  { %v756_v29 = vadd.f32 %v755_v24, %v693_v25  ;;  %v633_v31 = vadd.f32 %v632_v27, %v570_v28 }
 0x103   :  { %v793_v30 = vmax.f32 %v756_v29, 0.0 }
 0x105   :  { %v814_v32 = vpack.c.bf16 %v793_v30, %v793_v30 }
 0x106   :  { %v695_v33 = vpop.f32.mrf.mxu2  ;;  %v571_v36 = vpop.f32.mrf.mxu0 }
 0x107   :  { %v758_v34 = vpop.f32.mrf.mxu3  ;;  %836 = vst.msk [vmem:[%s1686_s3 + $0x2c] sm:$0xf] %vm824_vm0, %v814_v32  ;;  %v696_v35 = vadd.f32 %v695_v33, %v633_v31  ;;  %v634_v37 = vpop.f32.mrf.mxu1  ;;  %v572_v39 = vadd.f32 %v1523_v0, %v571_v36 }
 0x109   :  { %v759_v38 = vadd.f32 %v758_v34, %v696_v35  ;;  %v635_v42 = vadd.f32 %v634_v37, %v572_v39 }
 0x10b   :  { %v794_v40 = vmax.f32 %v759_v38, 0.0 }
 0x10d   :  { %v815_v41 = vpack.c.bf16 %v794_v40, %v794_v40 }
 0x10e   :  { %v697_v43 = vpop.f32.mrf.mxu2  ;;  %v574_v46 = vpop.f32.mrf.mxu0 }
 0x10f   :  { %v760_v44 = vpop.f32.mrf.mxu3  ;;  %837 = vst.msk [vmem:[%s1686_s3 + $0x30] sm:$0xf] %vm824_vm0, %v815_v41  ;;  %v698_v45 = vadd.f32 %v697_v43, %v635_v42  ;;  %v637_v47 = vpop.f32.mrf.mxu1  ;;  %v575_v48 = vadd.f32 %v1523_v0, %v574_v46 }
 0x111   :  { %v761_v49 = vadd.f32 %v760_v44, %v698_v45  ;;  %v638_v51 = vadd.f32 %v637_v47, %v575_v48 }
 0x113   :  { %v795_v50 = vmax.f32 %v761_v49, 0.0 }
 0x115   :  { %v816_v52 = vpack.c.bf16 %v795_v50, %v795_v50 }
 0x116   :  { %v700_v53 = vpop.f32.mrf.mxu2  ;;  %v576_v56 = vpop.f32.mrf.mxu0 }
 0x117   :  { %v763_v54 = vpop.f32.mrf.mxu3  ;;  %838 = vst.msk [vmem:[%s1686_s3 + $0x34] sm:$0xf] %vm824_vm0, %v816_v52  ;;  %v701_v55 = vadd.f32 %v700_v53, %v638_v51  ;;  %v639_v57 = vpop.f32.mrf.mxu1  ;;  %v577_v59 = vadd.f32 %v1523_v0, %v576_v56 }
 0x119   :  { %v764_v58 = vadd.f32 %v763_v54, %v701_v55  ;;  %v640_v62 = vadd.f32 %v639_v57, %v577_v59 }
 0x11b   :  { %v796_v60 = vmax.f32 %v764_v58, 0.0 }
 0x11d   :  { %v817_v61 = vpack.c.bf16 %v796_v60, %v796_v60 }
 0x11e   :  { %v702_v63 = vpop.f32.mrf.mxu2  ;;  %v579_v3 = vpop.f32.mrf.mxu0 }
 0x11f   :  { %v765_v1 = vpop.f32.mrf.mxu3  ;;  %839 = vst.msk [vmem:[%s1686_s3 + $0x38] sm:$0xf] %vm824_vm0, %v817_v61  ;;  %v703_v2 = vadd.f32 %v702_v63, %v640_v62  ;;  %v642_v4 = vpop.f32.mrf.mxu1  ;;  %v580_v5 = vadd.f32 %v1523_v0, %v579_v3 }
 0x121   :  { %v766_v6 = vadd.f32 %v765_v1, %v703_v2  ;;  %v643_v8 = vadd.f32 %v642_v4, %v580_v5 }
 0x123   :  { %v797_v7 = vmax.f32 %v766_v6, 0.0 }
 0x125   :  { %v818_v9 = vpack.c.bf16 %v797_v7, %v797_v7 }
 0x126   :  { %v705_v10 = vpop.f32.mrf.mxu2  ;;  %v581_v13 = vpop.f32.mrf.mxu0 }
 0x127   :  { %v768_v11 = vpop.f32.mrf.mxu3  ;;  %840 = vst.msk [vmem:[%s1686_s3 + $0x3c] sm:$0xf] %vm824_vm0, %v818_v9  ;;  %v706_v12 = vadd.f32 %v705_v10, %v643_v8  ;;  %v644_v14 = vpop.f32.mrf.mxu1  ;;  %v582_v16 = vadd.f32 %v1523_v0, %v581_v13 }
 0x129   :  { %v769_v15 = vadd.f32 %v768_v11, %v706_v12  ;;  %v645_v19 = vadd.f32 %v644_v14, %v582_v16 }
 0x12b   :  { %v798_v17 = vmax.f32 %v769_v15, 0.0 }
 0x12d   :  { %v819_v18 = vpack.c.bf16 %v798_v17, %v798_v17 }
 0x12e   :  { %v707_v20 = vpop.f32.mrf.mxu2  ;;  %v584_v23 = vpop.f32.mrf.mxu0 }
 0x12f   :  { %v770_v21 = vpop.f32.mrf.mxu3  ;;  %841 = vst.msk [vmem:[%s1686_s3 + $0x40] sm:$0xf] %vm824_vm0, %v819_v18  ;;  %v708_v22 = vadd.f32 %v707_v20, %v645_v19  ;;  %v647_v24 = vpop.f32.mrf.mxu1  ;;  %v585_v25 = vadd.f32 %v1523_v0, %v584_v23 }
 0x131   :  { %v771_v26 = vadd.f32 %v770_v21, %v708_v22  ;;  %v648_v28 = vadd.f32 %v647_v24, %v585_v25 }
 0x133   :  { %v799_v27 = vmax.f32 %v771_v26, 0.0 }
 0x135   :  { %v820_v29 = vpack.c.bf16 %v799_v27, %v799_v27 }
 0x136   :  { %v710_v30 = vpop.f32.mrf.mxu2  ;;  %v586_v33 = vpop.f32.mrf.mxu0 }
 0x137   :  { %v773_v31 = vpop.f32.mrf.mxu3  ;;  %842 = vst.msk [vmem:[%s1686_s3 + $0x44] sm:$0xf] %vm824_vm0, %v820_v29  ;;  %v711_v32 = vadd.f32 %v710_v30, %v648_v28  ;;  %v649_v34 = vpop.f32.mrf.mxu1  ;;  %v587_v36 = vadd.f32 %v1523_v0, %v586_v33 }
 0x139   :  { %v774_v35 = vadd.f32 %v773_v31, %v711_v32  ;;  %v650_v39 = vadd.f32 %v649_v34, %v587_v36 }
 0x13b   :  { %v800_v37 = vmax.f32 %v774_v35, 0.0 }
 0x13d   :  { %v821_v38 = vpack.c.bf16 %v800_v37, %v800_v37 }
 0x13e   :  { %v712_v40 = vpop.f32.mrf.mxu2  ;;  %v589_v43 = vpop.f32.mrf.mxu0 }
 0x13f   :  { %v775_v41 = vpop.f32.mrf.mxu3  ;;  %843 = vst.msk [vmem:[%s1686_s3 + $0x48] sm:$0xf] %vm824_vm0, %v821_v38  ;;  %v713_v42 = vadd.f32 %v712_v40, %v650_v39  ;;  %v652_v44 = vpop.f32.mrf.mxu1  ;;  %v590_v45 = vadd.f32 %v1523_v0, %v589_v43 }
 0x141   :  { %v776_v46 = vadd.f32 %v775_v41, %v713_v42  ;;  %v653_v48 = vadd.f32 %v652_v44, %v590_v45 }
 0x143   :  { %v801_v47 = vmax.f32 %v776_v46, 0.0 }
 0x145   :  { %v822_v49 = vpack.c.bf16 %v801_v47, %v801_v47 }
 0x146   :  { %v715_v50 = vpop.f32.mrf.mxu2  ;;  %v591_v53 = vpop.f32.mrf.mxu0 }
 0x147   :  { %v778_v51 = vpop.f32.mrf.mxu3  ;;  %844 = vst.msk [vmem:[%s1686_s3 + $0x4c] sm:$0xf] %vm824_vm0, %v822_v49  ;;  %v716_v52 = vadd.f32 %v715_v50, %v653_v48  ;;  %v654_v54 = vpop.f32.mrf.mxu1 }
 0x149   :  { %v779_v55 = vadd.f32 %v778_v51, %v716_v52 }
 0x14b   :  { %v802_v56 = vmax.f32 %v779_v55, 0.0 }
 0x14d   :  { %v823_v57 = vpack.c.bf16 %v802_v56, %v802_v56 }
 0x14e   :  { %v717_v58 = vpop.f32.mrf.mxu2 }
 0x14f   :  { %v780_v0 = vpop.f32.mrf.mxu3  ;;  %846 = vst.msk [vmem:[%s1686_s3 + $0x50] sm:$0x1] %vm845_vm1, %v823_v57 }

// kernel: forward.7
= control target key start
LH: loop header
LB: loop body
LE: loop exit
PB: predicated region body
PF: predicated region fallthrough
CT: control target
= control target key end

     0   :  { %vm792_vm0 = vcmask 519168   ;;  %vm805_vm1 = vcmask 516096   ;;  %s1615_s1 = inlined_call_operand.vmem [shape: bf16[640,64], index: 1, kind: input, shape index: {}]   ;;  %s1616_s2 = inlined_call_operand.vmem [shape: f32[1,64], index: 2, kind: input, shape index: {}]   ;;  %s1617_s0 = inlined_call_operand.vmem [shape: bf16[98,640], index: 0, kind: input, shape index: {}]   ;;  %s1618_s3 = inlined_call_operand.vmem [shape: bf16[98,64], index: 3, kind: output, shape index: {}]  }
   0x1   :  { %v1128_v0 = vld [vmem:[%s1615_s1 + $0x38] sm:$0xff]  ;;  %v1127_v1 = vld [vmem:[%s1615_s1 + $0x30] sm:$0xff]  ;;  %v1126_v2 = vld [vmem:[%s1615_s1 + $0x28] sm:$0xff] }
   0x2   :  { %1161 = vmatpush.bf16.msra.mxu1 %v1128_v0  ;;  %1162 = vmatpush.bf16.msra.mxu2 %v1128_v0  ;;  %v1125_v3 = vld [vmem:[%s1615_s1 + $0x20] sm:$0xff]  ;;  %v1124_v4 = vld [vmem:[%s1615_s1 + $0x18] sm:$0xff]  ;;  %v1123_v5 = vld [vmem:[%s1615_s1 + $0x10] sm:$0xff] }
   0x3   :  { %1163 = vmatpush.bf16.msra.mxu3 %v1128_v0  ;;  %551 = vmatpush.bf16.msra.mxu0 %v1128_v0  ;;  %v1122_v6 = vld [vmem:[%s1615_s1 + $0x8] sm:$0xff]  ;;  %v1230_v7 = vld [vmem:[%s1617_s0 + $0xf0] sm:$0x11]  ;;  %v1121_v8 = vld [vmem:[%s1615_s1] sm:$0xff] }
   0x4   :  { %v853_v9 = vld [vmem:[%s1617_s0 + $0x50] sm:$0xf]  ;;  %v1103_v10 = vld [vmem:[%s1617_s0 + $0x60] sm:$0xf0]  ;;  %v893_v11 = vld [vmem:[%s1617_s0 + $0xa0] sm:$0xf]  ;;  %v236_v15 = vunpack.c.l.b16 %v1230_v7 }
   0x5   :  { %v1113_v12 = vld [vmem:[%s1617_s0 + $0xb0] sm:$0xf0]  ;;  %v813_v13 = vld [vmem:[%s1617_s0] sm:$0xf]  ;;  %v1152_v16 = vld [vmem:[%s1615_s1 + $0xf8] sm:$0xff]  ;;  %v854_v18 = vor.u32 %v1103_v10, %v853_v9 }
   0x6   :  { %1164 = vmatpush.bf16.msra.mxu1 %v1127_v1  ;;  %1165 = vmatpush.bf16.msra.mxu2 %v1127_v1  ;;  %v1093_v14 = vld [vmem:[%s1617_s0 + $0x10] sm:$0xf0]  ;;  %v1144_v17 = vld [vmem:[%s1615_s1 + $0xb8] sm:$0xff]  ;;  %v894_v19 = vor.u32 %v1113_v12, %v893_v11  ;;  %v271_v23 = vpack.c.b16 %v236_v15, %v236_v15  ;;  %v1150_v28 = vld [vmem:[%s1615_s1 + $0xe8] sm:$0xff] }
   0x7   :  { %1166 = vmatpush.bf16.msra.mxu3 %v1127_v1  ;;  %552 = vmatpush.bf16.msra.mxu0 %v1127_v1  ;;  %v814_v20 = vor.u32 %v1093_v14, %v813_v13  ;;  %v1136_v21 = vld [vmem:[%s1615_s1 + $0x78] sm:$0xff]  ;;  %v1151_v24 = vld [vmem:[%s1615_s1 + $0xf0] sm:$0xff]  ;;  %v1142_v29 = vld [vmem:[%s1615_s1 + $0xa8] sm:$0xff] }
   0x8   :  { %v1160_v22 = vld [vmem:[%s1615_s1 + $0x138] sm:$0xff]  ;;  %v1143_v25 = vld [vmem:[%s1615_s1 + $0xb0] sm:$0xff]  ;;  %v1134_v30 = vld [vmem:[%s1615_s1 + $0x68] sm:$0xff] }
   0x9   :  { %v1135_v26 = vld [vmem:[%s1615_s1 + $0x70] sm:$0xff]  ;;  %v1158_v31 = vld [vmem:[%s1615_s1 + $0x128] sm:$0xff]  ;;  %v1149_v32 = vld [vmem:[%s1615_s1 + $0xe0] sm:$0xff] }
   0xa   :  { %1167 = vmatpush.bf16.msra.mxu1 %v1126_v2  ;;  %1168 = vmatpush.bf16.msra.mxu2 %v1126_v2  ;;  %v1159_v27 = vld [vmem:[%s1615_s1 + $0x130] sm:$0xff]  ;;  %v1141_v33 = vld [vmem:[%s1615_s1 + $0xa0] sm:$0xff]  ;;  %v873_v35 = vld [vmem:[%s1617_s0 + $0x78] sm:$0xf] }
   0xb   :  { %1169 = vmatpush.bf16.msra.mxu3 %v1126_v2  ;;  %553 = vmatpush.bf16.msra.mxu0 %v1126_v2  ;;  %v1133_v34 = vld [vmem:[%s1615_s1 + $0x60] sm:$0xff]  ;;  %v1108_v36 = vld [vmem:[%s1617_s0 + $0x88] sm:$0xf0]  ;;  %v913_v37 = vld [vmem:[%s1617_s0 + $0xc8] sm:$0xf] }
   0xc   :  { %v1118_v38 = vld [vmem:[%s1617_s0 + $0xd8] sm:$0xf0]  ;;  %v1157_v39 = vld [vmem:[%s1615_s1 + $0x120] sm:$0xff]  ;;  %v833_v40 = vld [vmem:[%s1617_s0 + $0x28] sm:$0xf]  ;;  %v874_v44 = vor.u32 %v1108_v36, %v873_v35 }
   0xd   :  { %v1098_v41 = vld [vmem:[%s1617_s0 + $0x38] sm:$0xf0]  ;;  %v914_v45 = vor.u32 %v1118_v38, %v913_v37  ;;  %v1147_v49 = vld [vmem:[%s1615_s1 + $0xd0] sm:$0xff]  ;;  %v1146_v53 = vld [vmem:[%s1615_s1 + $0xc8] sm:$0xff] }
   0xe   :  { %1170 = vmatpush.bf16.msra.mxu1 %v1125_v3  ;;  %1171 = vmatpush.bf16.msra.mxu2 %v1125_v3  ;;  %v1148_v42 = vld [vmem:[%s1615_s1 + $0xd8] sm:$0xff]  ;;  %v834_v46 = vor.u32 %v1098_v41, %v833_v40  ;;  %v1139_v50 = vld [vmem:[%s1615_s1 + $0x90] sm:$0xff]  ;;  %v1138_v54 = vld [vmem:[%s1615_s1 + $0x88] sm:$0xff] }
   0xf   :  { %1172 = vmatpush.bf16.msra.mxu3 %v1125_v3  ;;  %554 = vmatpush.bf16.msra.mxu0 %v1125_v3  ;;  %v1140_v43 = vld [vmem:[%s1615_s1 + $0x98] sm:$0xff]  ;;  %v1131_v51 = vld [vmem:[%s1615_s1 + $0x50] sm:$0xff]  ;;  %v1130_v55 = vld [vmem:[%s1615_s1 + $0x48] sm:$0xff] }
  0x10   :  { %v1132_v47 = vld [vmem:[%s1615_s1 + $0x58] sm:$0xff]  ;;  %v1155_v52 = vld [vmem:[%s1615_s1 + $0x110] sm:$0xff]  ;;  %v1145_v56 = vld [vmem:[%s1615_s1 + $0xc0] sm:$0xff] }
  0x11   :  { %v1156_v48 = vld [vmem:[%s1615_s1 + $0x118] sm:$0xff]  ;;  %v1154_v57 = vld [vmem:[%s1615_s1 + $0x108] sm:$0xff]  ;;  %v1137_v58 = vld [vmem:[%s1615_s1 + $0x80] sm:$0xff] }
  0x12   :  { %1173 = vmatpush.bf16.msra.mxu1 %v1124_v4  ;;  %1174 = vmatpush.bf16.msra.mxu2 %v1124_v4  ;;  %v1092_v59 = vld [vmem:[%s1617_s0 + $0xc] sm:$0xf]  ;;  %v823_v60 = vld [vmem:[%s1617_s0 + $0x1c] sm:$0xf0]  ;;  %v1091_v62 = vld [vmem:[%s1617_s0 + $0x4] sm:$0xf] }
  0x13   :  { %1175 = vmatpush.bf16.msra.mxu3 %v1124_v4  ;;  %555 = vmatpush.bf16.msra.mxu0 %v1124_v4  ;;  %v1129_v61 = vld [vmem:[%s1615_s1 + $0x40] sm:$0xff]  ;;  %v815_v63 = vld [vmem:[%s1617_s0 + $0x14] sm:$0xf0]  ;;  %v821_v0 = vld [vmem:[%s1617_s0 + $0x8] sm:$0xf]  ;;  %v826_v2 = vor.u32 %v1092_v59, %v823_v60 }
  0x14   :  { %v1094_v1 = vld [vmem:[%s1617_s0 + $0x18] sm:$0xf0]  ;;  %v1153_v3 = vld [vmem:[%s1615_s1 + $0x100] sm:$0xff]  ;;  %v829_v4 = vld [vmem:[%s1617_s0 + $0x10] sm:$0xf] }
  0x15   :  { %v1097_v10 = vld [vmem:[%s1617_s0 + $0x34] sm:$0xf]  ;;  %v843_v11 = vld [vmem:[%s1617_s0 + $0x44] sm:$0xf0]  ;;  %v1096_v12 = vld [vmem:[%s1617_s0 + $0x2c] sm:$0xf] }
  0x16   :  { %1176 = vmatpush.bf16.msra.mxu1 %v1123_v5  ;;  %1177 = vmatpush.bf16.msra.mxu2 %v1123_v5  ;;  %v835_v13 = vld [vmem:[%s1617_s0 + $0x3c] sm:$0xf0]  ;;  %v841_v14 = vld [vmem:[%s1617_s0 + $0x30] sm:$0xf]  ;;  %v1099_v15 = vld [vmem:[%s1617_s0 + $0x40] sm:$0xf0] }
  0x17   :  { %1178 = vmatpush.bf16.msra.mxu3 %v1123_v5  ;;  %556 = vmatpush.bf16.msra.mxu0 %v1123_v5  ;;  %v1095_v5 = vld [vmem:[%s1617_s0 + $0x20] sm:$0xf0]  ;;  %v883_v35 = vld [vmem:[%s1617_s0 + $0x94] sm:$0xf0]  ;;  %v1106_v36 = vld [vmem:[%s1617_s0 + $0x7c] sm:$0xf] }
  0x18   :  { %v830_v9 = vor.u32 %v1095_v5, %v829_v4  ;;  %v875_v37 = vld [vmem:[%s1617_s0 + $0x8c] sm:$0xf0]  ;;  %v881_v38 = vld [vmem:[%s1617_s0 + $0x80] sm:$0xf]  ;;  %v889_v41 = vld [vmem:[%s1617_s0 + $0x88] sm:$0xf] }
  0x19   :  { %v923_v59 = vld [vmem:[%s1617_s0 + $0xe4] sm:$0xf0]  ;;  %v1116_v60 = vld [vmem:[%s1617_s0 + $0xcc] sm:$0xf] }
  0x1a   :  { %1179 = vmatpush.bf16.msra.mxu1 %v1122_v6  ;;  %1180 = vmatpush.bf16.msra.mxu2 %v1122_v6 }
  0x1b   :  { %1181 = vmatpush.bf16.msra.mxu3 %v1122_v6  ;;  %557 = vmatpush.bf16.msra.mxu0 %v1122_v6  ;;  %v818_v6 = vor.u32 %v1091_v62, %v815_v63  ;;  %v921_v62 = vld [vmem:[%s1617_s0 + $0xd0] sm:$0xf]  ;;  %v1119_v63 = vld [vmem:[%s1617_s0 + $0xe0] sm:$0xf0] }
  0x1c   :  { %v922_v4 = vor.u32 %v1119_v63, %v921_v62 }
  0x1e   :  { %1182 = vmatpush.bf16.msra.mxu1 %v1121_v8  ;;  %1183 = vmatpush.bf16.msra.mxu2 %v1121_v8 }
  0x1f   :  { %1184 = vmatpush.bf16.msra.mxu3 %v1121_v8  ;;  %558 = vmatpush.bf16.msra.mxu0 %v1121_v8  ;;  %v822_v8 = vor.u32 %v1094_v1, %v821_v0  ;;  %v929_v1 = vld [vmem:[%s1617_s0 + $0xd8] sm:$0xf] }
  0x21   :  { %569 = vmatmul.bf16.vlgmr.msra.gmra.mxu1 %v854_v18  ;;  %579 = vmatmul.bf16.vlgmr.msra.gmra.mxu2 %v894_v19  ;;  %v1100_v18 = vld [vmem:[%s1617_s0 + $0x48] sm:$0xf0]  ;;  %v838_v19 = vor.u32 %v1096_v12, %v835_v13 }
  0x22   :  { %637 = vmatpush.bf16.msrb.mxu2 %v1144_v17  ;;  %559 = vmatmul.bf16.vlgmr.msra.gmra.mxu0 %v814_v20  ;;  %v849_v17 = vld [vmem:[%s1617_s0 + $0x38] sm:$0xf]  ;;  %v842_v20 = vor.u32 %v1099_v15, %v841_v14 }
  0x23   :  { %680 = vmatpush.bf16.msrb.mxu3 %v1152_v16  ;;  %594 = vmatpush.bf16.msrb.mxu1 %v1136_v21  ;;  %v846_v16 = vor.u32 %v1097_v10, %v843_v11  ;;  %v850_v21 = vor.u32 %v1100_v18, %v849_v17  ;;  %v237_v10 = vunpack.c.h.b16 %v1230_v7 }
  0x24   :  { %723 = vmatpush.bf16.msrb.mxu0 %v1160_v22  ;;  %589 = vmatmul.bf16.vlgmr.msra.gmra.mxu3 %v271_v23  ;;  %v1102_v22 = vld [vmem:[%s1617_s0 + $0x5c] sm:$0xf]  ;;  %v863_v23 = vld [vmem:[%s1617_s0 + $0x6c] sm:$0xf0] }
  0x25   :  { %v272_v14 = vpack.c.b16 %v237_v10, %v237_v10 }
  0x26   :  { %638 = vmatpush.bf16.msrb.mxu2 %v1143_v25  ;;  %v855_v25 = vld [vmem:[%s1617_s0 + $0x64] sm:$0xf0] }
  0x27   :  { %681 = vmatpush.bf16.msrb.mxu3 %v1151_v24  ;;  %595 = vmatpush.bf16.msrb.mxu1 %v1135_v26  ;;  %v1101_v24 = vld [vmem:[%s1617_s0 + $0x54] sm:$0xf]  ;;  %v861_v26 = vld [vmem:[%s1617_s0 + $0x58] sm:$0xf] }
  0x28   :  { %724 = vmatpush.bf16.msrb.mxu0 %v1159_v27  ;;  %v1104_v27 = vld [vmem:[%s1617_s0 + $0x68] sm:$0xf0] }
  0x2a   :  { %639 = vmatpush.bf16.msrb.mxu2 %v1142_v29  ;;  %v869_v29 = vld [vmem:[%s1617_s0 + $0x60] sm:$0xf] }
  0x2b   :  { %682 = vmatpush.bf16.msrb.mxu3 %v1150_v28  ;;  %596 = vmatpush.bf16.msrb.mxu1 %v1134_v30  ;;  %v866_v28 = vor.u32 %v1102_v22, %v863_v23  ;;  %v1105_v30 = vld [vmem:[%s1617_s0 + $0x70] sm:$0xf0] }
  0x2c   :  { %725 = vmatpush.bf16.msrb.mxu0 %v1158_v31  ;;  %v858_v31 = vor.u32 %v1101_v24, %v855_v25 }
  0x2e   :  { %640 = vmatpush.bf16.msrb.mxu2 %v1141_v33  ;;  %v870_v33 = vor.u32 %v1105_v30, %v869_v29 }
  0x2f   :  { %683 = vmatpush.bf16.msrb.mxu3 %v1149_v32  ;;  %597 = vmatpush.bf16.msrb.mxu1 %v1133_v34  ;;  %v862_v32 = vor.u32 %v1104_v27, %v861_v26  ;;  %v1107_v34 = vld [vmem:[%s1617_s0 + $0x84] sm:$0xf] }
  0x30   :  { %726 = vmatpush.bf16.msrb.mxu0 %v1157_v39  ;;  %v1109_v39 = vld [vmem:[%s1617_s0 + $0x90] sm:$0xf0]  ;;  %v886_v40 = vor.u32 %v1107_v34, %v883_v35 }
  0x31   :  { %574 = vmatmul.bf16.gmra.mxu1 %v874_v44  ;;  %584 = vmatmul.bf16.gmra.mxu2 %v914_v45  ;;  %v882_v44 = vor.u32 %v1109_v39, %v881_v38 }
  0x32   :  { %641 = vmatpush.bf16.msrb.mxu2 %v1140_v43  ;;  %564 = vmatmul.bf16.gmra.mxu0 %v834_v46  ;;  %v878_v43 = vor.u32 %v1106_v36, %v875_v37  ;;  %v1112_v46 = vld [vmem:[%s1617_s0 + $0xac] sm:$0xf] }
  0x33   :  { %684 = vmatpush.bf16.msrb.mxu3 %v1148_v42  ;;  %598 = vmatpush.bf16.msrb.mxu1 %v1132_v47  ;;  %v1110_v42 = vld [vmem:[%s1617_s0 + $0x98] sm:$0xf0]  ;;  %v903_v47 = vld [vmem:[%s1617_s0 + $0xbc] sm:$0xf0] }
  0x34   :  { %727 = vmatpush.bf16.msrb.mxu0 %v1156_v48  ;;  %v890_v45 = vor.u32 %v1110_v42, %v889_v41  ;;  %v1111_v48 = vld [vmem:[%s1617_s0 + $0xa4] sm:$0xf] }
  0x36   :  { %642 = vmatpush.bf16.msrb.mxu2 %v1139_v50  ;;  %v901_v50 = vld [vmem:[%s1617_s0 + $0xa8] sm:$0xf] }
  0x37   :  { %685 = vmatpush.bf16.msrb.mxu3 %v1147_v49  ;;  %599 = vmatpush.bf16.msrb.mxu1 %v1131_v51  ;;  %v895_v49 = vld [vmem:[%s1617_s0 + $0xb4] sm:$0xf0]  ;;  %v1114_v51 = vld [vmem:[%s1617_s0 + $0xb8] sm:$0xf0] }
  0x38   :  { %728 = vmatpush.bf16.msrb.mxu0 %v1155_v52  ;;  %v906_v52 = vor.u32 %v1112_v46, %v903_v47 }
  0x3a   :  { %643 = vmatpush.bf16.msrb.mxu2 %v1138_v54  ;;  %v1115_v54 = vld [vmem:[%s1617_s0 + $0xc0] sm:$0xf0] }
  0x3b   :  { %686 = vmatpush.bf16.msrb.mxu3 %v1146_v53  ;;  %600 = vmatpush.bf16.msrb.mxu1 %v1130_v55  ;;  %v909_v53 = vld [vmem:[%s1617_s0 + $0xb0] sm:$0xf]  ;;  %v898_v55 = vor.u32 %v1111_v48, %v895_v49 }
  0x3c   :  { %729 = vmatpush.bf16.msrb.mxu0 %v1154_v57  ;;  %v910_v57 = vor.u32 %v1115_v54, %v909_v53 }
  0x3e   :  { %644 = vmatpush.bf16.msrb.mxu2 %v1137_v58  ;;  %v1117_v58 = vld [vmem:[%s1617_s0 + $0xd4] sm:$0xf] }
  0x3f   :  { %687 = vmatpush.bf16.msrb.mxu3 %v1145_v56  ;;  %601 = vmatpush.bf16.msrb.mxu1 %v1129_v61  ;;  %v902_v56 = vor.u32 %v1114_v51, %v901_v50  ;;  %v915_v61 = vld [vmem:[%s1617_s0 + $0xdc] sm:$0xf0]  ;;  %v926_v0 = vor.u32 %v1117_v58, %v923_v59 }
  0x40   :  { %730 = vmatpush.bf16.msrb.mxu0 %v1153_v3  ;;  %v918_v3 = vor.u32 %v1116_v60, %v915_v61 }
  0x41   :  { %645 = vmatmul.bf16.vlgmr.msrb.gmra.mxu2 %v822_v8 }
  0x42   :  { %688 = vmatmul.bf16.vlgmr.msrb.gmra.mxu3 %v826_v2  ;;  %602 = vmatmul.bf16.vlgmr.msrb.gmra.mxu1 %v818_v6  ;;  %v1120_v2 = vld [vmem:[%s1617_s0 + $0xe8] sm:$0xf0]  ;;  %v51_v6 = vld [vmem:[%s1617_s0 + $0xf8] sm:$0x11] }
  0x43   :  { %731 = vmatmul.bf16.vlgmr.msrb.gmra.mxu0 %v830_v9  ;;  %v930_v5 = vor.u32 %v1120_v2, %v929_v1  ;;  %v239_v8 = vunpack.c.h.b16 %v51_v6  ;;  %v52_v9 = vld [vmem:[%s1617_s0 + $0x100] sm:$0x1]  ;;  %v238_v11 = vunpack.c.l.b16 %v51_v6 }
  0x44   :  { %v240_v12 = vunpack.c.l.b16 %v52_v9 }
  0x45   :  { %v274_v13 = vpack.c.b16 %v239_v8, %v239_v8  ;;  %v273_v15 = vpack.c.b16 %v238_v11, %v238_v11 }
  0x46   :  { %v275_v17 = vpack.c.b16 %v240_v12, %v240_v12 }
  0x51   :  { %650 = vmatmul.bf16.gmra.mxu2 %v842_v20 }
  0x52   :  { %693 = vmatmul.bf16.gmra.mxu3 %v846_v16  ;;  %607 = vmatmul.bf16.gmra.mxu1 %v838_v19  ;;  %v1524_v19 = vld [vmem:[%s1616_s2] ss:$0 sm:$0xff] }
  0x53   :  { %736 = vmatmul.bf16.gmra.mxu0 %v850_v21 }
  0x61   :  { %655 = vmatmul.bf16.gmra.mxu2 %v862_v32 }
  0x62   :  { %698 = vmatmul.bf16.gmra.mxu3 %v866_v28  ;;  %612 = vmatmul.bf16.gmra.mxu1 %v858_v31 }
  0x63   :  { %741 = vmatmul.bf16.gmra.mxu0 %v870_v33 }
  0x71   :  { %660 = vmatmul.bf16.gmra.mxu2 %v882_v44 }
  0x72   :  { %703 = vmatmul.bf16.gmra.mxu3 %v886_v40  ;;  %617 = vmatmul.bf16.gmra.mxu1 %v878_v43 }
  0x73   :  { %746 = vmatmul.bf16.gmra.mxu0 %v890_v45 }
  0x81   :  { %665 = vmatmul.bf16.gmra.mxu2 %v902_v56 }
  0x82   :  { %708 = vmatmul.bf16.gmra.mxu3 %v906_v52  ;;  %622 = vmatmul.bf16.gmra.mxu1 %v898_v55 }
  0x83   :  { %751 = vmatmul.bf16.gmra.mxu0 %v910_v57 }
  0x91   :  { %670 = vmatmul.bf16.gmra.mxu2 %v922_v4 }
  0x92   :  { %713 = vmatmul.bf16.gmra.mxu3 %v926_v0  ;;  %627 = vmatmul.bf16.gmra.mxu1 %v918_v3 }
  0x93   :  { %756 = vmatmul.bf16.gmra.mxu0 %v930_v5 }
  0x9e   :  { %v1519_v16 = vpop.f32.mrf.mxu1 }
  0x9f   :  { %v560_v18 = vpop.f32.mrf.mxu0 }
  0xa0   :  { %v561_v38 = vadd.f32 %v1524_v19, %v560_v18 }
  0xa1   :  { %675 = vmatmul.bf16.gmra.mxu2 %v273_v15 }
  0xa2   :  { %718 = vmatmul.bf16.gmra.mxu3 %v274_v13  ;;  %632 = vmatmul.bf16.gmra.mxu1 %v272_v14 }
  0xa3   :  { %761 = vmatmul.bf16.gmra.mxu0 %v275_v17  ;;  %v571_v17 = vadd.f32 %v1524_v19, %v1519_v16 }
  0xa4   :  { %v580_v20 = vpop.f32.mrf.mxu2 }
  0xa5   :  { %v1527_v7 = vadd.f32 %v1524_v19, %v580_v20 }
  0xa6   :  { %v1529_v21 = vpop.f32.mrf.mxu1 }
  0xa7   :  { %v590_v22 = vpop.f32.mrf.mxu3  ;;  %v562_v23 = vpop.f32.mrf.mxu0 }
  0xa8   :  { %v1532_v24 = vadd.f32 %v1524_v19, %v590_v22  ;;  %v563_v46 = vadd.f32 %v1524_v19, %v562_v23 }
  0xac   :  { %v582_v25 = vpop.f32.mrf.mxu2 }
  0xad   :  { %v1535_v26 = vadd.f32 %v1524_v19, %v582_v25 }
  0xae   :  { %v1537_v27 = vpop.f32.mrf.mxu1 }
  0xaf   :  { %v592_v28 = vpop.f32.mrf.mxu3  ;;  %v565_v29 = vpop.f32.mrf.mxu0 }
  0xb0   :  { %v566_v57 = vadd.f32 %v1524_v19, %v565_v29 }
  0xb4   :  { %v585_v30 = vpop.f32.mrf.mxu2 }
  0xb5   :  { %v1540_v31 = vadd.f32 %v1524_v19, %v585_v30 }
  0xb6   :  { %v1542_v32 = vpop.f32.mrf.mxu1 }
  0xb7   :  { %v567_v33 = vpop.f32.mrf.mxu0 }
  0xb8   :  { %v568_v4 = vadd.f32 %v1524_v19, %v567_v33 }
  0xbc   :  { %v587_v34 = vpop.f32.mrf.mxu2 }
  0xbd   :  { %v1545_v35 = vadd.f32 %v1524_v19, %v587_v34 }
  0xbf   :  { %v603_v36 = vpop.f32.mrf.mxu1 }
  0xc0   :  { %v732_v37 = vpop.f32.mrf.mxu0  ;;  %v604_v40 = vadd.f32 %v603_v36, %v561_v38  ;;  %v573_v36 = vadd.f32 %v1524_v19, %v1529_v21 }
  0xc4   :  { %v646_v41 = vpop.f32.mrf.mxu2 }
  0xc5   :  { %v689_v39 = vpop.f32.mrf.mxu3  ;;  %v647_v42 = vadd.f32 %v646_v41, %v604_v40 }
  0xc7   :  { %v605_v43 = vpop.f32.mrf.mxu1  ;;  %v690_v44 = vadd.f32 %v689_v39, %v647_v42 }
  0xc8   :  { %v734_v45 = vpop.f32.mrf.mxu0  ;;  %v606_v50 = vadd.f32 %v605_v43, %v563_v46  ;;  %v576_v46 = vadd.f32 %v1524_v19, %v1537_v27 }
  0xc9   :  { %v733_v47 = vadd.f32 %v732_v37, %v690_v44 }
  0xcb   :  { %v766_v49 = vmax.f32 %v733_v47, 0.0 }
  0xcc   :  { %v648_v51 = vpop.f32.mrf.mxu2 }
  0xcd   :  { %v691_v48 = vpop.f32.mrf.mxu3  ;;  %v779_v52 = vpack.c.bf16 %v766_v49, %v766_v49  ;;  %v649_v53 = vadd.f32 %v648_v51, %v606_v50 }
  0xcf   :  { %v608_v54 = vpop.f32.mrf.mxu1  ;;  %793 = vst.msk [vmem:[%s1618_s3] sm:$0xf] %vm792_vm0, %v779_v52  ;;  %v692_v55 = vadd.f32 %v691_v48, %v649_v53 }
  0xd0   :  { %v737_v56 = vpop.f32.mrf.mxu0  ;;  %v609_v61 = vadd.f32 %v608_v54, %v566_v57 }
  0xd1   :  { %v735_v58 = vadd.f32 %v734_v45, %v692_v55 }
  0xd3   :  { %v767_v60 = vmax.f32 %v735_v58, 0.0 }
  0xd4   :  { %v651_v62 = vpop.f32.mrf.mxu2 }
  0xd5   :  { %v694_v59 = vpop.f32.mrf.mxu3  ;;  %v780_v63 = vpack.c.bf16 %v767_v60, %v767_v60  ;;  %v652_v0 = vadd.f32 %v651_v62, %v609_v61 }
  0xd7   :  { %v610_v1 = vpop.f32.mrf.mxu1  ;;  %794 = vst.msk [vmem:[%s1618_s3 + $0x4] sm:$0xf] %vm792_vm0, %v780_v63  ;;  %v695_v2 = vadd.f32 %v694_v59, %v652_v0 }
  0xd8   :  { %v739_v3 = vpop.f32.mrf.mxu0  ;;  %v611_v9 = vadd.f32 %v610_v1, %v568_v4 }
  0xd9   :  { %v738_v5 = vadd.f32 %v737_v56, %v695_v2  ;;  %v578_v56 = vadd.f32 %v1524_v19, %v1542_v32 }
  0xdb   :  { %v768_v8 = vmax.f32 %v738_v5, 0.0 }
  0xdc   :  { %v653_v10 = vpop.f32.mrf.mxu2 }
  0xdd   :  { %v696_v6 = vpop.f32.mrf.mxu3  ;;  %v781_v11 = vpack.c.bf16 %v768_v8, %v768_v8  ;;  %v654_v12 = vadd.f32 %v653_v10, %v611_v9 }
  0xdf   :  { %v613_v13 = vpop.f32.mrf.mxu1  ;;  %795 = vst.msk [vmem:[%s1618_s3 + $0x8] sm:$0xf] %vm792_vm0, %v781_v11  ;;  %v697_v14 = vadd.f32 %v696_v6, %v654_v12 }
  0xe0   :  { %v742_v15 = vpop.f32.mrf.mxu0  ;;  %v614_v23 = vadd.f32 %v613_v13, %v571_v17 }
  0xe1   :  { %v740_v18 = vadd.f32 %v739_v3, %v697_v14 }
  0xe3   :  { %v769_v22 = vmax.f32 %v740_v18, 0.0 }
  0xe4   :  { %v656_v25 = vpop.f32.mrf.mxu2 }
  0xe5   :  { %v699_v20 = vpop.f32.mrf.mxu3  ;;  %v782_v28 = vpack.c.bf16 %v769_v22, %v769_v22  ;;  %v657_v29 = vadd.f32 %v656_v25, %v614_v23 }
  0xe7   :  { %v615_v30 = vpop.f32.mrf.mxu1  ;;  %796 = vst.msk [vmem:[%s1618_s3 + $0xc] sm:$0xf] %vm792_vm0, %v782_v28  ;;  %v700_v33 = vadd.f32 %v699_v20, %v657_v29 }
  0xe8   :  { %v744_v34 = vpop.f32.mrf.mxu0  ;;  %v616_v39 = vadd.f32 %v615_v30, %v573_v36 }
  0xe9   :  { %v743_v37 = vadd.f32 %v742_v15, %v700_v33 }
  0xeb   :  { %v770_v38 = vmax.f32 %v743_v37, 0.0 }
  0xec   :  { %v658_v40 = vpop.f32.mrf.mxu2 }
  0xed   :  { %v701_v16 = vpop.f32.mrf.mxu3  ;;  %v783_v41 = vpack.c.bf16 %v770_v38, %v770_v38  ;;  %v659_v42 = vadd.f32 %v658_v40, %v616_v39 }
  0xef   :  { %v618_v43 = vpop.f32.mrf.mxu1  ;;  %797 = vst.msk [vmem:[%s1618_s3 + $0x10] sm:$0xf] %vm792_vm0, %v783_v41  ;;  %v702_v44 = vadd.f32 %v701_v16, %v659_v42 }
  0xf0   :  { %v747_v45 = vpop.f32.mrf.mxu0  ;;  %v619_v49 = vadd.f32 %v618_v43, %v576_v46 }
  0xf1   :  { %v745_v47 = vadd.f32 %v744_v34, %v702_v44 }
  0xf3   :  { %v771_v48 = vmax.f32 %v745_v47, 0.0 }
  0xf4   :  { %v661_v50 = vpop.f32.mrf.mxu2 }
  0xf5   :  { %v704_v21 = vpop.f32.mrf.mxu3  ;;  %v784_v51 = vpack.c.bf16 %v771_v48, %v771_v48  ;;  %v662_v52 = vadd.f32 %v661_v50, %v619_v49 }
  0xf7   :  { %v620_v53 = vpop.f32.mrf.mxu1  ;;  %798 = vst.msk [vmem:[%s1618_s3 + $0x14] sm:$0xf] %vm792_vm0, %v784_v51  ;;  %v705_v54 = vadd.f32 %v704_v21, %v662_v52 }
  0xf8   :  { %v749_v55 = vpop.f32.mrf.mxu0  ;;  %v621_v59 = vadd.f32 %v620_v53, %v578_v56 }
  0xf9   :  { %v748_v57 = vadd.f32 %v747_v45, %v705_v54 }
  0xfb   :  { %v772_v58 = vmax.f32 %v748_v57, 0.0 }
  0xfc   :  { %v663_v60 = vpop.f32.mrf.mxu2 }
  0xfd   :  { %v706_v27 = vpop.f32.mrf.mxu3  ;;  %v785_v61 = vpack.c.bf16 %v772_v58, %v772_v58  ;;  %v664_v62 = vadd.f32 %v663_v60, %v621_v59 }
  0xff   :  { %v623_v63 = vpop.f32.mrf.mxu1  ;;  %799 = vst.msk [vmem:[%s1618_s3 + $0x18] sm:$0xf] %vm792_vm0, %v785_v61  ;;  %v707_v0 = vadd.f32 %v706_v27, %v664_v62 }
 0x100   :  { %v752_v1 = vpop.f32.mrf.mxu0  ;;  %v624_v19 = vadd.f32 %v623_v63, %v1527_v7 }
 0x101   :  { %v750_v2 = vadd.f32 %v749_v55, %v707_v0 }
 0x103   :  { %v773_v4 = vmax.f32 %v750_v2, 0.0 }
 0x104   :  { %v666_v32 = vpop.f32.mrf.mxu2 }
 0x105   :  { %v709_v3 = vpop.f32.mrf.mxu3  ;;  %v786_v5 = vpack.c.bf16 %v773_v4, %v773_v4  ;;  %v667_v6 = vadd.f32 %v666_v32, %v624_v19 }
 0x107   :  { %v625_v8 = vpop.f32.mrf.mxu1  ;;  %800 = vst.msk [vmem:[%s1618_s3 + $0x1c] sm:$0xf] %vm792_vm0, %v786_v5  ;;  %v710_v9 = vadd.f32 %v709_v3, %v667_v6 }
 0x108   :  { %v754_v10 = vpop.f32.mrf.mxu0  ;;  %v626_v14 = vadd.f32 %v625_v8, %v1535_v26 }
 0x109   :  { %v753_v11 = vadd.f32 %v752_v1, %v710_v9 }
 0x10b   :  { %v774_v13 = vmax.f32 %v753_v11, 0.0 }
 0x10c   :  { %v668_v15 = vpop.f32.mrf.mxu2 }
 0x10d   :  { %v711_v12 = vpop.f32.mrf.mxu3  ;;  %v787_v17 = vpack.c.bf16 %v774_v13, %v774_v13  ;;  %v669_v18 = vadd.f32 %v668_v15, %v626_v14 }
 0x10f   :  { %v628_v7 = vpop.f32.mrf.mxu1  ;;  %801 = vst.msk [vmem:[%s1618_s3 + $0x20] sm:$0xf] %vm792_vm0, %v787_v17  ;;  %v712_v20 = vadd.f32 %v711_v12, %v669_v18 }
 0x110   :  { %v757_v22 = vpop.f32.mrf.mxu0  ;;  %v629_v29 = vadd.f32 %v628_v7, %v1540_v31 }
 0x111   :  { %v755_v23 = vadd.f32 %v754_v10, %v712_v20 }
 0x113   :  { %v775_v28 = vmax.f32 %v755_v23, 0.0 }
 0x114   :  { %v671_v30 = vpop.f32.mrf.mxu2 }
 0x115   :  { %v714_v25 = vpop.f32.mrf.mxu3  ;;  %v788_v33 = vpack.c.bf16 %v775_v28, %v775_v28  ;;  %v672_v34 = vadd.f32 %v671_v30, %v629_v29 }
 0x117   :  { %v630_v26 = vpop.f32.mrf.mxu1  ;;  %802 = vst.msk [vmem:[%s1618_s3 + $0x24] sm:$0xf] %vm792_vm0, %v788_v33  ;;  %v715_v36 = vadd.f32 %v714_v25, %v672_v34 }
 0x118   :  { %v759_v37 = vpop.f32.mrf.mxu0  ;;  %v631_v40 = vadd.f32 %v630_v26, %v1545_v35 }
 0x119   :  { %v758_v16 = vadd.f32 %v757_v22, %v715_v36 }
 0x11b   :  { %v776_v39 = vmax.f32 %v758_v16, 0.0 }
 0x11c   :  { %v673_v41 = vpop.f32.mrf.mxu2 }
 0x11d   :  { %v716_v38 = vpop.f32.mrf.mxu3  ;;  %v789_v42 = vpack.c.bf16 %v776_v39, %v776_v39  ;;  %v674_v43 = vadd.f32 %v673_v41, %v631_v40 }
 0x11f   :  { %v633_v31 = vpop.f32.mrf.mxu1  ;;  %803 = vst.msk [vmem:[%s1618_s3 + $0x28] sm:$0xf] %vm792_vm0, %v789_v42  ;;  %v717_v44 = vadd.f32 %v716_v38, %v674_v43 }
 0x120   :  { %v762_v45 = vpop.f32.mrf.mxu0  ;;  %v634_v48 = vadd.f32 %v633_v31, %v1532_v24 }
 0x121   :  { %v760_v46 = vadd.f32 %v759_v37, %v717_v44 }
 0x123   :  { %v777_v21 = vmax.f32 %v760_v46, 0.0 }
 0x124   :  { %v676_v49 = vpop.f32.mrf.mxu2 }
 0x125   :  { %v719_v47 = vpop.f32.mrf.mxu3  ;;  %v790_v50 = vpack.c.bf16 %v777_v21, %v777_v21  ;;  %v677_v51 = vadd.f32 %v676_v49, %v634_v48 }
 0x127   :  { %v635_v35 = vpop.f32.mrf.mxu1  ;;  %804 = vst.msk [vmem:[%s1618_s3 + $0x2c] sm:$0xf] %vm792_vm0, %v790_v50  ;;  %v720_v52 = vadd.f32 %v719_v47, %v677_v51 }
 0x128   :  { %v764_v53 = vpop.f32.mrf.mxu0 }
 0x129   :  { %v763_v54 = vadd.f32 %v762_v45, %v720_v52 }
 0x12b   :  { %v778_v56 = vmax.f32 %v763_v54, 0.0 }
 0x12c   :  { %v678_v57 = vpop.f32.mrf.mxu2 }
 0x12d   :  { %v721_v55 = vpop.f32.mrf.mxu3  ;;  %v791_v27 = vpack.c.bf16 %v778_v56, %v778_v56 }
 0x12f   :  { %806 = vst.msk [vmem:[%s1618_s3 + $0x30] sm:$0x1] %vm805_vm1, %v791_v27 }

// kernel: forward.9
= control target key start
LH: loop header
LB: loop body
LE: loop exit
PB: predicated region body
PF: predicated region fallthrough
CT: control target
= control target key end

     0   :  { %s669_s0 = inlined_call_operand.vmem [shape: bf16[2,512], index: 0, kind: input, shape index: {}]   ;;  %s670_s1 = inlined_call_operand.vmem [shape: bf16[512,128], index: 1, kind: input, shape index: {}]   ;;  %s671_s2 = inlined_call_operand.vmem [shape: f32[1,128], index: 2, kind: input, shape index: {}]   ;;  %s672_s3 = inlined_call_operand.hbm [shape: f32[2,128], index: 3, kind: output, shape index: {}]  }
   0x1   :  { %v490_v0 = vld [vmem:[%s670_s1 + $0x38] sm:$0xff]  ;;  %v489_v4 = vld [vmem:[%s670_s1 + $0x30] sm:$0xff]  ;;  %v488_v8 = vld [vmem:[%s670_s1 + $0x28] sm:$0xff] }
   0x2   :  { %v498_v1 = vld [vmem:[%s670_s1 + $0x78] sm:$0xff]  ;;  %286 = vmatpush.bf16.msra.mxu0 %v490_v0  ;;  %v497_v5 = vld [vmem:[%s670_s1 + $0x70] sm:$0xff]  ;;  %v496_v9 = vld [vmem:[%s670_s1 + $0x68] sm:$0xff] }
   0x3   :  { %v506_v2 = vld [vmem:[%s670_s1 + $0xb8] sm:$0xff]  ;;  %299 = vmatpush.bf16.msra.mxu1 %v498_v1  ;;  %v505_v6 = vld [vmem:[%s670_s1 + $0xb0] sm:$0xff]  ;;  %v504_v10 = vld [vmem:[%s670_s1 + $0xa8] sm:$0xff] }
   0x4   :  { %v514_v3 = vld [vmem:[%s670_s1 + $0xf8] sm:$0xff]  ;;  %312 = vmatpush.bf16.msra.mxu2 %v506_v2  ;;  %v513_v7 = vld [vmem:[%s670_s1 + $0xf0] sm:$0xff]  ;;  %v512_v11 = vld [vmem:[%s670_s1 + $0xe8] sm:$0xff] }
   0x5   :  { %325 = vmatpush.bf16.msra.mxu3 %v514_v3  ;;  %v487_v12 = vld [vmem:[%s670_s1 + $0x20] sm:$0xff] }
   0x6   :  { %287 = vmatpush.bf16.msra.mxu0 %v489_v4  ;;  %v495_v13 = vld [vmem:[%s670_s1 + $0x60] sm:$0xff] }
   0x7   :  { %300 = vmatpush.bf16.msra.mxu1 %v497_v5  ;;  %v15_v14 = vld [vmem:[%s669_s0] sm:$0xf] }
   0x8   :  { %313 = vmatpush.bf16.msra.mxu2 %v505_v6  ;;  %v503_v15 = vld [vmem:[%s670_s1 + $0xa0] sm:$0xff]  ;;  %85 = vst [vmem:[#allocation1] ss:$9 sm:$0xff] %v15_v14 }
   0x9   :  { %326 = vmatpush.bf16.msra.mxu3 %v513_v7  ;;  %v511_v16 = vld [vmem:[%s670_s1 + $0xe0] sm:$0xff] }
   0xa   :  { %288 = vmatpush.bf16.msra.mxu0 %v488_v8 }
   0xb   :  { %301 = vmatpush.bf16.msra.mxu1 %v496_v9 }
   0xc   :  { %314 = vmatpush.bf16.msra.mxu2 %v504_v10 }
   0xd   :  { %327 = vmatpush.bf16.msra.mxu3 %v512_v11 }
   0xe   :  { %8 = vsyncpa [#allocation3], 0  ;;  %289 = vmatpush.bf16.msra.mxu0 %v487_v12  ;;  %v486_v17 = vld [vmem:[%s670_s1 + $0x18] sm:$0xff]  ;;  %v485_v21 = vld [vmem:[%s670_s1 + $0x10] sm:$0xff]  ;;  %s346_s27 = sshll.u32 %s672_s3, 4  ;;  %s347_s27 = int_to_ptr.hbm [resolvable:$true] %s346_s27 }
   0xf   :  { %302 = vmatpush.bf16.msra.mxu1 %v495_v13  ;;  %v494_v18 = vld [vmem:[%s670_s1 + $0x58] sm:$0xff]  ;;  %v493_v22 = vld [vmem:[%s670_s1 + $0x50] sm:$0xff]  ;;  %v484_v25 = vld [vmem:[%s670_s1 + $0x8] sm:$0xff] }
  0x10   :  { %315 = vmatpush.bf16.msra.mxu2 %v503_v15  ;;  %v502_v19 = vld [vmem:[%s670_s1 + $0x98] sm:$0xff]  ;;  %v501_v23 = vld [vmem:[%s670_s1 + $0x90] sm:$0xff]  ;;  %v492_v26 = vld [vmem:[%s670_s1 + $0x48] sm:$0xff] }
  0x11   :  { %328 = vmatpush.bf16.msra.mxu3 %v511_v16  ;;  %v510_v20 = vld [vmem:[%s670_s1 + $0xd8] sm:$0xff]  ;;  %v509_v24 = vld [vmem:[%s670_s1 + $0xd0] sm:$0xff]  ;;  %v500_v27 = vld [vmem:[%s670_s1 + $0x88] sm:$0xff] }
  0x12   :  { %290 = vmatpush.bf16.msra.mxu0 %v486_v17  ;;  %v508_v28 = vld [vmem:[%s670_s1 + $0xc8] sm:$0xff]  ;;  %v483_v29 = vld [vmem:[%s670_s1] sm:$0xff]  ;;  %v88_v35 = vld [vmem:[#allocation1 + $0x12] sm:$0xff] }
  0x13   :  { %303 = vmatpush.bf16.msra.mxu1 %v494_v18  ;;  %v491_v30 = vld [vmem:[%s670_s1 + $0x40] sm:$0xff]  ;;  %v87_v34 = vld [vmem:[#allocation1 + $0x9] sm:$0xff] }
  0x14   :  { %316 = vmatpush.bf16.msra.mxu2 %v502_v19  ;;  %v499_v31 = vld [vmem:[%s670_s1 + $0x80] sm:$0xff] }
  0x15   :  { %329 = vmatpush.bf16.msra.mxu3 %v510_v20  ;;  %v507_v32 = vld [vmem:[%s670_s1 + $0xc0] sm:$0xff]  ;;  %s543_s1 = smov [#allocation2]  }
  0x16   :  { %291 = vmatpush.bf16.msra.mxu0 %v485_v21  ;;  %v86_v33 = vld [vmem:[#allocation1] sm:$0xff]  ;;  %s344_s24 = sshll.u32 %s543_s1, 4  ;;  %s345_s24 = int_to_ptr.vmem [resolvable:$true] %s344_s24 }
  0x17   :  { %304 = vmatpush.bf16.msra.mxu1 %v493_v22  ;;  %v89_v36 = vld [vmem:[#allocation1 + $0x1b] sm:$0xff] }
  0x18   :  { %317 = vmatpush.bf16.msra.mxu2 %v501_v23  ;;  %v516_v37 = vld [vmem:[%s671_s2] ss:$0 sm:$0xff] }
  0x19   :  { %330 = vmatpush.bf16.msra.mxu3 %v509_v24 }
  0x1a   :  { %292 = vmatpush.bf16.msra.mxu0 %v484_v25 }
  0x1b   :  { %305 = vmatpush.bf16.msra.mxu1 %v492_v26 }
  0x1c   :  { %318 = vmatpush.bf16.msra.mxu2 %v500_v27 }
  0x1d   :  { %331 = vmatpush.bf16.msra.mxu3 %v508_v28 }
  0x1e   :  { %293 = vmatpush.bf16.msra.mxu0 %v483_v29 }
  0x1f   :  { %306 = vmatpush.bf16.msra.mxu1 %v491_v30 }
  0x20   :  { %319 = vmatpush.bf16.msra.mxu2 %v499_v31 }
  0x21   :  { %332 = vmatpush.bf16.msra.mxu3 %v507_v32  ;;  %294 = vmatmul.bf16.vlgmr.msra.gmra.mxu0 %v86_v33 }
  0x22   :  { %307 = vmatmul.bf16.vlgmr.msra.gmra.mxu1 %v87_v34 }
  0x23   :  { %320 = vmatmul.bf16.vlgmr.msra.gmra.mxu2 %v88_v35 }
  0x24   :  { %333 = vmatmul.bf16.vlgmr.msra.gmra.mxu3 %v89_v36 }
  0x9e   :  { %v295_v38 = vpop.f32.mrf.mxu0 }
  0x9f   :  { %v308_v39 = vpop.f32.mrf.mxu1  ;;  %v296_v40 = vadd.f32 %v516_v37, %v295_v38 }
  0xa1   :  { %v309_v41 = vadd.f32 %v308_v39, %v296_v40 }
  0xa6   :  { %v321_v42 = vpop.f32.mrf.mxu2  ;;  %v297_v45 = vpop.f32.mrf.mxu0 }
  0xa7   :  { %v334_v43 = vpop.f32.mrf.mxu3  ;;  %v322_v44 = vadd.f32 %v321_v42, %v309_v41  ;;  %v310_v46 = vpop.f32.mrf.mxu1 }
  0xa9   :  { %v335_v47 = vadd.f32 %v334_v43, %v322_v44 }
  0xab   :  { %338 = vst [vmem:[#allocation2] sm:$0x3] %v335_v47 }
  0xac   :  { %349 = dma.vmem_to_hbm [thread:$0]  %s345_s24, 32, %s347_s27, [#allocation3]  }
  0xae   :  { %v323_v48 = vpop.f32.mrf.mxu2 }
  0xaf   :  { %v336_v49 = vpop.f32.mrf.mxu3 }
  0xb0   :  { %541 = dma.done.wait [#allocation3], 32  }
  0xb1   :  { %542 = vsyncadd [#allocation3], 4294967264 }
  0xb2   :  { %354 = vsyncpa [#allocation3], 1 }

// kernel: forward.8
= control target key start
LH: loop header
LB: loop body
LE: loop exit
PB: predicated region body
PF: predicated region fallthrough
CT: control target
= control target key end

     0   :  { %s8857_s12 = smov 0   ;;  %s8859_s13 = smov 0   ;;  %s10681_s0 = inlined_call_operand.vmem [shape: bf16[2,3200], index: 0, kind: input, shape index: {}]   ;;  %s10682_s1 = inlined_call_operand.vmem [shape: bf16[3200,512], index: 1, kind: input, shape index: {}]   ;;  %s10683_s2 = inlined_call_operand.vmem [shape: f32[1,512], index: 2, kind: input, shape index: {}]   ;;  %s10684_s3 = inlined_call_operand.vmem [shape: bf16[2,512], index: 3, kind: output, shape index: {}]  }
   0x1   :  { %s8861_s14 = smov 0   ;;  %s8863_s15 = smov 0  }
   0x2   :  { %s8865_s16 = smov 0  }
   0x3 LB: > { %s22_s17 = sadd.s32 1, %s8831_s15  ;;  %p65_p1 = scmp.ne.s32.totalorder %s8823_s13, %s8819_s12  ;;  %s8835_s16 = sphi %s8865_s16, %s13_s16   ;;  %s8831_s15 = sphi %s8863_s15, %s10689_s15   ;;  %s8827_s14 = sphi %s8861_s14, %s10688_s14   ;;  %s8823_s13 = sphi %s8859_s13, %s10687_s13   ;;  %s8819_s12 = sphi %s8857_s12, %s10686_s12  }
   0x4   : > { %p23_p0 = scmp.ge.s32.totalorder %s22_s17, 2  ;;  %p66_p2 = scmp.eq.s32.totalorder %s8835_s16, 0 }
   0x5   : > { %s58_s19 = sadd.s32 1, %s8823_s13  ;;  %p6744_p5 = scmp.ge.s32.totalorder %s8835_s16, 2 }
   0x6   : > { %s10691_s17 = smov (%p23_p0, %s22_s17), 0  ;;  %p67_p3 = por %p66_p2, %p65_p1 }
   0x7   : > { %s55_s18 = ssub.s32 %s8831_s15, %s10691_s17  ;;  %152 = sbr.rel (%p6744_p5) target bundleno = 416 (0x1a0), region = 20 }
   0x8   : > { %p56_p4 = scmp.eq.s32.totalorder %s55_s18, 0 }
   0xa   : > { %s8892_s20 = scalar_select %p56_p4, %s8823_s13, %s58_s19  }
   0xc   : > { %155 = sbr.rel (!%p67_p3) target bundleno = 416 (0x1a0), region = 24  ;;  %s157_s21 = sand.u32 (%p67_p3), 1, %s8823_s13  }
   0xd   : > { %s8352_s22 = sshll.u32 (%p67_p3), %s8831_s15, 3  ;;  %s8753_s23 = smul.u32 (%p67_p3), 3200, %s157_s21 }
   0xe   : > { %s8900_s26 = scalar_lea.vmem (%p67_p3), %s10682_s1, %s8352_s22 }
   0xf   : > { %v990_v0 = vld [vmem:[%s8900_s26] sm:$0xff] (%p67_p3)  ;;  %v992_v1 = vld [vmem:[%s8900_s26 + $0x10] sm:$0xff] (%p67_p3)  ;;  %s8905_s27 = scalar_lea.vmem (%p67_p3), [#allocation2], %s8753_s23 }
  0x10   : > { %v994_v2 = vld [vmem:[%s8900_s26 + $0x20] sm:$0xff] (%p67_p3)  ;;  %991 = vst [vmem:[%s8905_s27] sm:$0xff] (%p67_p3), %v990_v0  ;;  %v996_v3 = vld [vmem:[%s8900_s26 + $0x30] sm:$0xff] (%p67_p3) }
  0x11   : > { %993 = vst [vmem:[%s8905_s27 + $0x8] sm:$0xff] %v992_v1  ;;  %v998_v4 = vld [vmem:[%s8900_s26 + $0x40] sm:$0xff]  ;;  %v1000_v5 = vld [vmem:[%s8900_s26 + $0x50] sm:$0xff] }
  0x12   : > { %995 = vst [vmem:[%s8905_s27 + $0x10] sm:$0xff] %v994_v2  ;;  %v1002_v6 = vld [vmem:[%s8900_s26 + $0x60] sm:$0xff]  ;;  %v1004_v7 = vld [vmem:[%s8900_s26 + $0x70] sm:$0xff] }
  0x13   : > { %997 = vst [vmem:[%s8905_s27 + $0x18] sm:$0xff] %v996_v3  ;;  %v1006_v8 = vld [vmem:[%s8900_s26 + $0x80] sm:$0xff]  ;;  %v1008_v9 = vld [vmem:[%s8900_s26 + $0x90] sm:$0xff] }
  0x14   : > { %999 = vst [vmem:[%s8905_s27 + $0x20] sm:$0xff] %v998_v4  ;;  %v1010_v10 = vld [vmem:[%s8900_s26 + $0xa0] sm:$0xff]  ;;  %v1012_v11 = vld [vmem:[%s8900_s26 + $0xb0] sm:$0xff] }
  0x15   : > { %1001 = vst [vmem:[%s8905_s27 + $0x28] sm:$0xff] %v1000_v5  ;;  %v1014_v12 = vld [vmem:[%s8900_s26 + $0xc0] sm:$0xff]  ;;  %v1016_v13 = vld [vmem:[%s8900_s26 + $0xd0] sm:$0xff] }
  0x16   : > { %1003 = vst [vmem:[%s8905_s27 + $0x30] sm:$0xff] %v1002_v6  ;;  %v1018_v14 = vld [vmem:[%s8900_s26 + $0xe0] sm:$0xff]  ;;  %v1020_v15 = vld [vmem:[%s8900_s26 + $0xf0] sm:$0xff] }
  0x17   : > { %1005 = vst [vmem:[%s8905_s27 + $0x38] sm:$0xff] %v1004_v7  ;;  %v1022_v16 = vld [vmem:[%s8900_s26 + $0x100] sm:$0xff]  ;;  %v1024_v17 = vld [vmem:[%s8900_s26 + $0x110] sm:$0xff] }
  0x18   : > { %1007 = vst [vmem:[%s8905_s27 + $0x40] sm:$0xff] %v1006_v8  ;;  %v1026_v18 = vld [vmem:[%s8900_s26 + $0x120] sm:$0xff]  ;;  %v1028_v19 = vld [vmem:[%s8900_s26 + $0x130] sm:$0xff] }
  0x19   : > { %1009 = vst [vmem:[%s8905_s27 + $0x48] sm:$0xff] %v1008_v9  ;;  %v1030_v20 = vld [vmem:[%s8900_s26 + $0x140] sm:$0xff]  ;;  %v1032_v21 = vld [vmem:[%s8900_s26 + $0x150] sm:$0xff] }
  0x1a   : > { %1011 = vst [vmem:[%s8905_s27 + $0x50] sm:$0xff] %v1010_v10  ;;  %v1034_v22 = vld [vmem:[%s8900_s26 + $0x160] sm:$0xff]  ;;  %v1036_v23 = vld [vmem:[%s8900_s26 + $0x170] sm:$0xff] }
  0x1b   : > { %1013 = vst [vmem:[%s8905_s27 + $0x58] sm:$0xff] %v1012_v11  ;;  %v1038_v24 = vld [vmem:[%s8900_s26 + $0x180] sm:$0xff]  ;;  %v1040_v25 = vld [vmem:[%s8900_s26 + $0x190] sm:$0xff] }
  0x1c   : > { %1015 = vst [vmem:[%s8905_s27 + $0x60] sm:$0xff] %v1014_v12  ;;  %v1042_v26 = vld [vmem:[%s8900_s26 + $0x1a0] sm:$0xff]  ;;  %v1044_v27 = vld [vmem:[%s8900_s26 + $0x1b0] sm:$0xff] }
  0x1d   : > { %1017 = vst [vmem:[%s8905_s27 + $0x68] sm:$0xff] %v1016_v13  ;;  %v1046_v28 = vld [vmem:[%s8900_s26 + $0x1c0] sm:$0xff]  ;;  %v1048_v29 = vld [vmem:[%s8900_s26 + $0x1d0] sm:$0xff] }
  0x1e   : > { %1019 = vst [vmem:[%s8905_s27 + $0x70] sm:$0xff] %v1018_v14  ;;  %v1050_v30 = vld [vmem:[%s8900_s26 + $0x1e0] sm:$0xff]  ;;  %v1052_v31 = vld [vmem:[%s8900_s26 + $0x1f0] sm:$0xff] }
  0x1f   : > { %1021 = vst [vmem:[%s8905_s27 + $0x78] sm:$0xff] %v1020_v15  ;;  %v1054_v32 = vld [vmem:[%s8900_s26 + $0x200] sm:$0xff]  ;;  %v1056_v33 = vld [vmem:[%s8900_s26 + $0x210] sm:$0xff] }
  0x20   : > { %1023 = vst [vmem:[%s8905_s27 + $0x80] sm:$0xff] %v1022_v16  ;;  %v1058_v34 = vld [vmem:[%s8900_s26 + $0x220] sm:$0xff]  ;;  %v1060_v35 = vld [vmem:[%s8900_s26 + $0x230] sm:$0xff] }
  0x21   : > { %1025 = vst [vmem:[%s8905_s27 + $0x88] sm:$0xff] %v1024_v17  ;;  %v1062_v36 = vld [vmem:[%s8900_s26 + $0x240] sm:$0xff]  ;;  %v1064_v37 = vld [vmem:[%s8900_s26 + $0x250] sm:$0xff] }
  0x22   : > { %1027 = vst [vmem:[%s8905_s27 + $0x90] sm:$0xff] %v1026_v18  ;;  %v1066_v38 = vld [vmem:[%s8900_s26 + $0x260] sm:$0xff]  ;;  %v1068_v39 = vld [vmem:[%s8900_s26 + $0x270] sm:$0xff] }
  0x23   : > { %1029 = vst [vmem:[%s8905_s27 + $0x98] sm:$0xff] %v1028_v19  ;;  %v1070_v40 = vld [vmem:[%s8900_s26 + $0x280] sm:$0xff]  ;;  %v1072_v41 = vld [vmem:[%s8900_s26 + $0x290] sm:$0xff] }
  0x24   : > { %1031 = vst [vmem:[%s8905_s27 + $0xa0] sm:$0xff] %v1030_v20  ;;  %v1074_v42 = vld [vmem:[%s8900_s26 + $0x2a0] sm:$0xff]  ;;  %v1076_v43 = vld [vmem:[%s8900_s26 + $0x2b0] sm:$0xff] }
  0x25   : > { %1033 = vst [vmem:[%s8905_s27 + $0xa8] sm:$0xff] %v1032_v21  ;;  %v1078_v44 = vld [vmem:[%s8900_s26 + $0x2c0] sm:$0xff]  ;;  %v1080_v45 = vld [vmem:[%s8900_s26 + $0x2d0] sm:$0xff] }
  0x26   : > { %1035 = vst [vmem:[%s8905_s27 + $0xb0] sm:$0xff] %v1034_v22  ;;  %v1082_v46 = vld [vmem:[%s8900_s26 + $0x2e0] sm:$0xff]  ;;  %v1084_v47 = vld [vmem:[%s8900_s26 + $0x2f0] sm:$0xff] }
  0x27   : > { %1037 = vst [vmem:[%s8905_s27 + $0xb8] sm:$0xff] %v1036_v23  ;;  %v1086_v48 = vld [vmem:[%s8900_s26 + $0x300] sm:$0xff]  ;;  %v1088_v49 = vld [vmem:[%s8900_s26 + $0x310] sm:$0xff] }
  0x28   : > { %1039 = vst [vmem:[%s8905_s27 + $0xc0] sm:$0xff] %v1038_v24  ;;  %v1090_v50 = vld [vmem:[%s8900_s26 + $0x320] sm:$0xff]  ;;  %v1092_v51 = vld [vmem:[%s8900_s26 + $0x330] sm:$0xff] }
  0x29   : > { %1041 = vst [vmem:[%s8905_s27 + $0xc8] sm:$0xff] %v1040_v25  ;;  %v1094_v52 = vld [vmem:[%s8900_s26 + $0x340] sm:$0xff]  ;;  %v1096_v53 = vld [vmem:[%s8900_s26 + $0x350] sm:$0xff] }
  0x2a   : > { %1043 = vst [vmem:[%s8905_s27 + $0xd0] sm:$0xff] %v1042_v26  ;;  %v1098_v54 = vld [vmem:[%s8900_s26 + $0x360] sm:$0xff]  ;;  %v1100_v55 = vld [vmem:[%s8900_s26 + $0x370] sm:$0xff] }
  0x2b   : > { %1045 = vst [vmem:[%s8905_s27 + $0xd8] sm:$0xff] %v1044_v27  ;;  %v1102_v56 = vld [vmem:[%s8900_s26 + $0x380] sm:$0xff]  ;;  %v1104_v57 = vld [vmem:[%s8900_s26 + $0x390] sm:$0xff] }
  0x2c   : > { %1047 = vst [vmem:[%s8905_s27 + $0xe0] sm:$0xff] %v1046_v28  ;;  %v1106_v58 = vld [vmem:[%s8900_s26 + $0x3a0] sm:$0xff]  ;;  %v1108_v59 = vld [vmem:[%s8900_s26 + $0x3b0] sm:$0xff] }
  0x2d   : > { %1049 = vst [vmem:[%s8905_s27 + $0xe8] sm:$0xff] %v1048_v29  ;;  %v1110_v60 = vld [vmem:[%s8900_s26 + $0x3c0] sm:$0xff]  ;;  %v1112_v61 = vld [vmem:[%s8900_s26 + $0x3d0] sm:$0xff] }
  0x2e   : > { %1051 = vst [vmem:[%s8905_s27 + $0xf0] sm:$0xff] %v1050_v30  ;;  %v1114_v62 = vld [vmem:[%s8900_s26 + $0x3e0] sm:$0xff]  ;;  %v1116_v63 = vld [vmem:[%s8900_s26 + $0x3f0] sm:$0xff] }
  0x2f   : > { %1053 = vst [vmem:[%s8905_s27 + $0xf8] sm:$0xff] %v1052_v31  ;;  %v1118_v0 = vld [vmem:[%s8900_s26 + $0x400] sm:$0xff]  ;;  %v1120_v1 = vld [vmem:[%s8900_s26 + $0x410] sm:$0xff] }
  0x30   : > { %1055 = vst [vmem:[%s8905_s27 + $0x100] sm:$0xff] %v1054_v32  ;;  %v1122_v2 = vld [vmem:[%s8900_s26 + $0x420] sm:$0xff]  ;;  %v1124_v3 = vld [vmem:[%s8900_s26 + $0x430] sm:$0xff] }
  0x31   : > { %1057 = vst [vmem:[%s8905_s27 + $0x108] sm:$0xff] %v1056_v33  ;;  %v1126_v4 = vld [vmem:[%s8900_s26 + $0x440] sm:$0xff]  ;;  %v1128_v5 = vld [vmem:[%s8900_s26 + $0x450] sm:$0xff] }
  0x32   : > { %1059 = vst [vmem:[%s8905_s27 + $0x110] sm:$0xff] %v1058_v34  ;;  %v1130_v6 = vld [vmem:[%s8900_s26 + $0x460] sm:$0xff]  ;;  %v1132_v7 = vld [vmem:[%s8900_s26 + $0x470] sm:$0xff] }
  0x33   : > { %1061 = vst [vmem:[%s8905_s27 + $0x118] sm:$0xff] %v1060_v35  ;;  %v1134_v8 = vld [vmem:[%s8900_s26 + $0x480] sm:$0xff]  ;;  %v1136_v9 = vld [vmem:[%s8900_s26 + $0x490] sm:$0xff] }
  0x34   : > { %1063 = vst [vmem:[%s8905_s27 + $0x120] sm:$0xff] %v1062_v36  ;;  %v1138_v10 = vld [vmem:[%s8900_s26 + $0x4a0] sm:$0xff]  ;;  %v1140_v11 = vld [vmem:[%s8900_s26 + $0x4b0] sm:$0xff] }
  0x35   : > { %1065 = vst [vmem:[%s8905_s27 + $0x128] sm:$0xff] %v1064_v37  ;;  %v1142_v12 = vld [vmem:[%s8900_s26 + $0x4c0] sm:$0xff]  ;;  %v1144_v13 = vld [vmem:[%s8900_s26 + $0x4d0] sm:$0xff] }
  0x36   : > { %1067 = vst [vmem:[%s8905_s27 + $0x130] sm:$0xff] %v1066_v38  ;;  %v1146_v14 = vld [vmem:[%s8900_s26 + $0x4e0] sm:$0xff]  ;;  %v1148_v15 = vld [vmem:[%s8900_s26 + $0x4f0] sm:$0xff] }
  0x37   : > { %1069 = vst [vmem:[%s8905_s27 + $0x138] sm:$0xff] %v1068_v39  ;;  %v1150_v16 = vld [vmem:[%s8900_s26 + $0x500] sm:$0xff]  ;;  %v1152_v17 = vld [vmem:[%s8900_s26 + $0x510] sm:$0xff] }
  0x38   : > { %1071 = vst [vmem:[%s8905_s27 + $0x140] sm:$0xff] %v1070_v40  ;;  %v1154_v18 = vld [vmem:[%s8900_s26 + $0x520] sm:$0xff]  ;;  %v1156_v19 = vld [vmem:[%s8900_s26 + $0x530] sm:$0xff] }
  0x39   : > { %1073 = vst [vmem:[%s8905_s27 + $0x148] sm:$0xff] %v1072_v41  ;;  %v1158_v20 = vld [vmem:[%s8900_s26 + $0x540] sm:$0xff]  ;;  %v1160_v21 = vld [vmem:[%s8900_s26 + $0x550] sm:$0xff] }
  0x3a   : > { %1075 = vst [vmem:[%s8905_s27 + $0x150] sm:$0xff] %v1074_v42  ;;  %v1162_v22 = vld [vmem:[%s8900_s26 + $0x560] sm:$0xff]  ;;  %v1164_v23 = vld [vmem:[%s8900_s26 + $0x570] sm:$0xff] }
  0x3b   : > { %1077 = vst [vmem:[%s8905_s27 + $0x158] sm:$0xff] %v1076_v43  ;;  %v1166_v24 = vld [vmem:[%s8900_s26 + $0x580] sm:$0xff]  ;;  %v1168_v25 = vld [vmem:[%s8900_s26 + $0x590] sm:$0xff] }
  0x3c   : > { %1079 = vst [vmem:[%s8905_s27 + $0x160] sm:$0xff] %v1078_v44  ;;  %v1170_v26 = vld [vmem:[%s8900_s26 + $0x5a0] sm:$0xff]  ;;  %v1172_v27 = vld [vmem:[%s8900_s26 + $0x5b0] sm:$0xff] }
  0x3d   : > { %1081 = vst [vmem:[%s8905_s27 + $0x168] sm:$0xff] %v1080_v45  ;;  %v1174_v28 = vld [vmem:[%s8900_s26 + $0x5c0] sm:$0xff]  ;;  %v1176_v29 = vld [vmem:[%s8900_s26 + $0x5d0] sm:$0xff] }
  0x3e   : > { %1083 = vst [vmem:[%s8905_s27 + $0x170] sm:$0xff] %v1082_v46  ;;  %v1178_v30 = vld [vmem:[%s8900_s26 + $0x5e0] sm:$0xff]  ;;  %v1180_v31 = vld [vmem:[%s8900_s26 + $0x5f0] sm:$0xff] }
  0x3f   : > { %1085 = vst [vmem:[%s8905_s27 + $0x178] sm:$0xff] %v1084_v47  ;;  %v1182_v32 = vld [vmem:[%s8900_s26 + $0x600] sm:$0xff]  ;;  %v1184_v33 = vld [vmem:[%s8900_s26 + $0x610] sm:$0xff] }
  0x40   : > { %1087 = vst [vmem:[%s8905_s27 + $0x180] sm:$0xff] %v1086_v48  ;;  %v1186_v34 = vld [vmem:[%s8900_s26 + $0x620] sm:$0xff]  ;;  %v1188_v35 = vld [vmem:[%s8900_s26 + $0x630] sm:$0xff] }
  0x41   : > { %1089 = vst [vmem:[%s8905_s27 + $0x188] sm:$0xff] %v1088_v49  ;;  %v1190_v36 = vld [vmem:[%s8900_s26 + $0x640] sm:$0xff]  ;;  %v1192_v37 = vld [vmem:[%s8900_s26 + $0x650] sm:$0xff] }
  0x42   : > { %1091 = vst [vmem:[%s8905_s27 + $0x190] sm:$0xff] %v1090_v50  ;;  %v1194_v38 = vld [vmem:[%s8900_s26 + $0x660] sm:$0xff]  ;;  %v1196_v39 = vld [vmem:[%s8900_s26 + $0x670] sm:$0xff] }
  0x43   : > { %1093 = vst [vmem:[%s8905_s27 + $0x198] sm:$0xff] %v1092_v51  ;;  %v1198_v40 = vld [vmem:[%s8900_s26 + $0x680] sm:$0xff]  ;;  %v1200_v41 = vld [vmem:[%s8900_s26 + $0x690] sm:$0xff] }
  0x44   : > { %1095 = vst [vmem:[%s8905_s27 + $0x1a0] sm:$0xff] %v1094_v52  ;;  %v1202_v42 = vld [vmem:[%s8900_s26 + $0x6a0] sm:$0xff]  ;;  %v1204_v43 = vld [vmem:[%s8900_s26 + $0x6b0] sm:$0xff] }
  0x45   : > { %1097 = vst [vmem:[%s8905_s27 + $0x1a8] sm:$0xff] %v1096_v53  ;;  %v1206_v44 = vld [vmem:[%s8900_s26 + $0x6c0] sm:$0xff]  ;;  %v1208_v45 = vld [vmem:[%s8900_s26 + $0x6d0] sm:$0xff] }
  0x46   : > { %1099 = vst [vmem:[%s8905_s27 + $0x1b0] sm:$0xff] %v1098_v54  ;;  %v1210_v46 = vld [vmem:[%s8900_s26 + $0x6e0] sm:$0xff]  ;;  %v1212_v47 = vld [vmem:[%s8900_s26 + $0x6f0] sm:$0xff] }
  0x47   : > { %1101 = vst [vmem:[%s8905_s27 + $0x1b8] sm:$0xff] %v1100_v55  ;;  %v1214_v48 = vld [vmem:[%s8900_s26 + $0x700] sm:$0xff]  ;;  %v1216_v49 = vld [vmem:[%s8900_s26 + $0x710] sm:$0xff] }
  0x48   : > { %1103 = vst [vmem:[%s8905_s27 + $0x1c0] sm:$0xff] %v1102_v56  ;;  %v1218_v50 = vld [vmem:[%s8900_s26 + $0x720] sm:$0xff]  ;;  %v1220_v51 = vld [vmem:[%s8900_s26 + $0x730] sm:$0xff] }
  0x49   : > { %1105 = vst [vmem:[%s8905_s27 + $0x1c8] sm:$0xff] %v1104_v57  ;;  %v1222_v52 = vld [vmem:[%s8900_s26 + $0x740] sm:$0xff]  ;;  %v1224_v53 = vld [vmem:[%s8900_s26 + $0x750] sm:$0xff] }
  0x4a   : > { %1107 = vst [vmem:[%s8905_s27 + $0x1d0] sm:$0xff] %v1106_v58  ;;  %v1226_v54 = vld [vmem:[%s8900_s26 + $0x760] sm:$0xff]  ;;  %v1228_v55 = vld [vmem:[%s8900_s26 + $0x770] sm:$0xff] }
  0x4b   : > { %1109 = vst [vmem:[%s8905_s27 + $0x1d8] sm:$0xff] %v1108_v59  ;;  %v1230_v56 = vld [vmem:[%s8900_s26 + $0x780] sm:$0xff]  ;;  %v1232_v57 = vld [vmem:[%s8900_s26 + $0x790] sm:$0xff] }
  0x4c   : > { %1111 = vst [vmem:[%s8905_s27 + $0x1e0] sm:$0xff] %v1110_v60  ;;  %v1234_v58 = vld [vmem:[%s8900_s26 + $0x7a0] sm:$0xff]  ;;  %v1236_v59 = vld [vmem:[%s8900_s26 + $0x7b0] sm:$0xff] }
  0x4d   : > { %1113 = vst [vmem:[%s8905_s27 + $0x1e8] sm:$0xff] %v1112_v61  ;;  %v1238_v60 = vld [vmem:[%s8900_s26 + $0x7c0] sm:$0xff]  ;;  %v1240_v61 = vld [vmem:[%s8900_s26 + $0x7d0] sm:$0xff] }
  0x4e   : > { %1115 = vst [vmem:[%s8905_s27 + $0x1f0] sm:$0xff] %v1114_v62  ;;  %v1242_v62 = vld [vmem:[%s8900_s26 + $0x7e0] sm:$0xff] }
  0x4f   : > { %1117 = vst [vmem:[%s8905_s27 + $0x1f8] sm:$0xff] %v1116_v63  ;;  %v1244_v63 = vld [vmem:[%s8900_s26 + $0x7f0] sm:$0xff] }
  0x50   : > { %1119 = vst [vmem:[%s8905_s27 + $0x200] sm:$0xff] %v1118_v0  ;;  %v1246_v0 = vld [vmem:[%s8900_s26 + $0x800] sm:$0xff] }
  0x51   : > { %1121 = vst [vmem:[%s8905_s27 + $0x208] sm:$0xff] %v1120_v1  ;;  %v1248_v1 = vld [vmem:[%s8900_s26 + $0x810] sm:$0xff] }
  0x52   : > { %1123 = vst [vmem:[%s8905_s27 + $0x210] sm:$0xff] %v1122_v2  ;;  %v1250_v2 = vld [vmem:[%s8900_s26 + $0x820] sm:$0xff] }
  0x53   : > { %1125 = vst [vmem:[%s8905_s27 + $0x218] sm:$0xff] %v1124_v3  ;;  %v1252_v3 = vld [vmem:[%s8900_s26 + $0x830] sm:$0xff] }
  0x54   : > { %1127 = vst [vmem:[%s8905_s27 + $0x220] sm:$0xff] %v1126_v4  ;;  %v1254_v4 = vld [vmem:[%s8900_s26 + $0x840] sm:$0xff] }
  0x55   : > { %1129 = vst [vmem:[%s8905_s27 + $0x228] sm:$0xff] %v1128_v5  ;;  %v1256_v5 = vld [vmem:[%s8900_s26 + $0x850] sm:$0xff] }
  0x56   : > { %1131 = vst [vmem:[%s8905_s27 + $0x230] sm:$0xff] %v1130_v6  ;;  %v1258_v6 = vld [vmem:[%s8900_s26 + $0x860] sm:$0xff] }
  0x57   : > { %1133 = vst [vmem:[%s8905_s27 + $0x238] sm:$0xff] %v1132_v7  ;;  %v1260_v7 = vld [vmem:[%s8900_s26 + $0x870] sm:$0xff] }
  0x58   : > { %1135 = vst [vmem:[%s8905_s27 + $0x240] sm:$0xff] %v1134_v8  ;;  %v1262_v8 = vld [vmem:[%s8900_s26 + $0x880] sm:$0xff] }
  0x59   : > { %1137 = vst [vmem:[%s8905_s27 + $0x248] sm:$0xff] %v1136_v9  ;;  %v1264_v9 = vld [vmem:[%s8900_s26 + $0x890] sm:$0xff] }
  0x5a   : > { %1139 = vst [vmem:[%s8905_s27 + $0x250] sm:$0xff] %v1138_v10  ;;  %v1266_v10 = vld [vmem:[%s8900_s26 + $0x8a0] sm:$0xff] }
  0x5b   : > { %1141 = vst [vmem:[%s8905_s27 + $0x258] sm:$0xff] %v1140_v11  ;;  %v1268_v11 = vld [vmem:[%s8900_s26 + $0x8b0] sm:$0xff] }
  0x5c   : > { %1143 = vst [vmem:[%s8905_s27 + $0x260] sm:$0xff] %v1142_v12  ;;  %v1270_v12 = vld [vmem:[%s8900_s26 + $0x8c0] sm:$0xff] }
  0x5d   : > { %1145 = vst [vmem:[%s8905_s27 + $0x268] sm:$0xff] %v1144_v13  ;;  %v1272_v13 = vld [vmem:[%s8900_s26 + $0x8d0] sm:$0xff] }
  0x5e   : > { %1147 = vst [vmem:[%s8905_s27 + $0x270] sm:$0xff] %v1146_v14  ;;  %v1274_v14 = vld [vmem:[%s8900_s26 + $0x8e0] sm:$0xff] }
  0x5f   : > { %1149 = vst [vmem:[%s8905_s27 + $0x278] sm:$0xff] %v1148_v15  ;;  %v1276_v15 = vld [vmem:[%s8900_s26 + $0x8f0] sm:$0xff] }
  0x60   : > { %1151 = vst [vmem:[%s8905_s27 + $0x280] sm:$0xff] %v1150_v16  ;;  %v1278_v16 = vld [vmem:[%s8900_s26 + $0x900] sm:$0xff] }
  0x61   : > { %1153 = vst [vmem:[%s8905_s27 + $0x288] sm:$0xff] %v1152_v17  ;;  %v1280_v17 = vld [vmem:[%s8900_s26 + $0x910] sm:$0xff] }
  0x62   : > { %1155 = vst [vmem:[%s8905_s27 + $0x290] sm:$0xff] %v1154_v18  ;;  %v1282_v18 = vld [vmem:[%s8900_s26 + $0x920] sm:$0xff] }
  0x63   : > { %1157 = vst [vmem:[%s8905_s27 + $0x298] sm:$0xff] %v1156_v19  ;;  %v1284_v19 = vld [vmem:[%s8900_s26 + $0x930] sm:$0xff] }
  0x64   : > { %1159 = vst [vmem:[%s8905_s27 + $0x2a0] sm:$0xff] %v1158_v20  ;;  %v1286_v20 = vld [vmem:[%s8900_s26 + $0x940] sm:$0xff] }
  0x65   : > { %1161 = vst [vmem:[%s8905_s27 + $0x2a8] sm:$0xff] %v1160_v21  ;;  %v1288_v21 = vld [vmem:[%s8900_s26 + $0x950] sm:$0xff] }
  0x66   : > { %1163 = vst [vmem:[%s8905_s27 + $0x2b0] sm:$0xff] %v1162_v22  ;;  %v1290_v22 = vld [vmem:[%s8900_s26 + $0x960] sm:$0xff] }
  0x67   : > { %1165 = vst [vmem:[%s8905_s27 + $0x2b8] sm:$0xff] %v1164_v23  ;;  %v1292_v23 = vld [vmem:[%s8900_s26 + $0x970] sm:$0xff] }
  0x68   : > { %1167 = vst [vmem:[%s8905_s27 + $0x2c0] sm:$0xff] %v1166_v24  ;;  %v1294_v24 = vld [vmem:[%s8900_s26 + $0x980] sm:$0xff] }
  0x69   : > { %1169 = vst [vmem:[%s8905_s27 + $0x2c8] sm:$0xff] %v1168_v25  ;;  %v1296_v25 = vld [vmem:[%s8900_s26 + $0x990] sm:$0xff] }
  0x6a   : > { %1171 = vst [vmem:[%s8905_s27 + $0x2d0] sm:$0xff] %v1170_v26  ;;  %v1298_v26 = vld [vmem:[%s8900_s26 + $0x9a0] sm:$0xff] }
  0x6b   : > { %1173 = vst [vmem:[%s8905_s27 + $0x2d8] sm:$0xff] %v1172_v27  ;;  %v1300_v27 = vld [vmem:[%s8900_s26 + $0x9b0] sm:$0xff] }
  0x6c   : > { %1175 = vst [vmem:[%s8905_s27 + $0x2e0] sm:$0xff] %v1174_v28  ;;  %v1302_v28 = vld [vmem:[%s8900_s26 + $0x9c0] sm:$0xff] }
  0x6d   : > { %1177 = vst [vmem:[%s8905_s27 + $0x2e8] sm:$0xff] %v1176_v29  ;;  %v1304_v29 = vld [vmem:[%s8900_s26 + $0x9d0] sm:$0xff] }
  0x6e   : > { %1179 = vst [vmem:[%s8905_s27 + $0x2f0] sm:$0xff] %v1178_v30  ;;  %v1306_v30 = vld [vmem:[%s8900_s26 + $0x9e0] sm:$0xff] }
  0x6f   : > { %1181 = vst [vmem:[%s8905_s27 + $0x2f8] sm:$0xff] %v1180_v31  ;;  %v1308_v31 = vld [vmem:[%s8900_s26 + $0x9f0] sm:$0xff] }
  0x70   : > { %1183 = vst [vmem:[%s8905_s27 + $0x300] sm:$0xff] %v1182_v32  ;;  %v1310_v32 = vld [vmem:[%s8900_s26 + $0xa00] sm:$0xff] }
  0x71   : > { %1185 = vst [vmem:[%s8905_s27 + $0x308] sm:$0xff] %v1184_v33  ;;  %v1312_v33 = vld [vmem:[%s8900_s26 + $0xa10] sm:$0xff] }
  0x72   : > { %1187 = vst [vmem:[%s8905_s27 + $0x310] sm:$0xff] %v1186_v34  ;;  %v1314_v34 = vld [vmem:[%s8900_s26 + $0xa20] sm:$0xff] }
  0x73   : > { %1189 = vst [vmem:[%s8905_s27 + $0x318] sm:$0xff] %v1188_v35  ;;  %v1316_v35 = vld [vmem:[%s8900_s26 + $0xa30] sm:$0xff] }
  0x74   : > { %1191 = vst [vmem:[%s8905_s27 + $0x320] sm:$0xff] %v1190_v36  ;;  %v1318_v36 = vld [vmem:[%s8900_s26 + $0xa40] sm:$0xff] }
  0x75   : > { %1193 = vst [vmem:[%s8905_s27 + $0x328] sm:$0xff] %v1192_v37  ;;  %v1320_v37 = vld [vmem:[%s8900_s26 + $0xa50] sm:$0xff] }
  0x76   : > { %1195 = vst [vmem:[%s8905_s27 + $0x330] sm:$0xff] %v1194_v38  ;;  %v1322_v38 = vld [vmem:[%s8900_s26 + $0xa60] sm:$0xff] }
  0x77   : > { %1197 = vst [vmem:[%s8905_s27 + $0x338] sm:$0xff] %v1196_v39  ;;  %v1324_v39 = vld [vmem:[%s8900_s26 + $0xa70] sm:$0xff] }
  0x78   : > { %1199 = vst [vmem:[%s8905_s27 + $0x340] sm:$0xff] %v1198_v40  ;;  %v1326_v40 = vld [vmem:[%s8900_s26 + $0xa80] sm:$0xff] }
  0x79   : > { %1201 = vst [vmem:[%s8905_s27 + $0x348] sm:$0xff] %v1200_v41  ;;  %v1328_v41 = vld [vmem:[%s8900_s26 + $0xa90] sm:$0xff] }
  0x7a   : > { %1203 = vst [vmem:[%s8905_s27 + $0x350] sm:$0xff] %v1202_v42  ;;  %v1330_v42 = vld [vmem:[%s8900_s26 + $0xaa0] sm:$0xff] }
  0x7b   : > { %1205 = vst [vmem:[%s8905_s27 + $0x358] sm:$0xff] %v1204_v43  ;;  %v1332_v43 = vld [vmem:[%s8900_s26 + $0xab0] sm:$0xff] }
  0x7c   : > { %1207 = vst [vmem:[%s8905_s27 + $0x360] sm:$0xff] %v1206_v44  ;;  %v1334_v44 = vld [vmem:[%s8900_s26 + $0xac0] sm:$0xff] }
  0x7d   : > { %1209 = vst [vmem:[%s8905_s27 + $0x368] sm:$0xff] %v1208_v45  ;;  %v1336_v45 = vld [vmem:[%s8900_s26 + $0xad0] sm:$0xff] }
  0x7e   : > { %1211 = vst [vmem:[%s8905_s27 + $0x370] sm:$0xff] %v1210_v46  ;;  %v1338_v46 = vld [vmem:[%s8900_s26 + $0xae0] sm:$0xff] }
  0x7f   : > { %1213 = vst [vmem:[%s8905_s27 + $0x378] sm:$0xff] %v1212_v47  ;;  %v1340_v47 = vld [vmem:[%s8900_s26 + $0xaf0] sm:$0xff] }
  0x80   : > { %1215 = vst [vmem:[%s8905_s27 + $0x380] sm:$0xff] %v1214_v48  ;;  %v1342_v48 = vld [vmem:[%s8900_s26 + $0xb00] sm:$0xff] }
  0x81   : > { %1217 = vst [vmem:[%s8905_s27 + $0x388] sm:$0xff] %v1216_v49  ;;  %v1344_v49 = vld [vmem:[%s8900_s26 + $0xb10] sm:$0xff] }
  0x82   : > { %1219 = vst [vmem:[%s8905_s27 + $0x390] sm:$0xff] %v1218_v50  ;;  %v1346_v50 = vld [vmem:[%s8900_s26 + $0xb20] sm:$0xff] }
  0x83   : > { %1221 = vst [vmem:[%s8905_s27 + $0x398] sm:$0xff] %v1220_v51  ;;  %v1348_v51 = vld [vmem:[%s8900_s26 + $0xb30] sm:$0xff] }
  0x84   : > { %1223 = vst [vmem:[%s8905_s27 + $0x3a0] sm:$0xff] %v1222_v52  ;;  %v1350_v52 = vld [vmem:[%s8900_s26 + $0xb40] sm:$0xff] }
  0x85   : > { %1225 = vst [vmem:[%s8905_s27 + $0x3a8] sm:$0xff] %v1224_v53  ;;  %v1352_v53 = vld [vmem:[%s8900_s26 + $0xb50] sm:$0xff] }
  0x86   : > { %1227 = vst [vmem:[%s8905_s27 + $0x3b0] sm:$0xff] %v1226_v54  ;;  %v1354_v54 = vld [vmem:[%s8900_s26 + $0xb60] sm:$0xff] }
  0x87   : > { %1229 = vst [vmem:[%s8905_s27 + $0x3b8] sm:$0xff] %v1228_v55  ;;  %v1356_v55 = vld [vmem:[%s8900_s26 + $0xb70] sm:$0xff] }
  0x88   : > { %1231 = vst [vmem:[%s8905_s27 + $0x3c0] sm:$0xff] %v1230_v56  ;;  %v1358_v56 = vld [vmem:[%s8900_s26 + $0xb80] sm:$0xff] }
  0x89   : > { %1233 = vst [vmem:[%s8905_s27 + $0x3c8] sm:$0xff] %v1232_v57  ;;  %v1360_v57 = vld [vmem:[%s8900_s26 + $0xb90] sm:$0xff] }
  0x8a   : > { %1235 = vst [vmem:[%s8905_s27 + $0x3d0] sm:$0xff] %v1234_v58  ;;  %v1362_v58 = vld [vmem:[%s8900_s26 + $0xba0] sm:$0xff] }
  0x8b   : > { %1237 = vst [vmem:[%s8905_s27 + $0x3d8] sm:$0xff] %v1236_v59  ;;  %v1364_v59 = vld [vmem:[%s8900_s26 + $0xbb0] sm:$0xff] }
  0x8c   : > { %1239 = vst [vmem:[%s8905_s27 + $0x3e0] sm:$0xff] %v1238_v60  ;;  %v1366_v60 = vld [vmem:[%s8900_s26 + $0xbc0] sm:$0xff] }
  0x8d   : > { %1241 = vst [vmem:[%s8905_s27 + $0x3e8] sm:$0xff] %v1240_v61  ;;  %v1368_v61 = vld [vmem:[%s8900_s26 + $0xbd0] sm:$0xff] }
  0x8e   : > { %1243 = vst [vmem:[%s8905_s27 + $0x3f0] sm:$0xff] %v1242_v62  ;;  %v1370_v62 = vld [vmem:[%s8900_s26 + $0xbe0] sm:$0xff] }
  0x8f   : > { %1245 = vst [vmem:[%s8905_s27 + $0x3f8] sm:$0xff] %v1244_v63  ;;  %v1372_v63 = vld [vmem:[%s8900_s26 + $0xbf0] sm:$0xff] }
  0x90   : > { %1247 = vst [vmem:[%s8905_s27 + $0x400] sm:$0xff] %v1246_v0  ;;  %v1374_v0 = vld [vmem:[%s8900_s26 + $0xc00] sm:$0xff] }
  0x91   : > { %1249 = vst [vmem:[%s8905_s27 + $0x408] sm:$0xff] %v1248_v1  ;;  %v1376_v1 = vld [vmem:[%s8900_s26 + $0xc10] sm:$0xff] }
  0x92   : > { %1251 = vst [vmem:[%s8905_s27 + $0x410] sm:$0xff] %v1250_v2  ;;  %v1378_v2 = vld [vmem:[%s8900_s26 + $0xc20] sm:$0xff] }
  0x93   : > { %1253 = vst [vmem:[%s8905_s27 + $0x418] sm:$0xff] %v1252_v3  ;;  %v1380_v3 = vld [vmem:[%s8900_s26 + $0xc30] sm:$0xff] }
  0x94   : > { %1255 = vst [vmem:[%s8905_s27 + $0x420] sm:$0xff] %v1254_v4  ;;  %v1382_v4 = vld [vmem:[%s8900_s26 + $0xc40] sm:$0xff] }
  0x95   : > { %1257 = vst [vmem:[%s8905_s27 + $0x428] sm:$0xff] %v1256_v5  ;;  %v1384_v5 = vld [vmem:[%s8900_s26 + $0xc50] sm:$0xff] }
  0x96   : > { %1259 = vst [vmem:[%s8905_s27 + $0x430] sm:$0xff] %v1258_v6  ;;  %v1386_v6 = vld [vmem:[%s8900_s26 + $0xc60] sm:$0xff] }
  0x97   : > { %1261 = vst [vmem:[%s8905_s27 + $0x438] sm:$0xff] %v1260_v7  ;;  %v1388_v7 = vld [vmem:[%s8900_s26 + $0xc70] sm:$0xff] }
  0x98   : > { %1263 = vst [vmem:[%s8905_s27 + $0x440] sm:$0xff] %v1262_v8  ;;  %v1390_v8 = vld [vmem:[%s8900_s26 + $0xc80] sm:$0xff] }
  0x99   : > { %1265 = vst [vmem:[%s8905_s27 + $0x448] sm:$0xff] %v1264_v9  ;;  %v1392_v9 = vld [vmem:[%s8900_s26 + $0xc90] sm:$0xff] }
  0x9a   : > { %1267 = vst [vmem:[%s8905_s27 + $0x450] sm:$0xff] %v1266_v10  ;;  %v1394_v10 = vld [vmem:[%s8900_s26 + $0xca0] sm:$0xff] }
  0x9b   : > { %1269 = vst [vmem:[%s8905_s27 + $0x458] sm:$0xff] %v1268_v11  ;;  %v1396_v11 = vld [vmem:[%s8900_s26 + $0xcb0] sm:$0xff] }
  0x9c   : > { %1271 = vst [vmem:[%s8905_s27 + $0x460] sm:$0xff] %v1270_v12  ;;  %v1398_v12 = vld [vmem:[%s8900_s26 + $0xcc0] sm:$0xff] }
  0x9d   : > { %1273 = vst [vmem:[%s8905_s27 + $0x468] sm:$0xff] %v1272_v13  ;;  %v1400_v13 = vld [vmem:[%s8900_s26 + $0xcd0] sm:$0xff] }
  0x9e   : > { %1275 = vst [vmem:[%s8905_s27 + $0x470] sm:$0xff] %v1274_v14  ;;  %v1402_v14 = vld [vmem:[%s8900_s26 + $0xce0] sm:$0xff] }
  0x9f   : > { %1277 = vst [vmem:[%s8905_s27 + $0x478] sm:$0xff] %v1276_v15  ;;  %v1404_v15 = vld [vmem:[%s8900_s26 + $0xcf0] sm:$0xff] }
  0xa0   : > { %1279 = vst [vmem:[%s8905_s27 + $0x480] sm:$0xff] %v1278_v16  ;;  %v1406_v16 = vld [vmem:[%s8900_s26 + $0xd00] sm:$0xff] }
  0xa1   : > { %1281 = vst [vmem:[%s8905_s27 + $0x488] sm:$0xff] %v1280_v17  ;;  %v1408_v17 = vld [vmem:[%s8900_s26 + $0xd10] sm:$0xff] }
  0xa2   : > { %1283 = vst [vmem:[%s8905_s27 + $0x490] sm:$0xff] %v1282_v18  ;;  %v1410_v18 = vld [vmem:[%s8900_s26 + $0xd20] sm:$0xff] }
  0xa3   : > { %1285 = vst [vmem:[%s8905_s27 + $0x498] sm:$0xff] %v1284_v19  ;;  %v1412_v19 = vld [vmem:[%s8900_s26 + $0xd30] sm:$0xff] }
  0xa4   : > { %1287 = vst [vmem:[%s8905_s27 + $0x4a0] sm:$0xff] %v1286_v20  ;;  %v1414_v20 = vld [vmem:[%s8900_s26 + $0xd40] sm:$0xff] }
  0xa5   : > { %1289 = vst [vmem:[%s8905_s27 + $0x4a8] sm:$0xff] %v1288_v21  ;;  %v1416_v21 = vld [vmem:[%s8900_s26 + $0xd50] sm:$0xff] }
  0xa6   : > { %1291 = vst [vmem:[%s8905_s27 + $0x4b0] sm:$0xff] %v1290_v22  ;;  %v1418_v22 = vld [vmem:[%s8900_s26 + $0xd60] sm:$0xff] }
  0xa7   : > { %1293 = vst [vmem:[%s8905_s27 + $0x4b8] sm:$0xff] %v1292_v23  ;;  %v1420_v23 = vld [vmem:[%s8900_s26 + $0xd70] sm:$0xff] }
  0xa8   : > { %1295 = vst [vmem:[%s8905_s27 + $0x4c0] sm:$0xff] %v1294_v24  ;;  %v1422_v24 = vld [vmem:[%s8900_s26 + $0xd80] sm:$0xff] }
  0xa9   : > { %1297 = vst [vmem:[%s8905_s27 + $0x4c8] sm:$0xff] %v1296_v25  ;;  %v1424_v25 = vld [vmem:[%s8900_s26 + $0xd90] sm:$0xff] }
  0xaa   : > { %1299 = vst [vmem:[%s8905_s27 + $0x4d0] sm:$0xff] %v1298_v26  ;;  %v1426_v26 = vld [vmem:[%s8900_s26 + $0xda0] sm:$0xff] }
  0xab   : > { %1301 = vst [vmem:[%s8905_s27 + $0x4d8] sm:$0xff] %v1300_v27  ;;  %v1428_v27 = vld [vmem:[%s8900_s26 + $0xdb0] sm:$0xff] }
  0xac   : > { %1303 = vst [vmem:[%s8905_s27 + $0x4e0] sm:$0xff] %v1302_v28  ;;  %v1430_v28 = vld [vmem:[%s8900_s26 + $0xdc0] sm:$0xff] }
  0xad   : > { %1305 = vst [vmem:[%s8905_s27 + $0x4e8] sm:$0xff] %v1304_v29  ;;  %v1432_v29 = vld [vmem:[%s8900_s26 + $0xdd0] sm:$0xff] }
  0xae   : > { %1307 = vst [vmem:[%s8905_s27 + $0x4f0] sm:$0xff] %v1306_v30  ;;  %v1434_v30 = vld [vmem:[%s8900_s26 + $0xde0] sm:$0xff] }
  0xaf   : > { %1309 = vst [vmem:[%s8905_s27 + $0x4f8] sm:$0xff] %v1308_v31  ;;  %v1436_v31 = vld [vmem:[%s8900_s26 + $0xdf0] sm:$0xff] }
  0xb0   : > { %1311 = vst [vmem:[%s8905_s27 + $0x500] sm:$0xff] %v1310_v32  ;;  %v1438_v32 = vld [vmem:[%s8900_s26 + $0xe00] sm:$0xff] }
  0xb1   : > { %1313 = vst [vmem:[%s8905_s27 + $0x508] sm:$0xff] %v1312_v33  ;;  %v1440_v33 = vld [vmem:[%s8900_s26 + $0xe10] sm:$0xff] }
  0xb2   : > { %1315 = vst [vmem:[%s8905_s27 + $0x510] sm:$0xff] %v1314_v34  ;;  %v1442_v34 = vld [vmem:[%s8900_s26 + $0xe20] sm:$0xff] }
  0xb3   : > { %1317 = vst [vmem:[%s8905_s27 + $0x518] sm:$0xff] %v1316_v35  ;;  %v1444_v35 = vld [vmem:[%s8900_s26 + $0xe30] sm:$0xff] }
  0xb4   : > { %1319 = vst [vmem:[%s8905_s27 + $0x520] sm:$0xff] %v1318_v36  ;;  %v1446_v36 = vld [vmem:[%s8900_s26 + $0xe40] sm:$0xff] }
  0xb5   : > { %1321 = vst [vmem:[%s8905_s27 + $0x528] sm:$0xff] %v1320_v37  ;;  %v1448_v37 = vld [vmem:[%s8900_s26 + $0xe50] sm:$0xff] }
  0xb6   : > { %1323 = vst [vmem:[%s8905_s27 + $0x530] sm:$0xff] %v1322_v38  ;;  %v1450_v38 = vld [vmem:[%s8900_s26 + $0xe60] sm:$0xff] }
  0xb7   : > { %1325 = vst [vmem:[%s8905_s27 + $0x538] sm:$0xff] %v1324_v39  ;;  %v1452_v39 = vld [vmem:[%s8900_s26 + $0xe70] sm:$0xff] }
  0xb8   : > { %1327 = vst [vmem:[%s8905_s27 + $0x540] sm:$0xff] %v1326_v40  ;;  %v1454_v40 = vld [vmem:[%s8900_s26 + $0xe80] sm:$0xff] }
  0xb9   : > { %1329 = vst [vmem:[%s8905_s27 + $0x548] sm:$0xff] %v1328_v41  ;;  %v1456_v41 = vld [vmem:[%s8900_s26 + $0xe90] sm:$0xff] }
  0xba   : > { %1331 = vst [vmem:[%s8905_s27 + $0x550] sm:$0xff] %v1330_v42  ;;  %v1458_v42 = vld [vmem:[%s8900_s26 + $0xea0] sm:$0xff] }
  0xbb   : > { %1333 = vst [vmem:[%s8905_s27 + $0x558] sm:$0xff] %v1332_v43  ;;  %v1460_v43 = vld [vmem:[%s8900_s26 + $0xeb0] sm:$0xff] }
  0xbc   : > { %1335 = vst [vmem:[%s8905_s27 + $0x560] sm:$0xff] %v1334_v44  ;;  %v1462_v44 = vld [vmem:[%s8900_s26 + $0xec0] sm:$0xff] }
  0xbd   : > { %1337 = vst [vmem:[%s8905_s27 + $0x568] sm:$0xff] %v1336_v45  ;;  %v1464_v45 = vld [vmem:[%s8900_s26 + $0xed0] sm:$0xff] }
  0xbe   : > { %1339 = vst [vmem:[%s8905_s27 + $0x570] sm:$0xff] %v1338_v46  ;;  %v1466_v46 = vld [vmem:[%s8900_s26 + $0xee0] sm:$0xff] }
  0xbf   : > { %1341 = vst [vmem:[%s8905_s27 + $0x578] sm:$0xff] %v1340_v47  ;;  %v1468_v47 = vld [vmem:[%s8900_s26 + $0xef0] sm:$0xff] }
  0xc0   : > { %1343 = vst [vmem:[%s8905_s27 + $0x580] sm:$0xff] %v1342_v48  ;;  %v1470_v48 = vld [vmem:[%s8900_s26 + $0xf00] sm:$0xff] }
  0xc1   : > { %1345 = vst [vmem:[%s8905_s27 + $0x588] sm:$0xff] %v1344_v49  ;;  %v1472_v49 = vld [vmem:[%s8900_s26 + $0xf10] sm:$0xff] }
  0xc2   : > { %1347 = vst [vmem:[%s8905_s27 + $0x590] sm:$0xff] %v1346_v50  ;;  %v1474_v50 = vld [vmem:[%s8900_s26 + $0xf20] sm:$0xff] }
  0xc3   : > { %1349 = vst [vmem:[%s8905_s27 + $0x598] sm:$0xff] %v1348_v51  ;;  %v1476_v51 = vld [vmem:[%s8900_s26 + $0xf30] sm:$0xff] }
  0xc4   : > { %1351 = vst [vmem:[%s8905_s27 + $0x5a0] sm:$0xff] %v1350_v52  ;;  %v1478_v52 = vld [vmem:[%s8900_s26 + $0xf40] sm:$0xff] }
  0xc5   : > { %1353 = vst [vmem:[%s8905_s27 + $0x5a8] sm:$0xff] %v1352_v53  ;;  %v1480_v53 = vld [vmem:[%s8900_s26 + $0xf50] sm:$0xff] }
  0xc6   : > { %1355 = vst [vmem:[%s8905_s27 + $0x5b0] sm:$0xff] %v1354_v54  ;;  %v1482_v54 = vld [vmem:[%s8900_s26 + $0xf60] sm:$0xff] }
  0xc7   : > { %1357 = vst [vmem:[%s8905_s27 + $0x5b8] sm:$0xff] %v1356_v55  ;;  %v1484_v55 = vld [vmem:[%s8900_s26 + $0xf70] sm:$0xff] }
  0xc8   : > { %1359 = vst [vmem:[%s8905_s27 + $0x5c0] sm:$0xff] %v1358_v56  ;;  %v1486_v56 = vld [vmem:[%s8900_s26 + $0xf80] sm:$0xff] }
  0xc9   : > { %1361 = vst [vmem:[%s8905_s27 + $0x5c8] sm:$0xff] %v1360_v57  ;;  %v1488_v57 = vld [vmem:[%s8900_s26 + $0xf90] sm:$0xff] }
  0xca   : > { %1363 = vst [vmem:[%s8905_s27 + $0x5d0] sm:$0xff] %v1362_v58  ;;  %v1490_v58 = vld [vmem:[%s8900_s26 + $0xfa0] sm:$0xff] }
  0xcb   : > { %1365 = vst [vmem:[%s8905_s27 + $0x5d8] sm:$0xff] %v1364_v59  ;;  %v1492_v59 = vld [vmem:[%s8900_s26 + $0xfb0] sm:$0xff] }
  0xcc   : > { %1367 = vst [vmem:[%s8905_s27 + $0x5e0] sm:$0xff] %v1366_v60  ;;  %v1494_v60 = vld [vmem:[%s8900_s26 + $0xfc0] sm:$0xff] }
  0xcd   : > { %1369 = vst [vmem:[%s8905_s27 + $0x5e8] sm:$0xff] %v1368_v61  ;;  %v1496_v61 = vld [vmem:[%s8900_s26 + $0xfd0] sm:$0xff] }
  0xce   : > { %1371 = vst [vmem:[%s8905_s27 + $0x5f0] sm:$0xff] %v1370_v62  ;;  %v1498_v62 = vld [vmem:[%s8900_s26 + $0xfe0] sm:$0xff] }
  0xcf   : > { %1373 = vst [vmem:[%s8905_s27 + $0x5f8] sm:$0xff] %v1372_v63  ;;  %v1500_v63 = vld [vmem:[%s8900_s26 + $0xff0] sm:$0xff] }
  0xd0   : > { %1375 = vst [vmem:[%s8905_s27 + $0x600] sm:$0xff] %v1374_v0  ;;  %v1502_v0 = vld [vmem:[%s8900_s26 + $0x1000] sm:$0xff] }
  0xd1   : > { %1377 = vst [vmem:[%s8905_s27 + $0x608] sm:$0xff] %v1376_v1  ;;  %v1504_v1 = vld [vmem:[%s8900_s26 + $0x1010] sm:$0xff] }
  0xd2   : > { %1379 = vst [vmem:[%s8905_s27 + $0x610] sm:$0xff] %v1378_v2  ;;  %v1506_v2 = vld [vmem:[%s8900_s26 + $0x1020] sm:$0xff] }
  0xd3   : > { %1381 = vst [vmem:[%s8905_s27 + $0x618] sm:$0xff] %v1380_v3  ;;  %v1508_v3 = vld [vmem:[%s8900_s26 + $0x1030] sm:$0xff] }
  0xd4   : > { %1383 = vst [vmem:[%s8905_s27 + $0x620] sm:$0xff] %v1382_v4  ;;  %v1510_v4 = vld [vmem:[%s8900_s26 + $0x1040] sm:$0xff] }
  0xd5   : > { %1385 = vst [vmem:[%s8905_s27 + $0x628] sm:$0xff] %v1384_v5  ;;  %v1512_v5 = vld [vmem:[%s8900_s26 + $0x1050] sm:$0xff] }
  0xd6   : > { %1387 = vst [vmem:[%s8905_s27 + $0x630] sm:$0xff] %v1386_v6  ;;  %v1514_v6 = vld [vmem:[%s8900_s26 + $0x1060] sm:$0xff] }
  0xd7   : > { %1389 = vst [vmem:[%s8905_s27 + $0x638] sm:$0xff] %v1388_v7  ;;  %v1516_v7 = vld [vmem:[%s8900_s26 + $0x1070] sm:$0xff] }
  0xd8   : > { %1391 = vst [vmem:[%s8905_s27 + $0x640] sm:$0xff] %v1390_v8  ;;  %v1518_v8 = vld [vmem:[%s8900_s26 + $0x1080] sm:$0xff] }
  0xd9   : > { %1393 = vst [vmem:[%s8905_s27 + $0x648] sm:$0xff] %v1392_v9  ;;  %v1520_v9 = vld [vmem:[%s8900_s26 + $0x1090] sm:$0xff] }
  0xda   : > { %1395 = vst [vmem:[%s8905_s27 + $0x650] sm:$0xff] %v1394_v10  ;;  %v1522_v10 = vld [vmem:[%s8900_s26 + $0x10a0] sm:$0xff] }
  0xdb   : > { %1397 = vst [vmem:[%s8905_s27 + $0x658] sm:$0xff] %v1396_v11  ;;  %v1524_v11 = vld [vmem:[%s8900_s26 + $0x10b0] sm:$0xff] }
  0xdc   : > { %1399 = vst [vmem:[%s8905_s27 + $0x660] sm:$0xff] %v1398_v12  ;;  %v1526_v12 = vld [vmem:[%s8900_s26 + $0x10c0] sm:$0xff] }
  0xdd   : > { %1401 = vst [vmem:[%s8905_s27 + $0x668] sm:$0xff] %v1400_v13  ;;  %v1528_v13 = vld [vmem:[%s8900_s26 + $0x10d0] sm:$0xff] }
  0xde   : > { %1403 = vst [vmem:[%s8905_s27 + $0x670] sm:$0xff] %v1402_v14  ;;  %v1530_v14 = vld [vmem:[%s8900_s26 + $0x10e0] sm:$0xff] }
  0xdf   : > { %1405 = vst [vmem:[%s8905_s27 + $0x678] sm:$0xff] %v1404_v15  ;;  %v1532_v15 = vld [vmem:[%s8900_s26 + $0x10f0] sm:$0xff] }
  0xe0   : > { %1407 = vst [vmem:[%s8905_s27 + $0x680] sm:$0xff] %v1406_v16  ;;  %v1534_v16 = vld [vmem:[%s8900_s26 + $0x1100] sm:$0xff] }
  0xe1   : > { %1409 = vst [vmem:[%s8905_s27 + $0x688] sm:$0xff] %v1408_v17  ;;  %v1536_v17 = vld [vmem:[%s8900_s26 + $0x1110] sm:$0xff] }
  0xe2   : > { %1411 = vst [vmem:[%s8905_s27 + $0x690] sm:$0xff] %v1410_v18  ;;  %v1538_v18 = vld [vmem:[%s8900_s26 + $0x1120] sm:$0xff] }
  0xe3   : > { %1413 = vst [vmem:[%s8905_s27 + $0x698] sm:$0xff] %v1412_v19  ;;  %v1540_v19 = vld [vmem:[%s8900_s26 + $0x1130] sm:$0xff] }
  0xe4   : > { %1415 = vst [vmem:[%s8905_s27 + $0x6a0] sm:$0xff] %v1414_v20  ;;  %v1542_v20 = vld [vmem:[%s8900_s26 + $0x1140] sm:$0xff] }
  0xe5   : > { %1417 = vst [vmem:[%s8905_s27 + $0x6a8] sm:$0xff] %v1416_v21  ;;  %v1544_v21 = vld [vmem:[%s8900_s26 + $0x1150] sm:$0xff] }
  0xe6   : > { %1419 = vst [vmem:[%s8905_s27 + $0x6b0] sm:$0xff] %v1418_v22  ;;  %v1546_v22 = vld [vmem:[%s8900_s26 + $0x1160] sm:$0xff] }
  0xe7   : > { %1421 = vst [vmem:[%s8905_s27 + $0x6b8] sm:$0xff] %v1420_v23  ;;  %v1548_v23 = vld [vmem:[%s8900_s26 + $0x1170] sm:$0xff] }
  0xe8   : > { %1423 = vst [vmem:[%s8905_s27 + $0x6c0] sm:$0xff] %v1422_v24  ;;  %v1550_v24 = vld [vmem:[%s8900_s26 + $0x1180] sm:$0xff] }
  0xe9   : > { %1425 = vst [vmem:[%s8905_s27 + $0x6c8] sm:$0xff] %v1424_v25  ;;  %v1552_v25 = vld [vmem:[%s8900_s26 + $0x1190] sm:$0xff] }
  0xea   : > { %1427 = vst [vmem:[%s8905_s27 + $0x6d0] sm:$0xff] %v1426_v26  ;;  %v1554_v26 = vld [vmem:[%s8900_s26 + $0x11a0] sm:$0xff] }
  0xeb   : > { %1429 = vst [vmem:[%s8905_s27 + $0x6d8] sm:$0xff] %v1428_v27  ;;  %v1556_v27 = vld [vmem:[%s8900_s26 + $0x11b0] sm:$0xff] }
  0xec   : > { %1431 = vst [vmem:[%s8905_s27 + $0x6e0] sm:$0xff] %v1430_v28  ;;  %v1558_v28 = vld [vmem:[%s8900_s26 + $0x11c0] sm:$0xff] }
  0xed   : > { %1433 = vst [vmem:[%s8905_s27 + $0x6e8] sm:$0xff] %v1432_v29  ;;  %v1560_v29 = vld [vmem:[%s8900_s26 + $0x11d0] sm:$0xff] }
  0xee   : > { %1435 = vst [vmem:[%s8905_s27 + $0x6f0] sm:$0xff] %v1434_v30  ;;  %v1562_v30 = vld [vmem:[%s8900_s26 + $0x11e0] sm:$0xff] }
  0xef   : > { %1437 = vst [vmem:[%s8905_s27 + $0x6f8] sm:$0xff] %v1436_v31  ;;  %v1564_v31 = vld [vmem:[%s8900_s26 + $0x11f0] sm:$0xff] }
  0xf0   : > { %1439 = vst [vmem:[%s8905_s27 + $0x700] sm:$0xff] %v1438_v32  ;;  %v1566_v32 = vld [vmem:[%s8900_s26 + $0x1200] sm:$0xff] }
  0xf1   : > { %1441 = vst [vmem:[%s8905_s27 + $0x708] sm:$0xff] %v1440_v33  ;;  %v1568_v33 = vld [vmem:[%s8900_s26 + $0x1210] sm:$0xff] }
  0xf2   : > { %1443 = vst [vmem:[%s8905_s27 + $0x710] sm:$0xff] %v1442_v34  ;;  %v1570_v34 = vld [vmem:[%s8900_s26 + $0x1220] sm:$0xff] }
  0xf3   : > { %1445 = vst [vmem:[%s8905_s27 + $0x718] sm:$0xff] %v1444_v35  ;;  %v1572_v35 = vld [vmem:[%s8900_s26 + $0x1230] sm:$0xff] }
  0xf4   : > { %1447 = vst [vmem:[%s8905_s27 + $0x720] sm:$0xff] %v1446_v36  ;;  %v1574_v36 = vld [vmem:[%s8900_s26 + $0x1240] sm:$0xff] }
  0xf5   : > { %1449 = vst [vmem:[%s8905_s27 + $0x728] sm:$0xff] %v1448_v37  ;;  %v1576_v37 = vld [vmem:[%s8900_s26 + $0x1250] sm:$0xff] }
  0xf6   : > { %1451 = vst [vmem:[%s8905_s27 + $0x730] sm:$0xff] %v1450_v38  ;;  %v1578_v38 = vld [vmem:[%s8900_s26 + $0x1260] sm:$0xff] }
  0xf7   : > { %1453 = vst [vmem:[%s8905_s27 + $0x738] sm:$0xff] %v1452_v39  ;;  %v1580_v39 = vld [vmem:[%s8900_s26 + $0x1270] sm:$0xff] }
  0xf8   : > { %1455 = vst [vmem:[%s8905_s27 + $0x740] sm:$0xff] %v1454_v40  ;;  %v1582_v40 = vld [vmem:[%s8900_s26 + $0x1280] sm:$0xff] }
  0xf9   : > { %1457 = vst [vmem:[%s8905_s27 + $0x748] sm:$0xff] %v1456_v41  ;;  %v1584_v41 = vld [vmem:[%s8900_s26 + $0x1290] sm:$0xff] }
  0xfa   : > { %1459 = vst [vmem:[%s8905_s27 + $0x750] sm:$0xff] %v1458_v42  ;;  %v1586_v42 = vld [vmem:[%s8900_s26 + $0x12a0] sm:$0xff] }
  0xfb   : > { %1461 = vst [vmem:[%s8905_s27 + $0x758] sm:$0xff] %v1460_v43  ;;  %v1588_v43 = vld [vmem:[%s8900_s26 + $0x12b0] sm:$0xff] }
  0xfc   : > { %1463 = vst [vmem:[%s8905_s27 + $0x760] sm:$0xff] %v1462_v44  ;;  %v1590_v44 = vld [vmem:[%s8900_s26 + $0x12c0] sm:$0xff] }
  0xfd   : > { %1465 = vst [vmem:[%s8905_s27 + $0x768] sm:$0xff] %v1464_v45  ;;  %v1592_v45 = vld [vmem:[%s8900_s26 + $0x12d0] sm:$0xff] }
  0xfe   : > { %1467 = vst [vmem:[%s8905_s27 + $0x770] sm:$0xff] %v1466_v46  ;;  %v1594_v46 = vld [vmem:[%s8900_s26 + $0x12e0] sm:$0xff] }
  0xff   : > { %1469 = vst [vmem:[%s8905_s27 + $0x778] sm:$0xff] %v1468_v47  ;;  %v1596_v47 = vld [vmem:[%s8900_s26 + $0x12f0] sm:$0xff] }
 0x100   : > { %1471 = vst [vmem:[%s8905_s27 + $0x780] sm:$0xff] %v1470_v48  ;;  %v1598_v48 = vld [vmem:[%s8900_s26 + $0x1300] sm:$0xff] }
 0x101   : > { %1473 = vst [vmem:[%s8905_s27 + $0x788] sm:$0xff] %v1472_v49  ;;  %v1600_v49 = vld [vmem:[%s8900_s26 + $0x1310] sm:$0xff] }
 0x102   : > { %1475 = vst [vmem:[%s8905_s27 + $0x790] sm:$0xff] %v1474_v50  ;;  %v1602_v50 = vld [vmem:[%s8900_s26 + $0x1320] sm:$0xff] }
 0x103   : > { %1477 = vst [vmem:[%s8905_s27 + $0x798] sm:$0xff] %v1476_v51  ;;  %v1604_v51 = vld [vmem:[%s8900_s26 + $0x1330] sm:$0xff] }
 0x104   : > { %1479 = vst [vmem:[%s8905_s27 + $0x7a0] sm:$0xff] %v1478_v52  ;;  %v1606_v52 = vld [vmem:[%s8900_s26 + $0x1340] sm:$0xff] }
 0x105   : > { %1481 = vst [vmem:[%s8905_s27 + $0x7a8] sm:$0xff] %v1480_v53  ;;  %v1608_v53 = vld [vmem:[%s8900_s26 + $0x1350] sm:$0xff] }
 0x106   : > { %1483 = vst [vmem:[%s8905_s27 + $0x7b0] sm:$0xff] %v1482_v54  ;;  %v1610_v54 = vld [vmem:[%s8900_s26 + $0x1360] sm:$0xff] }
 0x107   : > { %1485 = vst [vmem:[%s8905_s27 + $0x7b8] sm:$0xff] %v1484_v55  ;;  %v1612_v55 = vld [vmem:[%s8900_s26 + $0x1370] sm:$0xff] }
 0x108   : > { %1487 = vst [vmem:[%s8905_s27 + $0x7c0] sm:$0xff] %v1486_v56  ;;  %v1614_v56 = vld [vmem:[%s8900_s26 + $0x1380] sm:$0xff] }
 0x109   : > { %1489 = vst [vmem:[%s8905_s27 + $0x7c8] sm:$0xff] %v1488_v57  ;;  %v1616_v57 = vld [vmem:[%s8900_s26 + $0x1390] sm:$0xff] }
 0x10a   : > { %1491 = vst [vmem:[%s8905_s27 + $0x7d0] sm:$0xff] %v1490_v58  ;;  %v1618_v58 = vld [vmem:[%s8900_s26 + $0x13a0] sm:$0xff] }
 0x10b   : > { %1493 = vst [vmem:[%s8905_s27 + $0x7d8] sm:$0xff] %v1492_v59  ;;  %v1620_v59 = vld [vmem:[%s8900_s26 + $0x13b0] sm:$0xff] }
 0x10c   : > { %1495 = vst [vmem:[%s8905_s27 + $0x7e0] sm:$0xff] %v1494_v60  ;;  %v1622_v60 = vld [vmem:[%s8900_s26 + $0x13c0] sm:$0xff] }
 0x10d   : > { %1497 = vst [vmem:[%s8905_s27 + $0x7e8] sm:$0xff] %v1496_v61  ;;  %v1624_v61 = vld [vmem:[%s8900_s26 + $0x13d0] sm:$0xff] }
 0x10e   : > { %1499 = vst [vmem:[%s8905_s27 + $0x7f0] sm:$0xff] %v1498_v62  ;;  %v1626_v62 = vld [vmem:[%s8900_s26 + $0x13e0] sm:$0xff] }
 0x10f   : > { %1501 = vst [vmem:[%s8905_s27 + $0x7f8] sm:$0xff] %v1500_v63  ;;  %v1628_v63 = vld [vmem:[%s8900_s26 + $0x13f0] sm:$0xff] }
 0x110   : > { %1503 = vst [vmem:[%s8905_s27 + $0x800] sm:$0xff] %v1502_v0  ;;  %v1630_v0 = vld [vmem:[%s8900_s26 + $0x1400] sm:$0xff] }
 0x111   : > { %1505 = vst [vmem:[%s8905_s27 + $0x808] sm:$0xff] %v1504_v1  ;;  %v1632_v1 = vld [vmem:[%s8900_s26 + $0x1410] sm:$0xff] }
 0x112   : > { %1507 = vst [vmem:[%s8905_s27 + $0x810] sm:$0xff] %v1506_v2  ;;  %v1634_v2 = vld [vmem:[%s8900_s26 + $0x1420] sm:$0xff] }
 0x113   : > { %1509 = vst [vmem:[%s8905_s27 + $0x818] sm:$0xff] %v1508_v3  ;;  %v1636_v3 = vld [vmem:[%s8900_s26 + $0x1430] sm:$0xff] }
 0x114   : > { %1511 = vst [vmem:[%s8905_s27 + $0x820] sm:$0xff] %v1510_v4  ;;  %v1638_v4 = vld [vmem:[%s8900_s26 + $0x1440] sm:$0xff] }
 0x115   : > { %1513 = vst [vmem:[%s8905_s27 + $0x828] sm:$0xff] %v1512_v5  ;;  %v1640_v5 = vld [vmem:[%s8900_s26 + $0x1450] sm:$0xff] }
 0x116   : > { %1515 = vst [vmem:[%s8905_s27 + $0x830] sm:$0xff] %v1514_v6  ;;  %v1642_v6 = vld [vmem:[%s8900_s26 + $0x1460] sm:$0xff] }
 0x117   : > { %1517 = vst [vmem:[%s8905_s27 + $0x838] sm:$0xff] %v1516_v7  ;;  %v1644_v7 = vld [vmem:[%s8900_s26 + $0x1470] sm:$0xff] }
 0x118   : > { %1519 = vst [vmem:[%s8905_s27 + $0x840] sm:$0xff] %v1518_v8  ;;  %v1646_v8 = vld [vmem:[%s8900_s26 + $0x1480] sm:$0xff] }
 0x119   : > { %1521 = vst [vmem:[%s8905_s27 + $0x848] sm:$0xff] %v1520_v9  ;;  %v1648_v9 = vld [vmem:[%s8900_s26 + $0x1490] sm:$0xff] }
 0x11a   : > { %1523 = vst [vmem:[%s8905_s27 + $0x850] sm:$0xff] %v1522_v10  ;;  %v1650_v10 = vld [vmem:[%s8900_s26 + $0x14a0] sm:$0xff] }
 0x11b   : > { %1525 = vst [vmem:[%s8905_s27 + $0x858] sm:$0xff] %v1524_v11  ;;  %v1652_v11 = vld [vmem:[%s8900_s26 + $0x14b0] sm:$0xff] }
 0x11c   : > { %1527 = vst [vmem:[%s8905_s27 + $0x860] sm:$0xff] %v1526_v12  ;;  %v1654_v12 = vld [vmem:[%s8900_s26 + $0x14c0] sm:$0xff] }
 0x11d   : > { %1529 = vst [vmem:[%s8905_s27 + $0x868] sm:$0xff] %v1528_v13  ;;  %v1656_v13 = vld [vmem:[%s8900_s26 + $0x14d0] sm:$0xff] }
 0x11e   : > { %1531 = vst [vmem:[%s8905_s27 + $0x870] sm:$0xff] %v1530_v14  ;;  %v1658_v14 = vld [vmem:[%s8900_s26 + $0x14e0] sm:$0xff] }
 0x11f   : > { %1533 = vst [vmem:[%s8905_s27 + $0x878] sm:$0xff] %v1532_v15  ;;  %v1660_v15 = vld [vmem:[%s8900_s26 + $0x14f0] sm:$0xff] }
 0x120   : > { %1535 = vst [vmem:[%s8905_s27 + $0x880] sm:$0xff] %v1534_v16  ;;  %v1662_v16 = vld [vmem:[%s8900_s26 + $0x1500] sm:$0xff] }
 0x121   : > { %1537 = vst [vmem:[%s8905_s27 + $0x888] sm:$0xff] %v1536_v17  ;;  %v1664_v17 = vld [vmem:[%s8900_s26 + $0x1510] sm:$0xff] }
 0x122   : > { %1539 = vst [vmem:[%s8905_s27 + $0x890] sm:$0xff] %v1538_v18  ;;  %v1666_v18 = vld [vmem:[%s8900_s26 + $0x1520] sm:$0xff] }
 0x123   : > { %1541 = vst [vmem:[%s8905_s27 + $0x898] sm:$0xff] %v1540_v19  ;;  %v1668_v19 = vld [vmem:[%s8900_s26 + $0x1530] sm:$0xff] }
 0x124   : > { %1543 = vst [vmem:[%s8905_s27 + $0x8a0] sm:$0xff] %v1542_v20  ;;  %v1670_v20 = vld [vmem:[%s8900_s26 + $0x1540] sm:$0xff] }
 0x125   : > { %1545 = vst [vmem:[%s8905_s27 + $0x8a8] sm:$0xff] %v1544_v21  ;;  %v1672_v21 = vld [vmem:[%s8900_s26 + $0x1550] sm:$0xff] }
 0x126   : > { %1547 = vst [vmem:[%s8905_s27 + $0x8b0] sm:$0xff] %v1546_v22  ;;  %v1674_v22 = vld [vmem:[%s8900_s26 + $0x1560] sm:$0xff] }
 0x127   : > { %1549 = vst [vmem:[%s8905_s27 + $0x8b8] sm:$0xff] %v1548_v23  ;;  %v1676_v23 = vld [vmem:[%s8900_s26 + $0x1570] sm:$0xff] }
 0x128   : > { %1551 = vst [vmem:[%s8905_s27 + $0x8c0] sm:$0xff] %v1550_v24  ;;  %v1678_v24 = vld [vmem:[%s8900_s26 + $0x1580] sm:$0xff] }
 0x129   : > { %1553 = vst [vmem:[%s8905_s27 + $0x8c8] sm:$0xff] %v1552_v25  ;;  %v1680_v25 = vld [vmem:[%s8900_s26 + $0x1590] sm:$0xff] }
 0x12a   : > { %1555 = vst [vmem:[%s8905_s27 + $0x8d0] sm:$0xff] %v1554_v26  ;;  %v1682_v26 = vld [vmem:[%s8900_s26 + $0x15a0] sm:$0xff] }
 0x12b   : > { %1557 = vst [vmem:[%s8905_s27 + $0x8d8] sm:$0xff] %v1556_v27  ;;  %v1684_v27 = vld [vmem:[%s8900_s26 + $0x15b0] sm:$0xff] }
 0x12c   : > { %1559 = vst [vmem:[%s8905_s27 + $0x8e0] sm:$0xff] %v1558_v28  ;;  %v1686_v28 = vld [vmem:[%s8900_s26 + $0x15c0] sm:$0xff] }
 0x12d   : > { %1561 = vst [vmem:[%s8905_s27 + $0x8e8] sm:$0xff] %v1560_v29  ;;  %v1688_v29 = vld [vmem:[%s8900_s26 + $0x15d0] sm:$0xff] }
 0x12e   : > { %1563 = vst [vmem:[%s8905_s27 + $0x8f0] sm:$0xff] %v1562_v30  ;;  %v1690_v30 = vld [vmem:[%s8900_s26 + $0x15e0] sm:$0xff] }
 0x12f   : > { %1565 = vst [vmem:[%s8905_s27 + $0x8f8] sm:$0xff] %v1564_v31  ;;  %v1692_v31 = vld [vmem:[%s8900_s26 + $0x15f0] sm:$0xff] }
 0x130   : > { %1567 = vst [vmem:[%s8905_s27 + $0x900] sm:$0xff] %v1566_v32  ;;  %v1694_v32 = vld [vmem:[%s8900_s26 + $0x1600] sm:$0xff] }
 0x131   : > { %1569 = vst [vmem:[%s8905_s27 + $0x908] sm:$0xff] %v1568_v33  ;;  %v1696_v33 = vld [vmem:[%s8900_s26 + $0x1610] sm:$0xff] }
 0x132   : > { %1571 = vst [vmem:[%s8905_s27 + $0x910] sm:$0xff] %v1570_v34  ;;  %v1698_v34 = vld [vmem:[%s8900_s26 + $0x1620] sm:$0xff] }
 0x133   : > { %1573 = vst [vmem:[%s8905_s27 + $0x918] sm:$0xff] %v1572_v35  ;;  %v1700_v35 = vld [vmem:[%s8900_s26 + $0x1630] sm:$0xff] }
 0x134   : > { %1575 = vst [vmem:[%s8905_s27 + $0x920] sm:$0xff] %v1574_v36  ;;  %v1702_v36 = vld [vmem:[%s8900_s26 + $0x1640] sm:$0xff] }
 0x135   : > { %1577 = vst [vmem:[%s8905_s27 + $0x928] sm:$0xff] %v1576_v37  ;;  %v1704_v37 = vld [vmem:[%s8900_s26 + $0x1650] sm:$0xff] }
 0x136   : > { %1579 = vst [vmem:[%s8905_s27 + $0x930] sm:$0xff] %v1578_v38  ;;  %v1706_v38 = vld [vmem:[%s8900_s26 + $0x1660] sm:$0xff] }
 0x137   : > { %1581 = vst [vmem:[%s8905_s27 + $0x938] sm:$0xff] %v1580_v39  ;;  %v1708_v39 = vld [vmem:[%s8900_s26 + $0x1670] sm:$0xff] }
 0x138   : > { %1583 = vst [vmem:[%s8905_s27 + $0x940] sm:$0xff] %v1582_v40  ;;  %v1710_v40 = vld [vmem:[%s8900_s26 + $0x1680] sm:$0xff] }
 0x139   : > { %1585 = vst [vmem:[%s8905_s27 + $0x948] sm:$0xff] %v1584_v41  ;;  %v1712_v41 = vld [vmem:[%s8900_s26 + $0x1690] sm:$0xff] }
 0x13a   : > { %1587 = vst [vmem:[%s8905_s27 + $0x950] sm:$0xff] %v1586_v42  ;;  %v1714_v42 = vld [vmem:[%s8900_s26 + $0x16a0] sm:$0xff] }
 0x13b   : > { %1589 = vst [vmem:[%s8905_s27 + $0x958] sm:$0xff] %v1588_v43  ;;  %v1716_v43 = vld [vmem:[%s8900_s26 + $0x16b0] sm:$0xff] }
 0x13c   : > { %1591 = vst [vmem:[%s8905_s27 + $0x960] sm:$0xff] %v1590_v44  ;;  %v1718_v44 = vld [vmem:[%s8900_s26 + $0x16c0] sm:$0xff] }
 0x13d   : > { %1593 = vst [vmem:[%s8905_s27 + $0x968] sm:$0xff] %v1592_v45  ;;  %v1720_v45 = vld [vmem:[%s8900_s26 + $0x16d0] sm:$0xff] }
 0x13e   : > { %1595 = vst [vmem:[%s8905_s27 + $0x970] sm:$0xff] %v1594_v46  ;;  %v1722_v46 = vld [vmem:[%s8900_s26 + $0x16e0] sm:$0xff] }
 0x13f   : > { %1597 = vst [vmem:[%s8905_s27 + $0x978] sm:$0xff] %v1596_v47  ;;  %v1724_v47 = vld [vmem:[%s8900_s26 + $0x16f0] sm:$0xff] }
 0x140   : > { %1599 = vst [vmem:[%s8905_s27 + $0x980] sm:$0xff] %v1598_v48  ;;  %v1726_v48 = vld [vmem:[%s8900_s26 + $0x1700] sm:$0xff] }
 0x141   : > { %1601 = vst [vmem:[%s8905_s27 + $0x988] sm:$0xff] %v1600_v49  ;;  %v1728_v49 = vld [vmem:[%s8900_s26 + $0x1710] sm:$0xff] }
 0x142   : > { %1603 = vst [vmem:[%s8905_s27 + $0x990] sm:$0xff] %v1602_v50  ;;  %v1730_v50 = vld [vmem:[%s8900_s26 + $0x1720] sm:$0xff] }
 0x143   : > { %1605 = vst [vmem:[%s8905_s27 + $0x998] sm:$0xff] %v1604_v51  ;;  %v1732_v51 = vld [vmem:[%s8900_s26 + $0x1730] sm:$0xff] }
 0x144   : > { %1607 = vst [vmem:[%s8905_s27 + $0x9a0] sm:$0xff] %v1606_v52  ;;  %v1734_v52 = vld [vmem:[%s8900_s26 + $0x1740] sm:$0xff] }
 0x145   : > { %1609 = vst [vmem:[%s8905_s27 + $0x9a8] sm:$0xff] %v1608_v53  ;;  %v1736_v53 = vld [vmem:[%s8900_s26 + $0x1750] sm:$0xff] }
 0x146   : > { %1611 = vst [vmem:[%s8905_s27 + $0x9b0] sm:$0xff] %v1610_v54  ;;  %v1738_v54 = vld [vmem:[%s8900_s26 + $0x1760] sm:$0xff] }
 0x147   : > { %1613 = vst [vmem:[%s8905_s27 + $0x9b8] sm:$0xff] %v1612_v55  ;;  %v1740_v55 = vld [vmem:[%s8900_s26 + $0x1770] sm:$0xff] }
 0x148   : > { %1615 = vst [vmem:[%s8905_s27 + $0x9c0] sm:$0xff] %v1614_v56  ;;  %v1742_v56 = vld [vmem:[%s8900_s26 + $0x1780] sm:$0xff] }
 0x149   : > { %1617 = vst [vmem:[%s8905_s27 + $0x9c8] sm:$0xff] %v1616_v57  ;;  %v1744_v57 = vld [vmem:[%s8900_s26 + $0x1790] sm:$0xff] }
 0x14a   : > { %1619 = vst [vmem:[%s8905_s27 + $0x9d0] sm:$0xff] %v1618_v58  ;;  %v1746_v58 = vld [vmem:[%s8900_s26 + $0x17a0] sm:$0xff] }
 0x14b   : > { %1621 = vst [vmem:[%s8905_s27 + $0x9d8] sm:$0xff] %v1620_v59  ;;  %v1748_v59 = vld [vmem:[%s8900_s26 + $0x17b0] sm:$0xff] }
 0x14c   : > { %1623 = vst [vmem:[%s8905_s27 + $0x9e0] sm:$0xff] %v1622_v60  ;;  %v1750_v60 = vld [vmem:[%s8900_s26 + $0x17c0] sm:$0xff] }
 0x14d   : > { %1625 = vst [vmem:[%s8905_s27 + $0x9e8] sm:$0xff] %v1624_v61  ;;  %v1752_v61 = vld [vmem:[%s8900_s26 + $0x17d0] sm:$0xff] }
 0x14e   : > { %1627 = vst [vmem:[%s8905_s27 + $0x9f0] sm:$0xff] %v1626_v62  ;;  %v1754_v62 = vld [vmem:[%s8900_s26 + $0x17e0] sm:$0xff] }
 0x14f   : > { %1629 = vst [vmem:[%s8905_s27 + $0x9f8] sm:$0xff] %v1628_v63  ;;  %v1756_v63 = vld [vmem:[%s8900_s26 + $0x17f0] sm:$0xff] }
 0x150   : > { %1631 = vst [vmem:[%s8905_s27 + $0xa00] sm:$0xff] %v1630_v0  ;;  %v1758_v0 = vld [vmem:[%s8900_s26 + $0x1800] sm:$0xff] }
 0x151   : > { %1633 = vst [vmem:[%s8905_s27 + $0xa08] sm:$0xff] %v1632_v1  ;;  %v1760_v1 = vld [vmem:[%s8900_s26 + $0x1810] sm:$0xff] }
 0x152   : > { %1635 = vst [vmem:[%s8905_s27 + $0xa10] sm:$0xff] %v1634_v2  ;;  %v1762_v2 = vld [vmem:[%s8900_s26 + $0x1820] sm:$0xff] }
 0x153   : > { %1637 = vst [vmem:[%s8905_s27 + $0xa18] sm:$0xff] %v1636_v3  ;;  %v1764_v3 = vld [vmem:[%s8900_s26 + $0x1830] sm:$0xff] }
 0x154   : > { %1639 = vst [vmem:[%s8905_s27 + $0xa20] sm:$0xff] %v1638_v4  ;;  %v1766_v4 = vld [vmem:[%s8900_s26 + $0x1840] sm:$0xff] }
 0x155   : > { %1641 = vst [vmem:[%s8905_s27 + $0xa28] sm:$0xff] %v1640_v5  ;;  %v1768_v5 = vld [vmem:[%s8900_s26 + $0x1850] sm:$0xff] }
 0x156   : > { %1643 = vst [vmem:[%s8905_s27 + $0xa30] sm:$0xff] %v1642_v6  ;;  %v1770_v6 = vld [vmem:[%s8900_s26 + $0x1860] sm:$0xff] }
 0x157   : > { %1645 = vst [vmem:[%s8905_s27 + $0xa38] sm:$0xff] %v1644_v7  ;;  %v1772_v7 = vld [vmem:[%s8900_s26 + $0x1870] sm:$0xff] }
 0x158   : > { %1647 = vst [vmem:[%s8905_s27 + $0xa40] sm:$0xff] %v1646_v8  ;;  %v1774_v8 = vld [vmem:[%s8900_s26 + $0x1880] sm:$0xff] }
 0x159   : > { %1649 = vst [vmem:[%s8905_s27 + $0xa48] sm:$0xff] %v1648_v9  ;;  %v1776_v9 = vld [vmem:[%s8900_s26 + $0x1890] sm:$0xff] }
 0x15a   : > { %1651 = vst [vmem:[%s8905_s27 + $0xa50] sm:$0xff] %v1650_v10  ;;  %v1778_v10 = vld [vmem:[%s8900_s26 + $0x18a0] sm:$0xff] }
 0x15b   : > { %1653 = vst [vmem:[%s8905_s27 + $0xa58] sm:$0xff] %v1652_v11  ;;  %v1780_v11 = vld [vmem:[%s8900_s26 + $0x18b0] sm:$0xff] }
 0x15c   : > { %1655 = vst [vmem:[%s8905_s27 + $0xa60] sm:$0xff] %v1654_v12  ;;  %v1782_v12 = vld [vmem:[%s8900_s26 + $0x18c0] sm:$0xff] }
 0x15d   : > { %1657 = vst [vmem:[%s8905_s27 + $0xa68] sm:$0xff] %v1656_v13  ;;  %v1784_v13 = vld [vmem:[%s8900_s26 + $0x18d0] sm:$0xff] }
 0x15e   : > { %1659 = vst [vmem:[%s8905_s27 + $0xa70] sm:$0xff] %v1658_v14  ;;  %v1786_v14 = vld [vmem:[%s8900_s26 + $0x18e0] sm:$0xff] }
 0x15f   : > { %1661 = vst [vmem:[%s8905_s27 + $0xa78] sm:$0xff] %v1660_v15  ;;  %v1788_v15 = vld [vmem:[%s8900_s26 + $0x18f0] sm:$0xff] }
 0x160   : > { %1663 = vst [vmem:[%s8905_s27 + $0xa80] sm:$0xff] %v1662_v16 }
 0x161   : > { %1665 = vst [vmem:[%s8905_s27 + $0xa88] sm:$0xff] %v1664_v17 }
 0x162   : > { %1667 = vst [vmem:[%s8905_s27 + $0xa90] sm:$0xff] %v1666_v18 }
 0x163   : > { %1669 = vst [vmem:[%s8905_s27 + $0xa98] sm:$0xff] %v1668_v19 }
 0x164   : > { %1671 = vst [vmem:[%s8905_s27 + $0xaa0] sm:$0xff] %v1670_v20 }
 0x165   : > { %1673 = vst [vmem:[%s8905_s27 + $0xaa8] sm:$0xff] %v1672_v21 }
 0x166   : > { %1675 = vst [vmem:[%s8905_s27 + $0xab0] sm:$0xff] %v1674_v22 }
 0x167   : > { %1677 = vst [vmem:[%s8905_s27 + $0xab8] sm:$0xff] %v1676_v23 }
 0x168   : > { %1679 = vst [vmem:[%s8905_s27 + $0xac0] sm:$0xff] %v1678_v24 }
 0x169   : > { %1681 = vst [vmem:[%s8905_s27 + $0xac8] sm:$0xff] %v1680_v25 }
 0x16a   : > { %1683 = vst [vmem:[%s8905_s27 + $0xad0] sm:$0xff] %v1682_v26 }
 0x16b   : > { %1685 = vst [vmem:[%s8905_s27 + $0xad8] sm:$0xff] %v1684_v27 }
 0x16c   : > { %1687 = vst [vmem:[%s8905_s27 + $0xae0] sm:$0xff] %v1686_v28 }
 0x16d   : > { %1689 = vst [vmem:[%s8905_s27 + $0xae8] sm:$0xff] %v1688_v29 }
 0x16e   : > { %1691 = vst [vmem:[%s8905_s27 + $0xaf0] sm:$0xff] %v1690_v30 }
 0x16f   : > { %1693 = vst [vmem:[%s8905_s27 + $0xaf8] sm:$0xff] %v1692_v31 }
 0x170   : > { %1695 = vst [vmem:[%s8905_s27 + $0xb00] sm:$0xff] %v1694_v32 }
 0x171   : > { %1697 = vst [vmem:[%s8905_s27 + $0xb08] sm:$0xff] %v1696_v33 }
 0x172   : > { %1699 = vst [vmem:[%s8905_s27 + $0xb10] sm:$0xff] %v1698_v34 }
 0x173   : > { %1701 = vst [vmem:[%s8905_s27 + $0xb18] sm:$0xff] %v1700_v35 }
 0x174   : > { %1703 = vst [vmem:[%s8905_s27 + $0xb20] sm:$0xff] %v1702_v36 }
 0x175   : > { %1705 = vst [vmem:[%s8905_s27 + $0xb28] sm:$0xff] %v1704_v37 }
 0x176   : > { %1707 = vst [vmem:[%s8905_s27 + $0xb30] sm:$0xff] %v1706_v38 }
 0x177   : > { %1709 = vst [vmem:[%s8905_s27 + $0xb38] sm:$0xff] %v1708_v39 }
 0x178   : > { %1711 = vst [vmem:[%s8905_s27 + $0xb40] sm:$0xff] %v1710_v40 }
 0x179   : > { %1713 = vst [vmem:[%s8905_s27 + $0xb48] sm:$0xff] %v1712_v41 }
 0x17a   : > { %1715 = vst [vmem:[%s8905_s27 + $0xb50] sm:$0xff] %v1714_v42 }
 0x17b   : > { %1717 = vst [vmem:[%s8905_s27 + $0xb58] sm:$0xff] %v1716_v43 }
 0x17c   : > { %1719 = vst [vmem:[%s8905_s27 + $0xb60] sm:$0xff] %v1718_v44 }
 0x17d   : > { %1721 = vst [vmem:[%s8905_s27 + $0xb68] sm:$0xff] %v1720_v45 }
 0x17e   : > { %1723 = vst [vmem:[%s8905_s27 + $0xb70] sm:$0xff] %v1722_v46 }
 0x17f   : > { %1725 = vst [vmem:[%s8905_s27 + $0xb78] sm:$0xff] %v1724_v47 }
 0x180   : > { %1727 = vst [vmem:[%s8905_s27 + $0xb80] sm:$0xff] %v1726_v48 }
 0x181   : > { %1729 = vst [vmem:[%s8905_s27 + $0xb88] sm:$0xff] %v1728_v49 }
 0x182   : > { %1731 = vst [vmem:[%s8905_s27 + $0xb90] sm:$0xff] %v1730_v50 }
 0x183   : > { %1733 = vst [vmem:[%s8905_s27 + $0xb98] sm:$0xff] %v1732_v51 }
 0x184   : > { %1735 = vst [vmem:[%s8905_s27 + $0xba0] sm:$0xff] %v1734_v52 }
 0x185   : > { %1737 = vst [vmem:[%s8905_s27 + $0xba8] sm:$0xff] %v1736_v53 }
 0x186   : > { %1739 = vst [vmem:[%s8905_s27 + $0xbb0] sm:$0xff] %v1738_v54 }
 0x187   : > { %1741 = vst [vmem:[%s8905_s27 + $0xbb8] sm:$0xff] %v1740_v55 }
 0x188   : > { %1743 = vst [vmem:[%s8905_s27 + $0xbc0] sm:$0xff] %v1742_v56 }
 0x189   : > { %1745 = vst [vmem:[%s8905_s27 + $0xbc8] sm:$0xff] %v1744_v57 }
 0x18a   : > { %1747 = vst [vmem:[%s8905_s27 + $0xbd0] sm:$0xff] %v1746_v58 }
 0x18b   : > { %1749 = vst [vmem:[%s8905_s27 + $0xbd8] sm:$0xff] %v1748_v59 }
 0x18c   : > { %1751 = vst [vmem:[%s8905_s27 + $0xbe0] sm:$0xff] %v1750_v60 }
 0x18d   : > { %1753 = vst [vmem:[%s8905_s27 + $0xbe8] sm:$0xff] %v1752_v61 }
 0x18e   : > { %1755 = vst [vmem:[%s8905_s27 + $0xbf0] sm:$0xff] %v1754_v62 }
 0x18f   : > { %1757 = vst [vmem:[%s8905_s27 + $0xbf8] sm:$0xff] %v1756_v63 }
 0x190   : > { %1759 = vst [vmem:[%s8905_s27 + $0xc00] sm:$0xff] %v1758_v0 }
 0x191   : > { %1761 = vst [vmem:[%s8905_s27 + $0xc08] sm:$0xff] %v1760_v1 }
 0x192   : > { %1763 = vst [vmem:[%s8905_s27 + $0xc10] sm:$0xff] %v1762_v2 }
 0x193   : > { %1765 = vst [vmem:[%s8905_s27 + $0xc18] sm:$0xff] %v1764_v3 }
 0x194   : > { %1767 = vst [vmem:[%s8905_s27 + $0xc20] sm:$0xff] %v1766_v4 }
 0x195   : > { %1769 = vst [vmem:[%s8905_s27 + $0xc28] sm:$0xff] %v1768_v5 }
 0x196   : > { %1771 = vst [vmem:[%s8905_s27 + $0xc30] sm:$0xff] %v1770_v6 }
 0x197   : > { %1773 = vst [vmem:[%s8905_s27 + $0xc38] sm:$0xff] %v1772_v7 }
 0x198   : > { %1775 = vst [vmem:[%s8905_s27 + $0xc40] sm:$0xff] %v1774_v8 }
 0x199   : > { %1777 = vst [vmem:[%s8905_s27 + $0xc48] sm:$0xff] %v1776_v9 }
 0x19a   : > { %1779 = vst [vmem:[%s8905_s27 + $0xc50] sm:$0xff] %v1778_v10 }
 0x19b   : > { %1781 = vst [vmem:[%s8905_s27 + $0xc58] sm:$0xff] %v1780_v11 }
 0x19c   : > { %1783 = vst [vmem:[%s8905_s27 + $0xc60] sm:$0xff] %v1782_v12 }
 0x19d   : > { %1785 = vst [vmem:[%s8905_s27 + $0xc68] sm:$0xff] %v1784_v13 }
 0x19e   : > { %1787 = vst [vmem:[%s8905_s27 + $0xc70] sm:$0xff] %v1786_v14 }
 0x19f   : > { %1789 = vst [vmem:[%s8905_s27 + $0xc78] sm:$0xff] %v1788_v15 }
 0x1a0 PF: > { %p6747_p6 = scmp.ge.s32.totalorder %s8835_s16, 1  ;;  %p3437_p7 = scmp.lt.s32.totalorder %s8835_s16, 3 }
 0x1a2   : > { %p3438_p8 = pnand %p6747_p6, %p3437_p7 }
 0x1a3   : > { %s3444_s28 = sand.u32 (!%p3438_p8), 1, %s8819_s12   ;;  %s6748_s10 = sshll.u32 (!%p3438_p8), %s8827_s14, 1 }
 0x1a4   : > { %3441 = sbr.rel (%p3438_p8) target bundleno = 981 (0x3d5), region = 80  ;;  %p10113_p9 = scmp.lt.s32.totalorder (!%p3438_p8), %s6748_s10, 3 }
 0x1a5   : > { %s8754_s29 = smul.u32 (!%p3438_p8), 3200, %s3444_s28 }
 0x1a7   : > { %s9707_s30 = scalar_lea.vmem (!%p3438_p8), [#allocation2], %s8754_s29 }
 0x1a9   : > { %v6808_v16 = vld [vmem:[%s9707_s30 + $0x70] sm:$0xf]  ;;  %v8368_v17 = vld [vmem:[%s9707_s30 + $0x74] sm:$0xf0]  ;;  %v6800_v27 = vld [vmem:[%s9707_s30 + $0x60] sm:$0xf] }
 0x1aa   : > { %v6872_v18 = vld [vmem:[%s9707_s30 + $0xf0] sm:$0xf]  ;;  %v6809_v19 = vor.u32 %v8368_v17, %v6808_v16  ;;  %v8384_v20 = vld [vmem:[%s9707_s30 + $0xf4] sm:$0xf0]  ;;  %v8366_v29 = vld [vmem:[%s9707_s30 + $0x64] sm:$0xf0] }
 0x1ab   : > { %v6936_v21 = vld [vmem:[%s9707_s30 + $0x170] sm:$0xf]  ;;  %v8400_v22 = vld [vmem:[%s9707_s30 + $0x174] sm:$0xf0]  ;;  %v6873_v23 = vor.u32 %v8384_v20, %v6872_v18  ;;  %v6864_v30 = vld [vmem:[%s9707_s30 + $0xe0] sm:$0xf]  ;;  %v6801_v32 = vor.u32 %v8366_v29, %v6800_v27 }
 0x1ac   : > { %v6937_v24 = vor.u32 %v8400_v22, %v6936_v21  ;;  %v7000_v25 = vld [vmem:[%s9707_s30 + $0x1f0] sm:$0xf]  ;;  %v8416_v26 = vld [vmem:[%s9707_s30 + $0x1f4] sm:$0xf0]  ;;  %5965 = vmatpush.bf16.msra.mxu0 %v6809_v19  ;;  %v8382_v31 = vld [vmem:[%s9707_s30 + $0xe4] sm:$0xf0] }
 0x1ad   : > { %v7001_v28 = vor.u32 %v8416_v26, %v7000_v25  ;;  %5978 = vmatpush.bf16.msra.mxu1 %v6873_v23  ;;  %v6865_v33 = vor.u32 %v8382_v31, %v6864_v30  ;;  %v6928_v34 = vld [vmem:[%s9707_s30 + $0x160] sm:$0xf]  ;;  %v8398_v35 = vld [vmem:[%s9707_s30 + $0x164] sm:$0xf0]  ;;  %v6792_v39 = vld [vmem:[%s9707_s30 + $0x50] sm:$0xf] }
 0x1ae   : > { %5991 = vmatpush.bf16.msra.mxu2 %v6937_v24  ;;  %v6992_v36 = vld [vmem:[%s9707_s30 + $0x1e0] sm:$0xf]  ;;  %v6929_v37 = vor.u32 %v8398_v35, %v6928_v34  ;;  %v8414_v38 = vld [vmem:[%s9707_s30 + $0x1e4] sm:$0xf0]  ;;  %v8364_v40 = vld [vmem:[%s9707_s30 + $0x54] sm:$0xf0] }
 0x1af   : > { %6004 = vmatpush.bf16.msra.mxu3 %v7001_v28  ;;  %v6993_v41 = vor.u32 %v8414_v38, %v6992_v36  ;;  %v6856_v42 = vld [vmem:[%s9707_s30 + $0xd0] sm:$0xf]  ;;  %v8380_v43 = vld [vmem:[%s9707_s30 + $0xd4] sm:$0xf0]  ;;  %v6793_v45 = vor.u32 %v8364_v40, %v6792_v39  ;;  %v6784_v51 = vld [vmem:[%s9707_s30 + $0x40] sm:$0xf] }
 0x1b0   : > { %v6920_v44 = vld [vmem:[%s9707_s30 + $0x150] sm:$0xf]  ;;  %5966 = vmatpush.bf16.msra.mxu0 %v6801_v32  ;;  %v8396_v46 = vld [vmem:[%s9707_s30 + $0x154] sm:$0xf0]  ;;  %v6857_v49 = vor.u32 %v8380_v43, %v6856_v42  ;;  %v8362_v52 = vld [vmem:[%s9707_s30 + $0x44] sm:$0xf0] }
 0x1b1   : > { %v6984_v47 = vld [vmem:[%s9707_s30 + $0x1d0] sm:$0xf]  ;;  %v8412_v48 = vld [vmem:[%s9707_s30 + $0x1d4] sm:$0xf0]  ;;  %5979 = vmatpush.bf16.msra.mxu1 %v6865_v33  ;;  %v6921_v50 = vor.u32 %v8396_v46, %v6920_v44  ;;  %v6848_v53 = vld [vmem:[%s9707_s30 + $0xc0] sm:$0xf]  ;;  %v6785_v60 = vor.u32 %v8362_v52, %v6784_v51 }
 0x1b2   : > { %5992 = vmatpush.bf16.msra.mxu2 %v6929_v37  ;;  %v6985_v54 = vor.u32 %v8412_v48, %v6984_v47  ;;  %v8378_v55 = vld [vmem:[%s9707_s30 + $0xc4] sm:$0xf0]  ;;  %v6912_v56 = vld [vmem:[%s9707_s30 + $0x140] sm:$0xf]  ;;  %v6776_v63 = vld [vmem:[%s9707_s30 + $0x30] sm:$0xf] }
 0x1b3   : > { %6005 = vmatpush.bf16.msra.mxu3 %v6993_v41  ;;  %v8394_v57 = vld [vmem:[%s9707_s30 + $0x144] sm:$0xf0]  ;;  %v6976_v58 = vld [vmem:[%s9707_s30 + $0x1c0] sm:$0xf]  ;;  %v6849_v61 = vor.u32 %v8378_v55, %v6848_v53  ;;  %v8360_v0 = vld [vmem:[%s9707_s30 + $0x34] sm:$0xf0] }
 0x1b4   : > { %v8410_v59 = vld [vmem:[%s9707_s30 + $0x1c4] sm:$0xf0]  ;;  %5967 = vmatpush.bf16.msra.mxu0 %v6793_v45  ;;  %v6913_v62 = vor.u32 %v8394_v57, %v6912_v56  ;;  %v6840_v1 = vld [vmem:[%s9707_s30 + $0xb0] sm:$0xf]  ;;  %v8376_v3 = vld [vmem:[%s9707_s30 + $0xb4] sm:$0xf0]  ;;  %v6777_v8 = vor.u32 %v8360_v0, %v6776_v63 }
 0x1b5   : > { %5980 = vmatpush.bf16.msra.mxu1 %v6857_v49  ;;  %v6977_v2 = vor.u32 %v8410_v59, %v6976_v58  ;;  %v6904_v4 = vld [vmem:[%s9707_s30 + $0x130] sm:$0xf]  ;;  %v8392_v5 = vld [vmem:[%s9707_s30 + $0x134] sm:$0xf0]  ;;  %v6841_v9 = vor.u32 %v8376_v3, %v6840_v1  ;;  %v6768_v11 = vld [vmem:[%s9707_s30 + $0x20] sm:$0xf] }
 0x1b6   : > { %5993 = vmatpush.bf16.msra.mxu2 %v6921_v50  ;;  %v6968_v6 = vld [vmem:[%s9707_s30 + $0x1b0] sm:$0xf]  ;;  %v8408_v7 = vld [vmem:[%s9707_s30 + $0x1b4] sm:$0xf0]  ;;  %v6905_v10 = vor.u32 %v8392_v5, %v6904_v4  ;;  %v8358_v12 = vld [vmem:[%s9707_s30 + $0x24] sm:$0xf0] }
 0x1b7   : > { %6006 = vmatpush.bf16.msra.mxu3 %v6985_v54  ;;  %v6832_v13 = vld [vmem:[%s9707_s30 + $0xa0] sm:$0xf]  ;;  %v6969_v14 = vor.u32 %v8408_v7, %v6968_v6  ;;  %v8374_v15 = vld [vmem:[%s9707_s30 + $0xa4] sm:$0xf0]  ;;  %v6769_v20 = vor.u32 %v8358_v12, %v6768_v11  ;;  %v6760_v23 = vld [vmem:[%s9707_s30 + $0x10] sm:$0xf] }
 0x1b8   : > { %5968 = vmatpush.bf16.msra.mxu0 %v6785_v60  ;;  %v6896_v16 = vld [vmem:[%s9707_s30 + $0x120] sm:$0xf]  ;;  %v8390_v17 = vld [vmem:[%s9707_s30 + $0x124] sm:$0xf0]  ;;  %v6833_v21 = vor.u32 %v8374_v15, %v6832_v13  ;;  %v8356_v24 = vld [vmem:[%s9707_s30 + $0x14] sm:$0xf0] }
 0x1b9   : > { %5981 = vmatpush.bf16.msra.mxu1 %v6849_v61  ;;  %v6960_v18 = vld [vmem:[%s9707_s30 + $0x1a0] sm:$0xf]  ;;  %v8406_v19 = vld [vmem:[%s9707_s30 + $0x1a4] sm:$0xf0]  ;;  %v6897_v22 = vor.u32 %v8390_v17, %v6896_v16  ;;  %v6824_v25 = vld [vmem:[%s9707_s30 + $0x90] sm:$0xf]  ;;  %v6761_v32 = vor.u32 %v8356_v24, %v6760_v23 }
 0x1ba   : > { %5994 = vmatpush.bf16.msra.mxu2 %v6913_v62  ;;  %v6961_v26 = vor.u32 %v8406_v19, %v6960_v18  ;;  %v8372_v27 = vld [vmem:[%s9707_s30 + $0x94] sm:$0xf0]  ;;  %v6888_v28 = vld [vmem:[%s9707_s30 + $0x110] sm:$0xf]  ;;  %v6752_v33 = vld [vmem:[%s9707_s30] sm:$0xf] }
 0x1bb   : > { %6007 = vmatpush.bf16.msra.mxu3 %v6977_v2  ;;  %v8388_v29 = vld [vmem:[%s9707_s30 + $0x114] sm:$0xf0]  ;;  %v6952_v30 = vld [vmem:[%s9707_s30 + $0x190] sm:$0xf]  ;;  %v8354_v34 = vld [vmem:[%s9707_s30 + $0x4] sm:$0xf0]  ;;  %v6825_v35 = vor.u32 %v8372_v27, %v6824_v25 }
 0x1bc   : > { %5969 = vmatpush.bf16.msra.mxu0 %v6777_v8  ;;  %v8404_v31 = vld [vmem:[%s9707_s30 + $0x194] sm:$0xf0]  ;;  %v6889_v36 = vor.u32 %v8388_v29, %v6888_v28  ;;  %v6816_v37 = vld [vmem:[%s9707_s30 + $0x80] sm:$0xf]  ;;  %v8370_v38 = vld [vmem:[%s9707_s30 + $0x84] sm:$0xf0]  ;;  %v6753_v47 = vor.u32 %v8354_v34, %v6752_v33 }
 0x1bd   : > { %5982 = vmatpush.bf16.msra.mxu1 %v6841_v9  ;;  %v6880_v39 = vld [vmem:[%s9707_s30 + $0x100] sm:$0xf]  ;;  %v6953_v40 = vor.u32 %v8404_v31, %v6952_v30  ;;  %v8386_v41 = vld [vmem:[%s9707_s30 + $0x104] sm:$0xf0]  ;;  %v7064_v42 = vld [vmem:[%s9707_s30 + $0x270] sm:$0xf]  ;;  %v6817_v51 = vor.u32 %v8370_v38, %v6816_v37 }
 0x1be   : > { %5995 = vmatpush.bf16.msra.mxu2 %v6905_v10  ;;  %v8432_v43 = vld [vmem:[%s9707_s30 + $0x274] sm:$0xf0]  ;;  %v7128_v44 = vld [vmem:[%s9707_s30 + $0x2f0] sm:$0xf]  ;;  %v6944_v49 = vld [vmem:[%s9707_s30 + $0x180] sm:$0xf]  ;;  %v6881_v52 = vor.u32 %v8386_v41, %v6880_v39 }
 0x1bf   : > { %6008 = vmatpush.bf16.msra.mxu3 %v6969_v14  ;;  %v8448_v45 = vld [vmem:[%s9707_s30 + $0x2f4] sm:$0xf0]  ;;  %v7192_v46 = vld [vmem:[%s9707_s30 + $0x370] sm:$0xf]  ;;  %v8402_v50 = vld [vmem:[%s9707_s30 + $0x184] sm:$0xf0]  ;;  %v7065_v55 = vor.u32 %v8432_v43, %v7064_v42 }
 0x1c0   : > { %5970 = vmatpush.bf16.msra.mxu0 %v6769_v20  ;;  %v8464_v48 = vld [vmem:[%s9707_s30 + $0x374] sm:$0xf0]  ;;  %v7256_v53 = vld [vmem:[%s9707_s30 + $0x3f0] sm:$0xf]  ;;  %v7129_v56 = vor.u32 %v8448_v45, %v7128_v44  ;;  %v7056_v57 = vld [vmem:[%s9707_s30 + $0x260] sm:$0xf]  ;;  %v6945_v59 = vor.u32 %v8402_v50, %v6944_v49 }
 0x1c1   : > { %5983 = vmatpush.bf16.msra.mxu1 %v6833_v21  ;;  %v8480_v54 = vld [vmem:[%s9707_s30 + $0x3f4] sm:$0xf0]  ;;  %v7193_v58 = vor.u32 %v8464_v48, %v7192_v46  ;;  %v8430_v60 = vld [vmem:[%s9707_s30 + $0x264] sm:$0xf0]  ;;  %v7120_v61 = vld [vmem:[%s9707_s30 + $0x2e0] sm:$0xf] }
 0x1c2   : > { %5996 = vmatpush.bf16.msra.mxu2 %v6897_v22  ;;  %v8446_v62 = vld [vmem:[%s9707_s30 + $0x2e4] sm:$0xf0]  ;;  %v7257_v63 = vor.u32 %v8480_v54, %v7256_v53  ;;  %v7184_v0 = vld [vmem:[%s9707_s30 + $0x360] sm:$0xf]  ;;  %v7057_v4 = vor.u32 %v8430_v60, %v7056_v57  ;;  %v7048_v6 = vld [vmem:[%s9707_s30 + $0x250] sm:$0xf] }
 0x1c3   : > { %6009 = vmatpush.bf16.msra.mxu3 %v6961_v26  ;;  %v8462_v1 = vld [vmem:[%s9707_s30 + $0x364] sm:$0xf0]  ;;  %v7248_v2 = vld [vmem:[%s9707_s30 + $0x3e0] sm:$0xf]  ;;  %v7121_v5 = vor.u32 %v8446_v62, %v7120_v61  ;;  %v8428_v7 = vld [vmem:[%s9707_s30 + $0x254] sm:$0xf0] }
 0x1c4   : > { %5971 = vmatpush.bf16.msra.mxu0 %v6761_v32  ;;  %v8478_v3 = vld [vmem:[%s9707_s30 + $0x3e4] sm:$0xf0]  ;;  %v7185_v8 = vor.u32 %v8462_v1, %v7184_v0  ;;  %v7112_v9 = vld [vmem:[%s9707_s30 + $0x2d0] sm:$0xf]  ;;  %v8444_v10 = vld [vmem:[%s9707_s30 + $0x2d4] sm:$0xf0]  ;;  %v7049_v17 = vor.u32 %v8428_v7, %v7048_v6 }
 0x1c5   : > { %5984 = vmatpush.bf16.msra.mxu1 %v6825_v35  ;;  %v3497_v11 = vld [vmem:[%s10681_s0] sm:$0xff]  ;;  %v7249_v12 = vor.u32 %v8478_v3, %v7248_v2  ;;  %v7176_v13 = vld [vmem:[%s9707_s30 + $0x350] sm:$0xf]  ;;  %v7113_v18 = vor.u32 %v8444_v10, %v7112_v9  ;;  %v7040_v19 = vld [vmem:[%s9707_s30 + $0x240] sm:$0xf]  ;;  %s10693_s10 = smov (!%p10113_p9, %s6748_s10), 3 }
 0x1c6   : > { %5997 = vmatpush.bf16.msra.mxu2 %v6889_v36  ;;  %v8460_v14 = vld [vmem:[%s9707_s30 + $0x354] sm:$0xf0]  ;;  %3908 = vst [vmem:[#allocation1] ss:$9 sm:$0xff] %v3497_v11  ;;  %v7240_v15 = vld [vmem:[%s9707_s30 + $0x3d0] sm:$0xf]  ;;  %s10147_s18 = scalar_lea.vmem %s10683_s2, %s10693_s10  ;;  %s3495_s24 = scalar_lea.vmem %s10684_s3, %s10693_s10 }
 0x1c7   : > { %6010 = vmatpush.bf16.msra.mxu3 %v6953_v40  ;;  %v8476_v16 = vld [vmem:[%s9707_s30 + $0x3d4] sm:$0xf0]  ;;  %v7177_v20 = vor.u32 %v8460_v14, %v7176_v13  ;;  %v8426_v21 = vld [vmem:[%s9707_s30 + $0x244] sm:$0xf0]  ;;  %v7104_v22 = vld [vmem:[%s9707_s30 + $0x2c0] sm:$0xf] }
 0x1c8   : > { %5972 = vmatpush.bf16.msra.mxu0 %v6753_v47  ;;  %v8442_v23 = vld [vmem:[%s9707_s30 + $0x2c4] sm:$0xf0]  ;;  %v7241_v24 = vor.u32 %v8476_v16, %v7240_v15  ;;  %v7168_v25 = vld [vmem:[%s9707_s30 + $0x340] sm:$0xf]  ;;  %v7032_v29 = vld [vmem:[%s9707_s30 + $0x230] sm:$0xf]  ;;  %v7041_v30 = vor.u32 %v8426_v21, %v7040_v19 }
 0x1c9   : > { %5985 = vmatpush.bf16.msra.mxu1 %v6817_v51  ;;  %v8458_v26 = vld [vmem:[%s9707_s30 + $0x344] sm:$0xf0]  ;;  %v7232_v27 = vld [vmem:[%s9707_s30 + $0x3c0] sm:$0xf]  ;;  %v7105_v31 = vor.u32 %v8442_v23, %v7104_v22  ;;  %v8424_v32 = vld [vmem:[%s9707_s30 + $0x234] sm:$0xf0] }
 0x1ca   : > { %5998 = vmatpush.bf16.msra.mxu2 %v6881_v52  ;;  %v8474_v28 = vld [vmem:[%s9707_s30 + $0x3c4] sm:$0xf0]  ;;  %v7096_v33 = vld [vmem:[%s9707_s30 + $0x2b0] sm:$0xf]  ;;  %v8440_v34 = vld [vmem:[%s9707_s30 + $0x2b4] sm:$0xf0]  ;;  %v7169_v35 = vor.u32 %v8458_v26, %v7168_v25  ;;  %v7033_v45 = vor.u32 %v8424_v32, %v7032_v29 }
 0x1cb   : > { %6011 = vmatpush.bf16.msra.mxu3 %v6945_v59  ;;  %v7233_v39 = vor.u32 %v8474_v28, %v7232_v27  ;;  %v7160_v40 = vld [vmem:[%s9707_s30 + $0x330] sm:$0xf]  ;;  %v8456_v41 = vld [vmem:[%s9707_s30 + $0x334] sm:$0xf0]  ;;  %v7097_v46 = vor.u32 %v8440_v34, %v7096_v33  ;;  %v7024_v47 = vld [vmem:[%s9707_s30 + $0x220] sm:$0xf] }
 0x1cc   : > { %6017 = vmatpush.bf16.msrb.mxu0 %v7065_v55  ;;  %v7224_v43 = vld [vmem:[%s9707_s30 + $0x3b0] sm:$0xf]  ;;  %v8472_v44 = vld [vmem:[%s9707_s30 + $0x3b4] sm:$0xf0]  ;;  %v7161_v48 = vor.u32 %v8456_v41, %v7160_v40  ;;  %v8422_v49 = vld [vmem:[%s9707_s30 + $0x224] sm:$0xf0] }
 0x1cd   : > { %6030 = vmatpush.bf16.msrb.mxu1 %v7129_v56  ;;  %v9812_v36 = vld [vmem:[#allocation1 + $0x12] sm:$0xff]  ;;  %v9814_v37 = vld [vmem:[#allocation1] sm:$0xff]  ;;  %v9821_v42 = vld [vmem:[#allocation1 + $0x9] sm:$0xff]  ;;  %v7225_v52 = vor.u32 %v8472_v44, %v7224_v43  ;;  %v7025_v57 = vor.u32 %v8422_v49, %v7024_v47  ;;  %vm6620_vm0 = vcmask 1040384  }
 0x1ce   : > { %6043 = vmatpush.bf16.msrb.mxu2 %v7193_v58  ;;  %v9816_v38 = vld [vmem:[#allocation1 + $0x1b] sm:$0xff]  ;;  %5973 = vmatmul.bf16.vlgmr.msra.gmra.mxu0 %v9814_v37  ;;  %v7088_v50 = vld [vmem:[%s9707_s30 + $0x2a0] sm:$0xf]  ;;  %v8438_v51 = vld [vmem:[%s9707_s30 + $0x2a4] sm:$0xf0] }
 0x1cf   : > { %6056 = vmatpush.bf16.msrb.mxu3 %v7257_v63  ;;  %5999 = vmatmul.bf16.vlgmr.msra.gmra.mxu2 %v9812_v36  ;;  %v7152_v53 = vld [vmem:[%s9707_s30 + $0x320] sm:$0xf]  ;;  %v8454_v54 = vld [vmem:[%s9707_s30 + $0x324] sm:$0xf0]  ;;  %v7089_v58 = vor.u32 %v8438_v51, %v7088_v50  ;;  %v7016_v59 = vld [vmem:[%s9707_s30 + $0x210] sm:$0xf] }
 0x1d0   : > { %6018 = vmatpush.bf16.msrb.mxu0 %v7057_v4  ;;  %6012 = vmatmul.bf16.vlgmr.msra.gmra.mxu3 %v9816_v38  ;;  %v7216_v55 = vld [vmem:[%s9707_s30 + $0x3a0] sm:$0xf]  ;;  %v8470_v56 = vld [vmem:[%s9707_s30 + $0x3a4] sm:$0xf0]  ;;  %v8420_v60 = vld [vmem:[%s9707_s30 + $0x214] sm:$0xf0]  ;;  %v7153_v61 = vor.u32 %v8454_v54, %v7152_v53 }
 0x1d1   : > { %6031 = vmatpush.bf16.msrb.mxu1 %v7121_v5  ;;  %v7080_v62 = vld [vmem:[%s9707_s30 + $0x290] sm:$0xf]  ;;  %v8436_v63 = vld [vmem:[%s9707_s30 + $0x294] sm:$0xf0]  ;;  %v7217_v1 = vor.u32 %v8470_v56, %v7216_v55  ;;  %v7008_v5 = vld [vmem:[%s9707_s30 + $0x200] sm:$0xf]  ;;  %v7017_v11 = vor.u32 %v8420_v60, %v7016_v59 }
 0x1d2   : > { %6044 = vmatpush.bf16.msrb.mxu2 %v7185_v8  ;;  %5986 = vmatmul.bf16.vlgmr.msra.gmra.mxu1 %v9821_v42  ;;  %v7144_v0 = vld [vmem:[%s9707_s30 + $0x310] sm:$0xf]  ;;  %v8452_v2 = vld [vmem:[%s9707_s30 + $0x314] sm:$0xf0]  ;;  %v8418_v6 = vld [vmem:[%s9707_s30 + $0x204] sm:$0xf0] }
 0x1d3   : > { %6057 = vmatpush.bf16.msrb.mxu3 %v7249_v12  ;;  %v7208_v3 = vld [vmem:[%s9707_s30 + $0x390] sm:$0xf]  ;;  %v8468_v4 = vld [vmem:[%s9707_s30 + $0x394] sm:$0xf0]  ;;  %v7072_v7 = vld [vmem:[%s9707_s30 + $0x280] sm:$0xf]  ;;  %v7081_v12 = vor.u32 %v8436_v63, %v7080_v62  ;;  %v7145_v16 = vor.u32 %v8452_v2, %v7144_v0  ;;  %v7009_v26 = vor.u32 %v8418_v6, %v7008_v5 }
 0x1d4   : > { %6019 = vmatpush.bf16.msrb.mxu0 %v7049_v17  ;;  %v8434_v8 = vld [vmem:[%s9707_s30 + $0x284] sm:$0xf0]  ;;  %v9848_v9 = vld [vmem:[#allocation1 + $0x36] sm:$0xff]  ;;  %v9850_v10 = vld [vmem:[#allocation1 + $0x24] sm:$0xff]  ;;  %v7209_v19 = vor.u32 %v8468_v4, %v7208_v3 }
 0x1d5   : > { %6032 = vmatpush.bf16.msrb.mxu1 %v7113_v18  ;;  %v9852_v13 = vld [vmem:[#allocation1 + $0x3f] sm:$0xff]  ;;  %v3498_v14 = vld [vmem:[%s10681_s0 + $0x8] sm:$0xff]  ;;  %v8450_v18 = vld [vmem:[%s9707_s30 + $0x304] sm:$0xf0]  ;;  %v7073_v27 = vor.u32 %v8434_v8, %v7072_v7 }
 0x1d6   : > { %6045 = vmatpush.bf16.msrb.mxu2 %v7177_v20  ;;  %v9857_v15 = vld [vmem:[#allocation1 + $0x2d] sm:$0xff]  ;;  %v7136_v17 = vld [vmem:[%s9707_s30 + $0x300] sm:$0xf]  ;;  %v7320_v20 = vld [vmem:[%s9707_s30 + $0x470] sm:$0xf] }
 0x1d7   : > { %6058 = vmatpush.bf16.msrb.mxu3 %v7241_v24  ;;  %3918 = vst [vmem:[#allocation1] ss:$9 sm:$0xff] %v3498_v14  ;;  %v8496_v21 = vld [vmem:[%s9707_s30 + $0x474] sm:$0xf0]  ;;  %v7384_v22 = vld [vmem:[%s9707_s30 + $0x4f0] sm:$0xf] }
 0x1d8   : > { %6020 = vmatpush.bf16.msrb.mxu0 %v7041_v30  ;;  %v8512_v23 = vld [vmem:[%s9707_s30 + $0x4f4] sm:$0xf0]  ;;  %v7448_v24 = vld [vmem:[%s9707_s30 + $0x570] sm:$0xf]  ;;  %v7200_v28 = vld [vmem:[%s9707_s30 + $0x380] sm:$0xf]  ;;  %v7137_v30 = vor.u32 %v8450_v18, %v7136_v17 }
 0x1d9   : > { %6033 = vmatpush.bf16.msrb.mxu1 %v7105_v31  ;;  %v8528_v25 = vld [vmem:[%s9707_s30 + $0x574] sm:$0xf0]  ;;  %v8466_v29 = vld [vmem:[%s9707_s30 + $0x384] sm:$0xf0]  ;;  %v7321_v31 = vor.u32 %v8496_v21, %v7320_v20  ;;  %v7512_v32 = vld [vmem:[%s9707_s30 + $0x5f0] sm:$0xf]  ;;  %v7385_v34 = vor.u32 %v8512_v23, %v7384_v22 }
 0x1da   : > { %6046 = vmatpush.bf16.msrb.mxu2 %v7169_v35  ;;  %v8544_v33 = vld [vmem:[%s9707_s30 + $0x5f4] sm:$0xf0]  ;;  %v7449_v35 = vor.u32 %v8528_v25, %v7448_v24  ;;  %v8494_v40 = vld [vmem:[%s9707_s30 + $0x464] sm:$0xf0]  ;;  %v7376_v41 = vld [vmem:[%s9707_s30 + $0x4e0] sm:$0xf]  ;;  %v7201_v43 = vor.u32 %v8466_v29, %v7200_v28 }
 0x1db   : > { %6059 = vmatpush.bf16.msrb.mxu3 %v7233_v39  ;;  %v7312_v39 = vld [vmem:[%s9707_s30 + $0x460] sm:$0xf]  ;;  %v8510_v44 = vld [vmem:[%s9707_s30 + $0x4e4] sm:$0xf0]  ;;  %v7513_v47 = vor.u32 %v8544_v33, %v7512_v32  ;;  %v7304_v53 = vld [vmem:[%s9707_s30 + $0x450] sm:$0xf] }
 0x1dc   : > { %6021 = vmatpush.bf16.msrb.mxu0 %v7033_v45  ;;  %v7440_v45 = vld [vmem:[%s9707_s30 + $0x560] sm:$0xf]  ;;  %v8542_v50 = vld [vmem:[%s9707_s30 + $0x5e4] sm:$0xf0]  ;;  %v7377_v51 = vor.u32 %v8510_v44, %v7376_v41  ;;  %v8492_v54 = vld [vmem:[%s9707_s30 + $0x454] sm:$0xf0] }
 0x1dd   : > { %6034 = vmatpush.bf16.msrb.mxu1 %v7097_v46  ;;  %v8526_v46 = vld [vmem:[%s9707_s30 + $0x564] sm:$0xf0]  ;;  %v7504_v49 = vld [vmem:[%s9707_s30 + $0x5e0] sm:$0xf]  ;;  %v7368_v55 = vld [vmem:[%s9707_s30 + $0x4d0] sm:$0xf]  ;;  %v7305_v60 = vor.u32 %v8492_v54, %v7304_v53 }
 0x1de   : > { %6047 = vmatpush.bf16.msrb.mxu2 %v7161_v48  ;;  %v7313_v48 = vor.u32 %v8494_v40, %v7312_v39  ;;  %v8508_v56 = vld [vmem:[%s9707_s30 + $0x4d4] sm:$0xf0]  ;;  %v7505_v59 = vor.u32 %v8542_v50, %v7504_v49  ;;  %v8490_v2 = vld [vmem:[%s9707_s30 + $0x444] sm:$0xf0]  ;;  %v7360_v3 = vld [vmem:[%s9707_s30 + $0x4c0] sm:$0xf] }
 0x1df   : > { %6060 = vmatpush.bf16.msrb.mxu3 %v7225_v52  ;;  %v7441_v52 = vor.u32 %v8526_v46, %v7440_v45  ;;  %v8540_v62 = vld [vmem:[%s9707_s30 + $0x5d4] sm:$0xf0]  ;;  %v7369_v63 = vor.u32 %v8508_v56, %v7368_v55  ;;  %v8506_v4 = vld [vmem:[%s9707_s30 + $0x4c4] sm:$0xf0]  ;;  %v7424_v5 = vld [vmem:[%s9707_s30 + $0x540] sm:$0xf] }
 0x1e0   : > { %6022 = vmatpush.bf16.msrb.mxu0 %v7025_v57  ;;  %v7432_v57 = vld [vmem:[%s9707_s30 + $0x550] sm:$0xf]  ;;  %v8522_v6 = vld [vmem:[%s9707_s30 + $0x544] sm:$0xf0]  ;;  %v7361_v14 = vor.u32 %v8506_v4, %v7360_v3  ;;  %v8488_v18 = vld [vmem:[%s9707_s30 + $0x434] sm:$0xf0] }
 0x1e1   : > { %6035 = vmatpush.bf16.msrb.mxu1 %v7089_v58  ;;  %v8524_v58 = vld [vmem:[%s9707_s30 + $0x554] sm:$0xf0]  ;;  %v7288_v17 = vld [vmem:[%s9707_s30 + $0x430] sm:$0xf]  ;;  %v7280_v29 = vld [vmem:[%s9707_s30 + $0x420] sm:$0xf] }
 0x1e2   : > { %6048 = vmatpush.bf16.msrb.mxu2 %v7153_v61  ;;  %v7496_v61 = vld [vmem:[%s9707_s30 + $0x5d0] sm:$0xf]  ;;  %v7433_v0 = vor.u32 %v8524_v58, %v7432_v57  ;;  %v8504_v20 = vld [vmem:[%s9707_s30 + $0x4b4] sm:$0xf0]  ;;  %v7289_v24 = vor.u32 %v8488_v18, %v7288_v17  ;;  %v8502_v32 = vld [vmem:[%s9707_s30 + $0x4a4] sm:$0xf0] }
 0x1e3   : > { %6061 = vmatpush.bf16.msrb.mxu3 %v7217_v1  ;;  %v7296_v1 = vld [vmem:[%s9707_s30 + $0x440] sm:$0xf]  ;;  %v7497_v7 = vor.u32 %v8540_v62, %v7496_v61  ;;  %v7416_v21 = vld [vmem:[%s9707_s30 + $0x530] sm:$0xf]  ;;  %v8520_v22 = vld [vmem:[%s9707_s30 + $0x534] sm:$0xf0] }
 0x1e4   : > { %6023 = vmatpush.bf16.msrb.mxu0 %v7017_v11  ;;  %v7297_v8 = vor.u32 %v8490_v2, %v7296_v1  ;;  %v7488_v11 = vld [vmem:[%s9707_s30 + $0x5c0] sm:$0xf]  ;;  %v7480_v25 = vld [vmem:[%s9707_s30 + $0x5b0] sm:$0xf]  ;;  %v7417_v28 = vor.u32 %v8520_v22, %v7416_v21  ;;  %v8534_v41 = vld [vmem:[%s9707_s30 + $0x5a4] sm:$0xf0] }
 0x1e5   : > { %6036 = vmatpush.bf16.msrb.mxu1 %v7081_v12  ;;  %v8538_v12 = vld [vmem:[%s9707_s30 + $0x5c4] sm:$0xf0]  ;;  %v7408_v33 = vld [vmem:[%s9707_s30 + $0x520] sm:$0xf]  ;;  %v7272_v45 = vld [vmem:[%s9707_s30 + $0x410] sm:$0xf] }
 0x1e6   : > { %6049 = vmatpush.bf16.msrb.mxu2 %v7145_v16  ;;  %v7425_v16 = vor.u32 %v8522_v6, %v7424_v5  ;;  %v7489_v23 = vor.u32 %v8538_v12, %v7488_v11  ;;  %v7472_v40 = vld [vmem:[%s9707_s30 + $0x5a0] sm:$0xf]  ;;  %v8484_v46 = vld [vmem:[%s9707_s30 + $0x414] sm:$0xf0]  ;;  %v7400_v49 = vld [vmem:[%s9707_s30 + $0x510] sm:$0xf] }
 0x1e7   : > { %6062 = vmatpush.bf16.msrb.mxu3 %v7209_v19  ;;  %v7352_v19 = vld [vmem:[%s9707_s30 + $0x4b0] sm:$0xf]  ;;  %v8516_v50 = vld [vmem:[%s9707_s30 + $0x514] sm:$0xf0]  ;;  %v7273_v53 = vor.u32 %v8484_v46, %v7272_v45  ;;  %v7264_v55 = vld [vmem:[%s9707_s30 + $0x400] sm:$0xf] }
 0x1e8   : > { %6024 = vmatpush.bf16.msrb.mxu0 %v7009_v26  ;;  %v8536_v26 = vld [vmem:[%s9707_s30 + $0x5b4] sm:$0xf0]  ;;  %v8482_v56 = vld [vmem:[%s9707_s30 + $0x404] sm:$0xf0]  ;;  %v7401_v58 = vor.u32 %v8516_v50, %v7400_v49  ;;  %v7392_v61 = vld [vmem:[%s9707_s30 + $0x500] sm:$0xf] }
 0x1e9   : > { %6037 = vmatpush.bf16.msrb.mxu1 %v7073_v27  ;;  %v7353_v27 = vor.u32 %v8504_v20, %v7352_v19  ;;  %v8532_v54 = vld [vmem:[%s9707_s30 + $0x594] sm:$0xf0]  ;;  %v8514_v62 = vld [vmem:[%s9707_s30 + $0x504] sm:$0xf0]  ;;  %v7640_v2 = vld [vmem:[%s9707_s30 + $0x6f0] sm:$0xf]  ;;  %v7265_v5 = vor.u32 %v8482_v56, %v7264_v55 }
 0x1ea   : > { %6050 = vmatpush.bf16.msrb.mxu2 %v7137_v30  ;;  %v8486_v30 = vld [vmem:[%s9707_s30 + $0x424] sm:$0xf0]  ;;  %v8576_v3 = vld [vmem:[%s9707_s30 + $0x6f4] sm:$0xf0]  ;;  %v7704_v4 = vld [vmem:[%s9707_s30 + $0x770] sm:$0xf]  ;;  %v7393_v12 = vor.u32 %v8514_v62, %v7392_v61 }
 0x1eb   : > { %6063 = vmatpush.bf16.msrb.mxu3 %v7201_v43  ;;  %6025 = vmatmul.bf16.vlgmr.msrb.gmra.mxu0 %v9850_v10  ;;  %v7281_v39 = vor.u32 %v8486_v30, %v7280_v29  ;;  %v8592_v6 = vld [vmem:[%s9707_s30 + $0x774] sm:$0xf0]  ;;  %v7768_v17 = vld [vmem:[%s9707_s30 + $0x7f0] sm:$0xf]  ;;  %v7568_v21 = vld [vmem:[%s9707_s30 + $0x660] sm:$0xf] }
 0x1ec   : > { %6069 = vmatpush.bf16.msra.mxu0 %v7321_v31  ;;  %6038 = vmatmul.bf16.vlgmr.msrb.gmra.mxu1 %v9857_v15  ;;  %v7344_v31 = vld [vmem:[%s9707_s30 + $0x4a0] sm:$0xf]  ;;  %v8608_v18 = vld [vmem:[%s9707_s30 + $0x7f4] sm:$0xf0]  ;;  %v7705_v19 = vor.u32 %v8592_v6, %v7704_v4  ;;  %v8558_v22 = vld [vmem:[%s9707_s30 + $0x664] sm:$0xf0] }
 0x1ed   : > { %6082 = vmatpush.bf16.msra.mxu1 %v7385_v34  ;;  %6051 = vmatmul.bf16.vlgmr.msrb.gmra.mxu2 %v9848_v9  ;;  %v8518_v34 = vld [vmem:[%s9707_s30 + $0x524] sm:$0xf0]  ;;  %v7345_v43 = vor.u32 %v8502_v32, %v7344_v31  ;;  %v7769_v29 = vor.u32 %v8608_v18, %v7768_v17  ;;  %v9951_v31 = vld [vmem:[#allocation1 + $0x1b] sm:$0xff]  ;;  %v7569_v32 = vor.u32 %v8558_v22, %v7568_v21  ;;  %v7616_v55 = vld [vmem:[%s9707_s30 + $0x6c0] sm:$0xf] }
 0x1ee   : > { %6095 = vmatpush.bf16.msra.mxu2 %v7449_v35  ;;  %6064 = vmatmul.bf16.vlgmr.msrb.gmra.mxu3 %v9852_v13  ;;  %v7481_v35 = vor.u32 %v8536_v26, %v7480_v25  ;;  %v7409_v44 = vor.u32 %v8518_v34, %v7408_v33  ;;  %v7696_v25 = vld [vmem:[%s9707_s30 + $0x760] sm:$0xf]  ;;  %v8590_v26 = vld [vmem:[%s9707_s30 + $0x764] sm:$0xf0]  ;;  %v7688_v45 = vld [vmem:[%s9707_s30 + $0x750] sm:$0xf] }
 0x1ef   : > { %6108 = vmatpush.bf16.msra.mxu3 %v7513_v47  ;;  %v7336_v47 = vld [vmem:[%s9707_s30 + $0x490] sm:$0xf]  ;;  %v9949_v30 = vld [vmem:[#allocation1 + $0x9] sm:$0xff]  ;;  %v8588_v46 = vld [vmem:[%s9707_s30 + $0x754] sm:$0xf0] }
 0x1f0   : > { %6070 = vmatpush.bf16.msra.mxu0 %v7313_v48  ;;  %v8500_v48 = vld [vmem:[%s9707_s30 + $0x494] sm:$0xf0]  ;;  %v7760_v33 = vld [vmem:[%s9707_s30 + $0x7e0] sm:$0xf]  ;;  %v8606_v34 = vld [vmem:[%s9707_s30 + $0x7e4] sm:$0xf0] }
 0x1f1   : > { %6083 = vmatpush.bf16.msra.mxu1 %v7377_v51  ;;  %v7473_v51 = vor.u32 %v8534_v41, %v7472_v40  ;;  %v7337_v57 = vor.u32 %v8500_v48, %v7336_v47  ;;  %v7560_v40 = vld [vmem:[%s9707_s30 + $0x650] sm:$0xf]  ;;  %v8556_v41 = vld [vmem:[%s9707_s30 + $0x654] sm:$0xf0]  ;;  %v7761_v47 = vor.u32 %v8606_v34, %v7760_v33  ;;  %v8570_v56 = vld [vmem:[%s9707_s30 + $0x6c4] sm:$0xf0] }
 0x1f2   : > { %6096 = vmatpush.bf16.msra.mxu2 %v7441_v52  ;;  %v7464_v52 = vld [vmem:[%s9707_s30 + $0x590] sm:$0xf]  ;;  %v7561_v48 = vor.u32 %v8556_v41, %v7560_v40  ;;  %v8604_v50 = vld [vmem:[%s9707_s30 + $0x7d4] sm:$0xf0]  ;;  %v7744_v61 = vld [vmem:[%s9707_s30 + $0x7c0] sm:$0xf] }
 0x1f3   : > { %6109 = vmatpush.bf16.msra.mxu3 %v7505_v59  ;;  %v7328_v59 = vld [vmem:[%s9707_s30 + $0x480] sm:$0xf]  ;;  %v7465_v1 = vor.u32 %v8532_v54, %v7464_v52  ;;  %v7752_v49 = vld [vmem:[%s9707_s30 + $0x7d0] sm:$0xf]  ;;  %v7689_v52 = vor.u32 %v8588_v46, %v7688_v45  ;;  %v8554_v54 = vld [vmem:[%s9707_s30 + $0x644] sm:$0xf0] }
 0x1f4   : > { %6071 = vmatpush.bf16.msra.mxu0 %v7305_v60  ;;  %v8498_v60 = vld [vmem:[%s9707_s30 + $0x484] sm:$0xf0]  ;;  %v8568_v4 = vld [vmem:[%s9707_s30 + $0x6b4] sm:$0xf0]  ;;  %v7536_v17 = vld [vmem:[%s9707_s30 + $0x620] sm:$0xf] }
 0x1f5   : > { %6084 = vmatpush.bf16.msra.mxu1 %v7369_v63  ;;  %v7576_v63 = vld [vmem:[%s9707_s30 + $0x670] sm:$0xf]  ;;  %v7329_v11 = vor.u32 %v8498_v60, %v7328_v59  ;;  %v7753_v59 = vor.u32 %v8604_v50, %v7752_v49  ;;  %v8602_v62 = vld [vmem:[%s9707_s30 + $0x7c4] sm:$0xf0]  ;;  %v8584_v6 = vld [vmem:[%s9707_s30 + $0x734] sm:$0xf0] }
 0x1f6   : > { %6097 = vmatpush.bf16.msra.mxu2 %v7433_v0  ;;  %v8560_v0 = vld [vmem:[%s9707_s30 + $0x674] sm:$0xf0]  ;;  %v8550_v18 = vld [vmem:[%s9707_s30 + $0x624] sm:$0xf0]  ;;  %v7664_v21 = vld [vmem:[%s9707_s30 + $0x720] sm:$0xf] }
 0x1f7   : > { %6110 = vmatpush.bf16.msra.mxu3 %v7497_v7  ;;  %v7456_v7 = vld [vmem:[%s9707_s30 + $0x580] sm:$0xf]  ;;  %v8582_v22 = vld [vmem:[%s9707_s30 + $0x724] sm:$0xf0]  ;;  %v8548_v34 = vld [vmem:[%s9707_s30 + $0x614] sm:$0xf0] }
 0x1f8   : > { %6072 = vmatpush.bf16.msra.mxu0 %v7297_v8  ;;  %v8530_v8 = vld [vmem:[%s9707_s30 + $0x584] sm:$0xf0]  ;;  %v7665_v33 = vor.u32 %v8582_v22, %v7664_v21  ;;  %v7656_v40 = vld [vmem:[%s9707_s30 + $0x710] sm:$0xf]  ;;  %v8580_v41 = vld [vmem:[%s9707_s30 + $0x714] sm:$0xf0] }
 0x1f9   : > { %6085 = vmatpush.bf16.msra.mxu1 %v7361_v14  ;;  %v7577_v14 = vor.u32 %v8560_v0, %v7576_v63  ;;  %v7457_v20 = vor.u32 %v8530_v8, %v7456_v7  ;;  %v7617_v63 = vor.u32 %v8570_v56, %v7616_v55  ;;  %v7745_v7 = vor.u32 %v8602_v62, %v7744_v61  ;;  %v8596_v45 = vld [vmem:[%s9707_s30 + $0x794] sm:$0xf0]  ;;  %v7520_v46 = vld [vmem:[%s9707_s30 + $0x600] sm:$0xf]  ;;  %v8562_v50 = vld [vmem:[%s9707_s30 + $0x684] sm:$0xf0] }
 0x1fa   : > { %6098 = vmatpush.bf16.msra.mxu2 %v7425_v16  ;;  %v7641_v16 = vor.u32 %v8576_v3, %v7640_v2  ;;  %v8552_v2 = vld [vmem:[%s9707_s30 + $0x634] sm:$0xf0]  ;;  %v7608_v3 = vld [vmem:[%s9707_s30 + $0x6b0] sm:$0xf]  ;;  %v7584_v49 = vld [vmem:[%s9707_s30 + $0x680] sm:$0xf] }
 0x1fb   : > { %6111 = vmatpush.bf16.msra.mxu3 %v7489_v23  ;;  %v7632_v23 = vld [vmem:[%s9707_s30 + $0x6e0] sm:$0xf]  ;;  %v7832_v55 = vld [vmem:[%s9707_s30 + $0x870] sm:$0xf]  ;;  %v8624_v56 = vld [vmem:[%s9707_s30 + $0x874] sm:$0xf0] }
 0x1fc   : > { %6073 = vmatpush.bf16.msra.mxu0 %v7289_v24  ;;  %v8574_v24 = vld [vmem:[%s9707_s30 + $0x6e4] sm:$0xf0]  ;;  %v10014_v61 = vld [vmem:[#allocation1 + $0x3f] sm:$0xff]  ;;  %v7952_v22 = vld [vmem:[%s9707_s30 + $0x960] sm:$0xf] }
 0x1fd   : > { %6086 = vmatpush.bf16.msra.mxu1 %v7353_v27  ;;  %v9945_v27 = vld [vmem:[#allocation1] sm:$0xff]  ;;  %v3499_v62 = vld [vmem:[%s10681_s0 + $0x10] sm:$0xff] }
 0x1fe   : > { %6099 = vmatpush.bf16.msra.mxu2 %v7417_v28  ;;  %v9947_v28 = vld [vmem:[#allocation1 + $0x12] sm:$0xff] }
 0x1ff   : > { %6112 = vmatpush.bf16.msra.mxu3 %v7481_v35  ;;  %v7633_v35 = vor.u32 %v8574_v24, %v7632_v23  ;;  %v7537_v24 = vor.u32 %v8550_v18, %v7536_v17  ;;  %v7824_v18 = vld [vmem:[%s9707_s30 + $0x860] sm:$0xf]  ;;  %v8638_v21 = vld [vmem:[%s9707_s30 + $0x8e4] sm:$0xf0] }
 0x200   : > { %6074 = vmatpush.bf16.msra.mxu0 %v7281_v39  ;;  %v7697_v39 = vor.u32 %v8590_v26, %v7696_v25  ;;  %v7728_v25 = vld [vmem:[%s9707_s30 + $0x7a0] sm:$0xf]  ;;  %v8598_v26 = vld [vmem:[%s9707_s30 + $0x7a4] sm:$0xf0] }
 0x201   : > { %6087 = vmatpush.bf16.msra.mxu1 %v7345_v43  ;;  %v7624_v43 = vld [vmem:[%s9707_s30 + $0x6d0] sm:$0xf] }
 0x202   : > { %6100 = vmatpush.bf16.msra.mxu2 %v7409_v44  ;;  %v8572_v44 = vld [vmem:[%s9707_s30 + $0x6d4] sm:$0xf0] }
 0x203   : > { %6113 = vmatpush.bf16.msra.mxu3 %v7473_v51  ;;  %v7625_v51 = vor.u32 %v8572_v44, %v7624_v43  ;;  %v7720_v43 = vld [vmem:[%s9707_s30 + $0x790] sm:$0xf]  ;;  %v7729_v44 = vor.u32 %v8598_v26, %v7728_v25  ;;  %v8016_v26 = vld [vmem:[%s9707_s30 + $0x9e0] sm:$0xf] }
 0x204   : > { %6075 = vmatpush.bf16.msra.mxu0 %v7273_v53  ;;  %v7552_v53 = vld [vmem:[%s9707_s30 + $0x640] sm:$0xf] }
 0x205   : > { %6088 = vmatpush.bf16.msra.mxu1 %v7337_v57  ;;  %v7680_v57 = vld [vmem:[%s9707_s30 + $0x740] sm:$0xf]  ;;  %v7553_v60 = vor.u32 %v8554_v54, %v7552_v53  ;;  %v7657_v54 = vor.u32 %v8580_v41, %v7656_v40  ;;  %v8636_v40 = vld [vmem:[%s9707_s30 + $0x8d4] sm:$0xf0]  ;;  %v7944_v41 = vld [vmem:[%s9707_s30 + $0x950] sm:$0xf] }
 0x206   : > { %6101 = vmatpush.bf16.msra.mxu2 %v7401_v58  ;;  %v8586_v58 = vld [vmem:[%s9707_s30 + $0x744] sm:$0xf0] }
 0x207   : > { %6114 = vmatpush.bf16.msra.mxu3 %v7465_v1  ;;  %v7681_v0 = vor.u32 %v8586_v58, %v7680_v57  ;;  %v7544_v1 = vld [vmem:[%s9707_s30 + $0x630] sm:$0xf]  ;;  %v10008_v58 = vld [vmem:[#allocation1 + $0x24] sm:$0xff] }
 0x208   : > { %6076 = vmatpush.bf16.msra.mxu0 %v7265_v5  ;;  %v7672_v5 = vld [vmem:[%s9707_s30 + $0x730] sm:$0xf]  ;;  %v7545_v8 = vor.u32 %v8552_v2, %v7544_v1 }
 0x209   : > { %6089 = vmatpush.bf16.msra.mxu1 %v7329_v11  ;;  %v7736_v11 = vld [vmem:[%s9707_s30 + $0x7b0] sm:$0xf] }
 0x20a   : > { %6102 = vmatpush.bf16.msra.mxu2 %v7393_v12  ;;  %v8600_v12 = vld [vmem:[%s9707_s30 + $0x7b4] sm:$0xf0]  ;;  %v7896_v57 = vld [vmem:[%s9707_s30 + $0x8f0] sm:$0xf] }
 0x20b   : > { %6115 = vmatpush.bf16.msra.mxu3 %v7457_v20  ;;  %6077 = vmatmul.bf16.vlgmr.msra.gmra.mxu0 %v9945_v27  ;;  %v8566_v20 = vld [vmem:[%s9707_s30 + $0x6a4] sm:$0xf0]  ;;  %v7737_v23 = vor.u32 %v8600_v12, %v7736_v11  ;;  %v7960_v1 = vld [vmem:[%s9707_s30 + $0x970] sm:$0xf] }
 0x20c   : > { %6121 = vmatpush.bf16.msrb.mxu0 %v7577_v14  ;;  %6090 = vmatmul.bf16.vlgmr.msra.gmra.mxu1 %v9949_v30  ;;  %v7609_v14 = vor.u32 %v8568_v4, %v7608_v3  ;;  %v8656_v3 = vld [vmem:[%s9707_s30 + $0x974] sm:$0xf0]  ;;  %v7712_v4 = vld [vmem:[%s9707_s30 + $0x780] sm:$0xf]  ;;  %v8024_v12 = vld [vmem:[%s9707_s30 + $0x9f0] sm:$0xf] }
 0x20d   : > { %6134 = vmatpush.bf16.msrb.mxu1 %v7641_v16  ;;  %6103 = vmatmul.bf16.vlgmr.msra.gmra.mxu2 %v9947_v28  ;;  %v7673_v16 = vor.u32 %v8584_v6, %v7672_v5  ;;  %v8594_v5 = vld [vmem:[%s9707_s30 + $0x784] sm:$0xf0]  ;;  %v7585_v6 = vor.u32 %v8562_v50, %v7584_v49  ;;  %v7808_v50 = vld [vmem:[%s9707_s30 + $0x840] sm:$0xf] }
 0x20e   : > { %6147 = vmatpush.bf16.msrb.mxu2 %v7705_v19  ;;  %6116 = vmatmul.bf16.vlgmr.msra.gmra.mxu3 %v9951_v31  ;;  %v7600_v19 = vld [vmem:[%s9707_s30 + $0x6a0] sm:$0xf]  ;;  %v7713_v17 = vor.u32 %v8594_v5, %v7712_v4  ;;  %v7864_v4 = vld [vmem:[%s9707_s30 + $0x8b0] sm:$0xf]  ;;  %v8632_v5 = vld [vmem:[%s9707_s30 + $0x8b4] sm:$0xf0] }
 0x20f   : > { %6160 = vmatpush.bf16.msrb.mxu3 %v7769_v29  ;;  %v7528_v29 = vld [vmem:[%s9707_s30 + $0x610] sm:$0xf] }
 0x210   : > { %6122 = vmatpush.bf16.msrb.mxu0 %v7569_v32  ;;  %v7601_v32 = vor.u32 %v8566_v20, %v7600_v19  ;;  %v8622_v19 = vld [vmem:[%s9707_s30 + $0x864] sm:$0xf0]  ;;  %v7888_v20 = vld [vmem:[%s9707_s30 + $0x8e0] sm:$0xf] }
 0x211   : > { %6135 = vmatpush.bf16.msrb.mxu1 %v7633_v35  ;;  %v7592_v35 = vld [vmem:[%s9707_s30 + $0x690] sm:$0xf]  ;;  %v7825_v25 = vor.u32 %v8622_v19, %v7824_v18  ;;  %v7792_v18 = vld [vmem:[%s9707_s30 + $0x820] sm:$0xf]  ;;  %v8614_v19 = vld [vmem:[%s9707_s30 + $0x824] sm:$0xf0] }
 0x212   : > { %6148 = vmatpush.bf16.msrb.mxu2 %v7697_v39  ;;  %v8564_v39 = vld [vmem:[%s9707_s30 + $0x694] sm:$0xf0] }
 0x213   : > { %6161 = vmatpush.bf16.msrb.mxu3 %v7761_v47  ;;  %v8546_v47 = vld [vmem:[%s9707_s30 + $0x604] sm:$0xf0]  ;;  %v7593_v53 = vor.u32 %v8564_v39, %v7592_v35  ;;  %v8620_v35 = vld [vmem:[%s9707_s30 + $0x854] sm:$0xf0]  ;;  %v7880_v39 = vld [vmem:[%s9707_s30 + $0x8d0] sm:$0xf] }
 0x214   : > { %6123 = vmatpush.bf16.msrb.mxu0 %v7561_v48  ;;  %v7529_v48 = vor.u32 %v8548_v34, %v7528_v29  ;;  %v7521_v2 = vor.u32 %v8546_v47, %v7520_v46  ;;  %v8670_v29 = vld [vmem:[%s9707_s30 + $0x9e4] sm:$0xf0]  ;;  %v7816_v34 = vld [vmem:[%s9707_s30 + $0x850] sm:$0xf]  ;;  %v8668_v47 = vld [vmem:[%s9707_s30 + $0x9d4] sm:$0xf0] }
 0x215   : > { %6136 = vmatpush.bf16.msrb.mxu1 %v7625_v51  ;;  %v7648_v51 = vld [vmem:[%s9707_s30 + $0x700] sm:$0xf]  ;;  %v8008_v46 = vld [vmem:[%s9707_s30 + $0x9d0] sm:$0xf] }
 0x216   : > { %6149 = vmatpush.bf16.msrb.mxu2 %v7689_v52  ;;  %v8578_v52 = vld [vmem:[%s9707_s30 + $0x704] sm:$0xf0] }
 0x217   : > { %6162 = vmatpush.bf16.msrb.mxu3 %v7753_v59  ;;  %v10010_v59 = vld [vmem:[#allocation1 + $0x36] sm:$0xff] }
 0x218   : > { %6124 = vmatpush.bf16.msrb.mxu0 %v7553_v60  ;;  %v10012_v60 = vld [vmem:[#allocation1 + $0x2d] sm:$0xff] }
 0x219   : > { %6137 = vmatpush.bf16.msrb.mxu1 %v7617_v63  ;;  %v7721_v63 = vor.u32 %v8596_v45, %v7720_v43  ;;  %3928 = vst [vmem:[#allocation1] ss:$9 sm:$0xff] %v3499_v62  ;;  %v8652_v43 = vld [vmem:[%s9707_s30 + $0x954] sm:$0xf0]  ;;  %v7817_v45 = vor.u32 %v8620_v35, %v7816_v34  ;;  %v8000_v62 = vld [vmem:[%s9707_s30 + $0x9c0] sm:$0xf] }
 0x21a   : > { %6150 = vmatpush.bf16.msrb.mxu2 %v7681_v0  ;;  %v8640_v0 = vld [vmem:[%s9707_s30 + $0x8f4] sm:$0xf0]  ;;  %v7945_v49 = vor.u32 %v8652_v43, %v7944_v41  ;;  %v7784_v34 = vld [vmem:[%s9707_s30 + $0x810] sm:$0xf] }
 0x21b   : > { %6163 = vmatpush.bf16.msrb.mxu3 %v7745_v7  ;;  %v7649_v7 = vor.u32 %v8578_v52, %v7648_v51  ;;  %v7897_v11 = vor.u32 %v8640_v0, %v7896_v57  ;;  %v8618_v51 = vld [vmem:[%s9707_s30 + $0x844] sm:$0xf0]  ;;  %v7872_v52 = vld [vmem:[%s9707_s30 + $0x8c0] sm:$0xf]  ;;  %v8612_v35 = vld [vmem:[%s9707_s30 + $0x814] sm:$0xf0] }
 0x21c   : > { %6125 = vmatpush.bf16.msrb.mxu0 %v7545_v8  ;;  %v7833_v8 = vor.u32 %v8624_v56, %v7832_v55  ;;  %v8650_v55 = vld [vmem:[%s9707_s30 + $0x944] sm:$0xf0]  ;;  %v8009_v56 = vor.u32 %v8668_v47, %v8008_v46  ;;  %v7809_v57 = vor.u32 %v8618_v51, %v7808_v50  ;;  %v7912_v41 = vld [vmem:[%s9707_s30 + $0x910] sm:$0xf]  ;;  %v8644_v43 = vld [vmem:[%s9707_s30 + $0x914] sm:$0xf0]  ;;  %v7785_v46 = vor.u32 %v8612_v35, %v7784_v34 }
 0x21d   : > { %6138 = vmatpush.bf16.msrb.mxu1 %v7609_v14  ;;  %v8672_v14 = vld [vmem:[%s9707_s30 + $0x9f4] sm:$0xf0]  ;;  %v7913_v51 = vor.u32 %v8644_v43, %v7912_v41  ;;  %v8272_v34 = vld [vmem:[%s9707_s30 + $0xbe0] sm:$0xf]  ;;  %v8734_v35 = vld [vmem:[%s9707_s30 + $0xbe4] sm:$0xf0] }
 0x21e   : > { %6151 = vmatpush.bf16.msrb.mxu2 %v7673_v16  ;;  %v7961_v16 = vor.u32 %v8656_v3, %v7960_v1  ;;  %v8616_v3 = vld [vmem:[%s9707_s30 + $0x834] sm:$0xf0]  ;;  %v8072_v41 = vld [vmem:[%s9707_s30 + $0xa50] sm:$0xf] }
 0x21f   : > { %6164 = vmatpush.bf16.msrb.mxu3 %v7737_v23  ;;  %v8654_v23 = vld [vmem:[%s9707_s30 + $0x964] sm:$0xf0]  ;;  %v8660_v47 = vld [vmem:[%s9707_s30 + $0x994] sm:$0xf0] }
 0x220   : > { %6126 = vmatpush.bf16.msrb.mxu0 %v7537_v24  ;;  %v8025_v24 = vor.u32 %v8672_v14, %v8024_v12  ;;  %v7992_v12 = vld [vmem:[%s9707_s30 + $0x9b0] sm:$0xf]  ;;  %v8664_v14 = vld [vmem:[%s9707_s30 + $0x9b4] sm:$0xf0] }
 0x221   : > { %6139 = vmatpush.bf16.msrb.mxu1 %v7601_v32  ;;  %v7889_v32 = vor.u32 %v8638_v21, %v7888_v20  ;;  %v7856_v20 = vld [vmem:[%s9707_s30 + $0x8a0] sm:$0xf]  ;;  %v8630_v21 = vld [vmem:[%s9707_s30 + $0x8a4] sm:$0xf0]  ;;  %v8684_v43 = vld [vmem:[%s9707_s30 + $0xa54] sm:$0xf0] }
 0x222   : > { %6152 = vmatpush.bf16.msrb.mxu2 %v7665_v33  ;;  %v7953_v33 = vor.u32 %v8654_v23, %v7952_v22  ;;  %v7920_v22 = vld [vmem:[%s9707_s30 + $0x920] sm:$0xf]  ;;  %v8646_v23 = vld [vmem:[%s9707_s30 + $0x924] sm:$0xf0] }
 0x223   : > { %6165 = vmatpush.bf16.msrb.mxu3 %v7729_v44  ;;  %v8017_v44 = vor.u32 %v8670_v29, %v8016_v26  ;;  %v7984_v26 = vld [vmem:[%s9707_s30 + $0x9a0] sm:$0xf]  ;;  %v8662_v29 = vld [vmem:[%s9707_s30 + $0x9a4] sm:$0xf0] }
 0x224   : > { %6127 = vmatpush.bf16.msrb.mxu0 %v7529_v48  ;;  %v7881_v48 = vor.u32 %v8636_v40, %v7880_v39  ;;  %v7848_v39 = vld [vmem:[%s9707_s30 + $0x890] sm:$0xf]  ;;  %v8628_v40 = vld [vmem:[%s9707_s30 + $0x894] sm:$0xf0] }
 0x225   : > { %6140 = vmatpush.bf16.msrb.mxu1 %v7593_v53  ;;  %v8634_v53 = vld [vmem:[%s9707_s30 + $0x8c4] sm:$0xf0]  ;;  %v7849_v50 = vor.u32 %v8628_v40, %v7848_v39 }
 0x226   : > { %6153 = vmatpush.bf16.msrb.mxu2 %v7657_v54  ;;  %v7936_v54 = vld [vmem:[%s9707_s30 + $0x940] sm:$0xf]  ;;  %v7873_v0 = vor.u32 %v8634_v53, %v7872_v52  ;;  %v8626_v53 = vld [vmem:[%s9707_s30 + $0x884] sm:$0xf0] }
 0x227   : > { %6166 = vmatpush.bf16.msrb.mxu3 %v7721_v63  ;;  %v8666_v63 = vld [vmem:[%s9707_s30 + $0x9c4] sm:$0xf0]  ;;  %v7937_v1 = vor.u32 %v8650_v55, %v7936_v54  ;;  %v7840_v52 = vld [vmem:[%s9707_s30 + $0x880] sm:$0xf] }
 0x228   : > { %6128 = vmatpush.bf16.msrb.mxu0 %v7521_v2  ;;  %v7800_v2 = vld [vmem:[%s9707_s30 + $0x830] sm:$0xf]  ;;  %v7904_v54 = vld [vmem:[%s9707_s30 + $0x900] sm:$0xf]  ;;  %v8642_v55 = vld [vmem:[%s9707_s30 + $0x904] sm:$0xf0] }
 0x229   : > { %6141 = vmatpush.bf16.msrb.mxu1 %v7585_v6  ;;  %v7928_v6 = vld [vmem:[%s9707_s30 + $0x930] sm:$0xf] }
 0x22a   : > { %6154 = vmatpush.bf16.msrb.mxu2 %v7649_v7  ;;  %v8648_v7 = vld [vmem:[%s9707_s30 + $0x934] sm:$0xf0] }
 0x22b   : > { %6167 = vmatpush.bf16.msrb.mxu3 %v7713_v17  ;;  %6129 = vmatmul.bf16.vlgmr.msrb.gmra.mxu0 %v10008_v58  ;;  %v7929_v17 = vor.u32 %v8648_v7, %v7928_v6  ;;  %v7841_v6 = vor.u32 %v8626_v53, %v7840_v52  ;;  %v7905_v7 = vor.u32 %v8642_v55, %v7904_v54  ;;  %v8064_v54 = vld [vmem:[%s9707_s30 + $0xa40] sm:$0xf]  ;;  %v8682_v55 = vld [vmem:[%s9707_s30 + $0xa44] sm:$0xf0] }
 0x22c   : > { %6173 = vmatpush.bf16.msra.mxu0 %v7833_v8  ;;  %6142 = vmatmul.bf16.vlgmr.msrb.gmra.mxu1 %v10012_v60  ;;  %v8001_v8 = vor.u32 %v8666_v63, %v8000_v62  ;;  %v8152_v63 = vld [vmem:[%s9707_s30 + $0xaf0] sm:$0xf] }
 0x22d   : > { %6186 = vmatpush.bf16.msra.mxu1 %v7897_v11  ;;  %6155 = vmatmul.bf16.vlgmr.msrb.gmra.mxu2 %v10010_v59  ;;  %v7801_v11 = vor.u32 %v8616_v3, %v7800_v2  ;;  %v8720_v3 = vld [vmem:[%s9707_s30 + $0xb74] sm:$0xf0] }
 0x22e   : > { %6199 = vmatpush.bf16.msra.mxu2 %v7961_v16  ;;  %6168 = vmatmul.bf16.vlgmr.msrb.gmra.mxu3 %v10014_v61  ;;  %v7865_v16 = vor.u32 %v8632_v5, %v7864_v4  ;;  %v7968_v4 = vld [vmem:[%s9707_s30 + $0x980] sm:$0xf]  ;;  %v8658_v5 = vld [vmem:[%s9707_s30 + $0x984] sm:$0xf0] }
 0x22f   : > { %6212 = vmatpush.bf16.msra.mxu3 %v8025_v24  ;;  %v7993_v24 = vor.u32 %v8664_v14, %v7992_v12  ;;  %v8280_v12 = vld [vmem:[%s9707_s30 + $0xbf0] sm:$0xf]  ;;  %v8736_v14 = vld [vmem:[%s9707_s30 + $0xbf4] sm:$0xf0] }
 0x230   : > { %6174 = vmatpush.bf16.msra.mxu0 %v7825_v25  ;;  %v7793_v25 = vor.u32 %v8614_v19, %v7792_v18  ;;  %v8080_v18 = vld [vmem:[%s9707_s30 + $0xa60] sm:$0xf]  ;;  %v8686_v19 = vld [vmem:[%s9707_s30 + $0xa64] sm:$0xf0] }
 0x231   : > { %6187 = vmatpush.bf16.msra.mxu1 %v7889_v32  ;;  %v7857_v32 = vor.u32 %v8630_v21, %v7856_v20  ;;  %v8144_v20 = vld [vmem:[%s9707_s30 + $0xae0] sm:$0xf]  ;;  %v8702_v21 = vld [vmem:[%s9707_s30 + $0xae4] sm:$0xf0] }
 0x232   : > { %6200 = vmatpush.bf16.msra.mxu2 %v7953_v33  ;;  %v7921_v33 = vor.u32 %v8646_v23, %v7920_v22  ;;  %v8208_v22 = vld [vmem:[%s9707_s30 + $0xb60] sm:$0xf]  ;;  %v8718_v23 = vld [vmem:[%s9707_s30 + $0xb64] sm:$0xf0]  ;;  %v8145_v39 = vor.u32 %v8702_v21, %v8144_v20  ;;  %v8728_v20 = vld [vmem:[%s9707_s30 + $0xbb4] sm:$0xf0] }
 0x233   : > { %6213 = vmatpush.bf16.msra.mxu3 %v8017_v44  ;;  %v7985_v44 = vor.u32 %v8662_v29, %v7984_v26  ;;  %v8281_v26 = vor.u32 %v8736_v14, %v8280_v12  ;;  %v10105_v29 = vld [vmem:[#allocation1 + $0x9] sm:$0xff]  ;;  %v8209_v40 = vor.u32 %v8718_v23, %v8208_v22  ;;  %v8184_v12 = vld [vmem:[%s9707_s30 + $0xb30] sm:$0xf]  ;;  %v8712_v14 = vld [vmem:[%s9707_s30 + $0xb34] sm:$0xf0] }
 0x234   : > { %6175 = vmatpush.bf16.msra.mxu0 %v7817_v45  ;;  %v7976_v45 = vld [vmem:[%s9707_s30 + $0x990] sm:$0xf]  ;;  %v8048_v21 = vld [vmem:[%s9707_s30 + $0xa20] sm:$0xf]  ;;  %v8185_v23 = vor.u32 %v8712_v14, %v8184_v12  ;;  %v8752_v14 = vld [vmem:[%s9707_s30 + $0xc74] sm:$0xf0] }
 0x235   : > { %6188 = vmatpush.bf16.msra.mxu1 %v7881_v48  ;;  %v7776_v48 = vld [vmem:[%s9707_s30 + $0x800] sm:$0xf]  ;;  %v7977_v62 = vor.u32 %v8660_v47, %v7976_v45  ;;  %v8700_v45 = vld [vmem:[%s9707_s30 + $0xad4] sm:$0xf0]  ;;  %v8344_v12 = vld [vmem:[%s9707_s30 + $0xc70] sm:$0xf] }
 0x236   : > { %6201 = vmatpush.bf16.msra.mxu2 %v7945_v49  ;;  %v8610_v49 = vld [vmem:[%s9707_s30 + $0x804] sm:$0xf0]  ;;  %v8716_v47 = vld [vmem:[%s9707_s30 + $0xb54] sm:$0xf0] }
 0x237   : > { %6214 = vmatpush.bf16.msra.mxu3 %v8009_v56  ;;  %v8088_v56 = vld [vmem:[%s9707_s30 + $0xa70] sm:$0xf]  ;;  %v7777_v2 = vor.u32 %v8610_v49, %v7776_v48  ;;  %v8273_v48 = vor.u32 %v8734_v35, %v8272_v34  ;;  %v8073_v49 = vor.u32 %v8684_v43, %v8072_v41  ;;  %v8694_v34 = vld [vmem:[%s9707_s30 + $0xaa4] sm:$0xf0]  ;;  %v8176_v35 = vld [vmem:[%s9707_s30 + $0xb20] sm:$0xf] }
 0x238   : > { %6176 = vmatpush.bf16.msra.mxu0 %v7809_v57  ;;  %v8688_v57 = vld [vmem:[%s9707_s30 + $0xa74] sm:$0xf0] }
 0x239   : > { %6189 = vmatpush.bf16.msra.mxu1 %v7873_v0  ;;  %v8704_v0 = vld [vmem:[%s9707_s30 + $0xaf4] sm:$0xf0] }
 0x23a   : > { %6202 = vmatpush.bf16.msra.mxu2 %v7937_v1  ;;  %v8216_v1 = vld [vmem:[%s9707_s30 + $0xb70] sm:$0xf] }
 0x23b   : > { %6215 = vmatpush.bf16.msra.mxu3 %v8001_v8  ;;  %v8089_v8 = vor.u32 %v8688_v57, %v8088_v56  ;;  %v8128_v56 = vld [vmem:[%s9707_s30 + $0xac0] sm:$0xf]  ;;  %v8698_v57 = vld [vmem:[%s9707_s30 + $0xac4] sm:$0xf0] }
 0x23c   : > { %6177 = vmatpush.bf16.msra.mxu0 %v7801_v11  ;;  %v8153_v11 = vor.u32 %v8704_v0, %v8152_v63  ;;  %v8714_v63 = vld [vmem:[%s9707_s30 + $0xb44] sm:$0xf0] }
 0x23d   : > { %6190 = vmatpush.bf16.msra.mxu1 %v7865_v16  ;;  %v8217_v16 = vor.u32 %v8720_v3, %v8216_v1  ;;  %v8065_v1 = vor.u32 %v8682_v55, %v8064_v54  ;;  %v8730_v3 = vld [vmem:[%s9707_s30 + $0xbc4] sm:$0xf0]  ;;  %v8708_v54 = vld [vmem:[%s9707_s30 + $0xb14] sm:$0xf0]  ;;  %v8232_v55 = vld [vmem:[%s9707_s30 + $0xb90] sm:$0xf] }
 0x23e   : > { %6203 = vmatpush.bf16.msra.mxu2 %v7929_v17  ;;  %v7969_v17 = vor.u32 %v8658_v5, %v7968_v4  ;;  %v8129_v4 = vor.u32 %v8698_v57, %v8128_v56 }
 0x23f   : > { %6216 = vmatpush.bf16.msra.mxu3 %v7993_v24  ;;  %v10101_v24 = vld [vmem:[#allocation1] sm:$0xff] }
 0x240   : > { %6178 = vmatpush.bf16.msra.mxu0 %v7793_v25  ;;  %v10103_v25 = vld [vmem:[#allocation1 + $0x12] sm:$0xff] }
 0x241   : > { %6191 = vmatpush.bf16.msra.mxu1 %v7857_v32  ;;  %v10107_v32 = vld [vmem:[#allocation1 + $0x1b] sm:$0xff] }
 0x242   : > { %6204 = vmatpush.bf16.msra.mxu2 %v7921_v33  ;;  %v8081_v33 = vor.u32 %v8686_v19, %v8080_v18  ;;  %v8248_v19 = vld [vmem:[%s9707_s30 + $0xbb0] sm:$0xf] }
 0x243   : > { %6217 = vmatpush.bf16.msra.mxu3 %v7985_v44  ;;  %v8136_v44 = vld [vmem:[%s9707_s30 + $0xad0] sm:$0xf]  ;;  %v8249_v41 = vor.u32 %v8728_v20, %v8248_v19  ;;  %v10187_v19 = vld [vmem:[#allocation1 + $0x2d] sm:$0xff]  ;;  %v10189_v20 = vld [vmem:[#allocation1 + $0x3f] sm:$0xff] }
 0x244   : > { %6179 = vmatpush.bf16.msra.mxu0 %v7785_v46  ;;  %v8200_v46 = vld [vmem:[%s9707_s30 + $0xb50] sm:$0xf]  ;;  %v8137_v52 = vor.u32 %v8700_v45, %v8136_v44  ;;  %v8240_v44 = vld [vmem:[%s9707_s30 + $0xba0] sm:$0xf]  ;;  %v8726_v45 = vld [vmem:[%s9707_s30 + $0xba4] sm:$0xf0] }
 0x245   : > { %6192 = vmatpush.bf16.msra.mxu1 %v7849_v50  ;;  %v8264_v50 = vld [vmem:[%s9707_s30 + $0xbd0] sm:$0xf]  ;;  %v8201_v53 = vor.u32 %v8716_v47, %v8200_v46  ;;  %v8241_v57 = vor.u32 %v8726_v45, %v8240_v44 }
 0x246   : > { %6205 = vmatpush.bf16.msra.mxu2 %v7913_v51  ;;  %v8732_v51 = vld [vmem:[%s9707_s30 + $0xbd4] sm:$0xf0]  ;;  %v8040_v46 = vld [vmem:[%s9707_s30 + $0xa10] sm:$0xf] }
 0x247   : > { %6218 = vmatpush.bf16.msra.mxu3 %v7977_v62  ;;  %v8192_v62 = vld [vmem:[%s9707_s30 + $0xb40] sm:$0xf]  ;;  %v8265_v0 = vor.u32 %v8732_v51, %v8264_v50  ;;  %v8104_v50 = vld [vmem:[%s9707_s30 + $0xa90] sm:$0xf]  ;;  %v8692_v51 = vld [vmem:[%s9707_s30 + $0xa94] sm:$0xf0] }
 0x248   : > { %6180 = vmatpush.bf16.msra.mxu0 %v7777_v2  ;;  %v8256_v2 = vld [vmem:[%s9707_s30 + $0xbc0] sm:$0xf]  ;;  %v8193_v5 = vor.u32 %v8714_v63, %v8192_v62  ;;  %v8724_v62 = vld [vmem:[%s9707_s30 + $0xb94] sm:$0xf0] }
 0x249   : > { %6193 = vmatpush.bf16.msra.mxu1 %v7841_v6  ;;  %v8056_v6 = vld [vmem:[%s9707_s30 + $0xa30] sm:$0xf]  ;;  %v8032_v63 = vld [vmem:[%s9707_s30 + $0xa00] sm:$0xf] }
 0x24a   : > { %6206 = vmatpush.bf16.msra.mxu2 %v7905_v7  ;;  %v8680_v7 = vld [vmem:[%s9707_s30 + $0xa34] sm:$0xf0] }
 0x24b   : > { %6219 = vmatpush.bf16.msra.mxu3 %v7969_v17  ;;  %6181 = vmatmul.bf16.vlgmr.msra.gmra.mxu0 %v10101_v24  ;;  %v3901_v17 = vld [vmem:[%s10147_s18] sm:$0x3]  ;;  %v8057_v18 = vor.u32 %v8680_v7, %v8056_v6  ;;  %v8706_v6 = vld [vmem:[%s9707_s30 + $0xb04] sm:$0xf0] }
 0x24c   : > { %6225 = vmatpush.bf16.msrb.mxu0 %v8089_v8  ;;  %6194 = vmatmul.bf16.vlgmr.msra.gmra.mxu1 %v10105_v29  ;;  %v8120_v8 = vld [vmem:[%s9707_s30 + $0xab0] sm:$0xf] }
 0x24d   : > { %6238 = vmatpush.bf16.msrb.mxu1 %v8153_v11  ;;  %6207 = vmatmul.bf16.vlgmr.msra.gmra.mxu2 %v10103_v25  ;;  %v8696_v11 = vld [vmem:[%s9707_s30 + $0xab4] sm:$0xf0] }
 0x24e   : > { %6251 = vmatpush.bf16.msrb.mxu2 %v8217_v16  ;;  %6220 = vmatmul.bf16.vlgmr.msra.gmra.mxu3 %v10107_v32  ;;  %v8257_v16 = vor.u32 %v8730_v3, %v8256_v2  ;;  %v8121_v22 = vor.u32 %v8696_v11, %v8120_v8  ;;  %v8096_v3 = vld [vmem:[%s9707_s30 + $0xa80] sm:$0xf]  ;;  %v8105_v8 = vor.u32 %v8692_v51, %v8104_v50  ;;  %v8399_v50 = vld [vmem:[%s9707_s30 + $0x174] sm:$0xf]  ;;  %v6938_v51 = vld [vmem:[%s9707_s30 + $0x178] sm:$0xf0] }
 0x24f   : > { %6264 = vmatpush.bf16.msrb.mxu3 %v8281_v26  ;;  %v8678_v26 = vld [vmem:[%s9707_s30 + $0xa24] sm:$0xf0] }
 0x250   : > { %6226 = vmatpush.bf16.msrb.mxu0 %v8081_v33  ;;  %v8112_v33 = vld [vmem:[%s9707_s30 + $0xaa0] sm:$0xf]  ;;  %v8049_v43 = vor.u32 %v8678_v26, %v8048_v21  ;;  %v6810_v26 = vld [vmem:[%s9707_s30 + $0x78] sm:$0xf0] }
 0x251   : > { %6239 = vmatpush.bf16.msrb.mxu1 %v8145_v39  ;;  %v8710_v39 = vld [vmem:[%s9707_s30 + $0xb24] sm:$0xf0]  ;;  %v8113_v47 = vor.u32 %v8694_v34, %v8112_v33  ;;  %v8383_v33 = vld [vmem:[%s9707_s30 + $0xf4] sm:$0xf] }
 0x252   : > { %6252 = vmatpush.bf16.msrb.mxu2 %v8209_v40  ;;  %v3903_v40 = vperm.slane %v3901_v17, 0  ;;  %v10183_v17 = vld [vmem:[#allocation1 + $0x24] sm:$0xff]  ;;  %v6000_v21 = vpop.f32.mrf.mxu2 }
 0x253   : > { %6265 = vmatpush.bf16.msrb.mxu3 %v8273_v48  ;;  %v8177_v48 = vor.u32 %v8710_v39, %v8176_v35  ;;  %v6013_v35 = vpop.f32.mrf.mxu3 }
 0x254   : > { %6227 = vmatpush.bf16.msrb.mxu0 %v8073_v49  ;;  %v8676_v49 = vld [vmem:[%s9707_s30 + $0xa14] sm:$0xf0] }
 0x255   : > { %6240 = vmatpush.bf16.msrb.mxu1 %v8137_v52  ;;  %v5974_v52 = vpop.f32.mrf.mxu0  ;;  %v8041_v2 = vor.u32 %v8676_v49, %v8040_v46 }
 0x256   : > { %6253 = vmatpush.bf16.msrb.mxu2 %v8201_v53  ;;  %v8168_v53 = vld [vmem:[%s9707_s30 + $0xb10] sm:$0xf]  ;;  %v5975_v56 = vadd.f32 %v5974_v52, %v3903_v40  ;;  %v6874_v40 = vld [vmem:[%s9707_s30 + $0xf8] sm:$0xf0] }
 0x257   : > { %6266 = vmatpush.bf16.msrb.mxu3 %v8265_v0  ;;  %v8674_v0 = vld [vmem:[%s9707_s30 + $0xa04] sm:$0xf0]  ;;  %v8169_v11 = vor.u32 %v8708_v54, %v8168_v53  ;;  %v6877_v52 = vor.u32 %v8383_v33, %v6874_v40  ;;  %v8336_v54 = vld [vmem:[%s9707_s30 + $0xc60] sm:$0xf]  ;;  %v8395_v33 = vld [vmem:[%s9707_s30 + $0x154] sm:$0xf] }
 0x258   : > { %6228 = vmatpush.bf16.msrb.mxu0 %v8065_v1  ;;  %v5987_v1 = vpop.f32.mrf.mxu1  ;;  %v8033_v39 = vor.u32 %v8674_v0, %v8032_v63  ;;  %v8381_v63 = vld [vmem:[%s9707_s30 + $0xe4] sm:$0xf]  ;;  %v6866_v0 = vld [vmem:[%s9707_s30 + $0xe8] sm:$0xf0]  ;;  %v8320_v40 = vld [vmem:[%s9707_s30 + $0xc40] sm:$0xf] }
 0x259   : > { %6241 = vmatpush.bf16.msrb.mxu1 %v8129_v4  ;;  %v8690_v4 = vld [vmem:[%s9707_s30 + $0xa84] sm:$0xf0]  ;;  %v5988_v7 = vadd.f32 %v5987_v1, %v5975_v56  ;;  %v8365_v56 = vld [vmem:[%s9707_s30 + $0x64] sm:$0xf]  ;;  %v6941_v1 = vor.u32 %v8399_v50, %v6938_v51 }
 0x25a   : > { %6254 = vmatpush.bf16.msrb.mxu2 %v8193_v5  ;;  %v8160_v5 = vld [vmem:[%s9707_s30 + $0xb00] sm:$0xf]  ;;  %v8097_v44 = vor.u32 %v8690_v4, %v8096_v3  ;;  %v8397_v3 = vld [vmem:[%s9707_s30 + $0x164] sm:$0xf]  ;;  %v6930_v4 = vld [vmem:[%s9707_s30 + $0x168] sm:$0xf0] }
 0x25b   : > { %6267 = vmatpush.bf16.msrb.mxu3 %v8257_v16  ;;  %v8367_v16 = vld [vmem:[%s9707_s30 + $0x74] sm:$0xf]  ;;  %v6001_v34 = vadd.f32 %v6000_v21, %v5988_v7  ;;  %v8161_v45 = vor.u32 %v8706_v6, %v8160_v5  ;;  %v6002_v5 = vpop.f32.mrf.mxu2  ;;  %v6869_v7 = vor.u32 %v8381_v63, %v6866_v0  ;;  %v8393_v51 = vld [vmem:[%s9707_s30 + $0x144] sm:$0xf]  ;;  %v6778_v0 = vld [vmem:[%s9707_s30 + $0x38] sm:$0xf0] }
 0x25c   : > { %6229 = vmatpush.bf16.msrb.mxu0 %v8057_v18  ;;  %v10185_v18 = vld [vmem:[#allocation1 + $0x36] sm:$0xff]  ;;  %v6813_v49 = vor.u32 %v8367_v16, %v6810_v26  ;;  %v6794_v16 = vld [vmem:[%s9707_s30 + $0x58] sm:$0xf0] }
 0x25d   : > { %6242 = vmatpush.bf16.msrb.mxu1 %v8121_v22  ;;  %v3500_v22 = vld [vmem:[%s10681_s0 + $0x18] sm:$0x1]  ;;  %v10199_v46 = vadd.f32 %v6013_v35, %v6001_v34  ;;  %v8379_v21 = vld [vmem:[%s9707_s30 + $0xd4] sm:$0xf]  ;;  %v6922_v34 = vld [vmem:[%s9707_s30 + $0x158] sm:$0xf0] }
 0x25e   : > { %6255 = vmatpush.bf16.msrb.mxu2 %v8185_v23  ;;  %v8233_v23 = vor.u32 %v8724_v62, %v8232_v55  ;;  %3938 = vst [vmem:[#allocation1] ss:$9 sm:$0xff] %v3500_v22  ;;  %v8750_v55 = vld [vmem:[%s9707_s30 + $0xc64] sm:$0xf0]  ;;  %v6802_v62 = vld [vmem:[%s9707_s30 + $0x68] sm:$0xf0] }
 0x25f   : > { %6268 = vmatpush.bf16.msrb.mxu3 %v8249_v41  ;;  %v8224_v41 = vld [vmem:[%s9707_s30 + $0xb80] sm:$0xf]  ;;  %v6805_v6 = vor.u32 %v8365_v56, %v6802_v62  ;;  %v6858_v22 = vld [vmem:[%s9707_s30 + $0xd8] sm:$0xf0]  ;;  %v8312_v56 = vld [vmem:[%s9707_s30 + $0xc30] sm:$0xf] }
 0x260   : > { %6230 = vmatpush.bf16.msrb.mxu0 %v8049_v43  ;;  %v8722_v43 = vld [vmem:[%s9707_s30 + $0xb84] sm:$0xf0]  ;;  %v8359_v62 = vld [vmem:[%s9707_s30 + $0x34] sm:$0xf] }
 0x261   : > { %6243 = vmatpush.bf16.msrb.mxu1 %v8113_v47  ;;  %v5976_v47 = vpop.f32.mrf.mxu0  ;;  %v8225_v53 = vor.u32 %v8722_v43, %v8224_v41  ;;  %v8746_v41 = vld [vmem:[%s9707_s30 + $0xc44] sm:$0xf0]  ;;  %v8361_v43 = vld [vmem:[%s9707_s30 + $0x44] sm:$0xf]  ;;  %v8391_v5 = vld [vmem:[%s9707_s30 + $0x134] sm:$0xf] }
 0x262   : > { %6256 = vmatpush.bf16.msrb.mxu2 %v8177_v48  ;;  %v8345_v48 = vor.u32 %v8752_v14, %v8344_v12  ;;  %v8363_v12 = vld [vmem:[%s9707_s30 + $0x54] sm:$0xf]  ;;  %v6015_v14 = vpop.f32.mrf.mxu3  ;;  %v6850_v47 = vld [vmem:[%s9707_s30 + $0xc8] sm:$0xf0]  ;;  %v8321_v50 = vor.u32 %v8746_v41, %v8320_v40 }
 0x263   : > { %6269 = vmatpush.bf16.msrb.mxu3 %v8241_v57  ;;  %v5989_v57 = vpop.f32.mrf.mxu1  ;;  %v6797_v35 = vor.u32 %v8363_v12, %v6794_v16  ;;  %v8742_v12 = vld [vmem:[%s9707_s30 + $0xc24] sm:$0xf0]  ;;  %v8357_v14 = vld [vmem:[%s9707_s30 + $0x24] sm:$0xf]  ;;  %v6770_v16 = vld [vmem:[%s9707_s30 + $0x28] sm:$0xf0] }
 0x264   : > { %6231 = vmatpush.bf16.msrb.mxu0 %v8041_v2  ;;  %v8337_v2 = vor.u32 %v8750_v55, %v8336_v54  ;;  %v8744_v57 = vld [vmem:[%s9707_s30 + $0xc34] sm:$0xf0]  ;;  %v6898_v40 = vld [vmem:[%s9707_s30 + $0x128] sm:$0xf0]  ;;  %v6773_v41 = vor.u32 %v8357_v14, %v6770_v16  ;;  %v8447_v14 = vld [vmem:[%s9707_s30 + $0x2f4] sm:$0xf] }
 0x265   : > { %6244 = vmatpush.bf16.msrb.mxu1 %v8105_v8  ;;  %v8328_v8 = vld [vmem:[%s9707_s30 + $0xc50] sm:$0xf] }
 0x266   : > { %6257 = vmatpush.bf16.msrb.mxu2 %v8169_v11  ;;  %v8748_v11 = vld [vmem:[%s9707_s30 + $0xc54] sm:$0xf0] }
 0x267   : > { %6270 = vmatpush.bf16.msrb.mxu3 %v8233_v23  ;;  %v6933_v23 = vor.u32 %v8397_v3, %v6930_v4  ;;  %v8329_v26 = vor.u32 %v8748_v11, %v8328_v8  ;;  %v8313_v4 = vor.u32 %v8744_v57, %v8312_v56  ;;  %v8304_v11 = vld [vmem:[%s9707_s30 + $0xc20] sm:$0xf]  ;;  %v6890_v57 = vld [vmem:[%s9707_s30 + $0x118] sm:$0xf0] }
 0x268   : > { %6232 = vmatpush.bf16.msrb.mxu0 %v8033_v39  ;;  %v6861_v39 = vor.u32 %v8379_v21, %v6858_v22  ;;  %v8373_v21 = vld [vmem:[%s9707_s30 + $0xa4] sm:$0xf]  ;;  %v6834_v22 = vld [vmem:[%s9707_s30 + $0xa8] sm:$0xf0] }
 0x269   : > { %6245 = vmatpush.bf16.msrb.mxu1 %v8097_v44  ;;  %v6786_v44 = vld [vmem:[%s9707_s30 + $0x48] sm:$0xf0] }
 0x26a   : > { %6258 = vmatpush.bf16.msrb.mxu2 %v8161_v45  ;;  %v8377_v45 = vld [vmem:[%s9707_s30 + $0xc4] sm:$0xf]  ;;  %v6789_v54 = vor.u32 %v8361_v43, %v6786_v44  ;;  %v6837_v43 = vor.u32 %v8373_v21, %v6834_v22  ;;  %v7130_v21 = vld [vmem:[%s9707_s30 + $0x2f8] sm:$0xf0] }
 0x26b   : > { %6271 = vmatpush.bf16.msrb.mxu3 %v8225_v53  ;;  %6233 = vmatmul.bf16.vlgmr.msrb.gmra.mxu0 %v10183_v17  ;;  %v6853_v55 = vor.u32 %v8377_v45, %v6850_v47  ;;  %v6039_v63 = vpop.f32.mrf.mxu1  ;;  %v8296_v45 = vld [vmem:[%s9707_s30 + $0xc10] sm:$0xf]  ;;  %v8740_v47 = vld [vmem:[%s9707_s30 + $0xc14] sm:$0xf0]  ;;  %v8385_v22 = vld [vmem:[%s9707_s30 + $0x104] sm:$0xf] }
 0x26c   : > { %6277 = vmatpush.bf16.msra.mxu0 %v8345_v48  ;;  %6246 = vmatmul.bf16.vlgmr.msrb.gmra.mxu1 %v10187_v19  ;;  %v6925_v48 = vor.u32 %v8395_v33, %v6922_v34  ;;  %v8297_v56 = vor.u32 %v8740_v47, %v8296_v45  ;;  %v6994_v47 = vld [vmem:[%s9707_s30 + $0x1e8] sm:$0xf0] }
 0x26d   : > { %6290 = vmatpush.bf16.msra.mxu1 %v6813_v49  ;;  %6259 = vmatmul.bf16.vlgmr.msrb.gmra.mxu2 %v10185_v18  ;;  %v6026_v49 = vpop.f32.mrf.mxu0 }
 0x26e   : > { %6303 = vmatpush.bf16.msra.mxu2 %v6877_v52  ;;  %6272 = vmatmul.bf16.vlgmr.msrb.gmra.mxu3 %v10189_v20  ;;  %v6914_v52 = vld [vmem:[%s9707_s30 + $0x148] sm:$0xf0]  ;;  %v6027_v53 = vadd.f32 %v6026_v49, %v10199_v46 }
 0x26f   : > { %6316 = vmatpush.bf16.msra.mxu3 %v6941_v1  ;;  %v8375_v1 = vld [vmem:[%s9707_s30 + $0xb4] sm:$0xf]  ;;  %v6917_v46 = vor.u32 %v8393_v51, %v6914_v52  ;;  %v6762_v51 = vld [vmem:[%s9707_s30 + $0x18] sm:$0xf0] }
 0x270   : > { %6278 = vmatpush.bf16.msra.mxu0 %v8337_v2  ;;  %v6842_v2 = vld [vmem:[%s9707_s30 + $0xb8] sm:$0xf0]  ;;  %v6040_v3 = vadd.f32 %v6039_v63, %v6027_v53  ;;  %v8371_v52 = vld [vmem:[%s9707_s30 + $0x94] sm:$0xf]  ;;  %v8738_v63 = vld [vmem:[%s9707_s30 + $0xc04] sm:$0xf0] }
 0x271   : > { %6291 = vmatpush.bf16.msra.mxu1 %v6805_v6  ;;  %v6906_v6 = vld [vmem:[%s9707_s30 + $0x138] sm:$0xf0]  ;;  %v6845_v8 = vor.u32 %v8375_v1, %v6842_v2  ;;  %v6065_v44 = vpop.f32.mrf.mxu3  ;;  %v8353_v2 = vld [vmem:[%s9707_s30 + $0x4] sm:$0xf] }
 0x272   : > { %6304 = vmatpush.bf16.msra.mxu2 %v6869_v7  ;;  %v6781_v7 = vor.u32 %v8359_v62, %v6778_v0  ;;  %v6826_v53 = vld [vmem:[%s9707_s30 + $0x98] sm:$0xf0]  ;;  %v8288_v62 = vld [vmem:[%s9707_s30 + $0xc00] sm:$0xf] }
 0x273   : > { %6317 = vmatpush.bf16.msra.mxu3 %v6933_v23  ;;  %v6052_v23 = vpop.f32.mrf.mxu2  ;;  %v6041_v49 = vpop.f32.mrf.mxu1  ;;  %v6829_v1 = vor.u32 %v8371_v52, %v6826_v53  ;;  %v8289_v16 = vor.u32 %v8738_v63, %v8288_v62  ;;  %v8445_v52 = vld [vmem:[%s9707_s30 + $0x2e4] sm:$0xf]  ;;  %v7122_v53 = vld [vmem:[%s9707_s30 + $0x2e8] sm:$0xf0]  ;;  %v8411_v63 = vld [vmem:[%s9707_s30 + $0x1d4] sm:$0xf] }
 0x274   : > { %6279 = vmatpush.bf16.msra.mxu0 %v8329_v26  ;;  %v6909_v26 = vor.u32 %v8391_v5, %v6906_v6  ;;  %v6053_v33 = vadd.f32 %v6052_v23, %v6040_v3  ;;  %v6754_v3 = vld [vmem:[%s9707_s30 + $0x8] sm:$0xf0]  ;;  %v8415_v5 = vld [vmem:[%s9707_s30 + $0x1f4] sm:$0xf]  ;;  %v7002_v6 = vld [vmem:[%s9707_s30 + $0x1f8] sm:$0xf0] }
 0x275   : > { %6292 = vmatpush.bf16.msra.mxu1 %v6797_v35  ;;  %v6028_v34 = vpop.f32.mrf.mxu0  ;;  %v8305_v35 = vor.u32 %v8742_v12, %v8304_v11  ;;  %v8431_v11 = vld [vmem:[%s9707_s30 + $0x274] sm:$0xf]  ;;  %v7066_v12 = vld [vmem:[%s9707_s30 + $0x278] sm:$0xf0]  ;;  %v6882_v23 = vld [vmem:[%s9707_s30 + $0x108] sm:$0xf0] }
 0x276   : > { %6305 = vmatpush.bf16.msra.mxu2 %v6861_v39  ;;  %v8389_v39 = vld [vmem:[%s9707_s30 + $0x124] sm:$0xf]  ;;  %v8463_v34 = vld [vmem:[%s9707_s30 + $0x374] sm:$0xf]  ;;  %v6885_v45 = vor.u32 %v8385_v22, %v6882_v23  ;;  %v7058_v49 = vld [vmem:[%s9707_s30 + $0x268] sm:$0xf0] }
 0x277   : > { %6318 = vmatpush.bf16.msra.mxu3 %v6925_v48  ;;  %v8355_v48 = vld [vmem:[%s9707_s30 + $0x14] sm:$0xf]  ;;  %v7042_v22 = vld [vmem:[%s9707_s30 + $0x248] sm:$0xf0] }
 0x278   : > { %6280 = vmatpush.bf16.msra.mxu0 %v8321_v50  ;;  %v10251_v50 = vadd.f32 %v6065_v44, %v6053_v33  ;;  %v6765_v0 = vor.u32 %v8355_v48, %v6762_v51  ;;  %v7133_v44 = vor.u32 %v8447_v14, %v7130_v21  ;;  %v8429_v48 = vld [vmem:[%s9707_s30 + $0x264] sm:$0xf]  ;;  %v7106_v23 = vld [vmem:[%s9707_s30 + $0x2c8] sm:$0xf0] }
 0x279   : > { %6293 = vmatpush.bf16.msra.mxu1 %v6789_v54  ;;  %v6901_v54 = vor.u32 %v8389_v39, %v6898_v40  ;;  %v6067_v39 = vpop.f32.mrf.mxu3  ;;  %v7005_v40 = vor.u32 %v8415_v5, %v7002_v6  ;;  %v7061_v62 = vor.u32 %v8429_v48, %v7058_v49  ;;  %v7114_v5 = vld [vmem:[%s9707_s30 + $0x2d8] sm:$0xf0]  ;;  %v8459_v6 = vld [vmem:[%s9707_s30 + $0x354] sm:$0xf]  ;;  %v8425_v21 = vld [vmem:[%s9707_s30 + $0x244] sm:$0xf] }
 0x27a   : > { %6306 = vmatpush.bf16.msra.mxu2 %v6853_v55  ;;  %v8387_v55 = vld [vmem:[%s9707_s30 + $0x114] sm:$0xf] }
 0x27b   : > { %6319 = vmatpush.bf16.msra.mxu3 %v6917_v46  ;;  %v8369_v46 = vld [vmem:[%s9707_s30 + $0x84] sm:$0xf] }
 0x27c   : > { %6281 = vmatpush.bf16.msra.mxu0 %v8313_v4  ;;  %v6818_v4 = vld [vmem:[%s9707_s30 + $0x88] sm:$0xf0] }
 0x27d   : > { %6294 = vmatpush.bf16.msra.mxu1 %v6781_v7  ;;  %v6054_v7 = vpop.f32.mrf.mxu2  ;;  %v6821_v33 = vor.u32 %v8369_v46, %v6818_v4  ;;  %v8443_v4 = vld [vmem:[%s9707_s30 + $0x2d4] sm:$0xf] }
 0x27e   : > { %6307 = vmatpush.bf16.msra.mxu2 %v6845_v8  ;;  %v6893_v8 = vor.u32 %v8387_v55, %v6890_v57  ;;  %v8461_v55 = vld [vmem:[%s9707_s30 + $0x364] sm:$0xf]  ;;  %v7178_v7 = vld [vmem:[%s9707_s30 + $0x358] sm:$0xf0]  ;;  %v7117_v14 = vor.u32 %v8443_v4, %v7114_v5  ;;  %v7090_v4 = vld [vmem:[%s9707_s30 + $0x2a8] sm:$0xf0] }
 0x27f   : > { %6320 = vmatpush.bf16.msra.mxu3 %v6909_v26  ;;  %v6757_v26 = vor.u32 %v8353_v2, %v6754_v3  ;;  %v8427_v2 = vld [vmem:[%s9707_s30 + $0x254] sm:$0xf]  ;;  %v7050_v3 = vld [vmem:[%s9707_s30 + $0x258] sm:$0xf0] }
 0x280   : > { %6282 = vmatpush.bf16.msra.mxu0 %v8305_v35  ;;  %v7194_v35 = vld [vmem:[%s9707_s30 + $0x378] sm:$0xf0] }
 0x281   : > { %6295 = vmatpush.bf16.msra.mxu1 %v6773_v41  ;;  %v7069_v41 = vor.u32 %v8431_v11, %v7066_v12  ;;  %v7197_v51 = vor.u32 %v8463_v34, %v7194_v35  ;;  %v7053_v11 = vor.u32 %v8427_v2, %v7050_v3  ;;  %v8409_v12 = vld [vmem:[%s9707_s30 + $0x1c4] sm:$0xf]  ;;  %v7170_v34 = vld [vmem:[%s9707_s30 + $0x348] sm:$0xf0] }
 0x282   : > { %6308 = vmatpush.bf16.msra.mxu2 %v6837_v43  ;;  %v8413_v43 = vld [vmem:[%s9707_s30 + $0x1e4] sm:$0xf] }
 0x283   : > { %6321 = vmatpush.bf16.msra.mxu3 %v6901_v54  ;;  %v3939_v54 = vld [vmem:[#allocation1] sm:$0xff]  ;;  %v6997_v57 = vor.u32 %v8413_v43, %v6994_v47 }
 0x284   : > { %6283 = vmatpush.bf16.msra.mxu0 %v8297_v56  ;;  %v7186_v56 = vld [vmem:[%s9707_s30 + $0x368] sm:$0xf0]  ;;  %v7034_v47 = vld [vmem:[%s9707_s30 + $0x238] sm:$0xf0] }
 0x285   : > { %6296 = vmatpush.bf16.msra.mxu1 %v6765_v0  ;;  %v7125_v0 = vor.u32 %v8445_v52, %v7122_v53  ;;  %v7189_v46 = vor.u32 %v8461_v55, %v7186_v56  ;;  %v7098_v52 = vld [vmem:[%s9707_s30 + $0x2b8] sm:$0xf0]  ;;  %v8405_v56 = vld [vmem:[%s9707_s30 + $0x1a4] sm:$0xf] }
 0x286   : > { %6309 = vmatpush.bf16.msra.mxu2 %v6829_v1  ;;  %v6986_v1 = vld [vmem:[%s9707_s30 + $0x1d8] sm:$0xf0] }
 0x287   : > { %6322 = vmatpush.bf16.msra.mxu3 %v6893_v8  ;;  %v6989_v8 = vor.u32 %v8411_v63, %v6986_v1  ;;  %v7162_v53 = vld [vmem:[%s9707_s30 + $0x338] sm:$0xf0]  ;;  %v6962_v63 = vld [vmem:[%s9707_s30 + $0x1a8] sm:$0xf0] }
 0x288   : > { %6284 = vmatpush.bf16.msra.mxu0 %v8289_v16  ;;  %v6978_v16 = vld [vmem:[%s9707_s30 + $0x1c8] sm:$0xf0] }
 0x289   : > { %6297 = vmatpush.bf16.msra.mxu1 %v6757_v26  ;;  %v6078_v26 = vpop.f32.mrf.mxu0  ;;  %v6981_v39 = vor.u32 %v8409_v12, %v6978_v16  ;;  %v7026_v1 = vld [vmem:[%s9707_s30 + $0x228] sm:$0xf0]  ;;  %v6965_v12 = vor.u32 %v8405_v56, %v6962_v63  ;;  %v8403_v16 = vld [vmem:[%s9707_s30 + $0x194] sm:$0xf] }
 0x28a   : > { %6310 = vmatpush.bf16.msra.mxu2 %v6821_v33  ;;  %v8457_v33 = vld [vmem:[%s9707_s30 + $0x344] sm:$0xf]  ;;  %v6079_v35 = vadd.f32 %v6078_v26, %v10251_v50  ;;  %v8455_v50 = vld [vmem:[%s9707_s30 + $0x334] sm:$0xf] }
 0x28b   : > { %6323 = vmatpush.bf16.msra.mxu3 %v6885_v45  ;;  %6285 = vmatmul.bf16.vlgmr.msra.gmra.mxu0 %v3939_v54  ;;  %v8423_v45 = vld [vmem:[%s9707_s30 + $0x234] sm:$0xf]  ;;  %v7173_v49 = vor.u32 %v8457_v33, %v7170_v34  ;;  %v7165_v3 = vor.u32 %v8455_v50, %v7162_v53  ;;  %v7082_v34 = vld [vmem:[%s9707_s30 + $0x298] sm:$0xf0] }
 0x28c   : > { %6329 = vmatpush.bf16.msrb.mxu0 %v7005_v40  ;;  %6298 = vmatmul.bf16.vlgmr.msra.gmra.mxu1 %v9814_v37  ;;  %v8441_v37 = vld [vmem:[%s9707_s30 + $0x2c4] sm:$0xf]  ;;  %v6091_v40 = vpop.f32.mrf.mxu1  ;;  %v7037_v55 = vor.u32 %v8423_v45, %v7034_v47  ;;  %v8435_v33 = vld [vmem:[%s9707_s30 + $0x294] sm:$0xf]  ;;  %v7010_v47 = vld [vmem:[%s9707_s30 + $0x208] sm:$0xf0] }
 0x28d   : > { %6342 = vmatpush.bf16.msrb.mxu1 %v7069_v41  ;;  %6311 = vmatmul.bf16.vlgmr.msra.gmra.mxu2 %v9821_v42  ;;  %v7181_v42 = vor.u32 %v8459_v6, %v7178_v7  ;;  %v8407_v41 = vld [vmem:[%s9707_s30 + $0x1b4] sm:$0xf]  ;;  %v7109_v43 = vor.u32 %v8441_v37, %v7106_v23  ;;  %v6092_v48 = vadd.f32 %v6091_v40, %v6079_v35  ;;  %v8453_v6 = vld [vmem:[%s9707_s30 + $0x324] sm:$0xf]  ;;  %v7154_v7 = vld [vmem:[%s9707_s30 + $0x328] sm:$0xf0] }
 0x28e   : > { %6355 = vmatpush.bf16.msrb.mxu2 %v7133_v44  ;;  %6324 = vmatmul.bf16.vlgmr.msra.gmra.mxu3 %v9812_v36  ;;  %v7045_v36 = vor.u32 %v8425_v21, %v7042_v22  ;;  %v6970_v44 = vld [vmem:[%s9707_s30 + $0x1b8] sm:$0xf0]  ;;  %v8419_v37 = vld [vmem:[%s9707_s30 + $0x214] sm:$0xf]  ;;  %v7157_v26 = vor.u32 %v8453_v6, %v7154_v7  ;;  %v7085_v45 = vor.u32 %v8435_v33, %v7082_v34  ;;  %v7442_v33 = vld [vmem:[%s9707_s30 + $0x568] sm:$0xf0] }
 0x28f   : > { %6368 = vmatpush.bf16.msrb.mxu3 %v7197_v51  ;;  %v8439_v51 = vld [vmem:[%s9707_s30 + $0x2b4] sm:$0xf]  ;;  %v6973_v54 = vor.u32 %v8407_v41, %v6970_v44  ;;  %v7018_v23 = vld [vmem:[%s9707_s30 + $0x218] sm:$0xf0]  ;;  %v8401_v41 = vld [vmem:[%s9707_s30 + $0x184] sm:$0xf] }
 0x290   : > { %6330 = vmatpush.bf16.msrb.mxu0 %v6997_v57  ;;  %v7101_v57 = vor.u32 %v8439_v51, %v7098_v52  ;;  %v8451_v35 = vld [vmem:[%s9707_s30 + $0x314] sm:$0xf]  ;;  %v7021_v40 = vor.u32 %v8419_v37, %v7018_v23  ;;  %v8417_v44 = vld [vmem:[%s9707_s30 + $0x204] sm:$0xf]  ;;  %v7258_v53 = vld [vmem:[%s9707_s30 + $0x3f8] sm:$0xf0] }
 0x291   : > { %6343 = vmatpush.bf16.msrb.mxu1 %v7061_v62  ;;  %v6104_v62 = vpop.f32.mrf.mxu2  ;;  %v6117_v5 = vpop.f32.mrf.mxu3  ;;  %v8479_v50 = vld [vmem:[%s9707_s30 + $0x3f4] sm:$0xf] }
 0x292   : > { %6356 = vmatpush.bf16.msrb.mxu2 %v7125_v0  ;;  %v8421_v0 = vld [vmem:[%s9707_s30 + $0x224] sm:$0xf]  ;;  %v6105_v2 = vadd.f32 %v6104_v62, %v6092_v48  ;;  %v8511_v56 = vld [vmem:[%s9707_s30 + $0x4f4] sm:$0xf] }
 0x293   : > { %6369 = vmatpush.bf16.msrb.mxu3 %v7189_v46  ;;  %v8437_v46 = vld [vmem:[%s9707_s30 + $0x2a4] sm:$0xf] }
 0x294   : > { %6331 = vmatpush.bf16.msrb.mxu0 %v6989_v8  ;;  %v6080_v8 = vpop.f32.mrf.mxu0  ;;  %v6093_v21 = vpop.f32.mrf.mxu1  ;;  %v7093_v22 = vor.u32 %v8437_v46, %v7090_v4  ;;  %v8433_v48 = vld [vmem:[%s9707_s30 + $0x284] sm:$0xf]  ;;  %v7261_v46 = vor.u32 %v8479_v50, %v7258_v53  ;;  %v8527_v4 = vld [vmem:[%s9707_s30 + $0x574] sm:$0xf]  ;;  %v7234_v50 = vld [vmem:[%s9707_s30 + $0x3c8] sm:$0xf0] }
 0x295   : > { %6344 = vmatpush.bf16.msrb.mxu1 %v7053_v11  ;;  %v10318_v11 = vadd.f32 %v6117_v5, %v6105_v2  ;;  %v7138_v2 = vld [vmem:[%s9707_s30 + $0x308] sm:$0xf0]  ;;  %v7450_v5 = vld [vmem:[%s9707_s30 + $0x578] sm:$0xf0]  ;;  %v8477_v8 = vld [vmem:[%s9707_s30 + $0x3e4] sm:$0xf] }
 0x296   : > { %6357 = vmatpush.bf16.msrb.mxu2 %v7117_v14  ;;  %v7029_v14 = vor.u32 %v8421_v0, %v7026_v1  ;;  %v7013_v0 = vor.u32 %v8417_v44, %v7010_v47  ;;  %v8449_v1 = vld [vmem:[%s9707_s30 + $0x304] sm:$0xf]  ;;  %v7314_v21 = vld [vmem:[%s9707_s30 + $0x468] sm:$0xf0]  ;;  %v7453_v37 = vor.u32 %v8527_v4, %v7450_v5  ;;  %v7370_v44 = vld [vmem:[%s9707_s30 + $0x4d8] sm:$0xf0] }
 0x297   : > { %6370 = vmatpush.bf16.msrb.mxu3 %v7181_v42  ;;  %v6954_v42 = vld [vmem:[%s9707_s30 + $0x198] sm:$0xf0]  ;;  %v8489_v53 = vld [vmem:[%s9707_s30 + $0x444] sm:$0xf]  ;;  %v8487_v4 = vld [vmem:[%s9707_s30 + $0x434] sm:$0xf] }
 0x298   : > { %6332 = vmatpush.bf16.msrb.mxu0 %v6981_v39  ;;  %v7146_v39 = vld [vmem:[%s9707_s30 + $0x318] sm:$0xf0] }
 0x299   : > { %6345 = vmatpush.bf16.msrb.mxu1 %v7045_v36  ;;  %v6957_v36 = vor.u32 %v8403_v16, %v6954_v42  ;;  %v6106_v51 = vpop.f32.mrf.mxu2  ;;  %v7149_v52 = vor.u32 %v8451_v35, %v7146_v39  ;;  %v6119_v62 = vpop.f32.mrf.mxu3  ;;  %v7141_v16 = vor.u32 %v8449_v1, %v7138_v2  ;;  %v7378_v42 = vld [vmem:[%s9707_s30 + $0x4e8] sm:$0xf0]  ;;  %v8475_v39 = vld [vmem:[%s9707_s30 + $0x3d4] sm:$0xf]  ;;  %v7290_v5 = vld [vmem:[%s9707_s30 + $0x438] sm:$0xf0] }
 0x29a   : > { %6358 = vmatpush.bf16.msrb.mxu2 %v7109_v43  ;;  %v6946_v43 = vld [vmem:[%s9707_s30 + $0x188] sm:$0xf0]  ;;  %v8521_v62 = vld [vmem:[%s9707_s30 + $0x544] sm:$0xf] }
 0x29b   : > { %6371 = vmatpush.bf16.msrb.mxu3 %v7173_v49  ;;  %v7074_v49 = vld [vmem:[%s9707_s30 + $0x288] sm:$0xf0]  ;;  %v6949_v63 = vor.u32 %v8401_v41, %v6946_v43  ;;  %v7306_v41 = vld [vmem:[%s9707_s30 + $0x458] sm:$0xf0]  ;;  %v8507_v43 = vld [vmem:[%s9707_s30 + $0x4d4] sm:$0xf] }
 0x29c   : > { %6333 = vmatpush.bf16.msrb.mxu0 %v6973_v54  ;;  %v8495_v54 = vld [vmem:[%s9707_s30 + $0x474] sm:$0xf]  ;;  %v7373_v51 = vor.u32 %v8507_v43, %v7370_v44  ;;  %v8517_v43 = vld [vmem:[%s9707_s30 + $0x524] sm:$0xf]  ;;  %v7410_v44 = vld [vmem:[%s9707_s30 + $0x528] sm:$0xf0] }
 0x29d   : > { %6346 = vmatpush.bf16.msrb.mxu1 %v7037_v55  ;;  %v7322_v55 = vld [vmem:[%s9707_s30 + $0x478] sm:$0xf0] }
 0x29e   : > { %6359 = vmatpush.bf16.msrb.mxu2 %v7101_v57  ;;  %v7386_v57 = vld [vmem:[%s9707_s30 + $0x4f8] sm:$0xf0]  ;;  %v7325_v6 = vor.u32 %v8495_v54, %v7322_v55  ;;  %v8505_v54 = vld [vmem:[%s9707_s30 + $0x4c4] sm:$0xf]  ;;  %v7362_v55 = vld [vmem:[%s9707_s30 + $0x4c8] sm:$0xf0] }
 0x29f   : > { %6372 = vmatpush.bf16.msrb.mxu3 %v7165_v3  ;;  %v7077_v3 = vor.u32 %v8433_v48, %v7074_v49  ;;  %v7389_v7 = vor.u32 %v8511_v56, %v7386_v57  ;;  %v8523_v48 = vld [vmem:[%s9707_s30 + $0x554] sm:$0xf]  ;;  %v7434_v49 = vld [vmem:[%s9707_s30 + $0x558] sm:$0xf0]  ;;  %v7365_v1 = vor.u32 %v8505_v54, %v7362_v55  ;;  %v7413_v55 = vor.u32 %v8517_v43, %v7410_v44  ;;  %v8557_v43 = vld [vmem:[%s9707_s30 + $0x664] sm:$0xf] }
 0x2a0   : > { %6334 = vmatpush.bf16.msrb.mxu0 %v6965_v12  ;;  %v7250_v12 = vld [vmem:[%s9707_s30 + $0x3e8] sm:$0xf0]  ;;  %v7338_v54 = vld [vmem:[%s9707_s30 + $0x498] sm:$0xf0] }
 0x2a1   : > { %6347 = vmatpush.bf16.msrb.mxu1 %v7029_v14  ;;  %v8493_v14 = vld [vmem:[%s9707_s30 + $0x464] sm:$0xf]  ;;  %v7253_v23 = vor.u32 %v8477_v8, %v7250_v12  ;;  %v7570_v44 = vld [vmem:[%s9707_s30 + $0x668] sm:$0xf0] }
 0x2a2   : > { %6360 = vmatpush.bf16.msrb.mxu2 %v7093_v22  ;;  %v8509_v22 = vld [vmem:[%s9707_s30 + $0x4e4] sm:$0xf]  ;;  %v7317_v34 = vor.u32 %v8493_v14, %v7314_v21  ;;  %v8519_v14 = vld [vmem:[%s9707_s30 + $0x534] sm:$0xf]  ;;  %v7293_v21 = vor.u32 %v8487_v4, %v7290_v5  ;;  %v7514_v5 = vld [vmem:[%s9707_s30 + $0x5f8] sm:$0xf0] }
 0x2a3   : > { %6373 = vmatpush.bf16.msrb.mxu3 %v7157_v26  ;;  %v8525_v26 = vld [vmem:[%s9707_s30 + $0x564] sm:$0xf]  ;;  %v7381_v35 = vor.u32 %v8509_v22, %v7378_v42  ;;  %v8543_v4 = vld [vmem:[%s9707_s30 + $0x5f4] sm:$0xf] }
 0x2a4   : > { %6335 = vmatpush.bf16.msrb.mxu0 %v6957_v36  ;;  %v7242_v36 = vld [vmem:[%s9707_s30 + $0x3d8] sm:$0xf0]  ;;  %v8469_v42 = vld [vmem:[%s9707_s30 + $0x3a4] sm:$0xf] }
 0x2a5   : > { %6348 = vmatpush.bf16.msrb.mxu1 %v7021_v40  ;;  %v8491_v40 = vld [vmem:[%s9707_s30 + $0x454] sm:$0xf]  ;;  %v7245_v47 = vor.u32 %v8475_v39, %v7242_v36 }
 0x2a6   : > { %6361 = vmatpush.bf16.msrb.mxu2 %v7085_v45  ;;  %v7445_v45 = vor.u32 %v8525_v26, %v7442_v33  ;;  %v7282_v33 = vld [vmem:[%s9707_s30 + $0x428] sm:$0xf0] }
 0x2a7   : > { %6374 = vmatpush.bf16.msrb.mxu3 %v7149_v52  ;;  %v8473_v52 = vld [vmem:[%s9707_s30 + $0x3c4] sm:$0xf] }
 0x2a8   : > { %6336 = vmatpush.bf16.msrb.mxu0 %v6949_v63  ;;  %v6130_v56 = vpop.f32.mrf.mxu0  ;;  %v7237_v57 = vor.u32 %v8473_v52, %v7234_v50  ;;  %v7426_v63 = vld [vmem:[%s9707_s30 + $0x548] sm:$0xf0]  ;;  %v8483_v52 = vld [vmem:[%s9707_s30 + $0x414] sm:$0xf] }
 0x2a9   : > { %6349 = vmatpush.bf16.msrb.mxu1 %v7013_v0  ;;  %v6143_v2 = vpop.f32.mrf.mxu1  ;;  %v7429_v12 = vor.u32 %v8521_v62, %v7426_v63  ;;  %v8465_v62 = vld [vmem:[%s9707_s30 + $0x384] sm:$0xf]  ;;  %v7202_v63 = vld [vmem:[%s9707_s30 + $0x388] sm:$0xf0] }
 0x2aa   : > { %6362 = vmatpush.bf16.msrb.mxu2 %v7077_v3  ;;  %v8471_v3 = vld [vmem:[%s9707_s30 + $0x3b4] sm:$0xf] }
 0x2ab   : > { %6375 = vmatpush.bf16.msrb.mxu3 %v7141_v16  ;;  %6337 = vmatmul.bf16.vlgmr.msrb.gmra.mxu0 %v9816_v38  ;;  %v7309_v38 = vor.u32 %v8491_v40, %v7306_v41  ;;  %v7418_v16 = vld [vmem:[%s9707_s30 + $0x538] sm:$0xf0] }
 0x2ac   : > { %6381 = vmatpush.bf16.msra.mxu0 %v7261_v46  ;;  %6350 = vmatmul.bf16.vlgmr.msrb.gmra.mxu1 %v9850_v10  ;;  %v7437_v10 = vor.u32 %v8523_v48, %v7434_v49  ;;  %v7226_v46 = vld [vmem:[%s9707_s30 + $0x3b8] sm:$0xf0]  ;;  %v7421_v36 = vor.u32 %v8519_v14, %v7418_v16  ;;  %v7205_v14 = vor.u32 %v8465_v62, %v7202_v63 }
 0x2ad   : > { %6394 = vmatpush.bf16.msra.mxu1 %v7325_v6  ;;  %6363 = vmatmul.bf16.vlgmr.msrb.gmra.mxu2 %v9857_v15  ;;  %v7298_v15 = vld [vmem:[%s9707_s30 + $0x448] sm:$0xf0]  ;;  %v8503_v6 = vld [vmem:[%s9707_s30 + $0x4b4] sm:$0xf]  ;;  %v7642_v16 = vld [vmem:[%s9707_s30 + $0x6f8] sm:$0xf0] }
 0x2ae   : > { %6407 = vmatpush.bf16.msra.mxu2 %v7389_v7  ;;  %6376 = vmatmul.bf16.vlgmr.msrb.gmra.mxu3 %v9848_v9  ;;  %v6131_v9 = vadd.f32 %v6130_v56, %v10318_v11  ;;  %v7301_v0 = vor.u32 %v8489_v53, %v7298_v15  ;;  %v7354_v7 = vld [vmem:[%s9707_s30 + $0x4b8] sm:$0xf0]  ;;  %v7229_v11 = vor.u32 %v8471_v3, %v7226_v46  ;;  %v8499_v15 = vld [vmem:[%s9707_s30 + $0x494] sm:$0xf]  ;;  %v8497_v3 = vld [vmem:[%s9707_s30 + $0x484] sm:$0xf] }
 0x2af   : > { %6420 = vmatpush.bf16.msra.mxu3 %v7453_v37  ;;  %v7357_v22 = vor.u32 %v8503_v6, %v7354_v7  ;;  %v7218_v37 = vld [vmem:[%s9707_s30 + $0x3a8] sm:$0xf0]  ;;  %v7274_v53 = vld [vmem:[%s9707_s30 + $0x418] sm:$0xf0] }
 0x2b0   : > { %6382 = vmatpush.bf16.msra.mxu0 %v7253_v23  ;;  %v6144_v8 = vadd.f32 %v6143_v2, %v6131_v9  ;;  %v8485_v23 = vld [vmem:[%s9707_s30 + $0x424] sm:$0xf]  ;;  %v6156_v26 = vpop.f32.mrf.mxu2  ;;  %v7221_v41 = vor.u32 %v8469_v42, %v7218_v37  ;;  %v7277_v9 = vor.u32 %v8483_v52, %v7274_v53  ;;  %v7266_v2 = vld [vmem:[%s9707_s30 + $0x408] sm:$0xf0] }
 0x2b1   : > { %6395 = vmatpush.bf16.msra.mxu1 %v7317_v34  ;;  %v8501_v34 = vld [vmem:[%s9707_s30 + $0x4a4] sm:$0xf]  ;;  %v6169_v40 = vpop.f32.mrf.mxu3  ;;  %v7285_v48 = vor.u32 %v8485_v23, %v7282_v33  ;;  %v6145_v50 = vpop.f32.mrf.mxu1  ;;  %v7330_v46 = vld [vmem:[%s9707_s30 + $0x488] sm:$0xf0] }
 0x2b2   : > { %6408 = vmatpush.bf16.msra.mxu2 %v7381_v35  ;;  %v7346_v35 = vld [vmem:[%s9707_s30 + $0x4a8] sm:$0xf0]  ;;  %v6157_v39 = vadd.f32 %v6156_v26, %v6144_v8  ;;  %v8559_v8 = vld [vmem:[%s9707_s30 + $0x674] sm:$0xf]  ;;  %v7333_v23 = vor.u32 %v8497_v3, %v7330_v46  ;;  %v7517_v26 = vor.u32 %v8543_v4, %v7514_v5  ;;  %v7573_v50 = vor.u32 %v8557_v43, %v7570_v44  ;;  %v8553_v3 = vld [vmem:[%s9707_s30 + $0x644] sm:$0xf] }
 0x2b3   : > { %6421 = vmatpush.bf16.msra.mxu3 %v7445_v45  ;;  %v6132_v45 = vpop.f32.mrf.mxu0  ;;  %v7349_v49 = vor.u32 %v8501_v34, %v7346_v35  ;;  %v8591_v34 = vld [vmem:[%s9707_s30 + $0x774] sm:$0xf]  ;;  %v7706_v35 = vld [vmem:[%s9707_s30 + $0x778] sm:$0xf0]  ;;  %v7698_v52 = vld [vmem:[%s9707_s30 + $0x768] sm:$0xf0] }
 0x2b4   : > { %6383 = vmatpush.bf16.msra.mxu0 %v7245_v47  ;;  %v10389_v47 = vadd.f32 %v6169_v40, %v6157_v39  ;;  %v8541_v40 = vld [vmem:[%s9707_s30 + $0x5e4] sm:$0xf]  ;;  %v7554_v46 = vld [vmem:[%s9707_s30 + $0x648] sm:$0xf0] }
 0x2b5   : > { %6396 = vmatpush.bf16.msra.mxu1 %v7309_v38  ;;  %v8467_v38 = vld [vmem:[%s9707_s30 + $0x394] sm:$0xf]  ;;  %v8573_v45 = vld [vmem:[%s9707_s30 + $0x6e4] sm:$0xf]  ;;  %v7618_v4 = vld [vmem:[%s9707_s30 + $0x6c8] sm:$0xf0] }
 0x2b6   : > { %6409 = vmatpush.bf16.msra.mxu2 %v7373_v51  ;;  %v7210_v51 = vld [vmem:[%s9707_s30 + $0x398] sm:$0xf0]  ;;  %v7474_v43 = vld [vmem:[%s9707_s30 + $0x5a8] sm:$0xf0]  ;;  %v8549_v44 = vld [vmem:[%s9707_s30 + $0x624] sm:$0xf] }
 0x2b7   : > { %6422 = vmatpush.bf16.msra.mxu3 %v7437_v10  ;;  %v8515_v10 = vld [vmem:[%s9707_s30 + $0x514] sm:$0xf]  ;;  %v7213_v56 = vor.u32 %v8467_v38, %v7210_v51  ;;  %v8589_v51 = vld [vmem:[%s9707_s30 + $0x764] sm:$0xf] }
 0x2b8   : > { %6384 = vmatpush.bf16.msra.mxu0 %v7237_v57  ;;  %v7402_v57 = vld [vmem:[%s9707_s30 + $0x518] sm:$0xf0]  ;;  %v6158_v6 = vpop.f32.mrf.mxu2  ;;  %v7701_v62 = vor.u32 %v8589_v51, %v7698_v52 }
 0x2b9   : > { %6397 = vmatpush.bf16.msra.mxu1 %v7301_v0  ;;  %v7341_v0 = vor.u32 %v8499_v15, %v7338_v54  ;;  %v7405_v7 = vor.u32 %v8515_v10, %v7402_v57  ;;  %v6171_v42 = vpop.f32.mrf.mxu3  ;;  %v8539_v15 = vld [vmem:[%s9707_s30 + $0x5d4] sm:$0xf]  ;;  %v7498_v54 = vld [vmem:[%s9707_s30 + $0x5d8] sm:$0xf0] }
 0x2ba   : > { %6410 = vmatpush.bf16.msra.mxu2 %v7365_v1  ;;  %v8481_v1 = vld [vmem:[%s9707_s30 + $0x404] sm:$0xf]  ;;  %v7562_v10 = vld [vmem:[%s9707_s30 + $0x658] sm:$0xf0]  ;;  %v7501_v63 = vor.u32 %v8539_v15, %v7498_v54  ;;  %v8551_v42 = vld [vmem:[%s9707_s30 + $0x634] sm:$0xf] }
 0x2bb   : > { %6423 = vmatpush.bf16.msra.mxu3 %v7429_v12  ;;  %v7578_v12 = vld [vmem:[%s9707_s30 + $0x678] sm:$0xf0]  ;;  %v7269_v37 = vor.u32 %v8481_v1, %v7266_v2  ;;  %v8537_v1 = vld [vmem:[%s9707_s30 + $0x5c4] sm:$0xf]  ;;  %v7490_v2 = vld [vmem:[%s9707_s30 + $0x5c8] sm:$0xf0] }
 0x2bc   : > { %6385 = vmatpush.bf16.msra.mxu0 %v7229_v11  ;;  %v8575_v11 = vld [vmem:[%s9707_s30 + $0x6f4] sm:$0xf]  ;;  %v7581_v33 = vor.u32 %v8559_v8, %v7578_v12  ;;  %v7626_v57 = vld [vmem:[%s9707_s30 + $0x6d8] sm:$0xf0]  ;;  %v7493_v6 = vor.u32 %v8537_v1, %v7490_v2  ;;  %v7682_v8 = vld [vmem:[%s9707_s30 + $0x748] sm:$0xf0] }
 0x2bd   : > { %6398 = vmatpush.bf16.msra.mxu1 %v7293_v21  ;;  %v8513_v21 = vld [vmem:[%s9707_s30 + $0x504] sm:$0xf]  ;;  %v7645_v39 = vor.u32 %v8575_v11, %v7642_v16  ;;  %v7557_v11 = vor.u32 %v8553_v3, %v7554_v46  ;;  %v7666_v54 = vld [vmem:[%s9707_s30 + $0x728] sm:$0xf0]  ;;  %v7594_v1 = vld [vmem:[%s9707_s30 + $0x698] sm:$0xf0] }
 0x2be   : > { %6411 = vmatpush.bf16.msra.mxu2 %v7357_v22  ;;  %v7394_v22 = vld [vmem:[%s9707_s30 + $0x508] sm:$0xf0]  ;;  %v8581_v15 = vld [vmem:[%s9707_s30 + $0x724] sm:$0xf]  ;;  %v8579_v3 = vld [vmem:[%s9707_s30 + $0x714] sm:$0xf] }
 0x2bf   : > { %6424 = vmatpush.bf16.msra.mxu3 %v7421_v36  ;;  %v7397_v36 = vor.u32 %v8513_v21, %v7394_v22  ;;  %v8535_v21 = vld [vmem:[%s9707_s30 + $0x5b4] sm:$0xf]  ;;  %v7482_v22 = vld [vmem:[%s9707_s30 + $0x5b8] sm:$0xf0]  ;;  %v7669_v2 = vor.u32 %v8581_v15, %v7666_v54 }
 0x2c0   : > { %6386 = vmatpush.bf16.msra.mxu0 %v7221_v41  ;;  %v7506_v41 = vld [vmem:[%s9707_s30 + $0x5e8] sm:$0xf0] }
 0x2c1   : > { %6399 = vmatpush.bf16.msra.mxu1 %v7285_v48  ;;  %v7634_v48 = vld [vmem:[%s9707_s30 + $0x6e8] sm:$0xf0]  ;;  %v7509_v38 = vor.u32 %v8541_v40, %v7506_v41  ;;  %v8533_v41 = vld [vmem:[%s9707_s30 + $0x5a4] sm:$0xf] }
 0x2c2   : > { %6412 = vmatpush.bf16.msra.mxu2 %v7349_v49  ;;  %v7709_v49 = vor.u32 %v8591_v34, %v7706_v35  ;;  %v7637_v53 = vor.u32 %v8573_v45, %v7634_v48  ;;  %v8583_v35 = vld [vmem:[%s9707_s30 + $0x734] sm:$0xf]  ;;  %v7538_v48 = vld [vmem:[%s9707_s30 + $0x628] sm:$0xf0] }
 0x2c3   : > { %6425 = vmatpush.bf16.msra.mxu3 %v7413_v55  ;;  %v8555_v55 = vld [vmem:[%s9707_s30 + $0x654] sm:$0xf] }
 0x2c4   : > { %6387 = vmatpush.bf16.msra.mxu0 %v7213_v56  ;;  %v8571_v56 = vld [vmem:[%s9707_s30 + $0x6d4] sm:$0xf] }
 0x2c5   : > { %6400 = vmatpush.bf16.msra.mxu1 %v7277_v9  ;;  %v7690_v9 = vld [vmem:[%s9707_s30 + $0x758] sm:$0xf0] }
 0x2c6   : > { %6413 = vmatpush.bf16.msra.mxu2 %v7341_v0  ;;  %v7629_v0 = vor.u32 %v8571_v56, %v7626_v57  ;;  %v7541_v56 = vor.u32 %v8549_v44, %v7538_v48  ;;  %v7962_v44 = vld [vmem:[%s9707_s30 + $0x978] sm:$0xf0] }
 0x2c7   : > { %6426 = vmatpush.bf16.msra.mxu3 %v7405_v7  ;;  %v8585_v7 = vld [vmem:[%s9707_s30 + $0x744] sm:$0xf] }
 0x2c8   : > { %6388 = vmatpush.bf16.msra.mxu0 %v7205_v14  ;;  %v6182_v5 = vpop.f32.mrf.mxu0  ;;  %v7685_v34 = vor.u32 %v8585_v7, %v7682_v8  ;;  %v8545_v7 = vld [vmem:[%s9707_s30 + $0x604] sm:$0xf]  ;;  %v7522_v8 = vld [vmem:[%s9707_s30 + $0x608] sm:$0xf0] }
 0x2c9   : > { %6401 = vmatpush.bf16.msra.mxu1 %v7269_v37  ;;  %v6183_v12 = vadd.f32 %v6182_v5, %v10389_v47  ;;  %v6195_v16 = vpop.f32.mrf.mxu1  ;;  %v7546_v37 = vld [vmem:[%s9707_s30 + $0x638] sm:$0xf0]  ;;  %v7485_v47 = vor.u32 %v8535_v21, %v7482_v22 }
 0x2ca   : > { %6414 = vmatpush.bf16.msra.mxu2 %v7333_v23  ;;  %v8567_v23 = vld [vmem:[%s9707_s30 + $0x6b4] sm:$0xf] }
 0x2cb   : > { %6427 = vmatpush.bf16.msra.mxu3 %v7397_v36  ;;  %6389 = vmatmul.bf16.vlgmr.msra.gmra.mxu0 %v9852_v13  ;;  %v8587_v13 = vld [vmem:[%s9707_s30 + $0x754] sm:$0xf]  ;;  %v7549_v36 = vor.u32 %v8551_v42, %v7546_v37  ;;  %v7834_v37 = vld [vmem:[%s9707_s30 + $0x878] sm:$0xf0] }
 0x2cc   : > { %6433 = vmatpush.bf16.msrb.mxu0 %v7517_v26  ;;  %6402 = vmatmul.bf16.vlgmr.msra.gmra.mxu1 %v9945_v27  ;;  %v8569_v27 = vld [vmem:[%s9707_s30 + $0x6c4] sm:$0xf]  ;;  %v7610_v26 = vld [vmem:[%s9707_s30 + $0x6b8] sm:$0xf0]  ;;  %v8623_v42 = vld [vmem:[%s9707_s30 + $0x874] sm:$0xf] }
 0x2cd   : > { %6446 = vmatpush.bf16.msrb.mxu1 %v7581_v33  ;;  %6415 = vmatmul.bf16.vlgmr.msra.gmra.mxu2 %v9949_v30  ;;  %v7565_v30 = vor.u32 %v8555_v55, %v7562_v10  ;;  %v7621_v14 = vor.u32 %v8569_v27, %v7618_v4  ;;  %v6196_v33 = vadd.f32 %v6195_v16, %v6183_v12  ;;  %v7658_v27 = vld [vmem:[%s9707_s30 + $0x718] sm:$0xf0]  ;;  %v8529_v4 = vld [vmem:[%s9707_s30 + $0x584] sm:$0xf] }
 0x2ce   : > { %6459 = vmatpush.bf16.msrb.mxu2 %v7645_v39  ;;  %6428 = vmatmul.bf16.vlgmr.msra.gmra.mxu3 %v9947_v28  ;;  %v7693_v28 = vor.u32 %v8587_v13, %v7690_v9  ;;  %v7674_v39 = vld [vmem:[%s9707_s30 + $0x738] sm:$0xf0]  ;;  %v7613_v40 = vor.u32 %v8567_v23, %v7610_v26  ;;  %v8547_v13 = vld [vmem:[%s9707_s30 + $0x614] sm:$0xf]  ;;  %v8561_v12 = vld [vmem:[%s9707_s30 + $0x684] sm:$0xf]  ;;  %v7661_v22 = vor.u32 %v8579_v3, %v7658_v27 }
 0x2cf   : > { %6472 = vmatpush.bf16.msrb.mxu3 %v7709_v49  ;;  %v8565_v49 = vld [vmem:[%s9707_s30 + $0x6a4] sm:$0xf]  ;;  %v7677_v52 = vor.u32 %v8583_v35, %v7674_v39  ;;  %v7770_v16 = vld [vmem:[%s9707_s30 + $0x7f8] sm:$0xf0]  ;;  %v8639_v23 = vld [vmem:[%s9707_s30 + $0x8f4] sm:$0xf]  ;;  %v7525_v39 = vor.u32 %v8545_v7, %v7522_v8 }
 0x2d0   : > { %6434 = vmatpush.bf16.msrb.mxu0 %v7509_v38  ;;  %v6208_v45 = vpop.f32.mrf.mxu2  ;;  %v7602_v38 = vld [vmem:[%s9707_s30 + $0x6a8] sm:$0xf0]  ;;  %v6184_v55 = vpop.f32.mrf.mxu0 }
 0x2d1   : > { %6447 = vmatpush.bf16.msrb.mxu1 %v7573_v50  ;;  %v6209_v51 = vadd.f32 %v6208_v45, %v6196_v33  ;;  %v6221_v50 = vpop.f32.mrf.mxu3  ;;  %v7605_v57 = vor.u32 %v8565_v49, %v7602_v38  ;;  %v6197_v9 = vpop.f32.mrf.mxu1  ;;  %v7898_v33 = vld [vmem:[%s9707_s30 + $0x8f8] sm:$0xf0]  ;;  %v8605_v49 = vld [vmem:[%s9707_s30 + $0x7e4] sm:$0xf]  ;;  %v7762_v38 = vld [vmem:[%s9707_s30 + $0x7e8] sm:$0xf0] }
 0x2d2   : > { %6460 = vmatpush.bf16.msrb.mxu2 %v7637_v53  ;;  %v7477_v53 = vor.u32 %v8533_v41, %v7474_v43  ;;  %v7837_v41 = vor.u32 %v8623_v42, %v7834_v37  ;;  %v8655_v43 = vld [vmem:[%s9707_s30 + $0x974] sm:$0xf]  ;;  %v7901_v45 = vor.u32 %v8639_v23, %v7898_v33  ;;  %v7765_v54 = vor.u32 %v8605_v49, %v7762_v38  ;;  %v8653_v55 = vld [vmem:[%s9707_s30 + $0x964] sm:$0xf]  ;;  %v7874_v7 = vld [vmem:[%s9707_s30 + $0x8c8] sm:$0xf0] }
 0x2d3   : > { %6473 = vmatpush.bf16.msrb.mxu3 %v7701_v62  ;;  %v10460_v10 = vadd.f32 %v6221_v50, %v6209_v51  ;;  %v8531_v62 = vld [vmem:[%s9707_s30 + $0x594] sm:$0xf]  ;;  %v8621_v51 = vld [vmem:[%s9707_s30 + $0x864] sm:$0xf]  ;;  %v7965_v15 = vor.u32 %v8655_v43, %v7962_v44  ;;  %v7738_v23 = vld [vmem:[%s9707_s30 + $0x7b8] sm:$0xf0] }
 0x2d4   : > { %6435 = vmatpush.bf16.msrb.mxu0 %v7501_v63  ;;  %v7466_v63 = vld [vmem:[%s9707_s30 + $0x598] sm:$0xf0]  ;;  %v8637_v50 = vld [vmem:[%s9707_s30 + $0x8e4] sm:$0xf]  ;;  %v8619_v9 = vld [vmem:[%s9707_s30 + $0x854] sm:$0xf] }
 0x2d5   : > { %6448 = vmatpush.bf16.msrb.mxu1 %v7565_v30  ;;  %v7530_v30 = vld [vmem:[%s9707_s30 + $0x618] sm:$0xf0]  ;;  %v7469_v46 = vor.u32 %v8531_v62, %v7466_v63  ;;  %v8603_v63 = vld [vmem:[%s9707_s30 + $0x7d4] sm:$0xf]  ;;  %v8597_v44 = vld [vmem:[%s9707_s30 + $0x7a4] sm:$0xf] }
 0x2d6   : > { %6461 = vmatpush.bf16.msrb.mxu2 %v7629_v0  ;;  %v8563_v0 = vld [vmem:[%s9707_s30 + $0x694] sm:$0xf]  ;;  %v7533_v5 = vor.u32 %v8547_v13, %v7530_v30  ;;  %v7754_v13 = vld [vmem:[%s9707_s30 + $0x7d8] sm:$0xf0]  ;;  %v7794_v38 = vld [vmem:[%s9707_s30 + $0x828] sm:$0xf0] }
 0x2d7   : > { %6474 = vmatpush.bf16.msrb.mxu3 %v7693_v28  ;;  %v7458_v28 = vld [vmem:[%s9707_s30 + $0x588] sm:$0xf0]  ;;  %v7818_v30 = vld [vmem:[%s9707_s30 + $0x858] sm:$0xf0]  ;;  %v7757_v3 = vor.u32 %v8603_v63, %v7754_v13  ;;  %v8599_v37 = vld [vmem:[%s9707_s30 + $0x7b4] sm:$0xf] }
 0x2d8   : > { %6436 = vmatpush.bf16.msrb.mxu0 %v7493_v6  ;;  %v7597_v6 = vor.u32 %v8563_v0, %v7594_v1  ;;  %v6210_v21 = vpop.f32.mrf.mxu2  ;;  %v7461_v26 = vor.u32 %v8529_v4, %v7458_v28  ;;  %v8635_v0 = vld [vmem:[%s9707_s30 + $0x8d4] sm:$0xf]  ;;  %v7882_v1 = vld [vmem:[%s9707_s30 + $0x8d8] sm:$0xf0]  ;;  %v8601_v4 = vld [vmem:[%s9707_s30 + $0x7c4] sm:$0xf] }
 0x2d9   : > { %6449 = vmatpush.bf16.msrb.mxu1 %v7557_v11  ;;  %v7586_v11 = vld [vmem:[%s9707_s30 + $0x688] sm:$0xf0]  ;;  %v6223_v35 = vpop.f32.mrf.mxu3  ;;  %v7885_v27 = vor.u32 %v8635_v0, %v7882_v1  ;;  %v7802_v33 = vld [vmem:[%s9707_s30 + $0x838] sm:$0xf0]  ;;  %v8611_v0 = vld [vmem:[%s9707_s30 + $0x814] sm:$0xf] }
 0x2da   : > { %6462 = vmatpush.bf16.msrb.mxu2 %v7621_v14  ;;  %v8607_v14 = vld [vmem:[%s9707_s30 + $0x7f4] sm:$0xf]  ;;  %v7746_v28 = vld [vmem:[%s9707_s30 + $0x7c8] sm:$0xf0] }
 0x2db   : > { %6475 = vmatpush.bf16.msrb.mxu3 %v7685_v34  ;;  %v8577_v34 = vld [vmem:[%s9707_s30 + $0x704] sm:$0xf] }
 0x2dc   : > { %6437 = vmatpush.bf16.msrb.mxu0 %v7485_v47  ;;  %v7650_v47 = vld [vmem:[%s9707_s30 + $0x708] sm:$0xf0] }
 0x2dd   : > { %6450 = vmatpush.bf16.msrb.mxu1 %v7549_v36  ;;  %v7589_v36 = vor.u32 %v8561_v12, %v7586_v11  ;;  %v7653_v48 = vor.u32 %v8577_v34, %v7650_v47  ;;  %v7749_v12 = vor.u32 %v8601_v4, %v7746_v28  ;;  %v8649_v11 = vld [vmem:[%s9707_s30 + $0x944] sm:$0xf]  ;;  %v8631_v34 = vld [vmem:[%s9707_s30 + $0x8b4] sm:$0xf]  ;;  %v7866_v47 = vld [vmem:[%s9707_s30 + $0x8b8] sm:$0xf0] }
 0x2de   : > { %6463 = vmatpush.bf16.msrb.mxu2 %v7613_v40  ;;  %v7773_v40 = vor.u32 %v8607_v14, %v7770_v16  ;;  %v7938_v14 = vld [vmem:[%s9707_s30 + $0x948] sm:$0xf0]  ;;  %v7869_v43 = vor.u32 %v8631_v34, %v7866_v47  ;;  %v7914_v4 = vld [vmem:[%s9707_s30 + $0x918] sm:$0xf0]  ;;  %v8593_v28 = vld [vmem:[%s9707_s30 + $0x784] sm:$0xf] }
 0x2df   : > { %6476 = vmatpush.bf16.msrb.mxu3 %v7677_v52  ;;  %v7826_v52 = vld [vmem:[%s9707_s30 + $0x868] sm:$0xf0] }
 0x2e0   : > { %6438 = vmatpush.bf16.msrb.mxu0 %v7477_v53  ;;  %v7890_v53 = vld [vmem:[%s9707_s30 + $0x8e8] sm:$0xf0] }
 0x2e1   : > { %6451 = vmatpush.bf16.msrb.mxu1 %v7541_v56  ;;  %v7954_v56 = vld [vmem:[%s9707_s30 + $0x968] sm:$0xf0]  ;;  %v7893_v62 = vor.u32 %v8637_v50, %v7890_v53 }
 0x2e2   : > { %6464 = vmatpush.bf16.msrb.mxu2 %v7605_v57  ;;  %v7829_v57 = vor.u32 %v8621_v51, %v7826_v52  ;;  %v8629_v51 = vld [vmem:[%s9707_s30 + $0x8a4] sm:$0xf]  ;;  %v7858_v52 = vld [vmem:[%s9707_s30 + $0x8a8] sm:$0xf0] }
 0x2e3   : > { %6477 = vmatpush.bf16.msrb.mxu3 %v7669_v2  ;;  %v7957_v2 = vor.u32 %v8653_v55, %v7954_v56  ;;  %v8645_v55 = vld [vmem:[%s9707_s30 + $0x924] sm:$0xf]  ;;  %v7922_v56 = vld [vmem:[%s9707_s30 + $0x928] sm:$0xf0]  ;;  %v7861_v13 = vor.u32 %v8629_v51, %v7858_v52 }
 0x2e4   : > { %6439 = vmatpush.bf16.msrb.mxu0 %v7469_v46  ;;  %v7946_v46 = vld [vmem:[%s9707_s30 + $0x958] sm:$0xf0]  ;;  %v7906_v34 = vld [vmem:[%s9707_s30 + $0x908] sm:$0xf0]  ;;  %v8701_v51 = vld [vmem:[%s9707_s30 + $0xae4] sm:$0xf] }
 0x2e5   : > { %6452 = vmatpush.bf16.msrb.mxu1 %v7533_v5  ;;  %v8617_v5 = vld [vmem:[%s9707_s30 + $0x844] sm:$0xf]  ;;  %v8146_v52 = vld [vmem:[%s9707_s30 + $0xae8] sm:$0xf0] }
 0x2e6   : > { %6465 = vmatpush.bf16.msrb.mxu2 %v7597_v6  ;;  %v7810_v6 = vld [vmem:[%s9707_s30 + $0x848] sm:$0xf0] }
 0x2e7   : > { %6478 = vmatpush.bf16.msrb.mxu3 %v7661_v22  ;;  %v7813_v21 = vor.u32 %v8617_v5, %v7810_v6  ;;  %v7714_v5 = vld [vmem:[%s9707_s30 + $0x788] sm:$0xf0] }
 0x2e8   : > { %6440 = vmatpush.bf16.msrb.mxu0 %v7461_v26  ;;  %v6234_v8 = vpop.f32.mrf.mxu0  ;;  %v8615_v26 = vld [vmem:[%s9707_s30 + $0x834] sm:$0xf] }
 0x2e9   : > { %6453 = vmatpush.bf16.msrb.mxu1 %v7525_v39  ;;  %v6235_v16 = vadd.f32 %v6234_v8, %v10460_v10  ;;  %v6247_v42 = vpop.f32.mrf.mxu1  ;;  %v7941_v39 = vor.u32 %v8649_v11, %v7938_v14  ;;  %v7741_v10 = vor.u32 %v8599_v37, %v7738_v23  ;;  %v8625_v8 = vld [vmem:[%s9707_s30 + $0x884] sm:$0xf]  ;;  %v8671_v11 = vld [vmem:[%s9707_s30 + $0x9f4] sm:$0xf]  ;;  %v8026_v14 = vld [vmem:[%s9707_s30 + $0x9f8] sm:$0xf0]  ;;  %v7717_v23 = vor.u32 %v8593_v28, %v7714_v5 }
 0x2ea   : > { %6466 = vmatpush.bf16.msrb.mxu2 %v7589_v36  ;;  %v8647_v36 = vld [vmem:[%s9707_s30 + $0x934] sm:$0xf]  ;;  %v8130_v28 = vld [vmem:[%s9707_s30 + $0xac8] sm:$0xf0] }
 0x2eb   : > { %6479 = vmatpush.bf16.msrb.mxu3 %v7653_v48  ;;  %6441 = vmatmul.bf16.vlgmr.msrb.gmra.mxu0 %v9951_v31  ;;  %v8651_v31 = vld [vmem:[%s9707_s30 + $0x954] sm:$0xf]  ;;  %v6248_v35 = vadd.f32 %v6247_v42, %v6235_v16  ;;  %v8613_v48 = vld [vmem:[%s9707_s30 + $0x824] sm:$0xf]  ;;  %v8090_v42 = vld [vmem:[%s9707_s30 + $0xa78] sm:$0xf0] }
 0x2ec   : > { %6485 = vmatpush.bf16.msra.mxu0 %v7773_v40  ;;  %6454 = vmatmul.bf16.vlgmr.msrb.gmra.mxu1 %v10008_v58  ;;  %v8633_v58 = vld [vmem:[%s9707_s30 + $0x8c4] sm:$0xf]  ;;  %v7930_v40 = vld [vmem:[%s9707_s30 + $0x938] sm:$0xf0]  ;;  %v7797_v63 = vor.u32 %v8613_v48, %v7794_v38  ;;  %v8703_v37 = vld [vmem:[%s9707_s30 + $0xaf4] sm:$0xf] }
 0x2ed   : > { %6498 = vmatpush.bf16.msra.mxu1 %v7837_v41  ;;  %6467 = vmatmul.bf16.vlgmr.msrb.gmra.mxu2 %v10012_v60  ;;  %v7821_v60 = vor.u32 %v8619_v9, %v7818_v30  ;;  %v7877_v22 = vor.u32 %v8633_v58, %v7874_v7  ;;  %v7805_v41 = vor.u32 %v8615_v26, %v7802_v33  ;;  %v8595_v9 = vld [vmem:[%s9707_s30 + $0x794] sm:$0xf]  ;;  %v7722_v30 = vld [vmem:[%s9707_s30 + $0x798] sm:$0xf0]  ;;  %v8609_v7 = vld [vmem:[%s9707_s30 + $0x804] sm:$0xf] }
 0x2ee   : > { %6511 = vmatpush.bf16.msra.mxu2 %v7901_v45  ;;  %6480 = vmatmul.bf16.vlgmr.msrb.gmra.mxu3 %v10010_v59  ;;  %v7949_v59 = vor.u32 %v8651_v31, %v7946_v46  ;;  %v7730_v45 = vld [vmem:[%s9707_s30 + $0x7a8] sm:$0xf0]  ;;  %v7933_v53 = vor.u32 %v8647_v36, %v7930_v40  ;;  %v7850_v31 = vld [vmem:[%s9707_s30 + $0x898] sm:$0xf0]  ;;  %v7925_v46 = vor.u32 %v8645_v55, %v7922_v56  ;;  %v8641_v33 = vld [vmem:[%s9707_s30 + $0x904] sm:$0xf] }
 0x2ef   : > { %6524 = vmatpush.bf16.msra.mxu3 %v7965_v15  ;;  %v8154_v26 = vld [vmem:[%s9707_s30 + $0xaf8] sm:$0xf0]  ;;  %v8719_v40 = vld [vmem:[%s9707_s30 + $0xb74] sm:$0xf]  ;;  %v8018_v48 = vld [vmem:[%s9707_s30 + $0x9e8] sm:$0xf0]  ;;  %v8149_v56 = vor.u32 %v8701_v51, %v8146_v52 }
 0x2f0   : > { %6486 = vmatpush.bf16.msra.mxu0 %v7765_v54  ;;  %v6260_v49 = vpop.f32.mrf.mxu2  ;;  %v7733_v54 = vor.u32 %v8597_v44, %v7730_v45  ;;  %v7909_v44 = vor.u32 %v8641_v33, %v7906_v34  ;;  %v8669_v45 = vld [vmem:[%s9707_s30 + $0x9e4] sm:$0xf]  ;;  %v8082_v38 = vld [vmem:[%s9707_s30 + $0xa68] sm:$0xf0]  ;;  %v8711_v34 = vld [vmem:[%s9707_s30 + $0xb34] sm:$0xf] }
 0x2f1   : > { %6499 = vmatpush.bf16.msra.mxu1 %v7829_v57  ;;  %v6261_v50 = vadd.f32 %v6260_v49, %v6248_v35  ;;  %v6273_v15 = vpop.f32.mrf.mxu3  ;;  %v6236_v57 = vpop.f32.mrf.mxu0  ;;  %v8685_v49 = vld [vmem:[%s9707_s30 + $0xa64] sm:$0xf]  ;;  %v8178_v52 = vld [vmem:[%s9707_s30 + $0xb28] sm:$0xf0] }
 0x2f2   : > { %6512 = vmatpush.bf16.msra.mxu2 %v7893_v62  ;;  %v6249_v1 = vpop.f32.mrf.mxu1  ;;  %v8085_v55 = vor.u32 %v8685_v49, %v8082_v38  ;;  %v8667_v57 = vld [vmem:[%s9707_s30 + $0x9d4] sm:$0xf]  ;;  %v8709_v51 = vld [vmem:[%s9707_s30 + $0xb24] sm:$0xf] }
 0x2f3   : > { %6525 = vmatpush.bf16.msra.mxu3 %v7957_v2  ;;  %v10531_v62 = vadd.f32 %v6273_v15, %v6261_v50  ;;  %v7786_v2 = vld [vmem:[%s9707_s30 + $0x818] sm:$0xf0]  ;;  %v8717_v15 = vld [vmem:[%s9707_s30 + $0xb64] sm:$0xf] }
 0x2f4   : > { %6487 = vmatpush.bf16.msra.mxu0 %v7757_v3  ;;  %v8627_v3 = vld [vmem:[%s9707_s30 + $0x894] sm:$0xf]  ;;  %v7789_v6 = vor.u32 %v8611_v0, %v7786_v2  ;;  %v8138_v0 = vld [vmem:[%s9707_s30 + $0xad8] sm:$0xf0] }
 0x2f5   : > { %6500 = vmatpush.bf16.msra.mxu1 %v7821_v60  ;;  %v8643_v60 = vld [vmem:[%s9707_s30 + $0x914] sm:$0xf]  ;;  %v7853_v58 = vor.u32 %v8627_v3, %v7850_v31  ;;  %v8202_v3 = vld [vmem:[%s9707_s30 + $0xb58] sm:$0xf0] }
 0x2f6   : > { %6513 = vmatpush.bf16.msra.mxu2 %v7885_v27  ;;  %v7725_v27 = vor.u32 %v8595_v9, %v7722_v30  ;;  %v8074_v9 = vld [vmem:[%s9707_s30 + $0xa58] sm:$0xf0]  ;;  %v8699_v30 = vld [vmem:[%s9707_s30 + $0xad4] sm:$0xf] }
 0x2f7   : > { %6526 = vmatpush.bf16.msra.mxu3 %v7949_v59  ;;  %v7778_v59 = vld [vmem:[%s9707_s30 + $0x808] sm:$0xf0]  ;;  %v8141_v31 = vor.u32 %v8699_v30, %v8138_v0  ;;  %v8691_v30 = vld [vmem:[%s9707_s30 + $0xa94] sm:$0xf]  ;;  %v8106_v0 = vld [vmem:[%s9707_s30 + $0xa98] sm:$0xf0] }
 0x2f8   : > { %6488 = vmatpush.bf16.msra.mxu0 %v7749_v12  ;;  %v7842_v12 = vld [vmem:[%s9707_s30 + $0x888] sm:$0xf0]  ;;  %v6262_v16 = vpop.f32.mrf.mxu2  ;;  %v7781_v35 = vor.u32 %v8609_v7, %v7778_v59  ;;  %v8795_v59 = vld [vmem:[%s10147_s18] sm:$0x3] }
 0x2f9   : > { %6501 = vmatpush.bf16.msra.mxu1 %v7813_v21  ;;  %v7917_v21 = vor.u32 %v8643_v60, %v7914_v4  ;;  %v6275_v47 = vpop.f32.mrf.mxu3  ;;  %v8002_v60 = vld [vmem:[%s9707_s30 + $0x9c8] sm:$0xf0]  ;;  %v8663_v16 = vld [vmem:[%s9707_s30 + $0x9b4] sm:$0xf] }
 0x2fa   : > { %6514 = vmatpush.bf16.msra.mxu2 %v7877_v22  ;;  %v8687_v22 = vld [vmem:[%s9707_s30 + $0xa74] sm:$0xf]  ;;  %v8066_v4 = vld [vmem:[%s9707_s30 + $0xa48] sm:$0xf0]  ;;  %v8186_v47 = vld [vmem:[%s9707_s30 + $0xb38] sm:$0xf0] }
 0x2fb   : > { %6527 = vmatpush.bf16.msra.mxu3 %v7941_v39  ;;  %v7845_v39 = vor.u32 %v8625_v8, %v7842_v12  ;;  %v8093_v36 = vor.u32 %v8687_v22, %v8090_v42  ;;  %v8194_v7 = vld [vmem:[%s9707_s30 + $0xb48] sm:$0xf0]  ;;  %v3904_v8 = vperm.slane %v8795_v59, 1  ;;  %v8679_v22 = vld [vmem:[%s9707_s30 + $0xa34] sm:$0xf] }
 0x2fc   : > { %6489 = vmatpush.bf16.msra.mxu0 %v7741_v10  ;;  %v8029_v10 = vor.u32 %v8671_v11, %v8026_v14  ;;  %v8346_v59 = vld [vmem:[%s9707_s30 + $0xc78] sm:$0xf0] }
 0x2fd   : > { %6502 = vmatpush.bf16.msra.mxu1 %v7805_v41  ;;  %v8218_v41 = vld [vmem:[%s9707_s30 + $0xb78] sm:$0xf0] }
 0x2fe   : > { %6515 = vmatpush.bf16.msra.mxu2 %v7869_v43  ;;  %v8157_v43 = vor.u32 %v8703_v37, %v8154_v26  ;;  %v8221_v50 = vor.u32 %v8719_v40, %v8218_v41  ;;  %v8058_v37 = vld [vmem:[%s9707_s30 + $0xa38] sm:$0xf0]  ;;  %v7986_v40 = vld [vmem:[%s9707_s30 + $0x9a8] sm:$0xf0]  ;;  %v8677_v41 = vld [vmem:[%s9707_s30 + $0xa24] sm:$0xf] }
 0x2ff   : > { %6528 = vmatpush.bf16.msra.mxu3 %v7933_v53  ;;  %v8021_v53 = vor.u32 %v8669_v45, %v8018_v48  ;;  %v8122_v26 = vld [vmem:[%s9707_s30 + $0xab8] sm:$0xf0]  ;;  %v8114_v45 = vld [vmem:[%s9707_s30 + $0xaa8] sm:$0xf0]  ;;  %v8189_v48 = vor.u32 %v8711_v34, %v8186_v47  ;;  %v8749_v34 = vld [vmem:[%s9707_s30 + $0xc64] sm:$0xf] }
 0x300   : > { %6490 = vmatpush.bf16.msra.mxu0 %v7733_v54  ;;  %v8210_v54 = vld [vmem:[%s9707_s30 + $0xb68] sm:$0xf0] }
 0x301   : > { %6503 = vmatpush.bf16.msra.mxu1 %v7797_v63  ;;  %v8010_v63 = vld [vmem:[%s9707_s30 + $0x9d8] sm:$0xf0]  ;;  %v8213_v1 = vor.u32 %v8717_v15, %v8210_v54  ;;  %v8338_v47 = vld [vmem:[%s9707_s30 + $0xc68] sm:$0xf0] }
 0x302   : > { %6516 = vmatpush.bf16.msra.mxu2 %v7861_v13  ;;  %v8683_v13 = vld [vmem:[%s9707_s30 + $0xa54] sm:$0xf]  ;;  %v8013_v2 = vor.u32 %v8667_v57, %v8010_v63 }
 0x303   : > { %6529 = vmatpush.bf16.msra.mxu3 %v7925_v46  ;;  %v8665_v46 = vld [vmem:[%s9707_s30 + $0x9c4] sm:$0xf]  ;;  %v8675_v57 = vld [vmem:[%s9707_s30 + $0xa14] sm:$0xf] }
 0x304   : > { %6491 = vmatpush.bf16.msra.mxu0 %v7725_v27  ;;  %v8681_v27 = vld [vmem:[%s9707_s30 + $0xa44] sm:$0xf] }
 0x305   : > { %6504 = vmatpush.bf16.msra.mxu1 %v7789_v6  ;;  %v8005_v6 = vor.u32 %v8665_v46, %v8002_v60  ;;  %v8069_v11 = vor.u32 %v8681_v27, %v8066_v4  ;;  %v8109_v60 = vor.u32 %v8691_v30, %v8106_v0  ;;  %v7970_v27 = vld [vmem:[%s9707_s30 + $0x988] sm:$0xf0]  ;;  %v8673_v4 = vld [vmem:[%s9707_s30 + $0xa04] sm:$0xf] }
 0x306   : > { %6517 = vmatpush.bf16.msra.mxu2 %v7853_v58  ;;  %v8713_v58 = vld [vmem:[%s9707_s30 + $0xb44] sm:$0xf] }
 0x307   : > { %6530 = vmatpush.bf16.msra.mxu3 %v7917_v21  ;;  %v7994_v21 = vld [vmem:[%s9707_s30 + $0x9b8] sm:$0xf0]  ;;  %v8197_v33 = vor.u32 %v8713_v58, %v8194_v7  ;;  %v8751_v7 = vld [vmem:[%s9707_s30 + $0xc74] sm:$0xf] }
 0x308   : > { %6492 = vmatpush.bf16.msra.mxu0 %v7717_v23  ;;  %v6286_v5 = vpop.f32.mrf.mxu0  ;;  %v8695_v23 = vld [vmem:[%s9707_s30 + $0xab4] sm:$0xf]  ;;  %v8282_v58 = vld [vmem:[%s9707_s30 + $0xbf8] sm:$0xf0] }
 0x309   : > { %6505 = vmatpush.bf16.msra.mxu1 %v7781_v35  ;;  %v10587_v12 = vadd.f32 %v6286_v5, %v10531_v62  ;;  %v6299_v42 = vpop.f32.mrf.mxu1  ;;  %v7997_v62 = vor.u32 %v8663_v16, %v7994_v21  ;;  %v8735_v5 = vld [vmem:[%s9707_s30 + $0xbf4] sm:$0xf]  ;;  %v8162_v16 = vld [vmem:[%s9707_s30 + $0xb08] sm:$0xf0] }
 0x30a   : > { %6518 = vmatpush.bf16.msra.mxu2 %v7845_v39  ;;  %v6300_v35 = vadd.f32 %v6299_v42, %v3904_v8  ;;  %v8061_v39 = vor.u32 %v8679_v22, %v8058_v37  ;;  %v8285_v37 = vor.u32 %v8735_v5, %v8282_v58  ;;  %v8226_v5 = vld [vmem:[%s9707_s30 + $0xb88] sm:$0xf0] }
 0x30b   : > { %6531 = vmatpush.bf16.msra.mxu3 %v7909_v44  ;;  %6493 = vmatmul.bf16.vlgmr.msra.gmra.mxu0 %v10014_v61  ;;  %v8715_v61 = vld [vmem:[%s9707_s30 + $0xb54] sm:$0xf]  ;;  %v8693_v44 = vld [vmem:[%s9707_s30 + $0xaa4] sm:$0xf]  ;;  %v8290_v58 = vld [vmem:[%s9707_s30 + $0xc08] sm:$0xf0] }
 0x30c   : > { %6537 = vmatpush.bf16.msrb.mxu0 %v8029_v10  ;;  %6506 = vmatmul.bf16.vlgmr.msra.gmra.mxu1 %v10101_v24  ;;  %v8697_v24 = vld [vmem:[%s9707_s30 + $0xac4] sm:$0xf]  ;;  %v8125_v10 = vor.u32 %v8695_v23, %v8122_v26  ;;  %v8117_v54 = vor.u32 %v8693_v44, %v8114_v45  ;;  %v8349_v23 = vor.u32 %v8751_v7, %v8346_v59  ;;  %v8258_v45 = vld [vmem:[%s9707_s30 + $0xbc8] sm:$0xf0] }
 0x30d   : > { %6550 = vmatpush.bf16.msrb.mxu1 %v8093_v36  ;;  %6519 = vmatmul.bf16.vlgmr.msra.gmra.mxu2 %v10105_v29  ;;  %v8077_v29 = vor.u32 %v8683_v13, %v8074_v9  ;;  %v8133_v14 = vor.u32 %v8697_v24, %v8130_v28  ;;  %v8661_v36 = vld [vmem:[%s9707_s30 + $0x9a4] sm:$0xf]  ;;  %v8042_v9 = vld [vmem:[%s9707_s30 + $0xa18] sm:$0xf0]  ;;  %v8034_v24 = vld [vmem:[%s9707_s30 + $0xa08] sm:$0xf0] }
 0x30e   : > { %6563 = vmatpush.bf16.msrb.mxu2 %v8157_v43  ;;  %6532 = vmatmul.bf16.vlgmr.msra.gmra.mxu3 %v10103_v25  ;;  %v8205_v25 = vor.u32 %v8715_v61, %v8202_v3  ;;  %v8050_v43 = vld [vmem:[%s9707_s30 + $0xa28] sm:$0xf0]  ;;  %v7989_v38 = vor.u32 %v8661_v36, %v7986_v40  ;;  %v8707_v3 = vld [vmem:[%s9707_s30 + $0xb14] sm:$0xf]  ;;  %v8045_v46 = vor.u32 %v8675_v57, %v8042_v9  ;;  %v8689_v28 = vld [vmem:[%s9707_s30 + $0xa84] sm:$0xf] }
 0x30f   : > { %6576 = vmatpush.bf16.msrb.mxu3 %v8221_v50  ;;  %v8053_v15 = vor.u32 %v8677_v41, %v8050_v43  ;;  %v8037_v21 = vor.u32 %v8673_v4, %v8034_v24  ;;  %v8266_v36 = vld [vmem:[%s9707_s30 + $0xbd8] sm:$0xf0]  ;;  %v8747_v40 = vld [vmem:[%s9707_s30 + $0xc54] sm:$0xf]  ;;  %v8729_v44 = vld [vmem:[%s9707_s30 + $0xbc4] sm:$0xf] }
 0x310   : > { %6538 = vmatpush.bf16.msrb.mxu0 %v8021_v53  ;;  %v6312_v49 = vpop.f32.mrf.mxu2  ;;  %v6288_v53 = vpop.f32.mrf.mxu0  ;;  %v8330_v41 = vld [vmem:[%s9707_s30 + $0xc58] sm:$0xf0]  ;;  %v8725_v57 = vld [vmem:[%s9707_s30 + $0xba4] sm:$0xf]  ;;  %v8306_v9 = vld [vmem:[%s9707_s30 + $0xc28] sm:$0xf0] }
 0x311   : > { %6551 = vmatpush.bf16.msrb.mxu1 %v8085_v55  ;;  %v6313_v50 = vadd.f32 %v6312_v49, %v6300_v35  ;;  %v8659_v55 = vld [vmem:[%s9707_s30 + $0x994] sm:$0xf]  ;;  %v6325_v63 = vpop.f32.mrf.mxu3  ;;  %v6301_v13 = vpop.f32.mrf.mxu1  ;;  %v8322_v49 = vld [vmem:[%s9707_s30 + $0xc48] sm:$0xf0]  ;;  %v8298_v4 = vld [vmem:[%s9707_s30 + $0xc18] sm:$0xf0] }
 0x312   : > { %6564 = vmatpush.bf16.msrb.mxu2 %v8149_v56  ;;  %v7978_v56 = vld [vmem:[%s9707_s30 + $0x998] sm:$0xf0]  ;;  %v8743_v53 = vld [vmem:[%s9707_s30 + $0xc34] sm:$0xf]  ;;  %v8741_v13 = vld [vmem:[%s9707_s30 + $0xc24] sm:$0xf] }
 0x313   : > { %6577 = vmatpush.bf16.msrb.mxu3 %v8213_v1  ;;  %v10611_v1 = vadd.f32 %v6325_v63, %v6313_v50  ;;  %v7981_v61 = vor.u32 %v8659_v55, %v7978_v56  ;;  %v8242_v63 = vld [vmem:[%s9707_s30 + $0xba8] sm:$0xf0] }
 0x314   : > { %6539 = vmatpush.bf16.msrb.mxu0 %v8013_v2  ;;  %v8181_v2 = vor.u32 %v8709_v51, %v8178_v52  ;;  %v8727_v51 = vld [vmem:[%s9707_s30 + $0xbb4] sm:$0xf]  ;;  %v8250_v52 = vld [vmem:[%s9707_s30 + $0xbb8] sm:$0xf0] }
 0x315   : > { %6552 = vmatpush.bf16.msrb.mxu1 %v8077_v29  ;;  %v8170_v29 = vld [vmem:[%s9707_s30 + $0xb18] sm:$0xf0]  ;;  %v8253_v55 = vor.u32 %v8727_v51, %v8250_v52 }
 0x316   : > { %6565 = vmatpush.bf16.msrb.mxu2 %v8141_v31  ;;  %v8657_v31 = vld [vmem:[%s9707_s30 + $0x984] sm:$0xf] }
 0x317   : > { %6578 = vmatpush.bf16.msrb.mxu3 %v8205_v25  ;;  %v8098_v25 = vld [vmem:[%s9707_s30 + $0xa88] sm:$0xf0] }
 0x318   : > { %6540 = vmatpush.bf16.msrb.mxu0 %v8005_v6  ;;  %v8173_v6 = vor.u32 %v8707_v3, %v8170_v29  ;;  %v6314_v8 = vpop.f32.mrf.mxu2  ;;  %v8101_v22 = vor.u32 %v8689_v28, %v8098_v25  ;;  %v8723_v29 = vld [vmem:[%s9707_s30 + $0xb94] sm:$0xf]  ;;  %v8721_v25 = vld [vmem:[%s9707_s30 + $0xb84] sm:$0xf] }
 0x319   : > { %6553 = vmatpush.bf16.msrb.mxu1 %v8069_v11  ;;  %v7973_v11 = vor.u32 %v8657_v31, %v7970_v27  ;;  %v6327_v42 = vpop.f32.mrf.mxu3  ;;  %v8234_v31 = vld [vmem:[%s9707_s30 + $0xb98] sm:$0xf0]  ;;  %v8739_v27 = vld [vmem:[%s9707_s30 + $0xc14] sm:$0xf]  ;;  %v8229_v59 = vor.u32 %v8721_v25, %v8226_v5 }
 0x31a   : > { %6566 = vmatpush.bf16.msrb.mxu2 %v8133_v14  ;;  %v8705_v14 = vld [vmem:[%s9707_s30 + $0xb04] sm:$0xf]  ;;  %v8237_v24 = vor.u32 %v8723_v29, %v8234_v31  ;;  %v8301_v28 = vor.u32 %v8739_v27, %v8298_v4 }
 0x31b   : > { %6579 = vmatpush.bf16.msrb.mxu3 %v8197_v33  ;;  %v8165_v26 = vor.u32 %v8705_v14, %v8162_v16  ;;  %v8733_v33 = vld [vmem:[%s9707_s30 + $0xbe4] sm:$0xf]  ;;  %v8796_v14 = vld [vmem:[#allocation1] sm:$0xff] }
 0x31c   : > { %6541 = vmatpush.bf16.msrb.mxu0 %v7997_v62  ;;  %v8274_v62 = vld [vmem:[%s9707_s30 + $0xbe8] sm:$0xf0] }
 0x31d   : > { %6554 = vmatpush.bf16.msrb.mxu1 %v8061_v39  ;;  %v8277_v35 = vor.u32 %v8733_v33, %v8274_v62  ;;  %v8341_v39 = vor.u32 %v8749_v34, %v8338_v47 }
 0x31e   : > { %6567 = vmatpush.bf16.msrb.mxu2 %v8125_v10  ;;  %v8731_v10 = vld [vmem:[%s9707_s30 + $0xbd4] sm:$0xf] }
 0x31f   : > { %6580 = vmatpush.bf16.msrb.mxu3 %v8189_v48  ;;  %v8269_v43 = vor.u32 %v8731_v10, %v8266_v36  ;;  %v8745_v48 = vld [vmem:[%s9707_s30 + $0xc44] sm:$0xf] }
 0x320   : > { %6542 = vmatpush.bf16.msrb.mxu0 %v7989_v38 }
 0x321   : > { %6555 = vmatpush.bf16.msrb.mxu1 %v8053_v15  ;;  %v8314_v15 = vld [vmem:[%s9707_s30 + $0xc38] sm:$0xf0] }
 0x322   : > { %6568 = vmatpush.bf16.msrb.mxu2 %v8117_v54  ;;  %v8317_v56 = vor.u32 %v8743_v53, %v8314_v15 }
 0x323   : > { %6581 = vmatpush.bf16.msrb.mxu3 %v8181_v2  ;;  %v8245_v2 = vor.u32 %v8725_v57, %v8242_v63 }
 0x324   : > { %6543 = vmatpush.bf16.msrb.mxu0 %v7981_v61  ;;  %v8309_v61 = vor.u32 %v8741_v13, %v8306_v9 }
 0x325   : > { %6556 = vmatpush.bf16.msrb.mxu1 %v8045_v46 }
 0x326   : > { %6569 = vmatpush.bf16.msrb.mxu2 %v8109_v60 }
 0x327   : > { %6582 = vmatpush.bf16.msrb.mxu3 %v8173_v6  ;;  %v8737_v6 = vld [vmem:[%s9707_s30 + $0xc04] sm:$0xf] }
 0x328   : > { %6544 = vmatpush.bf16.msrb.mxu0 %v7973_v11  ;;  %v6338_v38 = vpop.f32.mrf.mxu0  ;;  %v8293_v8 = vor.u32 %v8737_v6, %v8290_v58 }
 0x329   : > { %6557 = vmatpush.bf16.msrb.mxu1 %v8037_v21  ;;  %v6351_v50 = vpop.f32.mrf.mxu1 }
 0x32a   : > { %6570 = vmatpush.bf16.msrb.mxu2 %v8101_v22 }
 0x32b   : > { %6583 = vmatpush.bf16.msrb.mxu3 %v8165_v26  ;;  %6545 = vmatmul.bf16.vlgmr.msrb.gmra.mxu0 %v10107_v32  ;;  %v8333_v32 = vor.u32 %v8747_v40, %v8330_v41 }
 0x32c   : > { %6589 = vmatpush.bf16.msra.mxu0 %v8285_v37  ;;  %6558 = vmatmul.bf16.vlgmr.msrb.gmra.mxu1 %v10183_v17  ;;  %v8261_v17 = vor.u32 %v8729_v44, %v8258_v45 }
 0x32d   : > { %6602 = vmatpush.bf16.msra.mxu1 %v8349_v23  ;;  %6571 = vmatmul.bf16.vlgmr.msrb.gmra.mxu2 %v10187_v19  ;;  %v6339_v19 = vadd.f32 %v6338_v38, %v10611_v1 }
 0x32e   : > { %6584 = vmatmul.bf16.vlgmr.msrb.gmra.mxu3 %v10185_v18  ;;  %v8325_v18 = vor.u32 %v8745_v48, %v8322_v49 }
 0x32f   : > { %v6352_v54 = vadd.f32 %v6351_v50, %v6339_v19 }
 0x330   : > { %6590 = vmatpush.bf16.msra.mxu0 %v8277_v35  ;;  %v6364_v30 = vpop.f32.mrf.mxu2  ;;  %v6340_v1 = vpop.f32.mrf.mxu0 }
 0x331   : > { %6603 = vmatpush.bf16.msra.mxu1 %v8341_v39  ;;  %v6365_v0 = vadd.f32 %v6364_v30, %v6352_v54  ;;  %v6377_v3 = vpop.f32.mrf.mxu3  ;;  %v6353_v46 = vpop.f32.mrf.mxu1 }
 0x333   : > { %v6378_v60 = vadd.f32 %v6377_v3, %v6365_v0 }
 0x334   : > { %6591 = vmatpush.bf16.msra.mxu0 %v8269_v43 }
 0x335   : > { %6604 = vmatpush.bf16.msra.mxu1 %v8333_v32 }
 0x338   : > { %6592 = vmatpush.bf16.msra.mxu0 %v8261_v17  ;;  %v6366_v7 = vpop.f32.mrf.mxu2 }
 0x339   : > { %6605 = vmatpush.bf16.msra.mxu1 %v8325_v18  ;;  %v6379_v11 = vpop.f32.mrf.mxu3 }
 0x33c   : > { %6593 = vmatpush.bf16.msra.mxu0 %v8253_v55 }
 0x33d   : > { %6606 = vmatpush.bf16.msra.mxu1 %v8317_v56 }
 0x340   : > { %6594 = vmatpush.bf16.msra.mxu0 %v8245_v2 }
 0x341   : > { %6607 = vmatpush.bf16.msra.mxu1 %v8309_v61 }
 0x344   : > { %6595 = vmatpush.bf16.msra.mxu0 %v8237_v24  ;;  %v6615_v24 = vmax.f32 %v10587_v12, 0.0 }
 0x345   : > { %6608 = vmatpush.bf16.msra.mxu1 %v8301_v28 }
 0x348   : > { %6596 = vmatpush.bf16.msra.mxu0 %v8229_v59  ;;  %v6390_v16 = vpop.f32.mrf.mxu0 }
 0x349   : > { %6609 = vmatpush.bf16.msra.mxu1 %v8293_v8  ;;  %v6391_v21 = vadd.f32 %v6390_v16, %v6378_v60  ;;  %v6403_v22 = vpop.f32.mrf.mxu1 }
 0x34b   : > { %6597 = vmatmul.bf16.vlgmr.msra.gmra.mxu0 %v10189_v20  ;;  %v6404_v42 = vadd.f32 %v6403_v22, %v6391_v21 }
 0x34c   : > { %6610 = vmatmul.bf16.vlgmr.msra.gmra.mxu1 %v8796_v14 }
 0x350   : > { %v6416_v37 = vpop.f32.mrf.mxu2  ;;  %v6392_v33 = vpop.f32.mrf.mxu0 }
 0x351   : > { %v6417_v23 = vadd.f32 %v6416_v37, %v6404_v42  ;;  %v6429_v26 = vpop.f32.mrf.mxu3  ;;  %v6405_v34 = vpop.f32.mrf.mxu1 }
 0x353   : > { %v6430_v62 = vadd.f32 %v6429_v26, %v6417_v23 }
 0x358   : > { %v6418_v47 = vpop.f32.mrf.mxu2 }
 0x359   : > { %v6431_v35 = vpop.f32.mrf.mxu3 }
 0x368   : > { %v6442_v39 = vpop.f32.mrf.mxu0 }
 0x369   : > { %v6443_v10 = vadd.f32 %v6442_v39, %v6430_v62  ;;  %v6455_v36 = vpop.f32.mrf.mxu1 }
 0x36b   : > { %v6456_v40 = vadd.f32 %v6455_v36, %v6443_v10 }
 0x370   : > { %v6468_v41 = vpop.f32.mrf.mxu2  ;;  %v6444_v43 = vpop.f32.mrf.mxu0 }
 0x371   : > { %v6481_v20 = vpop.f32.mrf.mxu3  ;;  %v6457_v32 = vpop.f32.mrf.mxu1  ;;  %v6469_v53 = vadd.f32 %v6468_v41, %v6456_v40 }
 0x373   : > { %v6482_v54 = vadd.f32 %v6481_v20, %v6469_v53 }
 0x378   : > { %v6470_v44 = vpop.f32.mrf.mxu2 }
 0x379   : > { %v6483_v45 = vpop.f32.mrf.mxu3 }
 0x388   : > { %v6494_v48 = vpop.f32.mrf.mxu0 }
 0x389   : > { %v6507_v49 = vpop.f32.mrf.mxu1  ;;  %v6495_v55 = vadd.f32 %v6494_v48, %v6482_v54 }
 0x38b   : > { %v6508_v9 = vadd.f32 %v6507_v49, %v6495_v55 }
 0x390   : > { %v6520_v38 = vpop.f32.mrf.mxu2  ;;  %v6496_v19 = vpop.f32.mrf.mxu0 }
 0x391   : > { %v6533_v17 = vpop.f32.mrf.mxu3  ;;  %v6509_v18 = vpop.f32.mrf.mxu1  ;;  %v6521_v30 = vadd.f32 %v6520_v38, %v6508_v9 }
 0x393   : > { %v6534_v1 = vadd.f32 %v6533_v17, %v6521_v30 }
 0x398   : > { %v6522_v51 = vpop.f32.mrf.mxu2 }
 0x399   : > { %v6535_v52 = vpop.f32.mrf.mxu3 }
 0x3a8   : > { %v6546_v50 = vpop.f32.mrf.mxu0 }
 0x3a9   : > { %v6559_v15 = vpop.f32.mrf.mxu1  ;;  %v6547_v61 = vadd.f32 %v6546_v50, %v6534_v1 }
 0x3ab   : > { %v6560_v3 = vadd.f32 %v6559_v15, %v6547_v61 }
 0x3b0   : > { %v6572_v56 = vpop.f32.mrf.mxu2  ;;  %v6548_v57 = vpop.f32.mrf.mxu0 }
 0x3b1   : > { %v6585_v63 = vpop.f32.mrf.mxu3  ;;  %v6561_v13 = vpop.f32.mrf.mxu1  ;;  %v6573_v29 = vadd.f32 %v6572_v56, %v6560_v3 }
 0x3b3   : > { %v6586_v31 = vadd.f32 %v6585_v63, %v6573_v29 }
 0x3b8   : > { %v6574_v0 = vpop.f32.mrf.mxu2 }
 0x3b9   : > { %v6587_v2 = vpop.f32.mrf.mxu3 }
 0x3c8   : > { %v6598_v46 = vpop.f32.mrf.mxu0 }
 0x3c9   : > { %v6599_v60 = vadd.f32 %v6598_v46, %v6586_v31  ;;  %v6611_v27 = vpop.f32.mrf.mxu1 }
 0x3cb   : > { %v6612_v4 = vadd.f32 %v6611_v27, %v6599_v60 }
 0x3cd   : > { %v6616_v28 = vmax.f32 %v6612_v4, 0.0 }
 0x3cf   : > { %v6617_v25 = vpack.c.bf16 %v6616_v28, %v6615_v24 }
 0x3d0   : > { %v6600_v5 = vpop.f32.mrf.mxu0 }
 0x3d1   : > { %v6619_v6 = vrot.slane %v6617_v25, 3  ;;  %v6613_v58 = vpop.f32.mrf.mxu1 }
 0x3d3   : > { %v6623_v7 = vsel %vm6620_vm0, %v6617_v25, %v6619_v6 }
 0x3d4   : > { %6625 = vst [vmem:[%s3495_s24] sm:$0x3] %v6623_v7 }
 0x3d5 PF: > { %s13_s16 = sadd.s32 1, %s8835_s16   ;;  %s10686_s12 = smov %s8823_s13 }
 0x3d6   : > { %p10_p10 = scmp.ge.s32.totalorder %s13_s16, 4   ;;  %s10687_s13 = smov %s8892_s20 }
 0x3d7   : > { %s10688_s14 = smov %s8831_s15  ;;  %s10689_s15 = smov %s10691_s17 }
 0x3d8   :  { %12 = sbr.rel (!%p10_p10) target bundleno = 3 (0x3), region = 131 }

</bundles_post_ra>
